<compile_context>
chip_gen: v7x
topology: tpu7x:2x2x1
jax: 0.10.0
libtpu: 0.0.40
codegen_flags: <defaults>
</compile_context>

<pallas_src>
import functools

import jax
import jax.numpy as jnp
import numpy as np
from jax import lax
from jax.experimental import pallas as pl
from jax.experimental.pallas import tpu as pltpu

EPS = 1e-5
LANE = 128                      # TPU vreg lane width


# ---------------------------------------------------------------------------
# generation-aware budgets
# ---------------------------------------------------------------------------
@functools.lru_cache(maxsize=1)
def _budgets():
    """(per-block VMEM budget for tile picking, scoped vmem_limit_bytes).

    v5e/v6e: 128 MiB physical VMEM -> large streaming tiles + 64 MiB scoped cap.
    v7x (64 MiB physical) or unknown/unavailable query -> conservative settings.
    """
    try:
        cap = int(getattr(pltpu.get_tpu_info(), "vmem_capacity_bytes", 0))
    except Exception:
        cap = 0
    if cap >= 100 * 1024 * 1024:                 # v5e / v6e
        return 12 * 1024 * 1024, 64 * 1024 * 1024
    return 4 * 1024 * 1024, 32 * 1024 * 1024     # v7x / unknown


# ---------------------------------------------------------------------------
# helpers
# ---------------------------------------------------------------------------
def _rup(c, m=LANE):
    return ((c + m - 1) // m) * m


def _pad_axis(x, axis, target):
    if x.shape[axis] == target:
        return x
    pad = [(0, 0)] * x.ndim
    pad[axis] = (0, target - x.shape[axis])
    return jnp.pad(x, pad)


def _pick_h_tile(h, w, c, itemsize, budget_bytes):
    """Largest multiple-of-8 divisor of `h` whose blocks fit the VMEM budget."""
    if h % 8 != 0:
        # TODO(synk): pad H/W to sublane multiples and mask BN sums instead.
        return h
    best = 8
    t = 8
    while t <= h:
        if h % t == 0 and 6 * t * w * c * itemsize <= budget_bytes:
            best = t
        t += 8
    return best


def _stats_rows(acc, co):
    """Pack per-channel sum / sum-of-squares into an (8, co) slab (row0/row1)."""
    s = jnp.sum(acc, axis=0)
    ss = jnp.sum(acc * acc, axis=0)
    rows = lax.broadcasted_iota(jnp.int32, (8, co), 0)
    return jnp.where(rows == 0, s[None, :],
                     jnp.where(rows == 1, ss[None, :], 0.0))


def _bn_scale_shift(s, ss, count, gamma, beta):
    mean = s / count
    var = jnp.maximum(ss / count - mean * mean, 0.0)     # biased batch variance
    scale = gamma * lax.rsqrt(var + EPS)
    shift = beta - mean * scale
    return scale, shift


# ---------------------------------------------------------------------------
# Kernel 1: 1x1 conv (one MXU matmul).  Optionally applies the *producer's*
# BN+ReLU (scale/shift of the previous conv) to the loaded input tile first.
# Emits raw (pre-BN) output + per-block BN partial stats.  No bias (BN cancels).
# ---------------------------------------------------------------------------
def _conv1x1_kernel(x_ref, sc_ref, sh_ref, w_ref, y_ref, st_ref, *, bn_in):
    _, ht, w, ci = x_ref.shape
    co = w_ref.shape[1]
    xm = x_ref[...].reshape(ht * w, ci)
    if bn_in:
        xb = jnp.maximum(xm.astype(jnp.float32) * sc_ref[...] + sh_ref[...], 0.0)
        xm = xb.astype(w_ref.dtype)                 # keep the fast MXU path
    acc = jnp.dot(xm, w_ref[...], preferred_element_type=jnp.float32)
    y_ref[...] = acc.reshape(1, ht, w, co).astype(y_ref.dtype)
    st_ref[...] = _stats_rows(acc, co).reshape(1, 1, 8, co)


# ---------------------------------------------------------------------------
# Kernel 2: 3x3 conv (dilation d, stride 1) as 9 accumulated MXU matmuls.
# The producer's BN+ReLU is fused into the halo-scratch interior fill (the
# store doubles as the halo copy, so the BN apply costs no extra pass) and only
# the 2*d-wide frame of the scratch is zeroed each step.
# ---------------------------------------------------------------------------
def _conv3x3_kernel(x_ref, sc_ref, sh_ref, w_ref, y_ref, st_ref, xpad_ref, *, dil):
    _, h, w, ci = x_ref.shape
    co = w_ref.shape[1]
    d = dil

    xb = jnp.maximum(x_ref[0].astype(jnp.float32) * sc_ref[...] + sh_ref[...], 0.0)
    xpad_ref[pl.ds(d, h), pl.ds(d, w), :] = xb.astype(xpad_ref.dtype)

    z_row = jnp.zeros((d, w + 2 * d, ci), xpad_ref.dtype)
    z_col = jnp.zeros((h + 2 * d, d, ci), xpad_ref.dtype)
    xpad_ref[pl.ds(0, d), :, :] = z_row
    xpad_ref[pl.ds(h + d, d), :, :] = z_row
    xpad_ref[:, pl.ds(0, d), :] = z_col
    xpad_ref[:, pl.ds(w + d, d), :] = z_col

    acc = jnp.zeros((h * w, co), jnp.float32)
    for kh in range(3):
        for kw in range(3):
            win = xpad_ref[pl.ds(kh * d, h), pl.ds(kw * d, w), :]
            wt = w_ref[pl.ds((kh * 3 + kw) * ci, ci), :]
            acc = acc + jnp.dot(win.reshape(h * w, ci), wt,
                                preferred_element_type=jnp.float32)
    y_ref[...] = acc.reshape(1, h, w, co).astype(y_ref.dtype)
    st_ref[...] = _stats_rows(acc, co).reshape(1, 1, 8, co)


# ---------------------------------------------------------------------------
# Kernel 3: final streaming pass of a bottleneck:
#   out = ReLU( BN3(y3) + [BN_short(r) | x] )
# scale/shift are precomputed per-channel, so this is a pure HBM-bound stream.
# ---------------------------------------------------------------------------
def _bn_add_relu_kernel(y_ref, r_ref, scy_ref, shy_ref, scr_ref, shr_ref, o_ref,
                        *, res_affine):
    out = y_ref[...].astype(jnp.float32) * scy_ref[...] + shy_ref[...]
    r = r_ref[...].astype(jnp.float32)
    if res_affine:
        r = r * scr_ref[...] + shr_ref[...]
    o_ref[...] = jnp.maximum(out + r, 0.0).astype(o_ref.dtype)


# ---------------------------------------------------------------------------
# pallas_call wrappers
# ---------------------------------------------------------------------------
def _conv1x1(x, w, sc_in=None, sh_in=None):
    n, h, wd, ci = x.shape
    co = w.shape[1]
    budget, vmem_limit = _budgets()
    ht = _pick_h_tile(h, wd, max(ci, co), x.dtype.itemsize, budget)
    nh = h // ht
    bn_in = sc_in is not None
    if bn_in:
        sc_in = sc_in.reshape(1, ci).astype(jnp.float32)
        sh_in = sh_in.reshape(1, ci).astype(jnp.float32)
    else:
        sc_in = jnp.zeros((1, ci), jnp.float32)
        sh_in = jnp.zeros((1, ci), jnp.float32)
    y, st = pl.pallas_call(
        functools.partial(_conv1x1_kernel, bn_in=bn_in),
        out_shape=(jax.ShapeDtypeStruct((n, h, wd, co), x.dtype),
                   jax.ShapeDtypeStruct((n, nh, 8, co), jnp.float32)),
        grid=(n, nh),
        in_specs=[
            pl.BlockSpec((1, ht, wd, ci), lambda i, j: (i, j, 0, 0)),
            pl.BlockSpec((1, ci), lambda i, j: (0, 0)),
            pl.BlockSpec((1, ci), lambda i, j: (0, 0)),
            pl.BlockSpec((ci, co), lambda i, j: (0, 0)),
        ],
        out_specs=(
            pl.BlockSpec((1, ht, wd, co), lambda i, j: (i, j, 0, 0)),
            pl.BlockSpec((1, 1, 8, co), lambda i, j: (i, j, 0, 0)),
        ),
        compiler_params=pltpu.CompilerParams(
            dimension_semantics=("parallel", "parallel"),
            vmem_limit_bytes=vmem_limit),
    )(x, sc_in, sh_in, w)
    s = jnp.sum(st[:, :, 0, :], axis=(0, 1))
    ss = jnp.sum(st[:, :, 1, :], axis=(0, 1))
    return y, s, ss


def _conv3x3(x, sc_in, sh_in, w, dil):
    # TODO(synk): tile H with a +-dil halo for production-sized feature maps;
    # at these sizes the whole per-batch tile (plus the scratch) fits VMEM.
    n, h, wd, ci = x.shape
    co = w.shape[1]
    _, vmem_limit = _budgets()
    sc_in = sc_in.reshape(1, ci).astype(jnp.float32)
    sh_in = sh_in.reshape(1, ci).astype(jnp.float32)
    y, st = pl.pallas_call(
        functools.partial(_conv3x3_kernel, dil=dil),
        out_shape=(jax.ShapeDtypeStruct((n, h, wd, co), x.dtype),
                   jax.ShapeDtypeStruct((n, 1, 8, co), jnp.float32)),
        grid=(n,),
        in_specs=[
            pl.BlockSpec((1, h, wd, ci), lambda i: (i, 0, 0, 0)),
            pl.BlockSpec((1, ci), lambda i: (0, 0)),
            pl.BlockSpec((1, ci), lambda i: (0, 0)),
            pl.BlockSpec((9 * ci, co), lambda i: (0, 0)),
        ],
        out_specs=(
            pl.BlockSpec((1, h, wd, co), lambda i: (i, 0, 0, 0)),
            pl.BlockSpec((1, 1, 8, co), lambda i: (i, 0, 0, 0)),
        ),
        scratch_shapes=[pltpu.VMEM((h + 2 * dil, wd + 2 * dil, ci), x.dtype)],
        compiler_params=pltpu.CompilerParams(
            dimension_semantics=("parallel",),
            vmem_limit_bytes=vmem_limit),
    )(x, sc_in, sh_in, w)
    s = jnp.sum(st[:, :, 0, :], axis=(0, 1))
    ss = jnp.sum(st[:, :, 1, :], axis=(0, 1))
    return y, s, ss


def _bn_add_relu(y, res, sc_y, sh_y, sc_r, sh_r, res_affine):
    n, h, wd, c = y.shape
    budget, vmem_limit = _budgets()
    ht = _pick_h_tile(h, wd, c, y.dtype.itemsize, budget)
    nh = h // ht
    blk = pl.BlockSpec((1, ht, wd, c), lambda i, j: (i, j, 0, 0))
    vec = pl.BlockSpec((1, c), lambda i, j: (0, 0))
    if not res_affine:
        sc_r = jnp.zeros((c,), jnp.float32)
        sh_r = jnp.zeros((c,), jnp.float32)
    return pl.pallas_call(
        functools.partial(_bn_add_relu_kernel, res_affine=res_affine),
        out_shape=jax.ShapeDtypeStruct((n, h, wd, c), y.dtype),
        grid=(n, nh),
        in_specs=[blk, blk, vec, vec, vec, vec],
        out_specs=blk,
        compiler_params=pltpu.CompilerParams(
            dimension_semantics=("parallel", "parallel"),
            vmem_limit_bytes=vmem_limit),
    )(y, res,
      sc_y.reshape(1, c).astype(jnp.float32), sh_y.reshape(1, c).astype(jnp.float32),
      sc_r.reshape(1, c).astype(jnp.float32), sh_r.reshape(1, c).astype(jnp.float32))


# ---------------------------------------------------------------------------
# Bottleneck / ResBlock forward
# ---------------------------------------------------------------------------
def _bottleneck(x, blk, stride, dilation):
    n, h, wd, _ = x.shape

    # conv1 (1x1): raw output + stats.  Its BN+ReLU is applied by conv2.
    y1, s1, ss1 = _conv1x1(x, blk["conv1"]["w"])
    sc1, sh1 = _bn_scale_shift(s1, ss1, n * h * wd,
                               blk["conv1"]["gamma"], blk["conv1"]["beta"])

    # conv2 (3x3, dilation): applies BN1+ReLU to its input inside the kernel.
    y2, s2, ss2 = _conv3x3(y1, sc1, sh1, blk["conv2"]["w"], dilation)
    if stride > 1:
        # TODO(synk): fold the stride into the conv kernel (strided windows)
        # instead of dense compute + wrapper subsample + restats.
        y2 = y2[:, ::stride, ::stride, :]
        y2f = y2.astype(jnp.float32)
        s2 = jnp.sum(y2f, axis=(0, 1, 2))
        ss2 = jnp.sum(y2f * y2f, axis=(0, 1, 2))
    n2, h2, w2, _ = y2.shape
    sc2, sh2 = _bn_scale_shift(s2, ss2, n2 * h2 * w2,
                               blk["conv2"]["gamma"], blk["conv2"]["beta"])

    # conv3 (1x1): applies BN2+ReLU to its input inside the kernel.
    y3, s3, ss3 = _conv1x1(y2, blk["conv3"]["w"], sc2, sh2)
    sc3, sh3 = _bn_scale_shift(s3, ss3, n2 * h2 * w2,
                               blk["conv3"]["gamma"], blk["conv3"]["beta"])

    if "short" in blk:
        xs = x[:, ::stride, ::stride, :] if stride > 1 else x
        r, sr, ssr = _conv1x1(xs, blk["short"]["w"])
        scr, shr = _bn_scale_shift(sr, ssr, n2 * h2 * w2,
                                   blk["short"]["gamma"], blk["short"]["beta"])
        # BN3(y3) + BN_short(r) + ReLU fused in one streaming pass.
        return _bn_add_relu(y3, r, sc3, sh3, scr, shr, res_affine=True)
    # identity residual: BN3(y3) + x + ReLU
    return _bn_add_relu(y3, x, sc3, sh3, None, None, res_affine=False)


def resblock_forward(x_nchw, blocks, *, stride, dilation, out_channels):
    n_layers = len(blocks)
    cin = x_nchw.shape[1]
    sdt = blocks[0]["conv1"]["w"].dtype          # storage dtype (f32 or bf16)
    x = jnp.transpose(x_nchw, (0, 2, 3, 1))      # NCHW -> NHWC
    x = _pad_axis(x, 3, _rup(cin)).astype(sdt)   # pad channels to the lane width
    for i, blk in enumerate(blocks):
        layer_stride = 1 if i < n_layers - 1 else stride
        x = _bottleneck(x, blk, layer_stride, dilation)
    x = x[..., :out_channels].astype(jnp.float32)
    return jnp.transpose(x, (0, 3, 1, 2))        # back to NCHW


# ---------------------------------------------------------------------------
# Parameter construction (logical, PyTorch-like) and kernel packing
# ---------------------------------------------------------------------------
def _init_conv(key, cin, cout, k):
    kw, kb, kg, kbt = jax.random.split(key, 4)
    shape = (cin, cout) if k == 1 else (k, k, cin, cout)
    return {
        "w": 0.25 * jax.random.normal(kw, shape, jnp.float32),
        "b": 0.1 * jax.random.normal(kb, (cout,), jnp.float32),
        "gamma": 1.0 + 0.1 * jax.random.normal(kg, (cout,), jnp.float32),
        "beta": 0.1 * jax.random.normal(kbt, (cout,), jnp.float32),
    }


def init_resblock_params(key, n_layers, in_ch, mid_ch, out_ch, stride, dilation):
    del dilation  # does not affect parameter shapes
    blocks = []
    for i in range(n_layers):
        lin = in_ch if i == 0 else out_ch
        lstride = 1 if i < n_layers - 1 else stride
        key, k1, k2, k3, k4 = jax.random.split(key, 5)
        blk = {
            "conv1": _init_conv(k1, lin, mid_ch, 1),
            "conv2": _init_conv(k2, mid_ch, mid_ch, 3),
            "conv3": _init_conv(k3, mid_ch, out_ch, 1),
        }
        if lin != out_ch or lstride > 1:
            blk["short"] = _init_conv(k4, lin, out_ch, 1)
        blocks.append(blk)
    return blocks


def _pack_conv(p, sdt):
    # The conv bias is intentionally NOT packed: the per-call-batch BN that
    # immediately follows every conv cancels an additive per-channel constant
    # exactly, so the kernels skip the add (and its DMA) altogether.
    w = p["w"]
    if w.ndim == 2:                                        # 1x1: (cin, cout)
        cin, cout = w.shape
        cip, cop = _rup(cin), _rup(cout)
        wp = _pad_axis(_pad_axis(w, 0, cip), 1, cop).astype(sdt)
    else:                                                  # 3x3: (3, 3, cin, cout)
        _, _, cin, cout = w.shape
        cip, cop = _rup(cin), _rup(cout)
        wp = _pad_axis(_pad_axis(w, 2, cip), 3, cop)
        wp = wp.reshape(9 * cip, cop).astype(sdt)          # row = (kh*3+kw)*cip + ci
    return {
        "w": wp,
        # gamma/beta padded with 0 -> padded channels stay exactly 0 downstream.
        "gamma": _pad_axis(p["gamma"], 0, cop).astype(jnp.float32),
        "beta": _pad_axis(p["beta"], 0, cop).astype(jnp.float32),
    }


def pack_resblock_params(blocks, sdt):
    return [{name: _pack_conv(p, sdt) for name, p in blk.items()} for blk in blocks]


# ---------------------------------------------------------------------------
# Pure-JAX reference (for the correctness check) — includes the conv bias.
# ---------------------------------------------------------------------------
def _ref_conv_bn(x, p, k, stride, padding, dilation, act):
    w = p["w"]
    w_oihw = w.T[:, :, None, None] if k == 1 else jnp.transpose(w, (3, 2, 0, 1))
    y = lax.conv_general_dilated(
        x, w_oihw, (stride, stride), ((padding, padding), (padding, padding)),
        rhs_dilation=(dilation, dilation),
        dimension_numbers=("NCHW", "OIHW", "NCHW"),
        precision=lax.Precision.HIGHEST)
    y = y + p["b"].reshape(1, -1, 1, 1)
    mean = y.mean(axis=(0, 2, 3), keepdims=True)
    var = ((y - mean) ** 2).mean(axis=(0, 2, 3), keepdims=True)
    y = (y - mean) / jnp.sqrt(var + EPS) * p["gamma"].reshape(1, -1, 1, 1) \
        + p["beta"].reshape(1, -1, 1, 1)
    return jnp.maximum(y, 0.0) if act else y


def _ref_bottleneck(x, blk, stride, dilation):
    out = _ref_conv_bn(x, blk["conv1"], 1, 1, 0, 1, True)
    out = _ref_conv_bn(out, blk["conv2"], 3, stride, dilation, dilation, True)
    out = _ref_conv_bn(out, blk["conv3"], 1, 1, 0, 1, False)
    if "short" in blk:
        x = _ref_conv_bn(x, blk["short"], 1, stride, 0, 1, False)
    return jnp.maximum(out + x, 0.0)


def _ref_resblock(x, blocks, stride, dilation):
    n_layers = len(blocks)
    for i, blk in enumerate(blocks):
        layer_stride = 1 if i < n_layers - 1 else stride
        x = _ref_bottleneck(x, blk, layer_stride, dilation)
    return x


# ---------------------------------------------------------------------------
if __name__ == "__main__":
    key = jax.random.PRNGKey(0)
    fwd = jax.jit(resblock_forward,
                  static_argnames=("stride", "dilation", "out_channels"))

    # --- Config A: projection + identity + strided bottlenecks --------------
    N, C_IN, C_MID, C_OUT = 2, 8, 8, 16
    H = W = 16
    N_LAYERS, STRIDE, DILATION = 3, 2, 1
    kx, kp, key = jax.random.split(key, 3)
    x = jax.random.normal(kx, (N, C_IN, H, W), jnp.float32)
    params = init_resblock_params(kp, N_LAYERS, C_IN, C_MID, C_OUT, STRIDE, DILATION)

    # f32 storage: strict check against the pure-JAX/XLA reference.
    packed_f32 = pack_resblock_params(params, jnp.float32)
    out = jax.block_until_ready(
        fwd(x, packed_f32, stride=STRIDE, dilation=DILATION, out_channels=C_OUT))
    ref = jax.block_until_ready(_ref_resblock(x, params, STRIDE, DILATION))
    assert out.shape == (N, C_OUT, H // STRIDE, W // STRIDE)
    np.testing.assert_allclose(np.asarray(out), np.asarray(ref), atol=2e-2, rtol=2e-2)

    # bf16 storage (halves HBM traffic, fast MXU path); loose sanity check.
    packed_bf16 = pack_resblock_params(params, jnp.bfloat16)
    out_bf16 = jax.block_until_ready(
        fwd(x, packed_bf16, stride=STRIDE, dilation=DILATION, out_channels=C_OUT))
    assert bool(jnp.all(jnp.isfinite(out_bf16)))
    np.testing.assert_allclose(np.asarray(out_bf16.astype(jnp.float32)),
                               np.asarray(ref), atol=0.25, rtol=0.25)

    # --- Config B: DeepLab-style dilation=2, identity shortcuts -------------
    N2, C_IN2, C_MID2, C_OUT2 = 1, 16, 8, 16
    N_LAYERS2, STRIDE2, DILATION2 = 2, 1, 2
    kx2, kp2, key = jax.random.split(key, 3)
    x2 = jax.random.normal(kx2, (N2, C_IN2, H, W), jnp.float32)
    params2 = init_resblock_params(kp2, N_LAYERS2, C_IN2, C_MID2, C_OUT2,
                                   STRIDE2, DILATION2)
    packed2 = pack_resblock_params(params2, jnp.float32)
    out2 = jax.block_until_ready(
        fwd(x2, packed2, stride=STRIDE2, dilation=DILATION2, out_channels=C_OUT2))
    ref2 = jax.block_until_ready(_ref_resblock(x2, params2, STRIDE2, DILATION2))
    assert out2.shape == (N2, C_OUT2, H, W)
    np.testing.assert_allclose(np.asarray(out2), np.asarray(ref2),
                               atol=2e-2, rtol=2e-2)

    print("KERNEL_OK")
</pallas_src>

<mosaic_0001>
module attributes {stable_mosaic.version = 11 : i64} {
  func.func @_conv1x1_kernel(%arg0: i32, %arg1: i32, %arg2: memref<1x16x16x128xf32, #tpu.memory_space<vmem>>, %arg3: memref<1x128xf32, #tpu.memory_space<vmem>>, %arg4: memref<1x128xf32, #tpu.memory_space<vmem>>, %arg5: memref<128x128xf32, #tpu.memory_space<vmem>>, %arg6: memref<1x16x16x128xf32, #tpu.memory_space<vmem>>, %arg7: memref<1x1x8x128xf32, #tpu.memory_space<vmem>>) attributes {dimension_semantics = [#tpu.dimension_semantics<parallel>, #tpu.dimension_semantics<parallel>], iteration_bounds = array<i64: 2, 1>, scalar_prefetch = 0 : i64, scratch_operands = 0 : i64, tpu.core_type = #tpu.core_type<tc>, window_params = [{transform_indices = @transform_0, window_bounds = array<i64: 1, 16, 16, 128>}, {pipeline_mode = #tpu.pipeline_mode<synchronous>, transform_indices = @transform_1, window_bounds = array<i64: 1, 128>}, {pipeline_mode = #tpu.pipeline_mode<synchronous>, transform_indices = @transform_2, window_bounds = array<i64: 1, 128>}, {pipeline_mode = #tpu.pipeline_mode<synchronous>, transform_indices = @transform_3, window_bounds = array<i64: 128, 128>}, {transform_indices = @transform_4, window_bounds = array<i64: 1, 16, 16, 128>}, {transform_indices = @transform_5, window_bounds = array<i64: 1, 1, 8, 128>}]} {
    %c0 = arith.constant 0 : index
    %c0_0 = arith.constant 0 : index
    %c0_1 = arith.constant 0 : index
    %c0_2 = arith.constant 0 : index
    %0 = vector.load %arg2[%c0, %c0_0, %c0_1, %c0_2] : memref<1x16x16x128xf32, #tpu.memory_space<vmem>>, vector<1x16x16x128xf32>
    %1 = vector.shape_cast %0 : vector<1x16x16x128xf32> to vector<256x128xf32>
    %c0_3 = arith.constant 0 : index
    %c0_4 = arith.constant 0 : index
    %2 = vector.load %arg5[%c0_3, %c0_4] : memref<128x128xf32, #tpu.memory_space<vmem>>, vector<128x128xf32>
    %cst = arith.constant dense<0.000000e+00> : vector<256x128xf32>
    %3 = tpu.matmul %1, %2, %cst {dimension_numbers = #tpu.dot_dimension_numbers<[1], [0], [0], [1], [0, 0, 1, 1], [], []>} : vector<256x128xf32>, vector<128x128xf32>, vector<256x128xf32> -> vector<256x128xf32>
    %4 = vector.shape_cast %3 : vector<256x128xf32> to vector<1x16x16x128xf32>
    %c0_5 = arith.constant 0 : index
    %c0_6 = arith.constant 0 : index
    %c0_7 = arith.constant 0 : index
    %c0_8 = arith.constant 0 : index
    %5 = vector.load %arg6[%c0_5, %c0_6, %c0_7, %c0_8] : memref<1x16x16x128xf32, #tpu.memory_space<vmem>>, vector<1x16x16x128xf32>
    tpu.vector_store %arg6[%c0_5, %c0_6, %c0_7, %c0_8], %4 {strides = array<i32>} : memref<1x16x16x128xf32, #tpu.memory_space<vmem>>, vector<1x16x16x128xf32>,
    %cst_9 = arith.constant dense<0.000000e+00> : vector<128xf32>
    %6 = vector.multi_reduction <add>, %3, %cst_9 [0] : vector<256x128xf32> to vector<128xf32>
    %7 = arith.mulf %3, %3 : vector<256x128xf32>
    %cst_10 = arith.constant dense<0.000000e+00> : vector<128xf32>
    %8 = vector.multi_reduction <add>, %7, %cst_10 [0] : vector<256x128xf32> to vector<128xf32>
    %9 = tpu.iota {dimensions = array<i32: 0>} : vector<8x128xi32>
    %c0_i32 = arith.constant 0 : i32
    %10 = vector.broadcast %c0_i32 : i32 to vector<8x128xi32>
    %11 = arith.cmpi eq, %9, %10 : vector<8x128xi32>
    %12 = vector.shape_cast %6 : vector<128xf32> to vector<1x128xf32>
    %c1_i32 = arith.constant 1 : i32
    %13 = vector.broadcast %c1_i32 : i32 to vector<8x128xi32>
    %14 = arith.cmpi eq, %9, %13 : vector<8x128xi32>
    %15 = vector.shape_cast %8 : vector<128xf32> to vector<1x128xf32>
    %cst_11 = arith.constant 0.000000e+00 : f32
    %16 = vector.shape_cast %15 : vector<1x128xf32> to vector<1x128xf32>
    %17 = vector.broadcast %16 : vector<1x128xf32> to vector<8x128xf32>
    %18 = vector.broadcast %cst_11 : f32 to vector<8x128xf32>
    %19 = arith.select %14, %17, %18 : vector<8x128xi1>, vector<8x128xf32>
    %20 = vector.shape_cast %12 : vector<1x128xf32> to vector<1x128xf32>
    %21 = vector.broadcast %20 : vector<1x128xf32> to vector<8x128xf32>
    %22 = arith.select %11, %21, %19 : vector<8x128xi1>, vector<8x128xf32>
    %23 = vector.shape_cast %22 : vector<8x128xf32> to vector<1x1x8x128xf32>
    %c0_12 = arith.constant 0 : index
    %c0_13 = arith.constant 0 : index
    %c0_14 = arith.constant 0 : index
    %c0_15 = arith.constant 0 : index
    %24 = vector.load %arg7[%c0_12, %c0_13, %c0_14, %c0_15] : memref<1x1x8x128xf32, #tpu.memory_space<vmem>>, vector<1x1x8x128xf32>
    tpu.vector_store %arg7[%c0_12, %c0_13, %c0_14, %c0_15], %23 {strides = array<i32>} : memref<1x1x8x128xf32, #tpu.memory_space<vmem>>, vector<1x1x8x128xf32>,
    return
  }
  func.func @transform_0(%arg0: i32, %arg1: i32) -> (i32, i32, i32, i32) {
    %c0_i32 = arith.constant 0 : i32
    %c0_i32_0 = arith.constant 0 : i32
    %c0_i32_1 = arith.constant 0 : i32
    return %arg0, %arg1, %c0_i32, %c0_i32_0 : i32, i32, i32, i32
  }
  func.func @transform_1(%arg0: i32, %arg1: i32) -> (i32, i32) {
    %c0_i32 = arith.constant 0 : i32
    %c0_i32_0 = arith.constant 0 : i32
    %c0_i32_1 = arith.constant 0 : i32
    return %c0_i32, %c0_i32_0 : i32, i32
  }
  func.func @transform_2(%arg0: i32, %arg1: i32) -> (i32, i32) {
    %c0_i32 = arith.constant 0 : i32
    %c0_i32_0 = arith.constant 0 : i32
    %c0_i32_1 = arith.constant 0 : i32
    return %c0_i32, %c0_i32_0 : i32, i32
  }
  func.func @transform_3(%arg0: i32, %arg1: i32) -> (i32, i32) {
    %c0_i32 = arith.constant 0 : i32
    %c0_i32_0 = arith.constant 0 : i32
    %c0_i32_1 = arith.constant 0 : i32
    return %c0_i32, %c0_i32_0 : i32, i32
  }
  func.func @transform_4(%arg0: i32, %arg1: i32) -> (i32, i32, i32, i32) {
    %c0_i32 = arith.constant 0 : i32
    %c0_i32_0 = arith.constant 0 : i32
    %c0_i32_1 = arith.constant 0 : i32
    return %arg0, %arg1, %c0_i32, %c0_i32_0 : i32, i32, i32, i32
  }
  func.func @transform_5(%arg0: i32, %arg1: i32) -> (i32, i32, i32, i32) {
    %c0_i32 = arith.constant 0 : i32
    %c0_i32_0 = arith.constant 0 : i32
    %c0_i32_1 = arith.constant 0 : i32
    return %arg0, %arg1, %c0_i32, %c0_i32_0 : i32, i32, i32, i32
  }
}

module attributes {stable_mosaic.version = 11 : i64} {
  func.func @_conv3x3_kernel(%arg0: i32, %arg1: memref<1x16x16x128xf32, #tpu.memory_space<vmem>>, %arg2: memref<1x128xf32, #tpu.memory_space<vmem>>, %arg3: memref<1x128xf32, #tpu.memory_space<vmem>>, %arg4: memref<1152x128xf32, #tpu.memory_space<vmem>>, %arg5: memref<1x16x16x128xf32, #tpu.memory_space<vmem>>, %arg6: memref<1x1x8x128xf32, #tpu.memory_space<vmem>>, %arg7: memref<18x18x128xf32, #tpu.memory_space<vmem>>) attributes {dimension_semantics = [#tpu.dimension_semantics<parallel>], iteration_bounds = array<i64: 2>, scalar_prefetch = 0 : i64, scratch_operands = 1 : i64, tpu.core_type = #tpu.core_type<tc>, window_params = [{transform_indices = @transform_0, window_bounds = array<i64: 1, 16, 16, 128>}, {pipeline_mode = #tpu.pipeline_mode<synchronous>, transform_indices = @transform_1, window_bounds = array<i64: 1, 128>}, {pipeline_mode = #tpu.pipeline_mode<synchronous>, transform_indices = @transform_2, window_bounds = array<i64: 1, 128>}, {pipeline_mode = #tpu.pipeline_mode<synchronous>, transform_indices = @transform_3, window_bounds = array<i64: 1152, 128>}, {transform_indices = @transform_4, window_bounds = array<i64: 1, 16, 16, 128>}, {transform_indices = @transform_5, window_bounds = array<i64: 1, 1, 8, 128>}]} {
    %c0 = arith.constant 0 : index
    %c0_0 = arith.constant 0 : index
    %c0_1 = arith.constant 0 : index
    %c0_2 = arith.constant 0 : index
    %0 = vector.load %arg1[%c0, %c0_0, %c0_1, %c0_2] : memref<1x16x16x128xf32, #tpu.memory_space<vmem>>, vector<1x16x16x128xf32>
    %1 = vector.shape_cast %0 : vector<1x16x16x128xf32> to vector<16x16x128xf32>
    %c0_3 = arith.constant 0 : index
    %c0_4 = arith.constant 0 : index
    %2 = vector.load %arg2[%c0_3, %c0_4] : memref<1x128xf32, #tpu.memory_space<vmem>>, vector<1x128xf32>
    %3 = vector.shape_cast %2 : vector<1x128xf32> to vector<1x1x128xf32>
    %4 = vector.broadcast %3 : vector<1x1x128xf32> to vector<16x16x128xf32>
    %5 = arith.mulf %1, %4 : vector<16x16x128xf32>
    %c0_5 = arith.constant 0 : index
    %c0_6 = arith.constant 0 : index
    %6 = vector.load %arg3[%c0_5, %c0_6] : memref<1x128xf32, #tpu.memory_space<vmem>>, vector<1x128xf32>
    %7 = vector.shape_cast %6 : vector<1x128xf32> to vector<1x1x128xf32>
    %8 = vector.broadcast %7 : vector<1x1x128xf32> to vector<16x16x128xf32>
    %9 = arith.addf %5, %8 : vector<16x16x128xf32>
    %cst = arith.constant 0.000000e+00 : f32
    %10 = vector.broadcast %cst : f32 to vector<16x16x128xf32>
    %11 = arith.maximumf %9, %10 : vector<16x16x128xf32>
    %c1 = arith.constant 1 : index
    %c1_7 = arith.constant 1 : index
    %c0_8 = arith.constant 0 : index
    %12 = vector.load %arg7[%c1, %c1_7, %c0_8] : memref<18x18x128xf32, #tpu.memory_space<vmem>>, vector<16x16x128xf32>
    tpu.vector_store %arg7[%c1, %c1_7, %c0_8], %11 {strides = array<i32>} : memref<18x18x128xf32, #tpu.memory_space<vmem>>, vector<16x16x128xf32>,
    %cst_9 = arith.constant 0.000000e+00 : f32
    %13 = vector.broadcast %cst_9 : f32 to vector<1x18x128xf32>
    %cst_10 = arith.constant 0.000000e+00 : f32
    %14 = vector.broadcast %cst_10 : f32 to vector<18x1x128xf32>
    %c0_11 = arith.constant 0 : index
    %c0_12 = arith.constant 0 : index
    %c0_13 = arith.constant 0 : index
    %15 = vector.load %arg7[%c0_11, %c0_12, %c0_13] : memref<18x18x128xf32, #tpu.memory_space<vmem>>, vector<1x18x128xf32>
    tpu.vector_store %arg7[%c0_11, %c0_12, %c0_13], %13 {strides = array<i32>} : memref<18x18x128xf32, #tpu.memory_space<vmem>>, vector<1x18x128xf32>,
    %c17 = arith.constant 17 : index
    %c0_14 = arith.constant 0 : index
    %c0_15 = arith.constant 0 : index
    %16 = vector.load %arg7[%c17, %c0_14, %c0_15] : memref<18x18x128xf32, #tpu.memory_space<vmem>>, vector<1x18x128xf32>
    tpu.vector_store %arg7[%c17, %c0_14, %c0_15], %13 {strides = array<i32>} : memref<18x18x128xf32, #tpu.memory_space<vmem>>, vector<1x18x128xf32>,
    %c0_16 = arith.constant 0 : index
    %c0_17 = arith.constant 0 : index
    %c0_18 = arith.constant 0 : index
    %17 = vector.load %arg7[%c0_16, %c0_17, %c0_18] : memref<18x18x128xf32, #tpu.memory_space<vmem>>, vector<18x1x128xf32>
    tpu.vector_store %arg7[%c0_16, %c0_17, %c0_18], %14 {strides = array<i32>} : memref<18x18x128xf32, #tpu.memory_space<vmem>>, vector<18x1x128xf32>,
    %c0_19 = arith.constant 0 : index
    %c17_20 = arith.constant 17 : index
    %c0_21 = arith.constant 0 : index
    %18 = vector.load %arg7[%c0_19, %c17_20, %c0_21] : memref<18x18x128xf32, #tpu.memory_space<vmem>>, vector<18x1x128xf32>
    tpu.vector_store %arg7[%c0_19, %c17_20, %c0_21], %14 {strides = array<i32>} : memref<18x18x128xf32, #tpu.memory_space<vmem>>, vector<18x1x128xf32>,
    %cst_22 = arith.constant 0.000000e+00 : f32
    %19 = vector.broadcast %cst_22 : f32 to vector<256x128xf32>
    %c0_23 = arith.constant 0 : index
    %c0_24 = arith.constant 0 : index
    %c0_25 = arith.constant 0 : index
    %20 = vector.load %arg7[%c0_23, %c0_24, %c0_25] : memref<18x18x128xf32, #tpu.memory_space<vmem>>, vector<16x16x128xf32>
    %c0_26 = arith.constant 0 : index
    %c0_27 = arith.constant 0 : index
    %21 = vector.load %arg4[%c0_26, %c0_27] : memref<1152x128xf32, #tpu.memory_space<vmem>>, vector<128x128xf32>
    %22 = vector.shape_cast %20 : vector<16x16x128xf32> to vector<256x128xf32>
    %cst_28 = arith.constant dense<0.000000e+00> : vector<256x128xf32>
    %23 = tpu.matmul %22, %21, %cst_28 {dimension_numbers = #tpu.dot_dimension_numbers<[1], [0], [0], [1], [0, 0, 1, 1], [], []>} : vector<256x128xf32>, vector<128x128xf32>, vector<256x128xf32> -> vector<256x128xf32>
    %24 = arith.addf %19, %23 : vector<256x128xf32>
    %c0_29 = arith.constant 0 : index
    %c1_30 = arith.constant 1 : index
    %c0_31 = arith.constant 0 : index
    %25 = vector.load %arg7[%c0_29, %c1_30, %c0_31] : memref<18x18x128xf32, #tpu.memory_space<vmem>>, vector<16x16x128xf32>
    %c128 = arith.constant 128 : index
    %c0_32 = arith.constant 0 : index
    %26 = vector.load %arg4[%c128, %c0_32] : memref<1152x128xf32, #tpu.memory_space<vmem>>, vector<128x128xf32>
    %27 = vector.shape_cast %25 : vector<16x16x128xf32> to vector<256x128xf32>
    %cst_33 = arith.constant dense<0.000000e+00> : vector<256x128xf32>
    %28 = tpu.matmul %27, %26, %cst_33 {dimension_numbers = #tpu.dot_dimension_numbers<[1], [0], [0], [1], [0, 0, 1, 1], [], []>} : vector<256x128xf32>, vector<128x128xf32>, vector<256x128xf32> -> vector<256x128xf32>
    %29 = arith.addf %24, %28 : vector<256x128xf32>
    %c0_34 = arith.constant 0 : index
    %c2 = arith.constant 2 : index
    %c0_35 = arith.constant 0 : index
    %30 = vector.load %arg7[%c0_34, %c2, %c0_35] : memref<18x18x128xf32, #tpu.memory_space<vmem>>, vector<16x16x128xf32>
    %c256 = arith.constant 256 : index
    %c0_36 = arith.constant 0 : index
    %31 = vector.load %arg4[%c256, %c0_36] : memref<1152x128xf32, #tpu.memory_space<vmem>>, vector<128x128xf32>
    %32 = vector.shape_cast %30 : vector<16x16x128xf32> to vector<256x128xf32>
    %cst_37 = arith.constant dense<0.000000e+00> : vector<256x128xf32>
    %33 = tpu.matmul %32, %31, %cst_37 {dimension_numbers = #tpu.dot_dimension_numbers<[1], [0], [0], [1], [0, 0, 1, 1], [], []>} : vector<256x128xf32>, vector<128x128xf32>, vector<256x128xf32> -> vector<256x128xf32>
    %34 = arith.addf %29, %33 : vector<256x128xf32>
    %c1_38 = arith.constant 1 : index
    %c0_39 = arith.constant 0 : index
    %c0_40 = arith.constant 0 : index
    %35 = vector.load %arg7[%c1_38, %c0_39, %c0_40] : memref<18x18x128xf32, #tpu.memory_space<vmem>>, vector<16x16x128xf32>
    %c384 = arith.constant 384 : index
    %c0_41 = arith.constant 0 : index
    %36 = vector.load %arg4[%c384, %c0_41] : memref<1152x128xf32, #tpu.memory_space<vmem>>, vector<128x128xf32>
    %37 = vector.shape_cast %35 : vector<16x16x128xf32> to vector<256x128xf32>
    %cst_42 = arith.constant dense<0.000000e+00> : vector<256x128xf32>
    %38 = tpu.matmul %37, %36, %cst_42 {dimension_numbers = #tpu.dot_dimension_numbers<[1], [0], [0], [1], [0, 0, 1, 1], [], []>} : vector<256x128xf32>, vector<128x128xf32>, vector<256x128xf32> -> vector<256x128xf32>
    %39 = arith.addf %34, %38 : vector<256x128xf32>
    %c1_43 = arith.constant 1 : index
    %c1_44 = arith.constant 1 : index
    %c0_45 = arith.constant 0 : index
    %40 = vector.load %arg7[%c1_43, %c1_44, %c0_45] : memref<18x18x128xf32, #tpu.memory_space<vmem>>, vector<16x16x128xf32>
    %c512 = arith.constant 512 : index
    %c0_46 = arith.constant 0 : index
    %41 = vector.load %arg4[%c512, %c0_46] : memref<1152x128xf32, #tpu.memory_space<vmem>>, vector<128x128xf32>
    %42 = vector.shape_cast %40 : vector<16x16x128xf32> to vector<256x128xf32>
    %cst_47 = arith.constant dense<0.000000e+00> : vector<256x128xf32>
    %43 = tpu.matmul %42, %41, %cst_47 {dimension_numbers = #tpu.dot_dimension_numbers<[1], [0], [0], [1], [0, 0, 1, 1], [], []>} : vector<256x128xf32>, vector<128x128xf32>, vector<256x128xf32> -> vector<256x128xf32>
    %44 = arith.addf %39, %43 : vector<256x128xf32>
    %c1_48 = arith.constant 1 : index
    %c2_49 = arith.constant 2 : index
    %c0_50 = arith.constant 0 : index
    %45 = vector.load %arg7[%c1_48, %c2_49, %c0_50] : memref<18x18x128xf32, #tpu.memory_space<vmem>>, vector<16x16x128xf32>
    %c640 = arith.constant 640 : index
    %c0_51 = arith.constant 0 : index
    %46 = vector.load %arg4[%c640, %c0_51] : memref<1152x128xf32, #tpu.memory_space<vmem>>, vector<128x128xf32>
    %47 = vector.shape_cast %45 : vector<16x16x128xf32> to vector<256x128xf32>
    %cst_52 = arith.constant dense<0.000000e+00> : vector<256x128xf32>
    %48 = tpu.matmul %47, %46, %cst_52 {dimension_numbers = #tpu.dot_dimension_numbers<[1], [0], [0], [1], [0, 0, 1, 1], [], []>} : vector<256x128xf32>, vector<128x128xf32>, vector<256x128xf32> -> vector<256x128xf32>
    %49 = arith.addf %44, %48 : vector<256x128xf32>
    %c2_53 = arith.constant 2 : index
    %c0_54 = arith.constant 0 : index
    %c0_55 = arith.constant 0 : index
    %50 = vector.load %arg7[%c2_53, %c0_54, %c0_55] : memref<18x18x128xf32, #tpu.memory_space<vmem>>, vector<16x16x128xf32>
    %c768 = arith.constant 768 : index
    %c0_56 = arith.constant 0 : index
    %51 = vector.load %arg4[%c768, %c0_56] : memref<1152x128xf32, #tpu.memory_space<vmem>>, vector<128x128xf32>
    %52 = vector.shape_cast %50 : vector<16x16x128xf32> to vector<256x128xf32>
    %cst_57 = arith.constant dense<0.000000e+00> : vector<256x128xf32>
    %53 = tpu.matmul %52, %51, %cst_57 {dimension_numbers = #tpu.dot_dimension_numbers<[1], [0], [0], [1], [0, 0, 1, 1], [], []>} : vector<256x128xf32>, vector<128x128xf32>, vector<256x128xf32> -> vector<256x128xf32>
    %54 = arith.addf %49, %53 : vector<256x128xf32>
    %c2_58 = arith.constant 2 : index
    %c1_59 = arith.constant 1 : index
    %c0_60 = arith.constant 0 : index
    %55 = vector.load %arg7[%c2_58, %c1_59, %c0_60] : memref<18x18x128xf32, #tpu.memory_space<vmem>>, vector<16x16x128xf32>
    %c896 = arith.constant 896 : index
    %c0_61 = arith.constant 0 : index
    %56 = vector.load %arg4[%c896, %c0_61] : memref<1152x128xf32, #tpu.memory_space<vmem>>, vector<128x128xf32>
    %57 = vector.shape_cast %55 : vector<16x16x128xf32> to vector<256x128xf32>
    %cst_62 = arith.constant dense<0.000000e+00> : vector<256x128xf32>
    %58 = tpu.matmul %57, %56, %cst_62 {dimension_numbers = #tpu.dot_dimension_numbers<[1], [0], [0], [1], [0, 0, 1, 1], [], []>} : vector<256x128xf32>, vector<128x128xf32>, vector<256x128xf32> -> vector<256x128xf32>
    %59 = arith.addf %54, %58 : vector<256x128xf32>
    %c2_63 = arith.constant 2 : index
    %c2_64 = arith.constant 2 : index
    %c0_65 = arith.constant 0 : index
    %60 = vector.load %arg7[%c2_63, %c2_64, %c0_65] : memref<18x18x128xf32, #tpu.memory_space<vmem>>, vector<16x16x128xf32>
    %c1024 = arith.constant 1024 : index
    %c0_66 = arith.constant 0 : index
    %61 = vector.load %arg4[%c1024, %c0_66] : memref<1152x128xf32, #tpu.memory_space<vmem>>, vector<128x128xf32>
    %62 = vector.shape_cast %60 : vector<16x16x128xf32> to vector<256x128xf32>
    %cst_67 = arith.constant dense<0.000000e+00> : vector<256x128xf32>
    %63 = tpu.matmul %62, %61, %cst_67 {dimension_numbers = #tpu.dot_dimension_numbers<[1], [0], [0], [1], [0, 0, 1, 1], [], []>} : vector<256x128xf32>, vector<128x128xf32>, vector<256x128xf32> -> vector<256x128xf32>
    %64 = arith.addf %59, %63 : vector<256x128xf32>
    %65 = vector.shape_cast %64 : vector<256x128xf32> to vector<1x16x16x128xf32>
    %c0_68 = arith.constant 0 : index
    %c0_69 = arith.constant 0 : index
    %c0_70 = arith.constant 0 : index
    %c0_71 = arith.constant 0 : index
    %66 = vector.load %arg5[%c0_68, %c0_69, %c0_70, %c0_71] : memref<1x16x16x128xf32, #tpu.memory_space<vmem>>, vector<1x16x16x128xf32>
    tpu.vector_store %arg5[%c0_68, %c0_69, %c0_70, %c0_71], %65 {strides = array<i32>} : memref<1x16x16x128xf32, #tpu.memory_space<vmem>>, vector<1x16x16x128xf32>,
    %cst_72 = arith.constant dense<0.000000e+00> : vector<128xf32>
    %67 = vector.multi_reduction <add>, %64, %cst_72 [0] : vector<256x128xf32> to vector<128xf32>
    %68 = arith.mulf %64, %64 : vector<256x128xf32>
    %cst_73 = arith.constant dense<0.000000e+00> : vector<128xf32>
    %69 = vector.multi_reduction <add>, %68, %cst_73 [0] : vector<256x128xf32> to vector<128xf32>
    %70 = tpu.iota {dimensions = array<i32: 0>} : vector<8x128xi32>
    %c0_i32 = arith.constant 0 : i32
    %71 = vector.broadcast %c0_i32 : i32 to vector<8x128xi32>
    %72 = arith.cmpi eq, %70, %71 : vector<8x128xi32>
    %73 = vector.shape_cast %67 : vector<128xf32> to vector<1x128xf32>
    %c1_i32 = arith.constant 1 : i32
    %74 = vector.broadcast %c1_i32 : i32 to vector<8x128xi32>
    %75 = arith.cmpi eq, %70, %74 : vector<8x128xi32>
    %76 = vector.shape_cast %69 : vector<128xf32> to vector<1x128xf32>
    %cst_74 = arith.constant 0.000000e+00 : f32
    %77 = vector.shape_cast %76 : vector<1x128xf32> to vector<1x128xf32>
    %78 = vector.broadcast %77 : vector<1x128xf32> to vector<8x128xf32>
    %79 = vector.broadcast %cst_74 : f32 to vector<8x128xf32>
    %80 = arith.select %75, %78, %79 : vector<8x128xi1>, vector<8x128xf32>
    %81 = vector.shape_cast %73 : vector<1x128xf32> to vector<1x128xf32>
    %82 = vector.broadcast %81 : vector<1x128xf32> to vector<8x128xf32>
    %83 = arith.select %72, %82, %80 : vector<8x128xi1>, vector<8x128xf32>
    %84 = vector.shape_cast %83 : vector<8x128xf32> to vector<1x1x8x128xf32>
    %c0_75 = arith.constant 0 : index
    %c0_76 = arith.constant 0 : index
    %c0_77 = arith.constant 0 : index
    %c0_78 = arith.constant 0 : index
    %85 = vector.load %arg6[%c0_75, %c0_76, %c0_77, %c0_78] : memref<1x1x8x128xf32, #tpu.memory_space<vmem>>, vector<1x1x8x128xf32>
    tpu.vector_store %arg6[%c0_75, %c0_76, %c0_77, %c0_78], %84 {strides = array<i32>} : memref<1x1x8x128xf32, #tpu.memory_space<vmem>>, vector<1x1x8x128xf32>,
    return
  }
  func.func @transform_0(%arg0: i32) -> (i32, i32, i32, i32) {
    %c0_i32 = arith.constant 0 : i32
    %c0_i32_0 = arith.constant 0 : i32
    %c0_i32_1 = arith.constant 0 : i32
    %c0_i32_2 = arith.constant 0 : i32
    return %arg0, %c0_i32, %c0_i32_0, %c0_i32_1 : i32, i32, i32, i32
  }
  func.func @transform_1(%arg0: i32) -> (i32, i32) {
    %c0_i32 = arith.constant 0 : i32
    %c0_i32_0 = arith.constant 0 : i32
    %c0_i32_1 = arith.constant 0 : i32
    return %c0_i32, %c0_i32_0 : i32, i32
  }
  func.func @transform_2(%arg0: i32) -> (i32, i32) {
    %c0_i32 = arith.constant 0 : i32
    %c0_i32_0 = arith.constant 0 : i32
    %c0_i32_1 = arith.constant 0 : i32
    return %c0_i32, %c0_i32_0 : i32, i32
  }
  func.func @transform_3(%arg0: i32) -> (i32, i32) {
    %c0_i32 = arith.constant 0 : i32
    %c0_i32_0 = arith.constant 0 : i32
    %c0_i32_1 = arith.constant 0 : i32
    return %c0_i32, %c0_i32_0 : i32, i32
  }
  func.func @transform_4(%arg0: i32) -> (i32, i32, i32, i32) {
    %c0_i32 = arith.constant 0 : i32
    %c0_i32_0 = arith.constant 0 : i32
    %c0_i32_1 = arith.constant 0 : i32
    %c0_i32_2 = arith.constant 0 : i32
    return %arg0, %c0_i32, %c0_i32_0, %c0_i32_1 : i32, i32, i32, i32
  }
  func.func @transform_5(%arg0: i32) -> (i32, i32, i32, i32) {
    %c0_i32 = arith.constant 0 : i32
    %c0_i32_0 = arith.constant 0 : i32
    %c0_i32_1 = arith.constant 0 : i32
    %c0_i32_2 = arith.constant 0 : i32
    return %arg0, %c0_i32, %c0_i32_0, %c0_i32_1 : i32, i32, i32, i32
  }
}

module attributes {stable_mosaic.version = 11 : i64} {
  func.func @_conv1x1_kernel(%arg0: i32, %arg1: i32, %arg2: memref<1x16x16x128xf32, #tpu.memory_space<vmem>>, %arg3: memref<1x128xf32, #tpu.memory_space<vmem>>, %arg4: memref<1x128xf32, #tpu.memory_space<vmem>>, %arg5: memref<128x128xf32, #tpu.memory_space<vmem>>, %arg6: memref<1x16x16x128xf32, #tpu.memory_space<vmem>>, %arg7: memref<1x1x8x128xf32, #tpu.memory_space<vmem>>) attributes {dimension_semantics = [#tpu.dimension_semantics<parallel>, #tpu.dimension_semantics<parallel>], iteration_bounds = array<i64: 2, 1>, scalar_prefetch = 0 : i64, scratch_operands = 0 : i64, tpu.core_type = #tpu.core_type<tc>, window_params = [{transform_indices = @transform_0, window_bounds = array<i64: 1, 16, 16, 128>}, {pipeline_mode = #tpu.pipeline_mode<synchronous>, transform_indices = @transform_1, window_bounds = array<i64: 1, 128>}, {pipeline_mode = #tpu.pipeline_mode<synchronous>, transform_indices = @transform_2, window_bounds = array<i64: 1, 128>}, {pipeline_mode = #tpu.pipeline_mode<synchronous>, transform_indices = @transform_3, window_bounds = array<i64: 128, 128>}, {transform_indices = @transform_4, window_bounds = array<i64: 1, 16, 16, 128>}, {transform_indices = @transform_5, window_bounds = array<i64: 1, 1, 8, 128>}]} {
    %c0 = arith.constant 0 : index
    %c0_0 = arith.constant 0 : index
    %c0_1 = arith.constant 0 : index
    %c0_2 = arith.constant 0 : index
    %0 = vector.load %arg2[%c0, %c0_0, %c0_1, %c0_2] : memref<1x16x16x128xf32, #tpu.memory_space<vmem>>, vector<1x16x16x128xf32>
    %1 = vector.shape_cast %0 : vector<1x16x16x128xf32> to vector<256x128xf32>
    %c0_3 = arith.constant 0 : index
    %c0_4 = arith.constant 0 : index
    %2 = vector.load %arg3[%c0_3, %c0_4] : memref<1x128xf32, #tpu.memory_space<vmem>>, vector<1x128xf32>
    %3 = vector.broadcast %2 : vector<1x128xf32> to vector<256x128xf32>
    %4 = arith.mulf %1, %3 : vector<256x128xf32>
    %c0_5 = arith.constant 0 : index
    %c0_6 = arith.constant 0 : index
    %5 = vector.load %arg4[%c0_5, %c0_6] : memref<1x128xf32, #tpu.memory_space<vmem>>, vector<1x128xf32>
    %6 = vector.broadcast %5 : vector<1x128xf32> to vector<256x128xf32>
    %7 = arith.addf %4, %6 : vector<256x128xf32>
    %cst = arith.constant 0.000000e+00 : f32
    %8 = vector.broadcast %cst : f32 to vector<256x128xf32>
    %9 = arith.maximumf %7, %8 : vector<256x128xf32>
    %c0_7 = arith.constant 0 : index
    %c0_8 = arith.constant 0 : index
    %10 = vector.load %arg5[%c0_7, %c0_8] : memref<128x128xf32, #tpu.memory_space<vmem>>, vector<128x128xf32>
    %cst_9 = arith.constant dense<0.000000e+00> : vector<256x128xf32>
    %11 = tpu.matmul %9, %10, %cst_9 {dimension_numbers = #tpu.dot_dimension_numbers<[1], [0], [0], [1], [0, 0, 1, 1], [], []>} : vector<256x128xf32>, vector<128x128xf32>, vector<256x128xf32> -> vector<256x128xf32>
    %12 = vector.shape_cast %11 : vector<256x128xf32> to vector<1x16x16x128xf32>
    %c0_10 = arith.constant 0 : index
    %c0_11 = arith.constant 0 : index
    %c0_12 = arith.constant 0 : index
    %c0_13 = arith.constant 0 : index
    %13 = vector.load %arg6[%c0_10, %c0_11, %c0_12, %c0_13] : memref<1x16x16x128xf32, #tpu.memory_space<vmem>>, vector<1x16x16x128xf32>
    tpu.vector_store %arg6[%c0_10, %c0_11, %c0_12, %c0_13], %12 {strides = array<i32>} : memref<1x16x16x128xf32, #tpu.memory_space<vmem>>, vector<1x16x16x128xf32>,
    %cst_14 = arith.constant dense<0.000000e+00> : vector<128xf32>
    %14 = vector.multi_reduction <add>, %11, %cst_14 [0] : vector<256x128xf32> to vector<128xf32>
    %15 = arith.mulf %11, %11 : vector<256x128xf32>
    %cst_15 = arith.constant dense<0.000000e+00> : vector<128xf32>
    %16 = vector.multi_reduction <add>, %15, %cst_15 [0] : vector<256x128xf32> to vector<128xf32>
    %17 = tpu.iota {dimensions = array<i32: 0>} : vector<8x128xi32>
    %c0_i32 = arith.constant 0 : i32
    %18 = vector.broadcast %c0_i32 : i32 to vector<8x128xi32>
    %19 = arith.cmpi eq, %17, %18 : vector<8x128xi32>
    %20 = vector.shape_cast %14 : vector<128xf32> to vector<1x128xf32>
    %c1_i32 = arith.constant 1 : i32
    %21 = vector.broadcast %c1_i32 : i32 to vector<8x128xi32>
    %22 = arith.cmpi eq, %17, %21 : vector<8x128xi32>
    %23 = vector.shape_cast %16 : vector<128xf32> to vector<1x128xf32>
    %cst_16 = arith.constant 0.000000e+00 : f32
    %24 = vector.shape_cast %23 : vector<1x128xf32> to vector<1x128xf32>
    %25 = vector.broadcast %24 : vector<1x128xf32> to vector<8x128xf32>
    %26 = vector.broadcast %cst_16 : f32 to vector<8x128xf32>
    %27 = arith.select %22, %25, %26 : vector<8x128xi1>, vector<8x128xf32>
    %28 = vector.shape_cast %20 : vector<1x128xf32> to vector<1x128xf32>
    %29 = vector.broadcast %28 : vector<1x128xf32> to vector<8x128xf32>
    %30 = arith.select %19, %29, %27 : vector<8x128xi1>, vector<8x128xf32>
    %31 = vector.shape_cast %30 : vector<8x128xf32> to vector<1x1x8x128xf32>
    %c0_17 = arith.constant 0 : index
    %c0_18 = arith.constant 0 : index
    %c0_19 = arith.constant 0 : index
    %c0_20 = arith.constant 0 : index
    %32 = vector.load %arg7[%c0_17, %c0_18, %c0_19, %c0_20] : memref<1x1x8x128xf32, #tpu.memory_space<vmem>>, vector<1x1x8x128xf32>
    tpu.vector_store %arg7[%c0_17, %c0_18, %c0_19, %c0_20], %31 {strides = array<i32>} : memref<1x1x8x128xf32, #tpu.memory_space<vmem>>, vector<1x1x8x128xf32>,
    return
  }
  func.func @transform_0(%arg0: i32, %arg1: i32) -> (i32, i32, i32, i32) {
    %c0_i32 = arith.constant 0 : i32
    %c0_i32_0 = arith.constant 0 : i32
    %c0_i32_1 = arith.constant 0 : i32
    return %arg0, %arg1, %c0_i32, %c0_i32_0 : i32, i32, i32, i32
  }
  func.func @transform_1(%arg0: i32, %arg1: i32) -> (i32, i32) {
    %c0_i32 = arith.constant 0 : i32
    %c0_i32_0 = arith.constant 0 : i32
    %c0_i32_1 = arith.constant 0 : i32
    return %c0_i32, %c0_i32_0 : i32, i32
  }
  func.func @transform_2(%arg0: i32, %arg1: i32) -> (i32, i32) {
    %c0_i32 = arith.constant 0 : i32
    %c0_i32_0 = arith.constant 0 : i32
    %c0_i32_1 = arith.constant 0 : i32
    return %c0_i32, %c0_i32_0 : i32, i32
  }
  func.func @transform_3(%arg0: i32, %arg1: i32) -> (i32, i32) {
    %c0_i32 = arith.constant 0 : i32
    %c0_i32_0 = arith.constant 0 : i32
    %c0_i32_1 = arith.constant 0 : i32
    return %c0_i32, %c0_i32_0 : i32, i32
  }
  func.func @transform_4(%arg0: i32, %arg1: i32) -> (i32, i32, i32, i32) {
    %c0_i32 = arith.constant 0 : i32
    %c0_i32_0 = arith.constant 0 : i32
    %c0_i32_1 = arith.constant 0 : i32
    return %arg0, %arg1, %c0_i32, %c0_i32_0 : i32, i32, i32, i32
  }
  func.func @transform_5(%arg0: i32, %arg1: i32) -> (i32, i32, i32, i32) {
    %c0_i32 = arith.constant 0 : i32
    %c0_i32_0 = arith.constant 0 : i32
    %c0_i32_1 = arith.constant 0 : i32
    return %arg0, %arg1, %c0_i32, %c0_i32_0 : i32, i32, i32, i32
  }
}

module attributes {stable_mosaic.version = 11 : i64} {
  func.func @_bn_add_relu_kernel(%arg0: i32, %arg1: i32, %arg2: memref<1x16x16x128xf32, #tpu.memory_space<vmem>>, %arg3: memref<1x16x16x128xf32, #tpu.memory_space<vmem>>, %arg4: memref<1x128xf32, #tpu.memory_space<vmem>>, %arg5: memref<1x128xf32, #tpu.memory_space<vmem>>, %arg6: memref<1x128xf32, #tpu.memory_space<vmem>>, %arg7: memref<1x128xf32, #tpu.memory_space<vmem>>, %arg8: memref<1x16x16x128xf32, #tpu.memory_space<vmem>>) attributes {dimension_semantics = [#tpu.dimension_semantics<parallel>, #tpu.dimension_semantics<parallel>], iteration_bounds = array<i64: 2, 1>, scalar_prefetch = 0 : i64, scratch_operands = 0 : i64, tpu.core_type = #tpu.core_type<tc>, window_params = [{transform_indices = @transform_0, window_bounds = array<i64: 1, 16, 16, 128>}, {transform_indices = @transform_1, window_bounds = array<i64: 1, 16, 16, 128>}, {pipeline_mode = #tpu.pipeline_mode<synchronous>, transform_indices = @transform_2, window_bounds = array<i64: 1, 128>}, {pipeline_mode = #tpu.pipeline_mode<synchronous>, transform_indices = @transform_3, window_bounds = array<i64: 1, 128>}, {pipeline_mode = #tpu.pipeline_mode<synchronous>, transform_indices = @transform_4, window_bounds = array<i64: 1, 128>}, {pipeline_mode = #tpu.pipeline_mode<synchronous>, transform_indices = @transform_5, window_bounds = array<i64: 1, 128>}, {transform_indices = @transform_6, window_bounds = array<i64: 1, 16, 16, 128>}]} {
    %c0 = arith.constant 0 : index
    %c0_0 = arith.constant 0 : index
    %c0_1 = arith.constant 0 : index
    %c0_2 = arith.constant 0 : index
    %0 = vector.load %arg2[%c0, %c0_0, %c0_1, %c0_2] : memref<1x16x16x128xf32, #tpu.memory_space<vmem>>, vector<1x16x16x128xf32>
    %c0_3 = arith.constant 0 : index
    %c0_4 = arith.constant 0 : index
    %1 = vector.load %arg4[%c0_3, %c0_4] : memref<1x128xf32, #tpu.memory_space<vmem>>, vector<1x128xf32>
    %2 = vector.shape_cast %1 : vector<1x128xf32> to vector<1x1x1x128xf32>
    %3 = vector.broadcast %2 : vector<1x1x1x128xf32> to vector<1x16x16x128xf32>
    %4 = arith.mulf %0, %3 : vector<1x16x16x128xf32>
    %c0_5 = arith.constant 0 : index
    %c0_6 = arith.constant 0 : index
    %5 = vector.load %arg5[%c0_5, %c0_6] : memref<1x128xf32, #tpu.memory_space<vmem>>, vector<1x128xf32>
    %6 = vector.shape_cast %5 : vector<1x128xf32> to vector<1x1x1x128xf32>
    %7 = vector.broadcast %6 : vector<1x1x1x128xf32> to vector<1x16x16x128xf32>
    %8 = arith.addf %4, %7 : vector<1x16x16x128xf32>
    %c0_7 = arith.constant 0 : index
    %c0_8 = arith.constant 0 : index
    %c0_9 = arith.constant 0 : index
    %c0_10 = arith.constant 0 : index
    %9 = vector.load %arg3[%c0_7, %c0_8, %c0_9, %c0_10] : memref<1x16x16x128xf32, #tpu.memory_space<vmem>>, vector<1x16x16x128xf32>
    %c0_11 = arith.constant 0 : index
    %c0_12 = arith.constant 0 : index
    %10 = vector.load %arg6[%c0_11, %c0_12] : memref<1x128xf32, #tpu.memory_space<vmem>>, vector<1x128xf32>
    %11 = vector.shape_cast %10 : vector<1x128xf32> to vector<1x1x1x128xf32>
    %12 = vector.broadcast %11 : vector<1x1x1x128xf32> to vector<1x16x16x128xf32>
    %13 = arith.mulf %9, %12 : vector<1x16x16x128xf32>
    %c0_13 = arith.constant 0 : index
    %c0_14 = arith.constant 0 : index
    %14 = vector.load %arg7[%c0_13, %c0_14] : memref<1x128xf32, #tpu.memory_space<vmem>>, vector<1x128xf32>
    %15 = vector.shape_cast %14 : vector<1x128xf32> to vector<1x1x1x128xf32>
    %16 = vector.broadcast %15 : vector<1x1x1x128xf32> to vector<1x16x16x128xf32>
    %17 = arith.addf %13, %16 : vector<1x16x16x128xf32>
    %18 = arith.addf %8, %17 : vector<1x16x16x128xf32>
    %cst = arith.constant 0.000000e+00 : f32
    %19 = vector.broadcast %cst : f32 to vector<1x16x16x128xf32>
    %20 = arith.maximumf %18, %19 : vector<1x16x16x128xf32>
    %c0_15 = arith.constant 0 : index
    %c0_16 = arith.constant 0 : index
    %c0_17 = arith.constant 0 : index
    %c0_18 = arith.constant 0 : index
    %21 = vector.load %arg8[%c0_15, %c0_16, %c0_17, %c0_18] : memref<1x16x16x128xf32, #tpu.memory_space<vmem>>, vector<1x16x16x128xf32>
    tpu.vector_store %arg8[%c0_15, %c0_16, %c0_17, %c0_18], %20 {strides = array<i32>} : memref<1x16x16x128xf32, #tpu.memory_space<vmem>>, vector<1x16x16x128xf32>,
    return
  }
  func.func @transform_0(%arg0: i32, %arg1: i32) -> (i32, i32, i32, i32) {
    %c0_i32 = arith.constant 0 : i32
    %c0_i32_0 = arith.constant 0 : i32
    %c0_i32_1 = arith.constant 0 : i32
    return %arg0, %arg1, %c0_i32, %c0_i32_0 : i32, i32, i32, i32
  }
  func.func @transform_1(%arg0: i32, %arg1: i32) -> (i32, i32, i32, i32) {
    %c0_i32 = arith.constant 0 : i32
    %c0_i32_0 = arith.constant 0 : i32
    %c0_i32_1 = arith.constant 0 : i32
    return %arg0, %arg1, %c0_i32, %c0_i32_0 : i32, i32, i32, i32
  }
  func.func @transform_2(%arg0: i32, %arg1: i32) -> (i32, i32) {
    %c0_i32 = arith.constant 0 : i32
    %c0_i32_0 = arith.constant 0 : i32
    %c0_i32_1 = arith.constant 0 : i32
    return %c0_i32, %c0_i32_0 : i32, i32
  }
  func.func @transform_3(%arg0: i32, %arg1: i32) -> (i32, i32) {
    %c0_i32 = arith.constant 0 : i32
    %c0_i32_0 = arith.constant 0 : i32
    %c0_i32_1 = arith.constant 0 : i32
    return %c0_i32, %c0_i32_0 : i32, i32
  }
  func.func @transform_4(%arg0: i32, %arg1: i32) -> (i32, i32) {
    %c0_i32 = arith.constant 0 : i32
    %c0_i32_0 = arith.constant 0 : i32
    %c0_i32_1 = arith.constant 0 : i32
    return %c0_i32, %c0_i32_0 : i32, i32
  }
  func.func @transform_5(%arg0: i32, %arg1: i32) -> (i32, i32) {
    %c0_i32 = arith.constant 0 : i32
    %c0_i32_0 = arith.constant 0 : i32
    %c0_i32_1 = arith.constant 0 : i32
    return %c0_i32, %c0_i32_0 : i32, i32
  }
  func.func @transform_6(%arg0: i32, %arg1: i32) -> (i32, i32, i32, i32) {
    %c0_i32 = arith.constant 0 : i32
    %c0_i32_0 = arith.constant 0 : i32
    %c0_i32_1 = arith.constant 0 : i32
    return %arg0, %arg1, %c0_i32, %c0_i32_0 : i32, i32, i32, i32
  }
}

module attributes {stable_mosaic.version = 11 : i64} {
  func.func @_bn_add_relu_kernel(%arg0: i32, %arg1: i32, %arg2: memref<1x16x16x128xf32, #tpu.memory_space<vmem>>, %arg3: memref<1x16x16x128xf32, #tpu.memory_space<vmem>>, %arg4: memref<1x128xf32, #tpu.memory_space<vmem>>, %arg5: memref<1x128xf32, #tpu.memory_space<vmem>>, %arg6: memref<1x128xf32, #tpu.memory_space<vmem>>, %arg7: memref<1x128xf32, #tpu.memory_space<vmem>>, %arg8: memref<1x16x16x128xf32, #tpu.memory_space<vmem>>) attributes {dimension_semantics = [#tpu.dimension_semantics<parallel>, #tpu.dimension_semantics<parallel>], iteration_bounds = array<i64: 2, 1>, scalar_prefetch = 0 : i64, scratch_operands = 0 : i64, tpu.core_type = #tpu.core_type<tc>, window_params = [{transform_indices = @transform_0, window_bounds = array<i64: 1, 16, 16, 128>}, {transform_indices = @transform_1, window_bounds = array<i64: 1, 16, 16, 128>}, {pipeline_mode = #tpu.pipeline_mode<synchronous>, transform_indices = @transform_2, window_bounds = array<i64: 1, 128>}, {pipeline_mode = #tpu.pipeline_mode<synchronous>, transform_indices = @transform_3, window_bounds = array<i64: 1, 128>}, {pipeline_mode = #tpu.pipeline_mode<synchronous>, transform_indices = @transform_4, window_bounds = array<i64: 1, 128>}, {pipeline_mode = #tpu.pipeline_mode<synchronous>, transform_indices = @transform_5, window_bounds = array<i64: 1, 128>}, {transform_indices = @transform_6, window_bounds = array<i64: 1, 16, 16, 128>}]} {
    %c0 = arith.constant 0 : index
    %c0_0 = arith.constant 0 : index
    %c0_1 = arith.constant 0 : index
    %c0_2 = arith.constant 0 : index
    %0 = vector.load %arg2[%c0, %c0_0, %c0_1, %c0_2] : memref<1x16x16x128xf32, #tpu.memory_space<vmem>>, vector<1x16x16x128xf32>
    %c0_3 = arith.constant 0 : index
    %c0_4 = arith.constant 0 : index
    %1 = vector.load %arg4[%c0_3, %c0_4] : memref<1x128xf32, #tpu.memory_space<vmem>>, vector<1x128xf32>
    %2 = vector.shape_cast %1 : vector<1x128xf32> to vector<1x1x1x128xf32>
    %3 = vector.broadcast %2 : vector<1x1x1x128xf32> to vector<1x16x16x128xf32>
    %4 = arith.mulf %0, %3 : vector<1x16x16x128xf32>
    %c0_5 = arith.constant 0 : index
    %c0_6 = arith.constant 0 : index
    %5 = vector.load %arg5[%c0_5, %c0_6] : memref<1x128xf32, #tpu.memory_space<vmem>>, vector<1x128xf32>
    %6 = vector.shape_cast %5 : vector<1x128xf32> to vector<1x1x1x128xf32>
    %7 = vector.broadcast %6 : vector<1x1x1x128xf32> to vector<1x16x16x128xf32>
    %8 = arith.addf %4, %7 : vector<1x16x16x128xf32>
    %c0_7 = arith.constant 0 : index
    %c0_8 = arith.constant 0 : index
    %c0_9 = arith.constant 0 : index
    %c0_10 = arith.constant 0 : index
    %9 = vector.load %arg3[%c0_7, %c0_8, %c0_9, %c0_10] : memref<1x16x16x128xf32, #tpu.memory_space<vmem>>, vector<1x16x16x128xf32>
    %10 = arith.addf %8, %9 : vector<1x16x16x128xf32>
    %cst = arith.constant 0.000000e+00 : f32
    %11 = vector.broadcast %cst : f32 to vector<1x16x16x128xf32>
    %12 = arith.maximumf %10, %11 : vector<1x16x16x128xf32>
    %c0_11 = arith.constant 0 : index
    %c0_12 = arith.constant 0 : index
    %c0_13 = arith.constant 0 : index
    %c0_14 = arith.constant 0 : index
    %13 = vector.load %arg8[%c0_11, %c0_12, %c0_13, %c0_14] : memref<1x16x16x128xf32, #tpu.memory_space<vmem>>, vector<1x16x16x128xf32>
    tpu.vector_store %arg8[%c0_11, %c0_12, %c0_13, %c0_14], %12 {strides = array<i32>} : memref<1x16x16x128xf32, #tpu.memory_space<vmem>>, vector<1x16x16x128xf32>,
    return
  }
  func.func @transform_0(%arg0: i32, %arg1: i32) -> (i32, i32, i32, i32) {
    %c0_i32 = arith.constant 0 : i32
    %c0_i32_0 = arith.constant 0 : i32
    %c0_i32_1 = arith.constant 0 : i32
    return %arg0, %arg1, %c0_i32, %c0_i32_0 : i32, i32, i32, i32
  }
  func.func @transform_1(%arg0: i32, %arg1: i32) -> (i32, i32, i32, i32) {
    %c0_i32 = arith.constant 0 : i32
    %c0_i32_0 = arith.constant 0 : i32
    %c0_i32_1 = arith.constant 0 : i32
    return %arg0, %arg1, %c0_i32, %c0_i32_0 : i32, i32, i32, i32
  }
  func.func @transform_2(%arg0: i32, %arg1: i32) -> (i32, i32) {
    %c0_i32 = arith.constant 0 : i32
    %c0_i32_0 = arith.constant 0 : i32
    %c0_i32_1 = arith.constant 0 : i32
    return %c0_i32, %c0_i32_0 : i32, i32
  }
  func.func @transform_3(%arg0: i32, %arg1: i32) -> (i32, i32) {
    %c0_i32 = arith.constant 0 : i32
    %c0_i32_0 = arith.constant 0 : i32
    %c0_i32_1 = arith.constant 0 : i32
    return %c0_i32, %c0_i32_0 : i32, i32
  }
  func.func @transform_4(%arg0: i32, %arg1: i32) -> (i32, i32) {
    %c0_i32 = arith.constant 0 : i32
    %c0_i32_0 = arith.constant 0 : i32
    %c0_i32_1 = arith.constant 0 : i32
    return %c0_i32, %c0_i32_0 : i32, i32
  }
  func.func @transform_5(%arg0: i32, %arg1: i32) -> (i32, i32) {
    %c0_i32 = arith.constant 0 : i32
    %c0_i32_0 = arith.constant 0 : i32
    %c0_i32_1 = arith.constant 0 : i32
    return %c0_i32, %c0_i32_0 : i32, i32
  }
  func.func @transform_6(%arg0: i32, %arg1: i32) -> (i32, i32, i32, i32) {
    %c0_i32 = arith.constant 0 : i32
    %c0_i32_0 = arith.constant 0 : i32
    %c0_i32_1 = arith.constant 0 : i32
    return %arg0, %arg1, %c0_i32, %c0_i32_0 : i32, i32, i32, i32
  }
}

module attributes {stable_mosaic.version = 11 : i64} {
  func.func @_conv3x3_kernel(%arg0: i32, %arg1: memref<1x16x16x128xf32, #tpu.memory_space<vmem>>, %arg2: memref<1x128xf32, #tpu.memory_space<vmem>>, %arg3: memref<1x128xf32, #tpu.memory_space<vmem>>, %arg4: memref<1152x128xf32, #tpu.memory_space<vmem>>, %arg5: memref<1x16x16x128xf32, #tpu.memory_space<vmem>>, %arg6: memref<1x1x8x128xf32, #tpu.memory_space<vmem>>, %arg7: memref<18x18x128xf32, #tpu.memory_space<vmem>>) attributes {dimension_semantics = [#tpu.dimension_semantics<parallel>], iteration_bounds = array<i64: 2>, scalar_prefetch = 0 : i64, scratch_operands = 1 : i64, tpu.core_type = #tpu.core_type<tc>, window_params = [{transform_indices = @transform_0, window_bounds = array<i64: 1, 16, 16, 128>}, {pipeline_mode = #tpu.pipeline_mode<synchronous>, transform_indices = @transform_1, window_bounds = array<i64: 1, 128>}, {pipeline_mode = #tpu.pipeline_mode<synchronous>, transform_indices = @transform_2, window_bounds = array<i64: 1, 128>}, {pipeline_mode = #tpu.pipeline_mode<synchronous>, transform_indices = @transform_3, window_bounds = array<i64: 1152, 128>}, {transform_indices = @transform_4, window_bounds = array<i64: 1, 16, 16, 128>}, {transform_indices = @transform_5, window_bounds = array<i64: 1, 1, 8, 128>}]} {
    %c0 = arith.constant 0 : index
    %c0_0 = arith.constant 0 : index
    %c0_1 = arith.constant 0 : index
    %c0_2 = arith.constant 0 : index
    %0 = vector.load %arg1[%c0, %c0_0, %c0_1, %c0_2] : memref<1x16x16x128xf32, #tpu.memory_space<vmem>>, vector<1x16x16x128xf32>
    %1 = vector.shape_cast %0 : vector<1x16x16x128xf32> to vector<16x16x128xf32>
    %c0_3 = arith.constant 0 : index
    %c0_4 = arith.constant 0 : index
    %2 = vector.load %arg2[%c0_3, %c0_4] : memref<1x128xf32, #tpu.memory_space<vmem>>, vector<1x128xf32>
    %3 = vector.shape_cast %2 : vector<1x128xf32> to vector<1x1x128xf32>
    %4 = vector.broadcast %3 : vector<1x1x128xf32> to vector<16x16x128xf32>
    %5 = arith.mulf %1, %4 : vector<16x16x128xf32>
    %c0_5 = arith.constant 0 : index
    %c0_6 = arith.constant 0 : index
    %6 = vector.load %arg3[%c0_5, %c0_6] : memref<1x128xf32, #tpu.memory_space<vmem>>, vector<1x128xf32>
    %7 = vector.shape_cast %6 : vector<1x128xf32> to vector<1x1x128xf32>
    %8 = vector.broadcast %7 : vector<1x1x128xf32> to vector<16x16x128xf32>
    %9 = arith.addf %5, %8 : vector<16x16x128xf32>
    %cst = arith.constant 0.000000e+00 : f32
    %10 = vector.broadcast %cst : f32 to vector<16x16x128xf32>
    %11 = arith.maximumf %9, %10 : vector<16x16x128xf32>
    %c1 = arith.constant 1 : index
    %c1_7 = arith.constant 1 : index
    %c0_8 = arith.constant 0 : index
    %12 = vector.load %arg7[%c1, %c1_7, %c0_8] : memref<18x18x128xf32, #tpu.memory_space<vmem>>, vector<16x16x128xf32>
    tpu.vector_store %arg7[%c1, %c1_7, %c0_8], %11 {strides = array<i32>} : memref<18x18x128xf32, #tpu.memory_space<vmem>>, vector<16x16x128xf32>,
    %cst_9 = arith.constant 0.000000e+00 : f32
    %13 = vector.broadcast %cst_9 : f32 to vector<1x18x128xf32>
    %cst_10 = arith.constant 0.000000e+00 : f32
    %14 = vector.broadcast %cst_10 : f32 to vector<18x1x128xf32>
    %c0_11 = arith.constant 0 : index
    %c0_12 = arith.constant 0 : index
    %c0_13 = arith.constant 0 : index
    %15 = vector.load %arg7[%c0_11, %c0_12, %c0_13] : memref<18x18x128xf32, #tpu.memory_space<vmem>>, vector<1x18x128xf32>
    tpu.vector_store %arg7[%c0_11, %c0_12, %c0_13], %13 {strides = array<i32>} : memref<18x18x128xf32, #tpu.memory_space<vmem>>, vector<1x18x128xf32>,
    %c17 = arith.constant 17 : index
    %c0_14 = arith.constant 0 : index
    %c0_15 = arith.constant 0 : index
    %16 = vector.load %arg7[%c17, %c0_14, %c0_15] : memref<18x18x128xf32, #tpu.memory_space<vmem>>, vector<1x18x128xf32>
    tpu.vector_store %arg7[%c17, %c0_14, %c0_15], %13 {strides = array<i32>} : memref<18x18x128xf32, #tpu.memory_space<vmem>>, vector<1x18x128xf32>,
    %c0_16 = arith.constant 0 : index
    %c0_17 = arith.constant 0 : index
    %c0_18 = arith.constant 0 : index
    %17 = vector.load %arg7[%c0_16, %c0_17, %c0_18] : memref<18x18x128xf32, #tpu.memory_space<vmem>>, vector<18x1x128xf32>
    tpu.vector_store %arg7[%c0_16, %c0_17, %c0_18], %14 {strides = array<i32>} : memref<18x18x128xf32, #tpu.memory_space<vmem>>, vector<18x1x128xf32>,
    %c0_19 = arith.constant 0 : index
    %c17_20 = arith.constant 17 : index
    %c0_21 = arith.constant 0 : index
    %18 = vector.load %arg7[%c0_19, %c17_20, %c0_21] : memref<18x18x128xf32, #tpu.memory_space<vmem>>, vector<18x1x128xf32>
    tpu.vector_store %arg7[%c0_19, %c17_20, %c0_21], %14 {strides = array<i32>} : memref<18x18x128xf32, #tpu.memory_space<vmem>>, vector<18x1x128xf32>,
    %cst_22 = arith.constant 0.000000e+00 : f32
    %19 = vector.broadcast %cst_22 : f32 to vector<256x128xf32>
    %c0_23 = arith.constant 0 : index
    %c0_24 = arith.constant 0 : index
    %c0_25 = arith.constant 0 : index
    %20 = vector.load %arg7[%c0_23, %c0_24, %c0_25] : memref<18x18x128xf32, #tpu.memory_space<vmem>>, vector<16x16x128xf32>
    %c0_26 = arith.constant 0 : index
    %c0_27 = arith.constant 0 : index
    %21 = vector.load %arg4[%c0_26, %c0_27] : memref<1152x128xf32, #tpu.memory_space<vmem>>, vector<128x128xf32>
    %22 = vector.shape_cast %20 : vector<16x16x128xf32> to vector<256x128xf32>
    %cst_28 = arith.constant dense<0.000000e+00> : vector<256x128xf32>
    %23 = tpu.matmul %22, %21, %cst_28 {dimension_numbers = #tpu.dot_dimension_numbers<[1], [0], [0], [1], [0, 0, 1, 1], [], []>} : vector<256x128xf32>, vector<128x128xf32>, vector<256x128xf32> -> vector<256x128xf32>
    %24 = arith.addf %19, %23 : vector<256x128xf32>
    %c0_29 = arith.constant 0 : index
    %c1_30 = arith.constant 1 : index
    %c0_31 = arith.constant 0 : index
    %25 = vector.load %arg7[%c0_29, %c1_30, %c0_31] : memref<18x18x128xf32, #tpu.memory_space<vmem>>, vector<16x16x128xf32>
    %c128 = arith.constant 128 : index
    %c0_32 = arith.constant 0 : index
    %26 = vector.load %arg4[%c128, %c0_32] : memref<1152x128xf32, #tpu.memory_space<vmem>>, vector<128x128xf32>
    %27 = vector.shape_cast %25 : vector<16x16x128xf32> to vector<256x128xf32>
    %cst_33 = arith.constant dense<0.000000e+00> : vector<256x128xf32>
    %28 = tpu.matmul %27, %26, %cst_33 {dimension_numbers = #tpu.dot_dimension_numbers<[1], [0], [0], [1], [0, 0, 1, 1], [], []>} : vector<256x128xf32>, vector<128x128xf32>, vector<256x128xf32> -> vector<256x128xf32>
    %29 = arith.addf %24, %28 : vector<256x128xf32>
    %c0_34 = arith.constant 0 : index
    %c2 = arith.constant 2 : index
    %c0_35 = arith.constant 0 : index
    %30 = vector.load %arg7[%c0_34, %c2, %c0_35] : memref<18x18x128xf32, #tpu.memory_space<vmem>>, vector<16x16x128xf32>
    %c256 = arith.constant 256 : index
    %c0_36 = arith.constant 0 : index
    %31 = vector.load %arg4[%c256, %c0_36] : memref<1152x128xf32, #tpu.memory_space<vmem>>, vector<128x128xf32>
    %32 = vector.shape_cast %30 : vector<16x16x128xf32> to vector<256x128xf32>
    %cst_37 = arith.constant dense<0.000000e+00> : vector<256x128xf32>
    %33 = tpu.matmul %32, %31, %cst_37 {dimension_numbers = #tpu.dot_dimension_numbers<[1], [0], [0], [1], [0, 0, 1, 1], [], []>} : vector<256x128xf32>, vector<128x128xf32>, vector<256x128xf32> -> vector<256x128xf32>
    %34 = arith.addf %29, %33 : vector<256x128xf32>
    %c1_38 = arith.constant 1 : index
    %c0_39 = arith.constant 0 : index
    %c0_40 = arith.constant 0 : index
    %35 = vector.load %arg7[%c1_38, %c0_39, %c0_40] : memref<18x18x128xf32, #tpu.memory_space<vmem>>, vector<16x16x128xf32>
    %c384 = arith.constant 384 : index
    %c0_41 = arith.constant 0 : index
    %36 = vector.load %arg4[%c384, %c0_41] : memref<1152x128xf32, #tpu.memory_space<vmem>>, vector<128x128xf32>
    %37 = vector.shape_cast %35 : vector<16x16x128xf32> to vector<256x128xf32>
    %cst_42 = arith.constant dense<0.000000e+00> : vector<256x128xf32>
    %38 = tpu.matmul %37, %36, %cst_42 {dimension_numbers = #tpu.dot_dimension_numbers<[1], [0], [0], [1], [0, 0, 1, 1], [], []>} : vector<256x128xf32>, vector<128x128xf32>, vector<256x128xf32> -> vector<256x128xf32>
    %39 = arith.addf %34, %38 : vector<256x128xf32>
    %c1_43 = arith.constant 1 : index
    %c1_44 = arith.constant 1 : index
    %c0_45 = arith.constant 0 : index
    %40 = vector.load %arg7[%c1_43, %c1_44, %c0_45] : memref<18x18x128xf32, #tpu.memory_space<vmem>>, vector<16x16x128xf32>
    %c512 = arith.constant 512 : index
    %c0_46 = arith.constant 0 : index
    %41 = vector.load %arg4[%c512, %c0_46] : memref<1152x128xf32, #tpu.memory_space<vmem>>, vector<128x128xf32>
    %42 = vector.shape_cast %40 : vector<16x16x128xf32> to vector<256x128xf32>
    %cst_47 = arith.constant dense<0.000000e+00> : vector<256x128xf32>
    %43 = tpu.matmul %42, %41, %cst_47 {dimension_numbers = #tpu.dot_dimension_numbers<[1], [0], [0], [1], [0, 0, 1, 1], [], []>} : vector<256x128xf32>, vector<128x128xf32>, vector<256x128xf32> -> vector<256x128xf32>
    %44 = arith.addf %39, %43 : vector<256x128xf32>
    %c1_48 = arith.constant 1 : index
    %c2_49 = arith.constant 2 : index
    %c0_50 = arith.constant 0 : index
    %45 = vector.load %arg7[%c1_48, %c2_49, %c0_50] : memref<18x18x128xf32, #tpu.memory_space<vmem>>, vector<16x16x128xf32>
    %c640 = arith.constant 640 : index
    %c0_51 = arith.constant 0 : index
    %46 = vector.load %arg4[%c640, %c0_51] : memref<1152x128xf32, #tpu.memory_space<vmem>>, vector<128x128xf32>
    %47 = vector.shape_cast %45 : vector<16x16x128xf32> to vector<256x128xf32>
    %cst_52 = arith.constant dense<0.000000e+00> : vector<256x128xf32>
    %48 = tpu.matmul %47, %46, %cst_52 {dimension_numbers = #tpu.dot_dimension_numbers<[1], [0], [0], [1], [0, 0, 1, 1], [], []>} : vector<256x128xf32>, vector<128x128xf32>, vector<256x128xf32> -> vector<256x128xf32>
    %49 = arith.addf %44, %48 : vector<256x128xf32>
    %c2_53 = arith.constant 2 : index
    %c0_54 = arith.constant 0 : index
    %c0_55 = arith.constant 0 : index
    %50 = vector.load %arg7[%c2_53, %c0_54, %c0_55] : memref<18x18x128xf32, #tpu.memory_space<vmem>>, vector<16x16x128xf32>
    %c768 = arith.constant 768 : index
    %c0_56 = arith.constant 0 : index
    %51 = vector.load %arg4[%c768, %c0_56] : memref<1152x128xf32, #tpu.memory_space<vmem>>, vector<128x128xf32>
    %52 = vector.shape_cast %50 : vector<16x16x128xf32> to vector<256x128xf32>
    %cst_57 = arith.constant dense<0.000000e+00> : vector<256x128xf32>
    %53 = tpu.matmul %52, %51, %cst_57 {dimension_numbers = #tpu.dot_dimension_numbers<[1], [0], [0], [1], [0, 0, 1, 1], [], []>} : vector<256x128xf32>, vector<128x128xf32>, vector<256x128xf32> -> vector<256x128xf32>
    %54 = arith.addf %49, %53 : vector<256x128xf32>
    %c2_58 = arith.constant 2 : index
    %c1_59 = arith.constant 1 : index
    %c0_60 = arith.constant 0 : index
    %55 = vector.load %arg7[%c2_58, %c1_59, %c0_60] : memref<18x18x128xf32, #tpu.memory_space<vmem>>, vector<16x16x128xf32>
    %c896 = arith.constant 896 : index
    %c0_61 = arith.constant 0 : index
    %56 = vector.load %arg4[%c896, %c0_61] : memref<1152x128xf32, #tpu.memory_space<vmem>>, vector<128x128xf32>
    %57 = vector.shape_cast %55 : vector<16x16x128xf32> to vector<256x128xf32>
    %cst_62 = arith.constant dense<0.000000e+00> : vector<256x128xf32>
    %58 = tpu.matmul %57, %56, %cst_62 {dimension_numbers = #tpu.dot_dimension_numbers<[1], [0], [0], [1], [0, 0, 1, 1], [], []>} : vector<256x128xf32>, vector<128x128xf32>, vector<256x128xf32> -> vector<256x128xf32>
    %59 = arith.addf %54, %58 : vector<256x128xf32>
    %c2_63 = arith.constant 2 : index
    %c2_64 = arith.constant 2 : index
    %c0_65 = arith.constant 0 : index
    %60 = vector.load %arg7[%c2_63, %c2_64, %c0_65] : memref<18x18x128xf32, #tpu.memory_space<vmem>>, vector<16x16x128xf32>
    %c1024 = arith.constant 1024 : index
    %c0_66 = arith.constant 0 : index
    %61 = vector.load %arg4[%c1024, %c0_66] : memref<1152x128xf32, #tpu.memory_space<vmem>>, vector<128x128xf32>
    %62 = vector.shape_cast %60 : vector<16x16x128xf32> to vector<256x128xf32>
    %cst_67 = arith.constant dense<0.000000e+00> : vector<256x128xf32>
    %63 = tpu.matmul %62, %61, %cst_67 {dimension_numbers = #tpu.dot_dimension_numbers<[1], [0], [0], [1], [0, 0, 1, 1], [], []>} : vector<256x128xf32>, vector<128x128xf32>, vector<256x128xf32> -> vector<256x128xf32>
    %64 = arith.addf %59, %63 : vector<256x128xf32>
    %65 = vector.shape_cast %64 : vector<256x128xf32> to vector<1x16x16x128xf32>
    %c0_68 = arith.constant 0 : index
    %c0_69 = arith.constant 0 : index
    %c0_70 = arith.constant 0 : index
    %c0_71 = arith.constant 0 : index
    %66 = vector.load %arg5[%c0_68, %c0_69, %c0_70, %c0_71] : memref<1x16x16x128xf32, #tpu.memory_space<vmem>>, vector<1x16x16x128xf32>
    tpu.vector_store %arg5[%c0_68, %c0_69, %c0_70, %c0_71], %65 {strides = array<i32>} : memref<1x16x16x128xf32, #tpu.memory_space<vmem>>, vector<1x16x16x128xf32>,
    %cst_72 = arith.constant dense<0.000000e+00> : vector<128xf32>
    %67 = vector.multi_reduction <add>, %64, %cst_72 [0] : vector<256x128xf32> to vector<128xf32>
    %68 = arith.mulf %64, %64 : vector<256x128xf32>
    %cst_73 = arith.constant dense<0.000000e+00> : vector<128xf32>
    %69 = vector.multi_reduction <add>, %68, %cst_73 [0] : vector<256x128xf32> to vector<128xf32>
    %70 = tpu.iota {dimensions = array<i32: 0>} : vector<8x128xi32>
    %c0_i32 = arith.constant 0 : i32
    %71 = vector.broadcast %c0_i32 : i32 to vector<8x128xi32>
    %72 = arith.cmpi eq, %70, %71 : vector<8x128xi32>
    %73 = vector.shape_cast %67 : vector<128xf32> to vector<1x128xf32>
    %c1_i32 = arith.constant 1 : i32
    %74 = vector.broadcast %c1_i32 : i32 to vector<8x128xi32>
    %75 = arith.cmpi eq, %70, %74 : vector<8x128xi32>
    %76 = vector.shape_cast %69 : vector<128xf32> to vector<1x128xf32>
    %cst_74 = arith.constant 0.000000e+00 : f32
    %77 = vector.shape_cast %76 : vector<1x128xf32> to vector<1x128xf32>
    %78 = vector.broadcast %77 : vector<1x128xf32> to vector<8x128xf32>
    %79 = vector.broadcast %cst_74 : f32 to vector<8x128xf32>
    %80 = arith.select %75, %78, %79 : vector<8x128xi1>, vector<8x128xf32>
    %81 = vector.shape_cast %73 : vector<1x128xf32> to vector<1x128xf32>
    %82 = vector.broadcast %81 : vector<1x128xf32> to vector<8x128xf32>
    %83 = arith.select %72, %82, %80 : vector<8x128xi1>, vector<8x128xf32>
    %84 = vector.shape_cast %83 : vector<8x128xf32> to vector<1x1x8x128xf32>
    %c0_75 = arith.constant 0 : index
    %c0_76 = arith.constant 0 : index
    %c0_77 = arith.constant 0 : index
    %c0_78 = arith.constant 0 : index
    %85 = vector.load %arg6[%c0_75, %c0_76, %c0_77, %c0_78] : memref<1x1x8x128xf32, #tpu.memory_space<vmem>>, vector<1x1x8x128xf32>
    tpu.vector_store %arg6[%c0_75, %c0_76, %c0_77, %c0_78], %84 {strides = array<i32>} : memref<1x1x8x128xf32, #tpu.memory_space<vmem>>, vector<1x1x8x128xf32>,
    return
  }
  func.func @transform_0(%arg0: i32) -> (i32, i32, i32, i32) {
    %c0_i32 = arith.constant 0 : i32
    %c0_i32_0 = arith.constant 0 : i32
    %c0_i32_1 = arith.constant 0 : i32
    %c0_i32_2 = arith.constant 0 : i32
    return %arg0, %c0_i32, %c0_i32_0, %c0_i32_1 : i32, i32, i32, i32
  }
  func.func @transform_1(%arg0: i32) -> (i32, i32) {
    %c0_i32 = arith.constant 0 : i32
    %c0_i32_0 = arith.constant 0 : i32
    %c0_i32_1 = arith.constant 0 : i32
    return %c0_i32, %c0_i32_0 : i32, i32
  }
  func.func @transform_2(%arg0: i32) -> (i32, i32) {
    %c0_i32 = arith.constant 0 : i32
    %c0_i32_0 = arith.constant 0 : i32
    %c0_i32_1 = arith.constant 0 : i32
    return %c0_i32, %c0_i32_0 : i32, i32
  }
  func.func @transform_3(%arg0: i32) -> (i32, i32) {
    %c0_i32 = arith.constant 0 : i32
    %c0_i32_0 = arith.constant 0 : i32
    %c0_i32_1 = arith.constant 0 : i32
    return %c0_i32, %c0_i32_0 : i32, i32
  }
  func.func @transform_4(%arg0: i32) -> (i32, i32, i32, i32) {
    %c0_i32 = arith.constant 0 : i32
    %c0_i32_0 = arith.constant 0 : i32
    %c0_i32_1 = arith.constant 0 : i32
    %c0_i32_2 = arith.constant 0 : i32
    return %arg0, %c0_i32, %c0_i32_0, %c0_i32_1 : i32, i32, i32, i32
  }
  func.func @transform_5(%arg0: i32) -> (i32, i32, i32, i32) {
    %c0_i32 = arith.constant 0 : i32
    %c0_i32_0 = arith.constant 0 : i32
    %c0_i32_1 = arith.constant 0 : i32
    %c0_i32_2 = arith.constant 0 : i32
    return %arg0, %c0_i32, %c0_i32_0, %c0_i32_1 : i32, i32, i32, i32
  }
}

module attributes {stable_mosaic.version = 11 : i64} {
  func.func @_conv1x1_kernel(%arg0: i32, %arg1: i32, %arg2: memref<1x8x8x128xf32, #tpu.memory_space<vmem>>, %arg3: memref<1x128xf32, #tpu.memory_space<vmem>>, %arg4: memref<1x128xf32, #tpu.memory_space<vmem>>, %arg5: memref<128x128xf32, #tpu.memory_space<vmem>>, %arg6: memref<1x8x8x128xf32, #tpu.memory_space<vmem>>, %arg7: memref<1x1x8x128xf32, #tpu.memory_space<vmem>>) attributes {dimension_semantics = [#tpu.dimension_semantics<parallel>, #tpu.dimension_semantics<parallel>], iteration_bounds = array<i64: 2, 1>, scalar_prefetch = 0 : i64, scratch_operands = 0 : i64, tpu.core_type = #tpu.core_type<tc>, window_params = [{transform_indices = @transform_0, window_bounds = array<i64: 1, 8, 8, 128>}, {pipeline_mode = #tpu.pipeline_mode<synchronous>, transform_indices = @transform_1, window_bounds = array<i64: 1, 128>}, {pipeline_mode = #tpu.pipeline_mode<synchronous>, transform_indices = @transform_2, window_bounds = array<i64: 1, 128>}, {pipeline_mode = #tpu.pipeline_mode<synchronous>, transform_indices = @transform_3, window_bounds = array<i64: 128, 128>}, {transform_indices = @transform_4, window_bounds = array<i64: 1, 8, 8, 128>}, {transform_indices = @transform_5, window_bounds = array<i64: 1, 1, 8, 128>}]} {
    %c0 = arith.constant 0 : index
    %c0_0 = arith.constant 0 : index
    %c0_1 = arith.constant 0 : index
    %c0_2 = arith.constant 0 : index
    %0 = vector.load %arg2[%c0, %c0_0, %c0_1, %c0_2] : memref<1x8x8x128xf32, #tpu.memory_space<vmem>>, vector<1x8x8x128xf32>
    %1 = vector.shape_cast %0 : vector<1x8x8x128xf32> to vector<64x128xf32>
    %c0_3 = arith.constant 0 : index
    %c0_4 = arith.constant 0 : index
    %2 = vector.load %arg5[%c0_3, %c0_4] : memref<128x128xf32, #tpu.memory_space<vmem>>, vector<128x128xf32>
    %cst = arith.constant dense<0.000000e+00> : vector<64x128xf32>
    %3 = tpu.matmul %1, %2, %cst {dimension_numbers = #tpu.dot_dimension_numbers<[1], [0], [0], [1], [0, 0, 1, 1], [], []>} : vector<64x128xf32>, vector<128x128xf32>, vector<64x128xf32> -> vector<64x128xf32>
    %4 = vector.shape_cast %3 : vector<64x128xf32> to vector<1x8x8x128xf32>
    %c0_5 = arith.constant 0 : index
    %c0_6 = arith.constant 0 : index
    %c0_7 = arith.constant 0 : index
    %c0_8 = arith.constant 0 : index
    %5 = vector.load %arg6[%c0_5, %c0_6, %c0_7, %c0_8] : memref<1x8x8x128xf32, #tpu.memory_space<vmem>>, vector<1x8x8x128xf32>
    tpu.vector_store %arg6[%c0_5, %c0_6, %c0_7, %c0_8], %4 {strides = array<i32>} : memref<1x8x8x128xf32, #tpu.memory_space<vmem>>, vector<1x8x8x128xf32>,
    %cst_9 = arith.constant dense<0.000000e+00> : vector<128xf32>
    %6 = vector.multi_reduction <add>, %3, %cst_9 [0] : vector<64x128xf32> to vector<128xf32>
    %7 = arith.mulf %3, %3 : vector<64x128xf32>
    %cst_10 = arith.constant dense<0.000000e+00> : vector<128xf32>
    %8 = vector.multi_reduction <add>, %7, %cst_10 [0] : vector<64x128xf32> to vector<128xf32>
    %9 = tpu.iota {dimensions = array<i32: 0>} : vector<8x128xi32>
    %c0_i32 = arith.constant 0 : i32
    %10 = vector.broadcast %c0_i32 : i32 to vector<8x128xi32>
    %11 = arith.cmpi eq, %9, %10 : vector<8x128xi32>
    %12 = vector.shape_cast %6 : vector<128xf32> to vector<1x128xf32>
    %c1_i32 = arith.constant 1 : i32
    %13 = vector.broadcast %c1_i32 : i32 to vector<8x128xi32>
    %14 = arith.cmpi eq, %9, %13 : vector<8x128xi32>
    %15 = vector.shape_cast %8 : vector<128xf32> to vector<1x128xf32>
    %cst_11 = arith.constant 0.000000e+00 : f32
    %16 = vector.shape_cast %15 : vector<1x128xf32> to vector<1x128xf32>
    %17 = vector.broadcast %16 : vector<1x128xf32> to vector<8x128xf32>
    %18 = vector.broadcast %cst_11 : f32 to vector<8x128xf32>
    %19 = arith.select %14, %17, %18 : vector<8x128xi1>, vector<8x128xf32>
    %20 = vector.shape_cast %12 : vector<1x128xf32> to vector<1x128xf32>
    %21 = vector.broadcast %20 : vector<1x128xf32> to vector<8x128xf32>
    %22 = arith.select %11, %21, %19 : vector<8x128xi1>, vector<8x128xf32>
    %23 = vector.shape_cast %22 : vector<8x128xf32> to vector<1x1x8x128xf32>
    %c0_12 = arith.constant 0 : index
    %c0_13 = arith.constant 0 : index
    %c0_14 = arith.constant 0 : index
    %c0_15 = arith.constant 0 : index
    %24 = vector.load %arg7[%c0_12, %c0_13, %c0_14, %c0_15] : memref<1x1x8x128xf32, #tpu.memory_space<vmem>>, vector<1x1x8x128xf32>
    tpu.vector_store %arg7[%c0_12, %c0_13, %c0_14, %c0_15], %23 {strides = array<i32>} : memref<1x1x8x128xf32, #tpu.memory_space<vmem>>, vector<1x1x8x128xf32>,
    return
  }
  func.func @transform_0(%arg0: i32, %arg1: i32) -> (i32, i32, i32, i32) {
    %c0_i32 = arith.constant 0 : i32
    %c0_i32_0 = arith.constant 0 : i32
    %c0_i32_1 = arith.constant 0 : i32
    return %arg0, %arg1, %c0_i32, %c0_i32_0 : i32, i32, i32, i32
  }
  func.func @transform_1(%arg0: i32, %arg1: i32) -> (i32, i32) {
    %c0_i32 = arith.constant 0 : i32
    %c0_i32_0 = arith.constant 0 : i32
    %c0_i32_1 = arith.constant 0 : i32
    return %c0_i32, %c0_i32_0 : i32, i32
  }
  func.func @transform_2(%arg0: i32, %arg1: i32) -> (i32, i32) {
    %c0_i32 = arith.constant 0 : i32
    %c0_i32_0 = arith.constant 0 : i32
    %c0_i32_1 = arith.constant 0 : i32
    return %c0_i32, %c0_i32_0 : i32, i32
  }
  func.func @transform_3(%arg0: i32, %arg1: i32) -> (i32, i32) {
    %c0_i32 = arith.constant 0 : i32
    %c0_i32_0 = arith.constant 0 : i32
    %c0_i32_1 = arith.constant 0 : i32
    return %c0_i32, %c0_i32_0 : i32, i32
  }
  func.func @transform_4(%arg0: i32, %arg1: i32) -> (i32, i32, i32, i32) {
    %c0_i32 = arith.constant 0 : i32
    %c0_i32_0 = arith.constant 0 : i32
    %c0_i32_1 = arith.constant 0 : i32
    return %arg0, %arg1, %c0_i32, %c0_i32_0 : i32, i32, i32, i32
  }
  func.func @transform_5(%arg0: i32, %arg1: i32) -> (i32, i32, i32, i32) {
    %c0_i32 = arith.constant 0 : i32
    %c0_i32_0 = arith.constant 0 : i32
    %c0_i32_1 = arith.constant 0 : i32
    return %arg0, %arg1, %c0_i32, %c0_i32_0 : i32, i32, i32, i32
  }
}

module attributes {stable_mosaic.version = 11 : i64} {
  func.func @_conv1x1_kernel(%arg0: i32, %arg1: i32, %arg2: memref<1x8x8x128xf32, #tpu.memory_space<vmem>>, %arg3: memref<1x128xf32, #tpu.memory_space<vmem>>, %arg4: memref<1x128xf32, #tpu.memory_space<vmem>>, %arg5: memref<128x128xf32, #tpu.memory_space<vmem>>, %arg6: memref<1x8x8x128xf32, #tpu.memory_space<vmem>>, %arg7: memref<1x1x8x128xf32, #tpu.memory_space<vmem>>) attributes {dimension_semantics = [#tpu.dimension_semantics<parallel>, #tpu.dimension_semantics<parallel>], iteration_bounds = array<i64: 2, 1>, scalar_prefetch = 0 : i64, scratch_operands = 0 : i64, tpu.core_type = #tpu.core_type<tc>, window_params = [{transform_indices = @transform_0, window_bounds = array<i64: 1, 8, 8, 128>}, {pipeline_mode = #tpu.pipeline_mode<synchronous>, transform_indices = @transform_1, window_bounds = array<i64: 1, 128>}, {pipeline_mode = #tpu.pipeline_mode<synchronous>, transform_indices = @transform_2, window_bounds = array<i64: 1, 128>}, {pipeline_mode = #tpu.pipeline_mode<synchronous>, transform_indices = @transform_3, window_bounds = array<i64: 128, 128>}, {transform_indices = @transform_4, window_bounds = array<i64: 1, 8, 8, 128>}, {transform_indices = @transform_5, window_bounds = array<i64: 1, 1, 8, 128>}]} {
    %c0 = arith.constant 0 : index
    %c0_0 = arith.constant 0 : index
    %c0_1 = arith.constant 0 : index
    %c0_2 = arith.constant 0 : index
    %0 = vector.load %arg2[%c0, %c0_0, %c0_1, %c0_2] : memref<1x8x8x128xf32, #tpu.memory_space<vmem>>, vector<1x8x8x128xf32>
    %1 = vector.shape_cast %0 : vector<1x8x8x128xf32> to vector<64x128xf32>
    %c0_3 = arith.constant 0 : index
    %c0_4 = arith.constant 0 : index
    %2 = vector.load %arg3[%c0_3, %c0_4] : memref<1x128xf32, #tpu.memory_space<vmem>>, vector<1x128xf32>
    %3 = vector.broadcast %2 : vector<1x128xf32> to vector<64x128xf32>
    %4 = arith.mulf %1, %3 : vector<64x128xf32>
    %c0_5 = arith.constant 0 : index
    %c0_6 = arith.constant 0 : index
    %5 = vector.load %arg4[%c0_5, %c0_6] : memref<1x128xf32, #tpu.memory_space<vmem>>, vector<1x128xf32>
    %6 = vector.broadcast %5 : vector<1x128xf32> to vector<64x128xf32>
    %7 = arith.addf %4, %6 : vector<64x128xf32>
    %cst = arith.constant 0.000000e+00 : f32
    %8 = vector.broadcast %cst : f32 to vector<64x128xf32>
    %9 = arith.maximumf %7, %8 : vector<64x128xf32>
    %c0_7 = arith.constant 0 : index
    %c0_8 = arith.constant 0 : index
    %10 = vector.load %arg5[%c0_7, %c0_8] : memref<128x128xf32, #tpu.memory_space<vmem>>, vector<128x128xf32>
    %cst_9 = arith.constant dense<0.000000e+00> : vector<64x128xf32>
    %11 = tpu.matmul %9, %10, %cst_9 {dimension_numbers = #tpu.dot_dimension_numbers<[1], [0], [0], [1], [0, 0, 1, 1], [], []>} : vector<64x128xf32>, vector<128x128xf32>, vector<64x128xf32> -> vector<64x128xf32>
    %12 = vector.shape_cast %11 : vector<64x128xf32> to vector<1x8x8x128xf32>
    %c0_10 = arith.constant 0 : index
    %c0_11 = arith.constant 0 : index
    %c0_12 = arith.constant 0 : index
    %c0_13 = arith.constant 0 : index
    %13 = vector.load %arg6[%c0_10, %c0_11, %c0_12, %c0_13] : memref<1x8x8x128xf32, #tpu.memory_space<vmem>>, vector<1x8x8x128xf32>
    tpu.vector_store %arg6[%c0_10, %c0_11, %c0_12, %c0_13], %12 {strides = array<i32>} : memref<1x8x8x128xf32, #tpu.memory_space<vmem>>, vector<1x8x8x128xf32>,
    %cst_14 = arith.constant dense<0.000000e+00> : vector<128xf32>
    %14 = vector.multi_reduction <add>, %11, %cst_14 [0] : vector<64x128xf32> to vector<128xf32>
    %15 = arith.mulf %11, %11 : vector<64x128xf32>
    %cst_15 = arith.constant dense<0.000000e+00> : vector<128xf32>
    %16 = vector.multi_reduction <add>, %15, %cst_15 [0] : vector<64x128xf32> to vector<128xf32>
    %17 = tpu.iota {dimensions = array<i32: 0>} : vector<8x128xi32>
    %c0_i32 = arith.constant 0 : i32
    %18 = vector.broadcast %c0_i32 : i32 to vector<8x128xi32>
    %19 = arith.cmpi eq, %17, %18 : vector<8x128xi32>
    %20 = vector.shape_cast %14 : vector<128xf32> to vector<1x128xf32>
    %c1_i32 = arith.constant 1 : i32
    %21 = vector.broadcast %c1_i32 : i32 to vector<8x128xi32>
    %22 = arith.cmpi eq, %17, %21 : vector<8x128xi32>
    %23 = vector.shape_cast %16 : vector<128xf32> to vector<1x128xf32>
    %cst_16 = arith.constant 0.000000e+00 : f32
    %24 = vector.shape_cast %23 : vector<1x128xf32> to vector<1x128xf32>
    %25 = vector.broadcast %24 : vector<1x128xf32> to vector<8x128xf32>
    %26 = vector.broadcast %cst_16 : f32 to vector<8x128xf32>
    %27 = arith.select %22, %25, %26 : vector<8x128xi1>, vector<8x128xf32>
    %28 = vector.shape_cast %20 : vector<1x128xf32> to vector<1x128xf32>
    %29 = vector.broadcast %28 : vector<1x128xf32> to vector<8x128xf32>
    %30 = arith.select %19, %29, %27 : vector<8x128xi1>, vector<8x128xf32>
    %31 = vector.shape_cast %30 : vector<8x128xf32> to vector<1x1x8x128xf32>
    %c0_17 = arith.constant 0 : index
    %c0_18 = arith.constant 0 : index
    %c0_19 = arith.constant 0 : index
    %c0_20 = arith.constant 0 : index
    %32 = vector.load %arg7[%c0_17, %c0_18, %c0_19, %c0_20] : memref<1x1x8x128xf32, #tpu.memory_space<vmem>>, vector<1x1x8x128xf32>
    tpu.vector_store %arg7[%c0_17, %c0_18, %c0_19, %c0_20], %31 {strides = array<i32>} : memref<1x1x8x128xf32, #tpu.memory_space<vmem>>, vector<1x1x8x128xf32>,
    return
  }
  func.func @transform_0(%arg0: i32, %arg1: i32) -> (i32, i32, i32, i32) {
    %c0_i32 = arith.constant 0 : i32
    %c0_i32_0 = arith.constant 0 : i32
    %c0_i32_1 = arith.constant 0 : i32
    return %arg0, %arg1, %c0_i32, %c0_i32_0 : i32, i32, i32, i32
  }
  func.func @transform_1(%arg0: i32, %arg1: i32) -> (i32, i32) {
    %c0_i32 = arith.constant 0 : i32
    %c0_i32_0 = arith.constant 0 : i32
    %c0_i32_1 = arith.constant 0 : i32
    return %c0_i32, %c0_i32_0 : i32, i32
  }
  func.func @transform_2(%arg0: i32, %arg1: i32) -> (i32, i32) {
    %c0_i32 = arith.constant 0 : i32
    %c0_i32_0 = arith.constant 0 : i32
    %c0_i32_1 = arith.constant 0 : i32
    return %c0_i32, %c0_i32_0 : i32, i32
  }
  func.func @transform_3(%arg0: i32, %arg1: i32) -> (i32, i32) {
    %c0_i32 = arith.constant 0 : i32
    %c0_i32_0 = arith.constant 0 : i32
    %c0_i32_1 = arith.constant 0 : i32
    return %c0_i32, %c0_i32_0 : i32, i32
  }
  func.func @transform_4(%arg0: i32, %arg1: i32) -> (i32, i32, i32, i32) {
    %c0_i32 = arith.constant 0 : i32
    %c0_i32_0 = arith.constant 0 : i32
    %c0_i32_1 = arith.constant 0 : i32
    return %arg0, %arg1, %c0_i32, %c0_i32_0 : i32, i32, i32, i32
  }
  func.func @transform_5(%arg0: i32, %arg1: i32) -> (i32, i32, i32, i32) {
    %c0_i32 = arith.constant 0 : i32
    %c0_i32_0 = arith.constant 0 : i32
    %c0_i32_1 = arith.constant 0 : i32
    return %arg0, %arg1, %c0_i32, %c0_i32_0 : i32, i32, i32, i32
  }
}

module attributes {stable_mosaic.version = 11 : i64} {
  func.func @_bn_add_relu_kernel(%arg0: i32, %arg1: i32, %arg2: memref<1x8x8x128xf32, #tpu.memory_space<vmem>>, %arg3: memref<1x8x8x128xf32, #tpu.memory_space<vmem>>, %arg4: memref<1x128xf32, #tpu.memory_space<vmem>>, %arg5: memref<1x128xf32, #tpu.memory_space<vmem>>, %arg6: memref<1x128xf32, #tpu.memory_space<vmem>>, %arg7: memref<1x128xf32, #tpu.memory_space<vmem>>, %arg8: memref<1x8x8x128xf32, #tpu.memory_space<vmem>>) attributes {dimension_semantics = [#tpu.dimension_semantics<parallel>, #tpu.dimension_semantics<parallel>], iteration_bounds = array<i64: 2, 1>, scalar_prefetch = 0 : i64, scratch_operands = 0 : i64, tpu.core_type = #tpu.core_type<tc>, window_params = [{transform_indices = @transform_0, window_bounds = array<i64: 1, 8, 8, 128>}, {transform_indices = @transform_1, window_bounds = array<i64: 1, 8, 8, 128>}, {pipeline_mode = #tpu.pipeline_mode<synchronous>, transform_indices = @transform_2, window_bounds = array<i64: 1, 128>}, {pipeline_mode = #tpu.pipeline_mode<synchronous>, transform_indices = @transform_3, window_bounds = array<i64: 1, 128>}, {pipeline_mode = #tpu.pipeline_mode<synchronous>, transform_indices = @transform_4, window_bounds = array<i64: 1, 128>}, {pipeline_mode = #tpu.pipeline_mode<synchronous>, transform_indices = @transform_5, window_bounds = array<i64: 1, 128>}, {transform_indices = @transform_6, window_bounds = array<i64: 1, 8, 8, 128>}]} {
    %c0 = arith.constant 0 : index
    %c0_0 = arith.constant 0 : index
    %c0_1 = arith.constant 0 : index
    %c0_2 = arith.constant 0 : index
    %0 = vector.load %arg2[%c0, %c0_0, %c0_1, %c0_2] : memref<1x8x8x128xf32, #tpu.memory_space<vmem>>, vector<1x8x8x128xf32>
    %c0_3 = arith.constant 0 : index
    %c0_4 = arith.constant 0 : index
    %1 = vector.load %arg4[%c0_3, %c0_4] : memref<1x128xf32, #tpu.memory_space<vmem>>, vector<1x128xf32>
    %2 = vector.shape_cast %1 : vector<1x128xf32> to vector<1x1x1x128xf32>
    %3 = vector.broadcast %2 : vector<1x1x1x128xf32> to vector<1x8x8x128xf32>
    %4 = arith.mulf %0, %3 : vector<1x8x8x128xf32>
    %c0_5 = arith.constant 0 : index
    %c0_6 = arith.constant 0 : index
    %5 = vector.load %arg5[%c0_5, %c0_6] : memref<1x128xf32, #tpu.memory_space<vmem>>, vector<1x128xf32>
    %6 = vector.shape_cast %5 : vector<1x128xf32> to vector<1x1x1x128xf32>
    %7 = vector.broadcast %6 : vector<1x1x1x128xf32> to vector<1x8x8x128xf32>
    %8 = arith.addf %4, %7 : vector<1x8x8x128xf32>
    %c0_7 = arith.constant 0 : index
    %c0_8 = arith.constant 0 : index
    %c0_9 = arith.constant 0 : index
    %c0_10 = arith.constant 0 : index
    %9 = vector.load %arg3[%c0_7, %c0_8, %c0_9, %c0_10] : memref<1x8x8x128xf32, #tpu.memory_space<vmem>>, vector<1x8x8x128xf32>
    %c0_11 = arith.constant 0 : index
    %c0_12 = arith.constant 0 : index
    %10 = vector.load %arg6[%c0_11, %c0_12] : memref<1x128xf32, #tpu.memory_space<vmem>>, vector<1x128xf32>
    %11 = vector.shape_cast %10 : vector<1x128xf32> to vector<1x1x1x128xf32>
    %12 = vector.broadcast %11 : vector<1x1x1x128xf32> to vector<1x8x8x128xf32>
    %13 = arith.mulf %9, %12 : vector<1x8x8x128xf32>
    %c0_13 = arith.constant 0 : index
    %c0_14 = arith.constant 0 : index
    %14 = vector.load %arg7[%c0_13, %c0_14] : memref<1x128xf32, #tpu.memory_space<vmem>>, vector<1x128xf32>
    %15 = vector.shape_cast %14 : vector<1x128xf32> to vector<1x1x1x128xf32>
    %16 = vector.broadcast %15 : vector<1x1x1x128xf32> to vector<1x8x8x128xf32>
    %17 = arith.addf %13, %16 : vector<1x8x8x128xf32>
    %18 = arith.addf %8, %17 : vector<1x8x8x128xf32>
    %cst = arith.constant 0.000000e+00 : f32
    %19 = vector.broadcast %cst : f32 to vector<1x8x8x128xf32>
    %20 = arith.maximumf %18, %19 : vector<1x8x8x128xf32>
    %c0_15 = arith.constant 0 : index
    %c0_16 = arith.constant 0 : index
    %c0_17 = arith.constant 0 : index
    %c0_18 = arith.constant 0 : index
    %21 = vector.load %arg8[%c0_15, %c0_16, %c0_17, %c0_18] : memref<1x8x8x128xf32, #tpu.memory_space<vmem>>, vector<1x8x8x128xf32>
    tpu.vector_store %arg8[%c0_15, %c0_16, %c0_17, %c0_18], %20 {strides = array<i32>} : memref<1x8x8x128xf32, #tpu.memory_space<vmem>>, vector<1x8x8x128xf32>,
    return
  }
  func.func @transform_0(%arg0: i32, %arg1: i32) -> (i32, i32, i32, i32) {
    %c0_i32 = arith.constant 0 : i32
    %c0_i32_0 = arith.constant 0 : i32
    %c0_i32_1 = arith.constant 0 : i32
    return %arg0, %arg1, %c0_i32, %c0_i32_0 : i32, i32, i32, i32
  }
  func.func @transform_1(%arg0: i32, %arg1: i32) -> (i32, i32, i32, i32) {
    %c0_i32 = arith.constant 0 : i32
    %c0_i32_0 = arith.constant 0 : i32
    %c0_i32_1 = arith.constant 0 : i32
    return %arg0, %arg1, %c0_i32, %c0_i32_0 : i32, i32, i32, i32
  }
  func.func @transform_2(%arg0: i32, %arg1: i32) -> (i32, i32) {
    %c0_i32 = arith.constant 0 : i32
    %c0_i32_0 = arith.constant 0 : i32
    %c0_i32_1 = arith.constant 0 : i32
    return %c0_i32, %c0_i32_0 : i32, i32
  }
  func.func @transform_3(%arg0: i32, %arg1: i32) -> (i32, i32) {
    %c0_i32 = arith.constant 0 : i32
    %c0_i32_0 = arith.constant 0 : i32
    %c0_i32_1 = arith.constant 0 : i32
    return %c0_i32, %c0_i32_0 : i32, i32
  }
  func.func @transform_4(%arg0: i32, %arg1: i32) -> (i32, i32) {
    %c0_i32 = arith.constant 0 : i32
    %c0_i32_0 = arith.constant 0 : i32
    %c0_i32_1 = arith.constant 0 : i32
    return %c0_i32, %c0_i32_0 : i32, i32
  }
  func.func @transform_5(%arg0: i32, %arg1: i32) -> (i32, i32) {
    %c0_i32 = arith.constant 0 : i32
    %c0_i32_0 = arith.constant 0 : i32
    %c0_i32_1 = arith.constant 0 : i32
    return %c0_i32, %c0_i32_0 : i32, i32
  }
  func.func @transform_6(%arg0: i32, %arg1: i32) -> (i32, i32, i32, i32) {
    %c0_i32 = arith.constant 0 : i32
    %c0_i32_0 = arith.constant 0 : i32
    %c0_i32_1 = arith.constant 0 : i32
    return %arg0, %arg1, %c0_i32, %c0_i32_0 : i32, i32, i32, i32
  }
}

</mosaic_0001>

<bundles_post_ra>
// kernel: resblock_forward.14
= control target key start
LH: loop header
LB: loop body
LE: loop exit
PB: predicated region body
PF: predicated region fallthrough
CT: control target
= control target key end

     0   :  { %s1111_s18 = smov 0   ;;  %s1113_s19 = smov 0   ;;  %s1349_s0 = inlined_call_operand.vmem [shape: f32[2,16,16,128], index: 0, kind: input, shape index: {}]   ;;  %s1350_s1 = inlined_call_operand.vmem [shape: f32[1,128], index: 1, kind: input, shape index: {}, may-alias: {1,2}]   ;;  %s1351_s2 = inlined_call_operand.vmem [shape: f32[1,128], index: 2, kind: input, shape index: {}, may-alias: {1,2}]   ;;  %s1352_s3 = inlined_call_operand.vmem [shape: f32[128,128], index: 3, kind: input, shape index: {}]   ;;  %s1353_s4 = inlined_call_operand.vmem [shape: f32[2,16,16,128], index: 4, kind: output, shape index: {0}]   ;;  %s1354_s5 = inlined_call_operand.vmem [shape: f32[2,1,8,128], index: 5, kind: output, shape index: {1}]  }
   0x1   :  { %s1115_s20 = smov 0  }
   0x2 LB: > { %s28_s1 = sadd.s32 1, %s1075_s19  ;;  %p847_p0 = scmp.ge.s32.totalorder %s1079_s20, 1  ;;  %s1079_s20 = sphi %s1115_s20, %s16_s20   ;;  %s1075_s19 = sphi %s1113_s19, %s1356_s19   ;;  %s1071_s18 = sphi %s1111_s18, %s1355_s18  }
   0x3   : > { %p30_p1 = scmp.ge.s32.totalorder %s28_s1, 2  ;;  %p214_p2 = scmp.lt.s32.totalorder %s1079_s20, 3 }
   0x5   : > { %s1358_s1 = smov (%p30_p1, %s28_s1), 0  ;;  %p215_p3 = pnand %p847_p0, %p214_p2 }
   0x6   : > { %v320_v0 = vld [vmem:[%s1352_s3] sm:$0xff] (!%p215_p3)  ;;  %v321_v1 = vld [vmem:[%s1352_s3 + $0x8] sm:$0xff] (!%p215_p3)  ;;  %v322_v2 = vld [vmem:[%s1352_s3 + $0x10] sm:$0xff] (!%p215_p3)  ;;  %p260_p4 = scmp.lt.s32.totalorder (!%p215_p3), %s1071_s18, 1 }
   0x7   : > { %218 = sbr.rel (%p215_p3) target bundleno = 335 (0x14f), region = 36  ;;  %v985_v3 = vpack.c.bf16 (!%p215_p3), %v321_v1, %v320_v0  ;;  %v323_v4 = vld [vmem:[%s1352_s3 + $0x18] sm:$0xff] (!%p215_p3)  ;;  %v324_v6 = vld [vmem:[%s1352_s3 + $0x20] sm:$0xff] (!%p215_p3)  ;;  %v325_v7 = vld [vmem:[%s1352_s3 + $0x28] sm:$0xff] (!%p215_p3) }
   0x8   : > { %v989_v5 = vpack.c.bf16 (!%p215_p3), %v323_v4, %v322_v2  ;;  %v993_v8 = vpack.c.bf16 (!%p215_p3), %v325_v7, %v324_v6  ;;  %v326_v9 = vld [vmem:[%s1352_s3 + $0x30] sm:$0xff] (!%p215_p3)  ;;  %v327_v10 = vld [vmem:[%s1352_s3 + $0x38] sm:$0xff] (!%p215_p3)  ;;  %v328_v13 = vld [vmem:[%s1352_s3 + $0x40] sm:$0xff] (!%p215_p3) }
   0x9   : > { %986 = vmatprep.subr.bf16.mxu0 (!%p215_p3), %v985_v3  ;;  %1017 = vmatprep.subr.bf16.mxu1 (!%p215_p3), %v985_v3  ;;  %v997_v12 = vpack.c.bf16 (!%p215_p3), %v327_v10, %v326_v9  ;;  %v329_v14 = vld [vmem:[%s1352_s3 + $0x48] sm:$0xff] (!%p215_p3)  ;;  %v330_v17 = vld [vmem:[%s1352_s3 + $0x50] sm:$0xff] (!%p215_p3)  ;;  %v331_v18 = vld [vmem:[%s1352_s3 + $0x58] sm:$0xff] (!%p215_p3) }
   0xa   : > { %988 = vmatpush3.bf16.msra.mxu0 (!%p215_p3), %v985_v3  ;;  %1025 = vmatpush3.bf16.msra.mxu1 (!%p215_p3), %v985_v3  ;;  %v1001_v16 = vpack.c.bf16 (!%p215_p3), %v329_v14, %v328_v13  ;;  %v1005_v19 = vpack.c.bf16 (!%p215_p3), %v331_v18, %v330_v17  ;;  %v332_v20 = vld [vmem:[%s1352_s3 + $0x60] sm:$0xff] (!%p215_p3)  ;;  %v333_v21 = vld [vmem:[%s1352_s3 + $0x68] sm:$0xff] (!%p215_p3)  ;;  %v334_v23 = vld [vmem:[%s1352_s3 + $0x70] sm:$0xff] (!%p215_p3) }
   0xb   : > { %990 = vmatprep.subr.bf16.mxu0 (!%p215_p3), %v989_v5  ;;  %1018 = vmatprep.subr.bf16.mxu1 (!%p215_p3), %v989_v5  ;;  %v1009_v22 = vpack.c.bf16 (!%p215_p3), %v333_v21, %v332_v20  ;;  %v335_v24 = vld [vmem:[%s1352_s3 + $0x78] sm:$0xff] (!%p215_p3) }
   0xc   : > { %v1013_v25 = vpack.c.bf16 (!%p215_p3), %v335_v24, %v334_v23 }
   0xe   : > { %s1360_s18 = smov (!%p260_p4, %s1071_s18), 1  ;;  %992 = vmatpush3.bf16.msra.mxu0 %v989_v5  ;;  %1026 = vmatpush3.bf16.msra.mxu1 %v989_v5 }
   0xf   : > { %s855_s7 = sshll.u32 %s1360_s18, 8  ;;  %994 = vmatprep.subr.bf16.mxu0 %v993_v8  ;;  %1019 = vmatprep.subr.bf16.mxu1 %v993_v8 }
  0x10   : > { %s1155_s10 = scalar_lea.vmem %s1349_s0, %s855_s7  ;;  %s1224_s12 = scalar_lea.vmem %s1353_s4, %s855_s7 }
  0x11   : > { %v288_v11 = vld [vmem:[%s1155_s10] sm:$0xff]  ;;  %v289_v26 = vld [vmem:[%s1155_s10 + $0x8] sm:$0xff]  ;;  %v290_v28 = vld [vmem:[%s1155_s10 + $0x10] sm:$0xff]  ;;  %s852_s7 = sshll.u32 %s1360_s18, 3 }
  0x12   : > { %937 = vmatprep.mubr.f32.mxu0 %v288_v11  ;;  %v304_v15 = vld [vmem:[%s1155_s10 + $0x80] sm:$0xff]  ;;  %996 = vmatpush3.bf16.msra.mxu0 %v993_v8  ;;  %v305_v27 = vld [vmem:[%s1155_s10 + $0x88] sm:$0xff]  ;;  %v306_v29 = vld [vmem:[%s1155_s10 + $0x90] sm:$0xff]  ;;  %s287_s14 = scalar_lea.vmem %s1354_s5, %s852_s7 }
  0x13   : > { %1027 = vmatpush3.bf16.msra.mxu1 %v993_v8  ;;  %998 = vmatprep.subr.bf16.mxu0 %v997_v12  ;;  %v291_v30 = vld [vmem:[%s1155_s10 + $0x18] sm:$0xff]  ;;  %v292_v32 = vld [vmem:[%s1155_s10 + $0x20] sm:$0xff]  ;;  %v293_v34 = vld [vmem:[%s1155_s10 + $0x28] sm:$0xff] }
  0x14   : > { %1020 = vmatprep.subr.bf16.mxu1 %v997_v12  ;;  %961 = vmatprep.mubr.f32.mxu1 %v304_v15  ;;  %v307_v31 = vld [vmem:[%s1155_s10 + $0x98] sm:$0xff]  ;;  %v308_v33 = vld [vmem:[%s1155_s10 + $0xa0] sm:$0xff]  ;;  %v309_v35 = vld [vmem:[%s1155_s10 + $0xa8] sm:$0xff] }
  0x15   : > { %v294_v36 = vld [vmem:[%s1155_s10 + $0x30] sm:$0xff]  ;;  %v295_v38 = vld [vmem:[%s1155_s10 + $0x38] sm:$0xff]  ;;  %v296_v40 = vld [vmem:[%s1155_s10 + $0x40] sm:$0xff] }
  0x16   : > { %1000 = vmatpush3.bf16.msra.mxu0 %v997_v12  ;;  %v310_v37 = vld [vmem:[%s1155_s10 + $0xb0] sm:$0xff]  ;;  %v311_v39 = vld [vmem:[%s1155_s10 + $0xb8] sm:$0xff]  ;;  %v312_v41 = vld [vmem:[%s1155_s10 + $0xc0] sm:$0xff] }
  0x17   : > { %1028 = vmatpush3.bf16.msra.mxu1 %v997_v12  ;;  %1002 = vmatprep.subr.bf16.mxu0 %v1001_v16  ;;  %v297_v42 = vld [vmem:[%s1155_s10 + $0x48] sm:$0xff]  ;;  %v298_v44 = vld [vmem:[%s1155_s10 + $0x50] sm:$0xff]  ;;  %v299_v46 = vld [vmem:[%s1155_s10 + $0x58] sm:$0xff] }
  0x18   : > { %1021 = vmatprep.subr.bf16.mxu1 %v1001_v16  ;;  %v313_v43 = vld [vmem:[%s1155_s10 + $0xc8] sm:$0xff]  ;;  %v314_v45 = vld [vmem:[%s1155_s10 + $0xd0] sm:$0xff]  ;;  %v315_v47 = vld [vmem:[%s1155_s10 + $0xd8] sm:$0xff] }
  0x19   : > { %v300_v48 = vld [vmem:[%s1155_s10 + $0x60] sm:$0xff]  ;;  %v301_v50 = vld [vmem:[%s1155_s10 + $0x68] sm:$0xff]  ;;  %v302_v52 = vld [vmem:[%s1155_s10 + $0x70] sm:$0xff] }
  0x1a   : > { %1004 = vmatpush3.bf16.msra.mxu0 %v1001_v16  ;;  %v316_v49 = vld [vmem:[%s1155_s10 + $0xe0] sm:$0xff]  ;;  %v317_v51 = vld [vmem:[%s1155_s10 + $0xe8] sm:$0xff]  ;;  %v318_v53 = vld [vmem:[%s1155_s10 + $0xf0] sm:$0xff] }
  0x1b   : > { %1029 = vmatpush3.bf16.msra.mxu1 %v1001_v16  ;;  %1006 = vmatprep.subr.bf16.mxu0 %v1005_v19  ;;  %v303_v54 = vld [vmem:[%s1155_s10 + $0x78] sm:$0xff] }
  0x1c   : > { %1022 = vmatprep.subr.bf16.mxu1 %v1005_v19  ;;  %v319_v55 = vld [vmem:[%s1155_s10 + $0xf8] sm:$0xff] }
  0x1e   : > { %1008 = vmatpush3.bf16.msra.mxu0 %v1005_v19 }
  0x1f   : > { %1030 = vmatpush3.bf16.msra.mxu1 %v1005_v19  ;;  %1010 = vmatprep.subr.bf16.mxu0 %v1009_v22 }
  0x20   : > { %1023 = vmatprep.subr.bf16.mxu1 %v1009_v22 }
  0x22   : > { %1012 = vmatpush3.bf16.msra.mxu0 %v1009_v22 }
  0x23   : > { %1031 = vmatpush3.bf16.msra.mxu1 %v1009_v22  ;;  %1014 = vmatprep.subr.bf16.mxu0 %v1013_v25 }
  0x24   : > { %1024 = vmatprep.subr.bf16.mxu1 %v1013_v25 }
  0x26   : > { %1016 = vmatpush3.bf16.msra.mxu0 %v1013_v25 }
  0x27   : > { %1032 = vmatpush3.bf16.msra.mxu1 %v1013_v25 }
  0x29   : > { %938 = vmatmul.mubr.f32.vlgmr.msra.gmra.mrb[0].mxu0 %v289_v26 }
  0x2a   : > { %962 = vmatmul.mubr.f32.vlgmr.msra.gmra.mrb[0].mxu1 %v305_v27  ;;  %940 = vmatprep.mubr.f32.mxu0 %v290_v28 }
  0x2b   : > { %964 = vmatprep.mubr.f32.mxu1 %v306_v29 }
  0x2d   : > { %941 = vmatmul.mubr.f32.gmra.mrb[2].mxu0 %v291_v30 }
  0x2e   : > { %965 = vmatmul.mubr.f32.gmra.mrb[2].mxu1 %v307_v31  ;;  %943 = vmatprep.mubr.f32.mxu0 %v292_v32 }
  0x2f   : > { %967 = vmatprep.mubr.f32.mxu1 %v308_v33 }
  0x31   : > { %944 = vmatmul.mubr.f32.gmra.mrb[4].mxu0 %v293_v34 }
  0x32   : > { %968 = vmatmul.mubr.f32.gmra.mrb[4].mxu1 %v309_v35  ;;  %946 = vmatprep.mubr.f32.mxu0 %v294_v36 }
  0x33   : > { %970 = vmatprep.mubr.f32.mxu1 %v310_v37 }
  0x35   : > { %947 = vmatmul.mubr.f32.gmra.mrb[6].mxu0 %v295_v38 }
  0x36   : > { %971 = vmatmul.mubr.f32.gmra.mrb[6].mxu1 %v311_v39  ;;  %949 = vmatprep.mubr.f32.mxu0 %v296_v40 }
  0x37   : > { %973 = vmatprep.mubr.f32.mxu1 %v312_v41 }
  0x39   : > { %950 = vmatmul.mubr.f32.gmra.mrb[8].mxu0 %v297_v42 }
  0x3a   : > { %974 = vmatmul.mubr.f32.gmra.mrb[8].mxu1 %v313_v43  ;;  %952 = vmatprep.mubr.f32.mxu0 %v298_v44 }
  0x3b   : > { %976 = vmatprep.mubr.f32.mxu1 %v314_v45 }
  0x3d   : > { %953 = vmatmul.mubr.f32.gmra.mrb[10].mxu0 %v299_v46 }
  0x3e   : > { %977 = vmatmul.mubr.f32.gmra.mrb[10].mxu1 %v315_v47  ;;  %955 = vmatprep.mubr.f32.mxu0 %v300_v48 }
  0x3f   : > { %979 = vmatprep.mubr.f32.mxu1 %v316_v49 }
  0x41   : > { %956 = vmatmul.mubr.f32.gmra.mrb[12].mxu0 %v301_v50 }
  0x42   : > { %980 = vmatmul.mubr.f32.gmra.mrb[12].mxu1 %v317_v51  ;;  %958 = vmatprep.mubr.f32.mxu0 %v302_v52 }
  0x43   : > { %982 = vmatprep.mubr.f32.mxu1 %v318_v53 }
  0x45   : > { %959 = vmatmul.mubr.f32.gmra.mrb[14].mxu0 %v303_v54 }
  0x46   : > { %983 = vmatmul.mubr.f32.gmra.mrb[14].mxu1 %v319_v55 }
  0xfc   : > { %v939_v56 = vpop.f32.mrb[0].mxu0 }
  0xfd   : > { %v1226_v57 = vpop.f32.mrb[0].mxu1  ;;  %562 = vst [vmem:[%s1224_s12 + $0x8] sm:$0xff] %v939_v56  ;;  %v631_v58 = vmul.f32 %v939_v56, %v939_v56  ;;  %v402_v59 = vpop.f32.mrb[1].mxu0 }
  0xfe   : > { %578 = vst [vmem:[%s1224_s12 + $0x88] sm:$0xff] %v1226_v57  ;;  %v1231_v60 = vpop.f32.mrb[1].mxu1  ;;  %561 = vst [vmem:[%s1224_s12] sm:$0xff] %v402_v59  ;;  %v593_v61 = vadd.f32 %v939_v56, %v402_v59  ;;  %v630_v62 = vmul.f32 %v402_v59, %v402_v59 }
  0xff   : > { %577 = vst [vmem:[%s1224_s12 + $0x80] sm:$0xff] %v1231_v60 }
 0x100   : > { %v662_v63 = vadd.f32 %v631_v58, %v630_v62  ;;  %v942_v0 = vpop.f32.mrb[2].mxu0 }
 0x101   : > { %v1236_v1 = vpop.f32.mrb[2].mxu1  ;;  %564 = vst [vmem:[%s1224_s12 + $0x18] sm:$0xff] %v942_v0  ;;  %v412_v2 = vpop.f32.mrb[3].mxu0  ;;  %v633_v6 = vmul.f32 %v942_v0, %v942_v0 }
 0x102   : > { %580 = vst [vmem:[%s1224_s12 + $0x98] sm:$0xff] %v1236_v1  ;;  %v1241_v3 = vpop.f32.mrb[3].mxu1  ;;  %563 = vst [vmem:[%s1224_s12 + $0x10] sm:$0xff] %v412_v2  ;;  %v594_v4 = vadd.f32 %v593_v61, %v412_v2  ;;  %v632_v5 = vmul.f32 %v412_v2, %v412_v2 }
 0x103   : > { %579 = vst [vmem:[%s1224_s12 + $0x90] sm:$0xff] %v1241_v3 }
 0x104   : > { %v663_v7 = vadd.f32 %v662_v63, %v632_v5  ;;  %v945_v8 = vpop.f32.mrb[4].mxu0  ;;  %v595_v9 = vadd.f32 %v942_v0, %v594_v4 }
 0x105   : > { %v1246_v10 = vpop.f32.mrb[4].mxu1  ;;  %566 = vst [vmem:[%s1224_s12 + $0x28] sm:$0xff] %v945_v8  ;;  %v422_v11 = vpop.f32.mrb[5].mxu0  ;;  %v635_v16 = vmul.f32 %v945_v8, %v945_v8 }
 0x106   : > { %582 = vst [vmem:[%s1224_s12 + $0xa8] sm:$0xff] %v1246_v10  ;;  %v1251_v12 = vpop.f32.mrb[5].mxu1  ;;  %565 = vst [vmem:[%s1224_s12 + $0x20] sm:$0xff] %v422_v11  ;;  %v596_v13 = vadd.f32 %v595_v9, %v422_v11  ;;  %v634_v14 = vmul.f32 %v422_v11, %v422_v11  ;;  %v664_v15 = vadd.f32 %v663_v7, %v633_v6 }
 0x107   : > { %581 = vst [vmem:[%s1224_s12 + $0xa0] sm:$0xff] %v1251_v12  ;;  %v646_v9 = vmul.f32 %v1231_v60, %v1231_v60 }
 0x108   : > { %v665_v17 = vadd.f32 %v664_v15, %v634_v14  ;;  %v948_v18 = vpop.f32.mrb[6].mxu0  ;;  %v597_v19 = vadd.f32 %v945_v8, %v596_v13  ;;  %v647_v14 = vmul.f32 %v1226_v57, %v1226_v57 }
 0x109   : > { %v1256_v20 = vpop.f32.mrb[6].mxu1  ;;  %568 = vst [vmem:[%s1224_s12 + $0x38] sm:$0xff] %v948_v18  ;;  %v432_v21 = vpop.f32.mrb[7].mxu0  ;;  %v637_v26 = vmul.f32 %v948_v18, %v948_v18 }
 0x10a   : > { %584 = vst [vmem:[%s1224_s12 + $0xb8] sm:$0xff] %v1256_v20  ;;  %v1261_v22 = vpop.f32.mrb[7].mxu1  ;;  %567 = vst [vmem:[%s1224_s12 + $0x30] sm:$0xff] %v432_v21  ;;  %v598_v23 = vadd.f32 %v597_v19, %v432_v21  ;;  %v636_v24 = vmul.f32 %v432_v21, %v432_v21  ;;  %v666_v25 = vadd.f32 %v665_v17, %v635_v16 }
 0x10b   : > { %583 = vst [vmem:[%s1224_s12 + $0xb0] sm:$0xff] %v1261_v22  ;;  %v648_v17 = vmul.f32 %v1241_v3, %v1241_v3  ;;  %v649_v21 = vmul.f32 %v1236_v1, %v1236_v1 }
 0x10c   : > { %v667_v27 = vadd.f32 %v666_v25, %v636_v24  ;;  %v951_v28 = vpop.f32.mrb[8].mxu0  ;;  %v599_v29 = vadd.f32 %v948_v18, %v598_v23 }
 0x10d   : > { %v1266_v30 = vpop.f32.mrb[8].mxu1  ;;  %570 = vst [vmem:[%s1224_s12 + $0x48] sm:$0xff] %v951_v28  ;;  %v442_v31 = vpop.f32.mrb[9].mxu0  ;;  %v639_v36 = vmul.f32 %v951_v28, %v951_v28 }
 0x10e   : > { %586 = vst [vmem:[%s1224_s12 + $0xc8] sm:$0xff] %v1266_v30  ;;  %v1271_v32 = vpop.f32.mrb[9].mxu1  ;;  %569 = vst [vmem:[%s1224_s12 + $0x40] sm:$0xff] %v442_v31  ;;  %v600_v33 = vadd.f32 %v599_v29, %v442_v31  ;;  %v638_v34 = vmul.f32 %v442_v31, %v442_v31  ;;  %v668_v35 = vadd.f32 %v667_v27, %v637_v26 }
 0x10f   : > { %585 = vst [vmem:[%s1224_s12 + $0xc0] sm:$0xff] %v1271_v32 }
 0x110   : > { %v669_v37 = vadd.f32 %v668_v35, %v638_v34  ;;  %v954_v38 = vpop.f32.mrb[10].mxu0  ;;  %v601_v39 = vadd.f32 %v951_v28, %v600_v33 }
 0x111   : > { %v1276_v40 = vpop.f32.mrb[10].mxu1  ;;  %572 = vst [vmem:[%s1224_s12 + $0x58] sm:$0xff] %v954_v38  ;;  %v452_v41 = vpop.f32.mrb[11].mxu0  ;;  %v641_v46 = vmul.f32 %v954_v38, %v954_v38 }
 0x112   : > { %588 = vst [vmem:[%s1224_s12 + $0xd8] sm:$0xff] %v1276_v40  ;;  %v1281_v42 = vpop.f32.mrb[11].mxu1  ;;  %571 = vst [vmem:[%s1224_s12 + $0x50] sm:$0xff] %v452_v41  ;;  %v602_v43 = vadd.f32 %v601_v39, %v452_v41  ;;  %v640_v44 = vmul.f32 %v452_v41, %v452_v41  ;;  %v670_v45 = vadd.f32 %v669_v37, %v639_v36 }
 0x113   : > { %587 = vst [vmem:[%s1224_s12 + $0xd0] sm:$0xff] %v1281_v42 }
 0x114   : > { %v671_v47 = vadd.f32 %v670_v45, %v640_v44  ;;  %v957_v48 = vpop.f32.mrb[12].mxu0  ;;  %v603_v49 = vadd.f32 %v954_v38, %v602_v43 }
 0x115   : > { %v1286_v50 = vpop.f32.mrb[12].mxu1  ;;  %574 = vst [vmem:[%s1224_s12 + $0x68] sm:$0xff] %v957_v48  ;;  %v462_v51 = vpop.f32.mrb[13].mxu0  ;;  %v643_v56 = vmul.f32 %v957_v48, %v957_v48 }
 0x116   : > { %590 = vst [vmem:[%s1224_s12 + $0xe8] sm:$0xff] %v1286_v50  ;;  %v542_v52 = vpop.f32.mrb[13].mxu1  ;;  %573 = vst [vmem:[%s1224_s12 + $0x60] sm:$0xff] %v462_v51  ;;  %v604_v53 = vadd.f32 %v603_v49, %v462_v51  ;;  %v642_v54 = vmul.f32 %v462_v51, %v462_v51  ;;  %v672_v55 = vadd.f32 %v671_v47, %v641_v46 }
 0x117   : > { %589 = vst [vmem:[%s1224_s12 + $0xe0] sm:$0xff] %v542_v52  ;;  %v659_v47 = vmul.f32 %v1286_v50, %v1286_v50 }
 0x118   : > { %v673_v58 = vadd.f32 %v672_v55, %v642_v54  ;;  %v960_v59 = vpop.f32.mrb[14].mxu0  ;;  %v605_v61 = vadd.f32 %v957_v48, %v604_v53 }
 0x119   : > { %v984_v62 = vpop.f32.mrb[14].mxu1  ;;  %576 = vst [vmem:[%s1224_s12 + $0x78] sm:$0xff] %v960_v59  ;;  %v472_v63 = vpop.f32.mrb[15].mxu0  ;;  %v645_v6 = vmul.f32 %v960_v59, %v960_v59 }
 0x11a   : > { %592 = vst [vmem:[%s1224_s12 + $0xf8] sm:$0xff] %v984_v62  ;;  %v552_v0 = vpop.f32.mrb[15].mxu1  ;;  %575 = vst [vmem:[%s1224_s12 + $0x70] sm:$0xff] %v472_v63  ;;  %v606_v2 = vadd.f32 %v605_v61, %v472_v63  ;;  %v644_v4 = vmul.f32 %v472_v63, %v472_v63  ;;  %v674_v5 = vadd.f32 %v673_v58, %v643_v56  ;;  %v699_v61 = vlaneseq }
 0x11b   : > { %591 = vst [vmem:[%s1224_s12 + $0xf0] sm:$0xff] %v552_v0  ;;  %v660_v49 = vmul.f32 %v552_v0, %v552_v0 }
 0x11c   : > { %v607_v7 = vadd.f32 %v960_v59, %v606_v2  ;;  %v675_v8 = vadd.f32 %v674_v5, %v644_v4  ;;  %v700_v5 = vshrl.u32 %v699_v61, 7 }
 0x11e   : > { %v676_v11 = vadd.f32 %v675_v8, %v645_v6  ;;  %v608_v13 = vadd.f32 %v607_v7, %v1231_v60  ;;  %v650_v60 = vmul.f32 %v1251_v12, %v1251_v12  ;;  %vm702_vm0 = vcmp.eq.s32.totalorder %v700_v5, 1 }
 0x11f   : > { %vm701_vm1 = vcmp.eq.s32.totalorder %v700_v5, 0 }
 0x120   : > { %v677_v15 = vadd.f32 %v676_v11, %v646_v9  ;;  %v609_v16 = vadd.f32 %v1226_v57, %v608_v13  ;;  %v651_v57 = vmul.f32 %v1246_v10, %v1246_v10 }
 0x122   : > { %v610_v18 = vadd.f32 %v609_v16, %v1241_v3  ;;  %v678_v19 = vadd.f32 %v677_v15, %v647_v14  ;;  %v652_v3 = vmul.f32 %v1261_v22, %v1261_v22 }
 0x124   : > { %v679_v23 = vadd.f32 %v678_v19, %v648_v17  ;;  %v611_v24 = vadd.f32 %v1236_v1, %v610_v18  ;;  %v653_v1 = vmul.f32 %v1256_v20, %v1256_v20 }
 0x126   : > { %v612_v25 = vadd.f32 %v611_v24, %v1251_v12  ;;  %v680_v26 = vadd.f32 %v679_v23, %v649_v21  ;;  %v654_v12 = vmul.f32 %v1271_v32, %v1271_v32 }
 0x128   : > { %v681_v27 = vadd.f32 %v680_v26, %v650_v60  ;;  %v613_v28 = vadd.f32 %v1246_v10, %v612_v25  ;;  %v655_v10 = vmul.f32 %v1266_v30, %v1266_v30 }
 0x12a   : > { %v614_v29 = vadd.f32 %v613_v28, %v1261_v22  ;;  %v682_v31 = vadd.f32 %v681_v27, %v651_v57  ;;  %v656_v22 = vmul.f32 %v1281_v42, %v1281_v42 }
 0x12c   : > { %v683_v33 = vadd.f32 %v682_v31, %v652_v3  ;;  %v615_v34 = vadd.f32 %v1256_v20, %v614_v29  ;;  %v657_v20 = vmul.f32 %v1276_v40, %v1276_v40 }
 0x12e   : > { %v616_v35 = vadd.f32 %v615_v34, %v1271_v32  ;;  %v684_v36 = vadd.f32 %v683_v33, %v653_v1  ;;  %v658_v32 = vmul.f32 %v542_v52, %v542_v52 }
 0x130   : > { %v685_v37 = vadd.f32 %v684_v36, %v654_v12  ;;  %v617_v38 = vadd.f32 %v1266_v30, %v616_v35 }
 0x132   : > { %v618_v39 = vadd.f32 %v617_v38, %v1281_v42  ;;  %v686_v41 = vadd.f32 %v685_v37, %v655_v10  ;;  %v661_v42 = vmul.f32 %v984_v62, %v984_v62 }
 0x134   : > { %v687_v43 = vadd.f32 %v686_v41, %v656_v22  ;;  %v619_v44 = vadd.f32 %v1276_v40, %v618_v39 }
 0x136   : > { %v620_v45 = vadd.f32 %v619_v44, %v542_v52  ;;  %v688_v46 = vadd.f32 %v687_v43, %v657_v20 }
 0x138   : > { %v689_v48 = vadd.f32 %v688_v46, %v658_v32  ;;  %v621_v30 = vadd.f32 %v1286_v50, %v620_v45 }
 0x13a   : > { %v622_v51 = vadd.f32 %v621_v30, %v552_v0  ;;  %v690_v53 = vadd.f32 %v689_v48, %v659_v47 }
 0x13c   : > { %v623_v54 = vadd.f32 %v984_v62, %v622_v51  ;;  %v691_v55 = vadd.f32 %v690_v53, %v660_v49 }
 0x13e   : > { %v624_v56 = vrot.slane %v623_v54, 4  ;;  %v692_v58 = vadd.f32 %v691_v55, %v661_v42 }
 0x140   : > { %v625_v59 = vadd.f32 %v624_v56, %v623_v54  ;;  %v693_v40 = vrot.slane %v692_v58, 4 }
 0x142   : > { %v626_v52 = vrot.slane %v625_v59, 2  ;;  %v694_v63 = vadd.f32 %v693_v40, %v692_v58 }
 0x144   : > { %v627_v2 = vadd.f32 %v626_v52, %v625_v59  ;;  %v695_v4 = vrot.slane %v694_v63, 2 }
 0x146   : > { %v696_v6 = vadd.f32 %v695_v4, %v694_v63  ;;  %v628_v7 = vrot.slane %v627_v2, 1 }
 0x148   : > { %v697_v50 = vrot.slane %v696_v6, 1  ;;  %v629_v62 = vadd.f32 %v628_v7, %v627_v2 }
 0x14a   : > { %v698_v0 = vadd.f32 %v697_v50, %v696_v6 }
 0x14c   : > { %v703_v8 = vsel %vm702_vm0, %v698_v0, 0.0 }
 0x14d   : > { %v704_v9 = vsel %vm701_vm1, %v629_v62, %v703_v8 }
 0x14e   : > { %705 = vst [vmem:[%s287_s14] sm:$0xff] %v704_v9 }
 0x14f PF: > { %s16_s20 = sadd.s32 1, %s1079_s20   ;;  %s1355_s18 = smov %s1075_s19 }
 0x150   : > { %p13_p5 = scmp.ge.s32.totalorder %s16_s20, 4   ;;  %s1356_s19 = smov %s1358_s1 }
 0x152   :  { %15 = sbr.rel (!%p13_p5) target bundleno = 2 (0x2), region = 78 }

// kernel: resblock_forward.18
= control target key start
LH: loop header
LB: loop body
LE: loop exit
PB: predicated region body
PF: predicated region fallthrough
CT: control target
= control target key end

     0   :  { %s871_s21 = smov 0   ;;  %s873_s22 = smov 0   ;;  %s1162_s0 = inlined_call_operand.vmem [shape: f32[2,16,16,128], index: 0, kind: input, shape index: {}]   ;;  %s1163_s1 = inlined_call_operand.vmem [shape: f32[2,16,16,128], index: 1, kind: input, shape index: {}]   ;;  %s1164_s2 = inlined_call_operand.vmem [shape: f32[1,128], index: 2, kind: input, shape index: {}]   ;;  %s1165_s3 = inlined_call_operand.vmem [shape: f32[1,128], index: 3, kind: input, shape index: {}]   ;;  %s1166_s4 = inlined_call_operand.vmem [shape: f32[1,128], index: 4, kind: input, shape index: {}]   ;;  %s1167_s5 = inlined_call_operand.vmem [shape: f32[1,128], index: 5, kind: input, shape index: {}]   ;;  %s1168_s6 = inlined_call_operand.vmem [shape: f32[2,16,16,128], index: 6, kind: output, shape index: {}]  }
   0x1   :  { %s875_s23 = smov 0  }
   0x2 LB: > { %s28_s24 = sadd.s32 1, %s830_s22  ;;  %p772_p0 = scmp.ge.s32.totalorder %s834_s23, 1  ;;  %s834_s23 = sphi %s875_s23, %s16_s23   ;;  %s830_s22 = sphi %s873_s22, %s1170_s22   ;;  %s826_s21 = sphi %s871_s21, %s1169_s21  }
   0x3   : > { %p30_p1 = scmp.ge.s32.totalorder %s28_s24, 2  ;;  %p252_p2 = scmp.lt.s32.totalorder %s834_s23, 3 }
   0x5   : > { %s1172_s24 = smov (%p30_p1, %s28_s24), 0  ;;  %p253_p3 = pnand %p772_p0, %p252_p2 }
   0x6   : > { %p303_p4 = scmp.lt.s32.totalorder (!%p253_p3), %s826_s21, 1  ;;  %v894_v0 = vld [vmem:[%s1164_s2] ss:$0 sm:$0xff] (!%p253_p3) }
   0x7   : > { %256 = sbr.rel (%p253_p3) target bundleno = 72 (0x48), region = 44  ;;  %v899_v1 = vld [vmem:[%s1166_s4] ss:$0 sm:$0xff] (!%p253_p3) }
   0x8   : > { %v916_v2 = vld [vmem:[%s1165_s3] ss:$0 sm:$0xff] (!%p253_p3) }
   0x9   : > { %v921_v3 = vld [vmem:[%s1167_s5] ss:$0 sm:$0xff] (!%p253_p3) }
   0xe   : > { %s1174_s21 = smov (!%p303_p4, %s826_s21), 1 }
   0xf   : > { %s889_s25 = sshll.u32 %s1174_s21, 8 }
  0x10   : > { %s905_s8 = scalar_lea.vmem %s1162_s0, %s889_s25  ;;  %s911_s11 = scalar_lea.vmem %s1163_s1, %s889_s25 }
  0x11   : > { %v335_v4 = vld [vmem:[%s905_s8] sm:$0xff]  ;;  %v336_v6 = vld [vmem:[%s905_s8 + $0x8] sm:$0xff]  ;;  %v337_v11 = vld [vmem:[%s905_s8 + $0x10] sm:$0xff]  ;;  %s956_s18 = scalar_lea.vmem %s1168_s6, %s889_s25 }
  0x12   : > { %v445_v5 = vld [vmem:[%s911_s11] sm:$0xff]  ;;  %v374_v7 = vmul.f32 %v894_v0, %v335_v4  ;;  %v375_v9 = vmul.f32 %v894_v0, %v336_v6  ;;  %v446_v10 = vld [vmem:[%s911_s11 + $0x8] sm:$0xff]  ;;  %v447_v12 = vld [vmem:[%s911_s11 + $0x10] sm:$0xff]  ;;  %v376_v14 = vmul.f32 %v894_v0, %v337_v11 }
  0x13   : > { %v484_v8 = vmul.f32 %v899_v1, %v445_v5  ;;  %v485_v13 = vmul.f32 %v899_v1, %v446_v10  ;;  %v486_v15 = vmul.f32 %v899_v1, %v447_v12  ;;  %v338_v16 = vld [vmem:[%s905_s8 + $0x18] sm:$0xff]  ;;  %v339_v18 = vld [vmem:[%s905_s8 + $0x20] sm:$0xff]  ;;  %v340_v24 = vld [vmem:[%s905_s8 + $0x28] sm:$0xff] }
  0x14   : > { %v448_v17 = vld [vmem:[%s911_s11 + $0x18] sm:$0xff]  ;;  %v413_v19 = vadd.f32 %v916_v2, %v374_v7  ;;  %v414_v21 = vadd.f32 %v916_v2, %v375_v9  ;;  %v377_v22 = vmul.f32 %v894_v0, %v338_v16  ;;  %v449_v23 = vld [vmem:[%s911_s11 + $0x20] sm:$0xff]  ;;  %v415_v26 = vadd.f32 %v916_v2, %v376_v14  ;;  %v450_v29 = vld [vmem:[%s911_s11 + $0x28] sm:$0xff] }
  0x15   : > { %v523_v20 = vadd.f32 %v921_v3, %v484_v8  ;;  %v524_v25 = vadd.f32 %v921_v3, %v485_v13  ;;  %v525_v27 = vadd.f32 %v921_v3, %v486_v15  ;;  %v487_v28 = vmul.f32 %v899_v1, %v448_v17  ;;  %v341_v38 = vld [vmem:[%s905_s8 + $0x30] sm:$0xff]  ;;  %v342_v44 = vld [vmem:[%s905_s8 + $0x38] sm:$0xff]  ;;  %v343_v46 = vld [vmem:[%s905_s8 + $0x40] sm:$0xff] }
  0x16   : > { %v416_v31 = vadd.f32 %v916_v2, %v377_v22  ;;  %v378_v32 = vmul.f32 %v894_v0, %v339_v18  ;;  %v488_v33 = vmul.f32 %v899_v1, %v449_v23  ;;  %v379_v37 = vmul.f32 %v894_v0, %v340_v24  ;;  %v451_v39 = vld [vmem:[%s911_s11 + $0x30] sm:$0xff]  ;;  %v452_v45 = vld [vmem:[%s911_s11 + $0x38] sm:$0xff]  ;;  %v453_v55 = vld [vmem:[%s911_s11 + $0x40] sm:$0xff] }
  0x17   : > { %v555_v30 = vadd.f32 %v523_v20, %v413_v19  ;;  %v556_v34 = vadd.f32 %v524_v25, %v414_v21  ;;  %v557_v35 = vadd.f32 %v525_v27, %v415_v26  ;;  %v526_v36 = vadd.f32 %v921_v3, %v487_v28  ;;  %v344_v60 = vld [vmem:[%s905_s8 + $0x48] sm:$0xff]  ;;  %v345_v6 = vld [vmem:[%s905_s8 + $0x50] sm:$0xff]  ;;  %v346_v12 = vld [vmem:[%s905_s8 + $0x58] sm:$0xff] }
  0x18   : > { %v417_v41 = vadd.f32 %v916_v2, %v378_v32  ;;  %v527_v42 = vadd.f32 %v921_v3, %v488_v33  ;;  %v489_v43 = vmul.f32 %v899_v1, %v450_v29  ;;  %v418_v50 = vadd.f32 %v916_v2, %v379_v37  ;;  %v454_v61 = vld [vmem:[%s911_s11 + $0x48] sm:$0xff]  ;;  %v455_v7 = vld [vmem:[%s911_s11 + $0x50] sm:$0xff]  ;;  %v456_v21 = vld [vmem:[%s911_s11 + $0x58] sm:$0xff] }
  0x19   : > { %v587_v40 = vmax.f32 %v555_v30, 0.0  ;;  %v588_v47 = vmax.f32 %v556_v34, 0.0  ;;  %v589_v48 = vmax.f32 %v557_v35, 0.0  ;;  %v558_v49 = vadd.f32 %v526_v36, %v416_v31  ;;  %v347_v22 = vld [vmem:[%s905_s8 + $0x60] sm:$0xff]  ;;  %v348_v28 = vld [vmem:[%s905_s8 + $0x68] sm:$0xff] }
  0x1a   : > { %v559_v51 = vadd.f32 %v527_v42, %v417_v41  ;;  %v528_v52 = vadd.f32 %v921_v3, %v489_v43  ;;  %v380_v53 = vmul.f32 %v894_v0, %v341_v38  ;;  %v490_v54 = vmul.f32 %v899_v1, %v451_v39  ;;  %v457_v27 = vld [vmem:[%s911_s11 + $0x60] sm:$0xff]  ;;  %v458_v33 = vld [vmem:[%s911_s11 + $0x68] sm:$0xff]  ;;  %v349_v38 = vld [vmem:[%s905_s8 + $0x70] sm:$0xff] }
  0x1b   : > { %619 = vst [vmem:[%s956_s18] sm:$0xff] %v587_v40  ;;  %620 = vst [vmem:[%s956_s18 + $0x8] sm:$0xff] %v588_v47  ;;  %v590_v56 = vmax.f32 %v558_v49, 0.0  ;;  %v381_v57 = vmul.f32 %v894_v0, %v342_v44  ;;  %v491_v58 = vmul.f32 %v899_v1, %v452_v45  ;;  %v382_v59 = vmul.f32 %v894_v0, %v343_v46  ;;  %v459_v43 = vld [vmem:[%s911_s11 + $0x70] sm:$0xff]  ;;  %v350_v44 = vld [vmem:[%s905_s8 + $0x78] sm:$0xff] }
  0x1c   : > { %621 = vst [vmem:[%s956_s18 + $0x10] sm:$0xff] %v589_v48  ;;  %v591_v62 = vmax.f32 %v559_v51, 0.0  ;;  %v560_v63 = vadd.f32 %v528_v52, %v418_v50  ;;  %v419_v4 = vadd.f32 %v916_v2, %v380_v53  ;;  %v529_v5 = vadd.f32 %v921_v3, %v490_v54  ;;  %v460_v49 = vld [vmem:[%s911_s11 + $0x78] sm:$0xff]  ;;  %v351_v50 = vld [vmem:[%s905_s8 + $0x80] sm:$0xff] }
  0x1d   : > { %622 = vst [vmem:[%s956_s18 + $0x18] sm:$0xff] %v590_v56  ;;  %v420_v8 = vadd.f32 %v916_v2, %v381_v57  ;;  %v530_v9 = vadd.f32 %v921_v3, %v491_v58  ;;  %v421_v10 = vadd.f32 %v916_v2, %v382_v59  ;;  %v492_v11 = vmul.f32 %v899_v1, %v453_v55  ;;  %v461_v59 = vld [vmem:[%s911_s11 + $0x80] sm:$0xff] }
  0x1e   : > { %623 = vst [vmem:[%s956_s18 + $0x20] sm:$0xff] %v591_v62  ;;  %v592_v13 = vmax.f32 %v560_v63, 0.0  ;;  %v561_v14 = vadd.f32 %v529_v5, %v419_v4  ;;  %v383_v15 = vmul.f32 %v894_v0, %v344_v60  ;;  %v493_v16 = vmul.f32 %v899_v1, %v454_v61  ;;  %v352_v4 = vld [vmem:[%s905_s8 + $0x88] sm:$0xff] }
  0x1f   : > { %v562_v17 = vadd.f32 %v530_v9, %v420_v8  ;;  %v531_v18 = vadd.f32 %v921_v3, %v492_v11  ;;  %v384_v19 = vmul.f32 %v894_v0, %v345_v6  ;;  %v494_v20 = vmul.f32 %v899_v1, %v455_v7  ;;  %v462_v5 = vld [vmem:[%s911_s11 + $0x88] sm:$0xff]  ;;  %v463_v11 = vld [vmem:[%s911_s11 + $0x90] sm:$0xff] }
  0x20   : > { %624 = vst [vmem:[%s956_s18 + $0x28] sm:$0xff] %v592_v13  ;;  %v593_v23 = vmax.f32 %v561_v14, 0.0  ;;  %v422_v24 = vadd.f32 %v916_v2, %v383_v15  ;;  %v532_v25 = vadd.f32 %v921_v3, %v493_v16  ;;  %v385_v26 = vmul.f32 %v894_v0, %v346_v12  ;;  %v354_v16 = vld [vmem:[%s905_s8 + $0x98] sm:$0xff] }
  0x21   : > { %v594_v29 = vmax.f32 %v562_v17, 0.0  ;;  %v563_v30 = vadd.f32 %v531_v18, %v421_v10  ;;  %v423_v31 = vadd.f32 %v916_v2, %v384_v19  ;;  %v533_v32 = vadd.f32 %v921_v3, %v494_v20  ;;  %v353_v10 = vld [vmem:[%s905_s8 + $0x90] sm:$0xff] }
  0x22   : > { %625 = vst [vmem:[%s956_s18 + $0x30] sm:$0xff] %v593_v23  ;;  %v564_v34 = vadd.f32 %v532_v25, %v422_v24  ;;  %v424_v35 = vadd.f32 %v916_v2, %v385_v26  ;;  %v495_v36 = vmul.f32 %v899_v1, %v456_v21  ;;  %v386_v37 = vmul.f32 %v894_v0, %v347_v22  ;;  %v464_v25 = vld [vmem:[%s911_s11 + $0x98] sm:$0xff]  ;;  %v355_v26 = vld [vmem:[%s905_s8 + $0xa0] sm:$0xff] }
  0x23   : > { %626 = vst [vmem:[%s956_s18 + $0x38] sm:$0xff] %v594_v29  ;;  %v595_v39 = vmax.f32 %v563_v30, 0.0  ;;  %v565_v40 = vadd.f32 %v533_v32, %v423_v31  ;;  %v496_v41 = vmul.f32 %v899_v1, %v457_v27  ;;  %v387_v42 = vmul.f32 %v894_v0, %v348_v28  ;;  %v465_v31 = vld [vmem:[%s911_s11 + $0xa0] sm:$0xff]  ;;  %v356_v32 = vld [vmem:[%s905_s8 + $0xa8] sm:$0xff] }
  0x24   : > { %v596_v45 = vmax.f32 %v564_v34, 0.0  ;;  %v534_v46 = vadd.f32 %v921_v3, %v495_v36  ;;  %v425_v47 = vadd.f32 %v916_v2, %v386_v37  ;;  %v497_v48 = vmul.f32 %v899_v1, %v458_v33  ;;  %v466_v37 = vld [vmem:[%s911_s11 + $0xa8] sm:$0xff] }
  0x25   : > { %627 = vst [vmem:[%s956_s18 + $0x40] sm:$0xff] %v595_v39  ;;  %v597_v51 = vmax.f32 %v565_v40, 0.0  ;;  %v535_v52 = vadd.f32 %v921_v3, %v496_v41  ;;  %v426_v53 = vadd.f32 %v916_v2, %v387_v42  ;;  %v388_v54 = vmul.f32 %v894_v0, %v349_v38  ;;  %v357_v42 = vld [vmem:[%s905_s8 + $0xb0] sm:$0xff] }
  0x26   : > { %628 = vst [vmem:[%s956_s18 + $0x48] sm:$0xff] %v596_v45  ;;  %v566_v55 = vadd.f32 %v534_v46, %v424_v35  ;;  %v536_v56 = vadd.f32 %v921_v3, %v497_v48  ;;  %v498_v57 = vmul.f32 %v899_v1, %v459_v43  ;;  %v389_v58 = vmul.f32 %v894_v0, %v350_v44  ;;  %v358_v48 = vld [vmem:[%s905_s8 + $0xb8] sm:$0xff] }
  0x27   : > { %629 = vst [vmem:[%s956_s18 + $0x50] sm:$0xff] %v597_v51  ;;  %v567_v60 = vadd.f32 %v535_v52, %v425_v47  ;;  %v427_v61 = vadd.f32 %v916_v2, %v388_v54  ;;  %v499_v62 = vmul.f32 %v899_v1, %v460_v49  ;;  %v390_v63 = vmul.f32 %v894_v0, %v351_v50  ;;  %v467_v47 = vld [vmem:[%s911_s11 + $0xb0] sm:$0xff]  ;;  %v359_v54 = vld [vmem:[%s905_s8 + $0xc0] sm:$0xff] }
  0x28   : > { %v598_v6 = vmax.f32 %v566_v55, 0.0  ;;  %v568_v7 = vadd.f32 %v536_v56, %v426_v53  ;;  %v537_v8 = vadd.f32 %v921_v3, %v498_v57  ;;  %v428_v9 = vadd.f32 %v916_v2, %v389_v58  ;;  %v468_v53 = vld [vmem:[%s911_s11 + $0xb8] sm:$0xff] }
  0x29   : > { %v599_v12 = vmax.f32 %v567_v60, 0.0  ;;  %v538_v13 = vadd.f32 %v921_v3, %v499_v62  ;;  %v429_v14 = vadd.f32 %v916_v2, %v390_v63  ;;  %v500_v15 = vmul.f32 %v899_v1, %v461_v59  ;;  %v469_v63 = vld [vmem:[%s911_s11 + $0xc0] sm:$0xff] }
  0x2a   : > { %630 = vst [vmem:[%s956_s18 + $0x58] sm:$0xff] %v598_v6  ;;  %v600_v17 = vmax.f32 %v568_v7, 0.0  ;;  %v569_v18 = vadd.f32 %v537_v8, %v427_v61  ;;  %v391_v19 = vmul.f32 %v894_v0, %v352_v4  ;;  %v501_v20 = vmul.f32 %v899_v1, %v462_v5  ;;  %v360_v8 = vld [vmem:[%s905_s8 + $0xc8] sm:$0xff] }
  0x2b   : > { %631 = vst [vmem:[%s956_s18 + $0x60] sm:$0xff] %v599_v12  ;;  %v570_v21 = vadd.f32 %v538_v13, %v428_v9  ;;  %v539_v22 = vadd.f32 %v921_v3, %v500_v15  ;;  %v392_v23 = vmul.f32 %v894_v0, %v353_v10  ;;  %v502_v24 = vmul.f32 %v899_v1, %v463_v11  ;;  %v470_v9 = vld [vmem:[%s911_s11 + $0xc8] sm:$0xff]  ;;  %v471_v15 = vld [vmem:[%s911_s11 + $0xd0] sm:$0xff] }
  0x2c   : > { %632 = vst [vmem:[%s956_s18 + $0x68] sm:$0xff] %v600_v17  ;;  %v601_v27 = vmax.f32 %v569_v18, 0.0  ;;  %v430_v28 = vadd.f32 %v916_v2, %v391_v19  ;;  %v540_v29 = vadd.f32 %v921_v3, %v501_v20  ;;  %v393_v30 = vmul.f32 %v894_v0, %v354_v16  ;;  %v362_v20 = vld [vmem:[%s905_s8 + $0xd8] sm:$0xff] }
  0x2d   : > { %v602_v33 = vmax.f32 %v570_v21, 0.0  ;;  %v571_v34 = vadd.f32 %v539_v22, %v429_v14  ;;  %v431_v35 = vadd.f32 %v916_v2, %v392_v23  ;;  %v541_v36 = vadd.f32 %v921_v3, %v502_v24  ;;  %v361_v14 = vld [vmem:[%s905_s8 + $0xd0] sm:$0xff] }
  0x2e   : > { %633 = vst [vmem:[%s956_s18 + $0x70] sm:$0xff] %v601_v27  ;;  %v572_v38 = vadd.f32 %v540_v29, %v430_v28  ;;  %v432_v39 = vadd.f32 %v916_v2, %v393_v30  ;;  %v503_v40 = vmul.f32 %v899_v1, %v464_v25  ;;  %v394_v41 = vmul.f32 %v894_v0, %v355_v26  ;;  %v472_v29 = vld [vmem:[%s911_s11 + $0xd8] sm:$0xff]  ;;  %v363_v30 = vld [vmem:[%s905_s8 + $0xe0] sm:$0xff] }
  0x2f   : > { %634 = vst [vmem:[%s956_s18 + $0x78] sm:$0xff] %v602_v33  ;;  %v603_v43 = vmax.f32 %v571_v34, 0.0  ;;  %v573_v44 = vadd.f32 %v541_v36, %v431_v35  ;;  %v504_v45 = vmul.f32 %v899_v1, %v465_v31  ;;  %v395_v46 = vmul.f32 %v894_v0, %v356_v32  ;;  %v473_v35 = vld [vmem:[%s911_s11 + $0xe0] sm:$0xff]  ;;  %v364_v36 = vld [vmem:[%s905_s8 + $0xe8] sm:$0xff] }
  0x30   : > { %v604_v49 = vmax.f32 %v572_v38, 0.0  ;;  %v542_v50 = vadd.f32 %v921_v3, %v503_v40  ;;  %v433_v51 = vadd.f32 %v916_v2, %v394_v41  ;;  %v505_v52 = vmul.f32 %v899_v1, %v466_v37  ;;  %v474_v41 = vld [vmem:[%s911_s11 + $0xe8] sm:$0xff] }
  0x31   : > { %635 = vst [vmem:[%s956_s18 + $0x80] sm:$0xff] %v603_v43  ;;  %v605_v55 = vmax.f32 %v573_v44, 0.0  ;;  %v543_v56 = vadd.f32 %v921_v3, %v504_v45  ;;  %v434_v57 = vadd.f32 %v916_v2, %v395_v46  ;;  %v396_v58 = vmul.f32 %v894_v0, %v357_v42  ;;  %v365_v46 = vld [vmem:[%s905_s8 + $0xf0] sm:$0xff] }
  0x32   : > { %636 = vst [vmem:[%s956_s18 + $0x88] sm:$0xff] %v604_v49  ;;  %v574_v59 = vadd.f32 %v542_v50, %v432_v39  ;;  %v544_v60 = vadd.f32 %v921_v3, %v505_v52  ;;  %v506_v61 = vmul.f32 %v899_v1, %v467_v47  ;;  %v397_v62 = vmul.f32 %v894_v0, %v358_v48  ;;  %v366_v52 = vld [vmem:[%s905_s8 + $0xf8] sm:$0xff] }
  0x33   : > { %637 = vst [vmem:[%s956_s18 + $0x90] sm:$0xff] %v605_v55  ;;  %v575_v4 = vadd.f32 %v543_v56, %v433_v51  ;;  %v435_v5 = vadd.f32 %v916_v2, %v396_v58  ;;  %v507_v6 = vmul.f32 %v899_v1, %v468_v53  ;;  %v398_v7 = vmul.f32 %v894_v0, %v359_v54  ;;  %v475_v51 = vld [vmem:[%s911_s11 + $0xf0] sm:$0xff] }
  0x34   : > { %v606_v10 = vmax.f32 %v574_v59, 0.0  ;;  %v576_v11 = vadd.f32 %v544_v60, %v434_v57  ;;  %v545_v12 = vadd.f32 %v921_v3, %v506_v61  ;;  %v436_v13 = vadd.f32 %v916_v2, %v397_v62  ;;  %v476_v57 = vld [vmem:[%s911_s11 + $0xf8] sm:$0xff] }
  0x35   : > { %v607_v16 = vmax.f32 %v575_v4, 0.0  ;;  %v546_v17 = vadd.f32 %v921_v3, %v507_v6  ;;  %v437_v18 = vadd.f32 %v916_v2, %v398_v7  ;;  %v508_v19 = vmul.f32 %v899_v1, %v469_v63 }
  0x36   : > { %638 = vst [vmem:[%s956_s18 + $0x98] sm:$0xff] %v606_v10  ;;  %v608_v21 = vmax.f32 %v576_v11, 0.0  ;;  %v577_v22 = vadd.f32 %v545_v12, %v435_v5  ;;  %v399_v23 = vmul.f32 %v894_v0, %v360_v8  ;;  %v509_v24 = vmul.f32 %v899_v1, %v470_v9 }
  0x37   : > { %639 = vst [vmem:[%s956_s18 + $0xa0] sm:$0xff] %v607_v16  ;;  %v578_v25 = vadd.f32 %v546_v17, %v436_v13  ;;  %v547_v26 = vadd.f32 %v921_v3, %v508_v19  ;;  %v400_v27 = vmul.f32 %v894_v0, %v361_v14  ;;  %v510_v28 = vmul.f32 %v899_v1, %v471_v15 }
  0x38   : > { %640 = vst [vmem:[%s956_s18 + $0xa8] sm:$0xff] %v608_v21  ;;  %v609_v31 = vmax.f32 %v577_v22, 0.0  ;;  %v438_v32 = vadd.f32 %v916_v2, %v399_v23  ;;  %v548_v33 = vadd.f32 %v921_v3, %v509_v24  ;;  %v401_v34 = vmul.f32 %v894_v0, %v362_v20 }
  0x39   : > { %v610_v37 = vmax.f32 %v578_v25, 0.0  ;;  %v579_v38 = vadd.f32 %v547_v26, %v437_v18  ;;  %v439_v39 = vadd.f32 %v916_v2, %v400_v27  ;;  %v549_v40 = vadd.f32 %v921_v3, %v510_v28 }
  0x3a   : > { %641 = vst [vmem:[%s956_s18 + $0xb0] sm:$0xff] %v609_v31  ;;  %v580_v42 = vadd.f32 %v548_v33, %v438_v32  ;;  %v440_v43 = vadd.f32 %v916_v2, %v401_v34  ;;  %v511_v44 = vmul.f32 %v899_v1, %v472_v29  ;;  %v402_v45 = vmul.f32 %v894_v0, %v363_v30 }
  0x3b   : > { %642 = vst [vmem:[%s956_s18 + $0xb8] sm:$0xff] %v610_v37  ;;  %v611_v47 = vmax.f32 %v579_v38, 0.0  ;;  %v581_v48 = vadd.f32 %v549_v40, %v439_v39  ;;  %v512_v49 = vmul.f32 %v899_v1, %v473_v35  ;;  %v403_v50 = vmul.f32 %v894_v0, %v364_v36 }
  0x3c   : > { %v612_v53 = vmax.f32 %v580_v42, 0.0  ;;  %v550_v54 = vadd.f32 %v921_v3, %v511_v44  ;;  %v441_v55 = vadd.f32 %v916_v2, %v402_v45  ;;  %v513_v56 = vmul.f32 %v899_v1, %v474_v41 }
  0x3d   : > { %643 = vst [vmem:[%s956_s18 + $0xc0] sm:$0xff] %v611_v47  ;;  %v613_v58 = vmax.f32 %v581_v48, 0.0  ;;  %v551_v59 = vadd.f32 %v921_v3, %v512_v49  ;;  %v442_v60 = vadd.f32 %v916_v2, %v403_v50  ;;  %v404_v61 = vmul.f32 %v894_v0, %v365_v46 }
  0x3e   : > { %644 = vst [vmem:[%s956_s18 + $0xc8] sm:$0xff] %v612_v53  ;;  %v582_v62 = vadd.f32 %v550_v54, %v440_v43  ;;  %v552_v63 = vadd.f32 %v921_v3, %v513_v56  ;;  %v514_v4 = vmul.f32 %v899_v1, %v475_v51  ;;  %v405_v5 = vmul.f32 %v894_v0, %v366_v52 }
  0x3f   : > { %645 = vst [vmem:[%s956_s18 + $0xd0] sm:$0xff] %v613_v58  ;;  %v583_v6 = vadd.f32 %v551_v59, %v441_v55  ;;  %v443_v7 = vadd.f32 %v916_v2, %v404_v61  ;;  %v515_v8 = vmul.f32 %v899_v1, %v476_v57 }
  0x40   : > { %v614_v9 = vmax.f32 %v582_v62, 0.0  ;;  %v584_v10 = vadd.f32 %v552_v63, %v442_v60  ;;  %v553_v11 = vadd.f32 %v921_v3, %v514_v4  ;;  %v444_v12 = vadd.f32 %v916_v2, %v405_v5 }
  0x41   : > { %v615_v13 = vmax.f32 %v583_v6, 0.0  ;;  %v554_v14 = vadd.f32 %v921_v3, %v515_v8 }
  0x42   : > { %646 = vst [vmem:[%s956_s18 + $0xd8] sm:$0xff] %v614_v9  ;;  %v616_v0 = vmax.f32 %v584_v10, 0.0  ;;  %v585_v15 = vadd.f32 %v553_v11, %v443_v7 }
  0x43   : > { %647 = vst [vmem:[%s956_s18 + $0xe0] sm:$0xff] %v615_v13  ;;  %v586_v16 = vadd.f32 %v554_v14, %v444_v12 }
  0x44   : > { %648 = vst [vmem:[%s956_s18 + $0xe8] sm:$0xff] %v616_v0  ;;  %v617_v17 = vmax.f32 %v585_v15, 0.0 }
  0x45   : > { %v618_v18 = vmax.f32 %v586_v16, 0.0 }
  0x46   : > { %649 = vst [vmem:[%s956_s18 + $0xf0] sm:$0xff] %v617_v17 }
  0x47   : > { %650 = vst [vmem:[%s956_s18 + $0xf8] sm:$0xff] %v618_v18 }
  0x48 PF: > { %s16_s23 = sadd.s32 1, %s834_s23   ;;  %s1169_s21 = smov %s830_s22 }
  0x49   : > { %p13_p5 = scmp.ge.s32.totalorder %s16_s23, 4   ;;  %s1170_s22 = smov %s1172_s24 }
  0x4b   :  { %15 = sbr.rel (!%p13_p5) target bundleno = 2 (0x2), region = 77 }

// kernel: resblock_forward.16
= control target key start
LH: loop header
LB: loop body
LE: loop exit
PB: predicated region body
PF: predicated region fallthrough
CT: control target
= control target key end

     0   :  { %s1223_s18 = smov 0   ;;  %s1225_s19 = smov 0   ;;  %s1535_s0 = inlined_call_operand.vmem [shape: f32[2,16,16,128], index: 0, kind: input, shape index: {}]   ;;  %s1536_s1 = inlined_call_operand.vmem [shape: f32[1,128], index: 1, kind: input, shape index: {}]   ;;  %s1537_s2 = inlined_call_operand.vmem [shape: f32[1,128], index: 2, kind: input, shape index: {}]   ;;  %s1538_s3 = inlined_call_operand.vmem [shape: f32[128,128], index: 3, kind: input, shape index: {}]   ;;  %s1539_s4 = inlined_call_operand.vmem [shape: f32[2,16,16,128], index: 4, kind: output, shape index: {0}]   ;;  %s1540_s5 = inlined_call_operand.vmem [shape: f32[2,1,8,128], index: 5, kind: output, shape index: {1}]  }
   0x1   :  { %s1227_s20 = smov 0  }
   0x2 LB: > { %s28_s21 = sadd.s32 1, %s1187_s19  ;;  %p957_p0 = scmp.ge.s32.totalorder %s1191_s20, 1  ;;  %s1191_s20 = sphi %s1227_s20, %s16_s20   ;;  %s1187_s19 = sphi %s1225_s19, %s1542_s19   ;;  %s1183_s18 = sphi %s1223_s18, %s1541_s18  }
   0x3   : > { %p30_p1 = scmp.ge.s32.totalorder %s28_s21, 2  ;;  %p214_p2 = scmp.lt.s32.totalorder %s1191_s20, 3 }
   0x5   : > { %s1544_s21 = smov (%p30_p1, %s28_s21), 0  ;;  %p215_p3 = pnand %p957_p0, %p214_p2 }
   0x6   : > { %v430_v0 = vld [vmem:[%s1538_s3] sm:$0xff] (!%p215_p3)  ;;  %v431_v1 = vld [vmem:[%s1538_s3 + $0x8] sm:$0xff] (!%p215_p3)  ;;  %v432_v2 = vld [vmem:[%s1538_s3 + $0x10] sm:$0xff] (!%p215_p3)  ;;  %p260_p4 = scmp.lt.s32.totalorder (!%p215_p3), %s1183_s18, 1 }
   0x7   : > { %218 = sbr.rel (%p215_p3) target bundleno = 335 (0x14f), region = 36  ;;  %v1097_v3 = vpack.c.bf16 (!%p215_p3), %v431_v1, %v430_v0  ;;  %v433_v4 = vld [vmem:[%s1538_s3 + $0x18] sm:$0xff] (!%p215_p3)  ;;  %v434_v6 = vld [vmem:[%s1538_s3 + $0x20] sm:$0xff] (!%p215_p3)  ;;  %v435_v7 = vld [vmem:[%s1538_s3 + $0x28] sm:$0xff] (!%p215_p3) }
   0x8   : > { %v1101_v5 = vpack.c.bf16 (!%p215_p3), %v433_v4, %v432_v2  ;;  %v1105_v8 = vpack.c.bf16 (!%p215_p3), %v435_v7, %v434_v6  ;;  %v436_v9 = vld [vmem:[%s1538_s3 + $0x30] sm:$0xff] (!%p215_p3)  ;;  %v1275_v10 = vld [vmem:[%s1536_s1] ss:$0 sm:$0xff] (!%p215_p3)  ;;  %v437_v11 = vld [vmem:[%s1538_s3 + $0x38] sm:$0xff] (!%p215_p3) }
   0x9   : > { %1098 = vmatprep.subr.bf16.mxu0 (!%p215_p3), %v1097_v3  ;;  %1129 = vmatprep.subr.bf16.mxu1 (!%p215_p3), %v1097_v3  ;;  %v1284_v13 = vld [vmem:[%s1537_s2] ss:$0 sm:$0xff] (!%p215_p3)  ;;  %v1109_v15 = vpack.c.bf16 (!%p215_p3), %v437_v11, %v436_v9  ;;  %v439_v18 = vld [vmem:[%s1538_s3 + $0x48] sm:$0xff] (!%p215_p3)  ;;  %v440_v21 = vld [vmem:[%s1538_s3 + $0x50] sm:$0xff] (!%p215_p3) }
   0xa   : > { %1100 = vmatpush3.bf16.msra.mxu0 (!%p215_p3), %v1097_v3  ;;  %1137 = vmatpush3.bf16.msra.mxu1 (!%p215_p3), %v1097_v3  ;;  %v438_v17 = vld [vmem:[%s1538_s3 + $0x40] sm:$0xff] (!%p215_p3)  ;;  %v441_v22 = vld [vmem:[%s1538_s3 + $0x58] sm:$0xff] (!%p215_p3)  ;;  %v443_v26 = vld [vmem:[%s1538_s3 + $0x68] sm:$0xff] (!%p215_p3) }
   0xb   : > { %1102 = vmatprep.subr.bf16.mxu0 (!%p215_p3), %v1101_v5  ;;  %1130 = vmatprep.subr.bf16.mxu1 (!%p215_p3), %v1101_v5  ;;  %v1113_v20 = vpack.c.bf16 (!%p215_p3), %v439_v18, %v438_v17  ;;  %v1117_v24 = vpack.c.bf16 (!%p215_p3), %v441_v22, %v440_v21  ;;  %v442_v25 = vld [vmem:[%s1538_s3 + $0x60] sm:$0xff] (!%p215_p3)  ;;  %v444_v34 = vld [vmem:[%s1538_s3 + $0x70] sm:$0xff] (!%p215_p3)  ;;  %v445_v35 = vld [vmem:[%s1538_s3 + $0x78] sm:$0xff] (!%p215_p3) }
   0xc   : > { %v1121_v30 = vpack.c.bf16 (!%p215_p3), %v443_v26, %v442_v25  ;;  %v1125_v44 = vpack.c.bf16 (!%p215_p3), %v445_v35, %v444_v34 }
   0xe   : > { %s1546_s18 = smov (!%p260_p4, %s1183_s18), 1  ;;  %1104 = vmatpush3.bf16.msra.mxu0 %v1101_v5  ;;  %1138 = vmatpush3.bf16.msra.mxu1 %v1101_v5 }
   0xf   : > { %s967_s9 = sshll.u32 %s1546_s18, 8  ;;  %1106 = vmatprep.subr.bf16.mxu0 %v1105_v8  ;;  %1131 = vmatprep.subr.bf16.mxu1 %v1105_v8 }
  0x10   : > { %s1270_s14 = scalar_lea.vmem %s1535_s0, %s967_s9  ;;  %s1410_s23 = scalar_lea.vmem %s1539_s4, %s967_s9 }
  0x11   : > { %v288_v12 = vld [vmem:[%s1270_s14] sm:$0xff]  ;;  %v289_v28 = vld [vmem:[%s1270_s14 + $0x8] sm:$0xff]  ;;  %v290_v31 = vld [vmem:[%s1270_s14 + $0x10] sm:$0xff]  ;;  %s962_s9 = sshll.u32 %s1546_s18, 3 }
  0x12   : > { %v327_v14 = vmul.f32 %v1275_v10, %v288_v12  ;;  %1108 = vmatpush3.bf16.msra.mxu0 %v1105_v8  ;;  %1139 = vmatpush3.bf16.msra.mxu1 %v1105_v8  ;;  %v304_v23 = vld [vmem:[%s1270_s14 + $0x80] sm:$0xff]  ;;  %v305_v29 = vld [vmem:[%s1270_s14 + $0x88] sm:$0xff]  ;;  %v306_v33 = vld [vmem:[%s1270_s14 + $0x90] sm:$0xff]  ;;  %v328_v36 = vmul.f32 %v1275_v10, %v289_v28  ;;  %v329_v41 = vmul.f32 %v1275_v10, %v290_v31  ;;  %s287_s26 = scalar_lea.vmem %s1540_s5, %s962_s9 }
  0x13   : > { %1110 = vmatprep.subr.bf16.mxu0 %v1109_v15  ;;  %1132 = vmatprep.subr.bf16.mxu1 %v1109_v15  ;;  %v343_v27 = vmul.f32 %v1275_v10, %v304_v23  ;;  %v291_v37 = vld [vmem:[%s1270_s14 + $0x18] sm:$0xff]  ;;  %v292_v38 = vld [vmem:[%s1270_s14 + $0x20] sm:$0xff]  ;;  %v344_v40 = vmul.f32 %v1275_v10, %v305_v29  ;;  %v345_v42 = vmul.f32 %v1275_v10, %v306_v33  ;;  %v293_v49 = vld [vmem:[%s1270_s14 + $0x28] sm:$0xff] }
  0x14   : > { %v366_v16 = vadd.f32 %v1284_v13, %v327_v14  ;;  %v307_v43 = vld [vmem:[%s1270_s14 + $0x98] sm:$0xff]  ;;  %v308_v45 = vld [vmem:[%s1270_s14 + $0xa0] sm:$0xff]  ;;  %v330_v46 = vmul.f32 %v1275_v10, %v291_v37  ;;  %v331_v47 = vmul.f32 %v1275_v10, %v292_v38  ;;  %v367_v48 = vadd.f32 %v1284_v13, %v328_v36  ;;  %v294_v50 = vld [vmem:[%s1270_s14 + $0x30] sm:$0xff] }
  0x15   : > { %v382_v32 = vadd.f32 %v1284_v13, %v343_v27  ;;  %v383_v51 = vadd.f32 %v1284_v13, %v344_v40  ;;  %v346_v52 = vmul.f32 %v1275_v10, %v307_v43  ;;  %v368_v53 = vadd.f32 %v1284_v13, %v329_v41  ;;  %v309_v56 = vld [vmem:[%s1270_s14 + $0xa8] sm:$0xff]  ;;  %v310_v57 = vld [vmem:[%s1270_s14 + $0xb0] sm:$0xff]  ;;  %v295_v63 = vld [vmem:[%s1270_s14 + $0x38] sm:$0xff] }
  0x16   : > { %v398_v19 = vmax.f32 %v366_v16, 0.0  ;;  %1112 = vmatpush3.bf16.msra.mxu0 %v1109_v15  ;;  %1140 = vmatpush3.bf16.msra.mxu1 %v1109_v15  ;;  %v384_v54 = vadd.f32 %v1284_v13, %v345_v42  ;;  %v347_v55 = vmul.f32 %v1275_v10, %v308_v45  ;;  %v369_v58 = vadd.f32 %v1284_v13, %v330_v46  ;;  %v311_v7 = vld [vmem:[%s1270_s14 + $0xb8] sm:$0xff]  ;;  %v296_v8 = vld [vmem:[%s1270_s14 + $0x40] sm:$0xff]  ;;  %v297_v17 = vld [vmem:[%s1270_s14 + $0x48] sm:$0xff] }
  0x17   : > { %1114 = vmatprep.subr.bf16.mxu0 %v1113_v20  ;;  %1133 = vmatprep.subr.bf16.mxu1 %v1113_v20  ;;  %v414_v39 = vmax.f32 %v382_v32, 0.0  ;;  %v370_v59 = vadd.f32 %v1284_v13, %v331_v47  ;;  %v332_v60 = vmul.f32 %v1275_v10, %v293_v49  ;;  %v333_v61 = vmul.f32 %v1275_v10, %v294_v50  ;;  %v312_v9 = vld [vmem:[%s1270_s14 + $0xc0] sm:$0xff]  ;;  %v298_v22 = vld [vmem:[%s1270_s14 + $0x50] sm:$0xff]  ;;  %v313_v26 = vld [vmem:[%s1270_s14 + $0xc8] sm:$0xff] }
  0x18   : > { %1049 = vmatprep.mubr.f32.mxu0 %v398_v19  ;;  %v399_v62 = vmax.f32 %v367_v48, 0.0  ;;  %v415_v0 = vmax.f32 %v383_v51, 0.0  ;;  %v385_v1 = vadd.f32 %v1284_v13, %v346_v52  ;;  %v348_v2 = vmul.f32 %v1275_v10, %v309_v56  ;;  %v314_v27 = vld [vmem:[%s1270_s14 + $0xd0] sm:$0xff]  ;;  %v299_v33 = vld [vmem:[%s1270_s14 + $0x58] sm:$0xff]  ;;  %v300_v34 = vld [vmem:[%s1270_s14 + $0x60] sm:$0xff] }
  0x19   : > { %1073 = vmatprep.mubr.f32.mxu1 %v414_v39  ;;  %v400_v3 = vmax.f32 %v368_v53, 0.0  ;;  %v416_v4 = vmax.f32 %v384_v54, 0.0  ;;  %v386_v5 = vadd.f32 %v1284_v13, %v347_v55  ;;  %v349_v6 = vmul.f32 %v1275_v10, %v310_v57  ;;  %v315_v42 = vld [vmem:[%s1270_s14 + $0xd8] sm:$0xff]  ;;  %v316_v43 = vld [vmem:[%s1270_s14 + $0xe0] sm:$0xff]  ;;  %v301_v49 = vld [vmem:[%s1270_s14 + $0x68] sm:$0xff] }
  0x1a   : > { %1116 = vmatpush3.bf16.msra.mxu0 %v1113_v20  ;;  %1141 = vmatpush3.bf16.msra.mxu1 %v1113_v20  ;;  %v401_v11 = vmax.f32 %v369_v58, 0.0  ;;  %v371_v12 = vadd.f32 %v1284_v13, %v332_v60  ;;  %v372_v14 = vadd.f32 %v1284_v13, %v333_v61  ;;  %v334_v15 = vmul.f32 %v1275_v10, %v295_v63  ;;  %v302_v54 = vld [vmem:[%s1270_s14 + $0x70] sm:$0xff]  ;;  %v317_v58 = vld [vmem:[%s1270_s14 + $0xe8] sm:$0xff] }
  0x1b   : > { %1118 = vmatprep.subr.bf16.mxu0 %v1117_v24  ;;  %1134 = vmatprep.subr.bf16.mxu1 %v1117_v24  ;;  %v402_v16 = vmax.f32 %v370_v59, 0.0  ;;  %v417_v18 = vmax.f32 %v385_v1, 0.0  ;;  %v387_v19 = vadd.f32 %v1284_v13, %v348_v2  ;;  %v350_v20 = vmul.f32 %v1275_v10, %v311_v7  ;;  %v318_v59 = vld [vmem:[%s1270_s14 + $0xf0] sm:$0xff] }
  0x1c   : > { %v335_v21 = vmul.f32 %v1275_v10, %v296_v8  ;;  %v418_v23 = vmax.f32 %v386_v5, 0.0  ;;  %v351_v25 = vmul.f32 %v1275_v10, %v312_v9  ;;  %v403_v28 = vmax.f32 %v371_v12, 0.0  ;;  %v303_v5 = vld [vmem:[%s1270_s14 + $0x78] sm:$0xff] }
  0x1d   : > { %v404_v29 = vmax.f32 %v372_v14, 0.0  ;;  %v336_v31 = vmul.f32 %v1275_v10, %v297_v17  ;;  %v337_v32 = vmul.f32 %v1275_v10, %v298_v22  ;;  %v419_v35 = vmax.f32 %v387_v19, 0.0  ;;  %v319_v9 = vld [vmem:[%s1270_s14 + $0xf8] sm:$0xff] }
  0x1e   : > { %1120 = vmatpush3.bf16.msra.mxu0 %v1117_v24  ;;  %1142 = vmatpush3.bf16.msra.mxu1 %v1117_v24  ;;  %v388_v24 = vadd.f32 %v1284_v13, %v349_v6  ;;  %v389_v36 = vadd.f32 %v1284_v13, %v350_v20  ;;  %v352_v37 = vmul.f32 %v1275_v10, %v313_v26 }
  0x1f   : > { %1122 = vmatprep.subr.bf16.mxu0 %v1121_v30  ;;  %1135 = vmatprep.subr.bf16.mxu1 %v1121_v30  ;;  %v374_v38 = vadd.f32 %v1284_v13, %v335_v21  ;;  %v390_v40 = vadd.f32 %v1284_v13, %v351_v25  ;;  %v353_v41 = vmul.f32 %v1275_v10, %v314_v27 }
  0x20   : > { %v420_v39 = vmax.f32 %v388_v24, 0.0  ;;  %v375_v45 = vadd.f32 %v1284_v13, %v336_v31  ;;  %v338_v46 = vmul.f32 %v1275_v10, %v299_v33  ;;  %v339_v47 = vmul.f32 %v1275_v10, %v300_v34 }
  0x21   : > { %v376_v48 = vadd.f32 %v1284_v13, %v337_v32  ;;  %v421_v50 = vmax.f32 %v389_v36, 0.0  ;;  %v391_v51 = vadd.f32 %v1284_v13, %v352_v37  ;;  %v354_v52 = vmul.f32 %v1275_v10, %v315_v42 }
  0x22   : > { %1124 = vmatpush3.bf16.msra.mxu0 %v1121_v30  ;;  %1143 = vmatpush3.bf16.msra.mxu1 %v1121_v30  ;;  %v373_v30 = vadd.f32 %v1284_v13, %v334_v15  ;;  %v406_v53 = vmax.f32 %v374_v38, 0.0  ;;  %v422_v55 = vmax.f32 %v390_v40, 0.0  ;;  %v392_v56 = vadd.f32 %v1284_v13, %v353_v41 }
  0x23   : > { %1126 = vmatprep.subr.bf16.mxu0 %v1125_v44  ;;  %1136 = vmatprep.subr.bf16.mxu1 %v1125_v44  ;;  %v355_v57 = vmul.f32 %v1275_v10, %v316_v43  ;;  %v407_v60 = vmax.f32 %v375_v45, 0.0  ;;  %v377_v61 = vadd.f32 %v1284_v13, %v338_v46  ;;  %v340_v63 = vmul.f32 %v1275_v10, %v301_v49 }
  0x24   : > { %v423_v1 = vmax.f32 %v391_v51, 0.0  ;;  %v393_v2 = vadd.f32 %v1284_v13, %v354_v52  ;;  %v424_v6 = vmax.f32 %v392_v56, 0.0  ;;  %v357_v8 = vmul.f32 %v1275_v10, %v318_v59 }
  0x25   : > { %v394_v7 = vadd.f32 %v1284_v13, %v355_v57  ;;  %v379_v12 = vadd.f32 %v1284_v13, %v340_v63  ;;  %v342_v14 = vmul.f32 %v1275_v10, %v303_v5  ;;  %v358_v17 = vmul.f32 %v1275_v10, %v319_v9 }
  0x26   : > { %1128 = vmatpush3.bf16.msra.mxu0 %v1125_v44  ;;  %1144 = vmatpush3.bf16.msra.mxu1 %v1125_v44  ;;  %v405_v44 = vmax.f32 %v373_v30, 0.0  ;;  %v425_v15 = vmax.f32 %v393_v2, 0.0  ;;  %v396_v21 = vadd.f32 %v1284_v13, %v357_v8 }
  0x27   : > { %v426_v20 = vmax.f32 %v394_v7, 0.0  ;;  %v411_v22 = vmax.f32 %v379_v12, 0.0  ;;  %v397_v25 = vadd.f32 %v1284_v13, %v358_v17 }
  0x29   : > { %1050 = vmatmul.mubr.f32.vlgmr.msra.gmra.mrb[0].mxu0 %v399_v62  ;;  %1074 = vmatmul.mubr.f32.vlgmr.msra.gmra.mrb[0].mxu1 %v415_v0  ;;  %v378_v62 = vadd.f32 %v1284_v13, %v339_v47  ;;  %v341_v0 = vmul.f32 %v1275_v10, %v302_v54 }
  0x2a   : > { %1052 = vmatprep.mubr.f32.mxu0 %v400_v3  ;;  %1076 = vmatprep.mubr.f32.mxu1 %v416_v4  ;;  %v356_v3 = vmul.f32 %v1275_v10, %v317_v58  ;;  %v408_v4 = vmax.f32 %v376_v48, 0.0  ;;  %v428_v10 = vmax.f32 %v396_v21, 0.0 }
  0x2b   : > { %v380_v19 = vadd.f32 %v1284_v13, %v341_v0 }
  0x2d   : > { %1053 = vmatmul.mubr.f32.gmra.mrb[2].mxu0 %v401_v11  ;;  %1077 = vmatmul.mubr.f32.gmra.mrb[2].mxu1 %v417_v18  ;;  %v409_v11 = vmax.f32 %v377_v61, 0.0  ;;  %v410_v18 = vmax.f32 %v378_v62, 0.0  ;;  %v412_v26 = vmax.f32 %v380_v19, 0.0 }
  0x2e   : > { %1055 = vmatprep.mubr.f32.mxu0 %v402_v16  ;;  %1079 = vmatprep.mubr.f32.mxu1 %v418_v23  ;;  %v395_v16 = vadd.f32 %v1284_v13, %v356_v3  ;;  %v381_v23 = vadd.f32 %v1284_v13, %v342_v14 }
  0x30   : > { %v427_v24 = vmax.f32 %v395_v16, 0.0  ;;  %v413_v27 = vmax.f32 %v381_v23, 0.0 }
  0x31   : > { %1056 = vmatmul.mubr.f32.gmra.mrb[4].mxu0 %v403_v28  ;;  %1080 = vmatmul.mubr.f32.gmra.mrb[4].mxu1 %v419_v35  ;;  %v429_v28 = vmax.f32 %v397_v25, 0.0 }
  0x32   : > { %1058 = vmatprep.mubr.f32.mxu0 %v404_v29  ;;  %1082 = vmatprep.mubr.f32.mxu1 %v420_v39 }
  0x35   : > { %1059 = vmatmul.mubr.f32.gmra.mrb[6].mxu0 %v405_v44  ;;  %1083 = vmatmul.mubr.f32.gmra.mrb[6].mxu1 %v421_v50 }
  0x36   : > { %1061 = vmatprep.mubr.f32.mxu0 %v406_v53  ;;  %1085 = vmatprep.mubr.f32.mxu1 %v422_v55 }
  0x39   : > { %1062 = vmatmul.mubr.f32.gmra.mrb[8].mxu0 %v407_v60  ;;  %1086 = vmatmul.mubr.f32.gmra.mrb[8].mxu1 %v423_v1 }
  0x3a   : > { %1064 = vmatprep.mubr.f32.mxu0 %v408_v4  ;;  %1088 = vmatprep.mubr.f32.mxu1 %v424_v6 }
  0x3d   : > { %1065 = vmatmul.mubr.f32.gmra.mrb[10].mxu0 %v409_v11  ;;  %1089 = vmatmul.mubr.f32.gmra.mrb[10].mxu1 %v425_v15 }
  0x3e   : > { %1067 = vmatprep.mubr.f32.mxu0 %v410_v18  ;;  %1091 = vmatprep.mubr.f32.mxu1 %v426_v20 }
  0x41   : > { %1068 = vmatmul.mubr.f32.gmra.mrb[12].mxu0 %v411_v22  ;;  %1092 = vmatmul.mubr.f32.gmra.mrb[12].mxu1 %v427_v24 }
  0x42   : > { %1070 = vmatprep.mubr.f32.mxu0 %v412_v26  ;;  %1094 = vmatprep.mubr.f32.mxu1 %v428_v10 }
  0x45   : > { %1071 = vmatmul.mubr.f32.gmra.mrb[14].mxu0 %v413_v27  ;;  %1095 = vmatmul.mubr.f32.gmra.mrb[14].mxu1 %v429_v28 }
  0xfc   : > { %v1051_v13 = vpop.f32.mrb[0].mxu0  ;;  %v1412_v29 = vpop.f32.mrb[0].mxu1 }
  0xfd   : > { %672 = vst [vmem:[%s1410_s23 + $0x8] sm:$0xff] %v1051_v13  ;;  %v741_v30 = vmul.f32 %v1051_v13, %v1051_v13  ;;  %v512_v31 = vpop.f32.mrb[1].mxu0  ;;  %688 = vst [vmem:[%s1410_s23 + $0x88] sm:$0xff] %v1412_v29  ;;  %v1417_v32 = vpop.f32.mrb[1].mxu1 }
  0xfe   : > { %671 = vst [vmem:[%s1410_s23] sm:$0xff] %v512_v31  ;;  %v703_v33 = vadd.f32 %v1051_v13, %v512_v31  ;;  %v740_v34 = vmul.f32 %v512_v31, %v512_v31  ;;  %687 = vst [vmem:[%s1410_s23 + $0x80] sm:$0xff] %v1417_v32 }
 0x100   : > { %v772_v35 = vadd.f32 %v741_v30, %v740_v34  ;;  %v1054_v36 = vpop.f32.mrb[2].mxu0  ;;  %v1422_v37 = vpop.f32.mrb[2].mxu1 }
 0x101   : > { %674 = vst [vmem:[%s1410_s23 + $0x18] sm:$0xff] %v1054_v36  ;;  %v522_v38 = vpop.f32.mrb[3].mxu0  ;;  %690 = vst [vmem:[%s1410_s23 + $0x98] sm:$0xff] %v1422_v37  ;;  %v1427_v39 = vpop.f32.mrb[3].mxu1  ;;  %v743_v42 = vmul.f32 %v1054_v36, %v1054_v36 }
 0x102   : > { %673 = vst [vmem:[%s1410_s23 + $0x10] sm:$0xff] %v522_v38  ;;  %v704_v40 = vadd.f32 %v703_v33, %v522_v38  ;;  %v742_v41 = vmul.f32 %v522_v38, %v522_v38  ;;  %689 = vst [vmem:[%s1410_s23 + $0x90] sm:$0xff] %v1427_v39 }
 0x104   : > { %v773_v43 = vadd.f32 %v772_v35, %v742_v41  ;;  %v1057_v44 = vpop.f32.mrb[4].mxu0  ;;  %v705_v45 = vadd.f32 %v1054_v36, %v704_v40  ;;  %v1432_v46 = vpop.f32.mrb[4].mxu1 }
 0x105   : > { %676 = vst [vmem:[%s1410_s23 + $0x28] sm:$0xff] %v1057_v44  ;;  %v532_v47 = vpop.f32.mrb[5].mxu0  ;;  %692 = vst [vmem:[%s1410_s23 + $0xa8] sm:$0xff] %v1432_v46  ;;  %v1437_v48 = vpop.f32.mrb[5].mxu1  ;;  %v745_v52 = vmul.f32 %v1057_v44, %v1057_v44 }
 0x106   : > { %675 = vst [vmem:[%s1410_s23 + $0x20] sm:$0xff] %v532_v47  ;;  %v706_v49 = vadd.f32 %v705_v45, %v532_v47  ;;  %v744_v50 = vmul.f32 %v532_v47, %v532_v47  ;;  %v774_v51 = vadd.f32 %v773_v43, %v743_v42  ;;  %691 = vst [vmem:[%s1410_s23 + $0xa0] sm:$0xff] %v1437_v48 }
 0x107   : > { %v756_v45 = vmul.f32 %v1417_v32, %v1417_v32 }
 0x108   : > { %v775_v53 = vadd.f32 %v774_v51, %v744_v50  ;;  %v1060_v54 = vpop.f32.mrb[6].mxu0  ;;  %v707_v55 = vadd.f32 %v1057_v44, %v706_v49  ;;  %v1442_v56 = vpop.f32.mrb[6].mxu1  ;;  %v757_v50 = vmul.f32 %v1412_v29, %v1412_v29 }
 0x109   : > { %678 = vst [vmem:[%s1410_s23 + $0x38] sm:$0xff] %v1060_v54  ;;  %v542_v57 = vpop.f32.mrb[7].mxu0  ;;  %694 = vst [vmem:[%s1410_s23 + $0xb8] sm:$0xff] %v1442_v56  ;;  %v1447_v58 = vpop.f32.mrb[7].mxu1  ;;  %v747_v62 = vmul.f32 %v1060_v54, %v1060_v54 }
 0x10a   : > { %677 = vst [vmem:[%s1410_s23 + $0x30] sm:$0xff] %v542_v57  ;;  %v708_v59 = vadd.f32 %v707_v55, %v542_v57  ;;  %v746_v60 = vmul.f32 %v542_v57, %v542_v57  ;;  %v776_v61 = vadd.f32 %v775_v53, %v745_v52  ;;  %693 = vst [vmem:[%s1410_s23 + $0xb0] sm:$0xff] %v1447_v58 }
 0x10b   : > { %v758_v53 = vmul.f32 %v1427_v39, %v1427_v39  ;;  %v759_v57 = vmul.f32 %v1422_v37, %v1422_v37 }
 0x10c   : > { %v777_v63 = vadd.f32 %v776_v61, %v746_v60  ;;  %v1063_v0 = vpop.f32.mrb[8].mxu0  ;;  %v709_v1 = vadd.f32 %v1060_v54, %v708_v59  ;;  %v1452_v2 = vpop.f32.mrb[8].mxu1 }
 0x10d   : > { %680 = vst [vmem:[%s1410_s23 + $0x48] sm:$0xff] %v1063_v0  ;;  %v552_v3 = vpop.f32.mrb[9].mxu0  ;;  %696 = vst [vmem:[%s1410_s23 + $0xc8] sm:$0xff] %v1452_v2  ;;  %v1457_v4 = vpop.f32.mrb[9].mxu1  ;;  %v749_v8 = vmul.f32 %v1063_v0, %v1063_v0 }
 0x10e   : > { %679 = vst [vmem:[%s1410_s23 + $0x40] sm:$0xff] %v552_v3  ;;  %v710_v5 = vadd.f32 %v709_v1, %v552_v3  ;;  %v748_v6 = vmul.f32 %v552_v3, %v552_v3  ;;  %v778_v7 = vadd.f32 %v777_v63, %v747_v62  ;;  %695 = vst [vmem:[%s1410_s23 + $0xc0] sm:$0xff] %v1457_v4 }
 0x110   : > { %v779_v9 = vadd.f32 %v778_v7, %v748_v6  ;;  %v1066_v11 = vpop.f32.mrb[10].mxu0  ;;  %v711_v12 = vadd.f32 %v1063_v0, %v710_v5  ;;  %v1462_v14 = vpop.f32.mrb[10].mxu1 }
 0x111   : > { %682 = vst [vmem:[%s1410_s23 + $0x58] sm:$0xff] %v1066_v11  ;;  %v562_v15 = vpop.f32.mrb[11].mxu0  ;;  %698 = vst [vmem:[%s1410_s23 + $0xd8] sm:$0xff] %v1462_v14  ;;  %v1467_v16 = vpop.f32.mrb[11].mxu1  ;;  %v751_v20 = vmul.f32 %v1066_v11, %v1066_v11 }
 0x112   : > { %681 = vst [vmem:[%s1410_s23 + $0x50] sm:$0xff] %v562_v15  ;;  %v712_v17 = vadd.f32 %v711_v12, %v562_v15  ;;  %v750_v18 = vmul.f32 %v562_v15, %v562_v15  ;;  %v780_v19 = vadd.f32 %v779_v9, %v749_v8  ;;  %697 = vst [vmem:[%s1410_s23 + $0xd0] sm:$0xff] %v1467_v16 }
 0x114   : > { %v781_v21 = vadd.f32 %v780_v19, %v750_v18  ;;  %v1069_v22 = vpop.f32.mrb[12].mxu0  ;;  %v713_v23 = vadd.f32 %v1066_v11, %v712_v17  ;;  %v1472_v24 = vpop.f32.mrb[12].mxu1 }
 0x115   : > { %684 = vst [vmem:[%s1410_s23 + $0x68] sm:$0xff] %v1069_v22  ;;  %v572_v25 = vpop.f32.mrb[13].mxu0  ;;  %700 = vst [vmem:[%s1410_s23 + $0xe8] sm:$0xff] %v1472_v24  ;;  %v652_v26 = vpop.f32.mrb[13].mxu1  ;;  %v753_v13 = vmul.f32 %v1069_v22, %v1069_v22 }
 0x116   : > { %683 = vst [vmem:[%s1410_s23 + $0x60] sm:$0xff] %v572_v25  ;;  %v714_v10 = vadd.f32 %v713_v23, %v572_v25  ;;  %v752_v27 = vmul.f32 %v572_v25, %v572_v25  ;;  %v782_v28 = vadd.f32 %v781_v21, %v751_v20  ;;  %699 = vst [vmem:[%s1410_s23 + $0xe0] sm:$0xff] %v652_v26 }
 0x117   : > { %v769_v21 = vmul.f32 %v1472_v24, %v1472_v24 }
 0x118   : > { %v783_v30 = vadd.f32 %v782_v28, %v752_v27  ;;  %v1072_v31 = vpop.f32.mrb[14].mxu0  ;;  %v715_v33 = vadd.f32 %v1069_v22, %v714_v10  ;;  %v1096_v34 = vpop.f32.mrb[14].mxu1 }
 0x119   : > { %686 = vst [vmem:[%s1410_s23 + $0x78] sm:$0xff] %v1072_v31  ;;  %v582_v35 = vpop.f32.mrb[15].mxu0  ;;  %702 = vst [vmem:[%s1410_s23 + $0xf8] sm:$0xff] %v1096_v34  ;;  %v662_v36 = vpop.f32.mrb[15].mxu1  ;;  %v755_v42 = vmul.f32 %v1072_v31, %v1072_v31 }
 0x11a   : > { %685 = vst [vmem:[%s1410_s23 + $0x70] sm:$0xff] %v582_v35  ;;  %v716_v38 = vadd.f32 %v715_v33, %v582_v35  ;;  %v754_v40 = vmul.f32 %v582_v35, %v582_v35  ;;  %v784_v41 = vadd.f32 %v783_v30, %v753_v13  ;;  %701 = vst [vmem:[%s1410_s23 + $0xf0] sm:$0xff] %v662_v36  ;;  %v809_v33 = vlaneseq }
 0x11b   : > { %v770_v23 = vmul.f32 %v662_v36, %v662_v36 }
 0x11c   : > { %v717_v43 = vadd.f32 %v1072_v31, %v716_v38  ;;  %v785_v44 = vadd.f32 %v784_v41, %v754_v40  ;;  %v810_v41 = vshrl.u32 %v809_v33, 7 }
 0x11e   : > { %v786_v47 = vadd.f32 %v785_v44, %v755_v42  ;;  %v718_v49 = vadd.f32 %v717_v43, %v1417_v32  ;;  %v760_v32 = vmul.f32 %v1437_v48, %v1437_v48  ;;  %vm812_vm0 = vcmp.eq.s32.totalorder %v810_v41, 1 }
 0x11f   : > { %vm811_vm1 = vcmp.eq.s32.totalorder %v810_v41, 0 }
 0x120   : > { %v787_v51 = vadd.f32 %v786_v47, %v756_v45  ;;  %v719_v52 = vadd.f32 %v1412_v29, %v718_v49  ;;  %v761_v29 = vmul.f32 %v1432_v46, %v1432_v46 }
 0x122   : > { %v720_v54 = vadd.f32 %v719_v52, %v1427_v39  ;;  %v788_v55 = vadd.f32 %v787_v51, %v757_v50  ;;  %v762_v39 = vmul.f32 %v1447_v58, %v1447_v58 }
 0x124   : > { %v789_v59 = vadd.f32 %v788_v55, %v758_v53  ;;  %v721_v60 = vadd.f32 %v1422_v37, %v720_v54  ;;  %v763_v37 = vmul.f32 %v1442_v56, %v1442_v56 }
 0x126   : > { %v722_v61 = vadd.f32 %v721_v60, %v1437_v48  ;;  %v790_v62 = vadd.f32 %v789_v59, %v759_v57  ;;  %v764_v48 = vmul.f32 %v1457_v4, %v1457_v4 }
 0x128   : > { %v791_v63 = vadd.f32 %v790_v62, %v760_v32  ;;  %v723_v0 = vadd.f32 %v1432_v46, %v722_v61  ;;  %v765_v46 = vmul.f32 %v1452_v2, %v1452_v2 }
 0x12a   : > { %v724_v1 = vadd.f32 %v723_v0, %v1447_v58  ;;  %v792_v3 = vadd.f32 %v791_v63, %v761_v29  ;;  %v766_v58 = vmul.f32 %v1467_v16, %v1467_v16 }
 0x12c   : > { %v793_v5 = vadd.f32 %v792_v3, %v762_v39  ;;  %v725_v6 = vadd.f32 %v1442_v56, %v724_v1  ;;  %v767_v56 = vmul.f32 %v1462_v14, %v1462_v14 }
 0x12e   : > { %v726_v7 = vadd.f32 %v725_v6, %v1457_v4  ;;  %v794_v8 = vadd.f32 %v793_v5, %v763_v37  ;;  %v768_v4 = vmul.f32 %v652_v26, %v652_v26 }
 0x130   : > { %v795_v9 = vadd.f32 %v794_v8, %v764_v48  ;;  %v727_v11 = vadd.f32 %v1452_v2, %v726_v7 }
 0x132   : > { %v728_v12 = vadd.f32 %v727_v11, %v1467_v16  ;;  %v796_v15 = vadd.f32 %v795_v9, %v765_v46  ;;  %v771_v16 = vmul.f32 %v1096_v34, %v1096_v34 }
 0x134   : > { %v797_v17 = vadd.f32 %v796_v15, %v766_v58  ;;  %v729_v18 = vadd.f32 %v1462_v14, %v728_v12 }
 0x136   : > { %v730_v19 = vadd.f32 %v729_v18, %v652_v26  ;;  %v798_v20 = vadd.f32 %v797_v17, %v767_v56 }
 0x138   : > { %v799_v22 = vadd.f32 %v798_v20, %v768_v4  ;;  %v731_v2 = vadd.f32 %v1472_v24, %v730_v19 }
 0x13a   : > { %v732_v25 = vadd.f32 %v731_v2, %v662_v36  ;;  %v800_v10 = vadd.f32 %v799_v22, %v769_v21 }
 0x13c   : > { %v733_v27 = vadd.f32 %v1096_v34, %v732_v25  ;;  %v801_v28 = vadd.f32 %v800_v10, %v770_v23 }
 0x13e   : > { %v734_v13 = vrot.slane %v733_v27, 4  ;;  %v802_v30 = vadd.f32 %v801_v28, %v771_v16 }
 0x140   : > { %v735_v31 = vadd.f32 %v734_v13, %v733_v27  ;;  %v803_v14 = vrot.slane %v802_v30, 4 }
 0x142   : > { %v736_v26 = vrot.slane %v735_v31, 2  ;;  %v804_v35 = vadd.f32 %v803_v14, %v802_v30 }
 0x144   : > { %v737_v38 = vadd.f32 %v736_v26, %v735_v31  ;;  %v805_v40 = vrot.slane %v804_v35, 2 }
 0x146   : > { %v806_v42 = vadd.f32 %v805_v40, %v804_v35  ;;  %v738_v43 = vrot.slane %v737_v38, 1 }
 0x148   : > { %v807_v24 = vrot.slane %v806_v42, 1  ;;  %v739_v34 = vadd.f32 %v738_v43, %v737_v38 }
 0x14a   : > { %v808_v36 = vadd.f32 %v807_v24, %v806_v42 }
 0x14c   : > { %v813_v44 = vsel %vm812_vm0, %v808_v36, 0.0 }
 0x14d   : > { %v814_v45 = vsel %vm811_vm1, %v739_v34, %v813_v44 }
 0x14e   : > { %815 = vst [vmem:[%s287_s26] sm:$0xff] %v814_v45 }
 0x14f PF: > { %s16_s20 = sadd.s32 1, %s1191_s20   ;;  %s1541_s18 = smov %s1187_s19 }
 0x150   : > { %p13_p5 = scmp.ge.s32.totalorder %s16_s20, 4   ;;  %s1542_s19 = smov %s1544_s21 }
 0x152   :  { %15 = sbr.rel (!%p13_p5) target bundleno = 2 (0x2), region = 78 }

// kernel: resblock_forward.22
= control target key start
LH: loop header
LB: loop body
LE: loop exit
PB: predicated region body
PF: predicated region fallthrough
CT: control target
= control target key end

     0   :  { %s791_s21 = smov 0   ;;  %s793_s22 = smov 0   ;;  %s1008_s0 = inlined_call_operand.vmem [shape: f32[2,16,16,128], index: 0, kind: input, shape index: {}]   ;;  %s1009_s1 = inlined_call_operand.vmem [shape: f32[2,16,16,128], index: 1, kind: input, shape index: {}]   ;;  %s1010_s2 = inlined_call_operand.vmem [shape: f32[1,128], index: 2, kind: input, shape index: {}]   ;;  %s1011_s3 = inlined_call_operand.vmem [shape: f32[1,128], index: 3, kind: input, shape index: {}]   ;;  %s1012_s4 = inlined_call_operand.vmem [shape: f32[1,128], index: 4, kind: input, shape index: {}, may-alias: {4,5}]   ;;  %s1013_s5 = inlined_call_operand.vmem [shape: f32[1,128], index: 5, kind: input, shape index: {}, may-alias: {4,5}]   ;;  %s1014_s6 = inlined_call_operand.vmem [shape: f32[2,16,16,128], index: 6, kind: output, shape index: {}]  }
   0x1   :  { %s795_s23 = smov 0  }
   0x2 LB: > { %s28_s4 = sadd.s32 1, %s750_s22  ;;  %p694_p0 = scmp.ge.s32.totalorder %s754_s23, 1  ;;  %s754_s23 = sphi %s795_s23, %s16_s23   ;;  %s750_s22 = sphi %s793_s22, %s1016_s22   ;;  %s746_s21 = sphi %s791_s21, %s1015_s21  }
   0x3   : > { %p30_p1 = scmp.ge.s32.totalorder %s28_s4, 2  ;;  %p252_p2 = scmp.lt.s32.totalorder %s754_s23, 3 }
   0x5   : > { %s1018_s4 = smov (%p30_p1, %s28_s4), 0  ;;  %p253_p3 = pnand %p694_p0, %p252_p2 }
   0x6   : > { %p303_p4 = scmp.lt.s32.totalorder (!%p253_p3), %s746_s21, 1  ;;  %v814_v0 = vld [vmem:[%s1010_s2] ss:$0 sm:$0xff] (!%p253_p3) }
   0x7   : > { %256 = sbr.rel (%p253_p3) target bundleno = 56 (0x38), region = 44  ;;  %v832_v2 = vld [vmem:[%s1011_s3] ss:$0 sm:$0xff] (!%p253_p3) }
   0xe   : > { %s1020_s21 = smov (!%p303_p4, %s746_s21), 1 }
   0xf   : > { %s809_s5 = sshll.u32 %s1020_s21, 8 }
  0x10   : > { %s820_s28 = scalar_lea.vmem %s1008_s0, %s809_s5  ;;  %s826_s7 = scalar_lea.vmem %s1009_s1, %s809_s5 }
  0x11   : > { %v335_v1 = vld [vmem:[%s820_s28] sm:$0xff]  ;;  %v336_v3 = vld [vmem:[%s820_s28 + $0x8] sm:$0xff]  ;;  %v337_v7 = vld [vmem:[%s820_s28 + $0x10] sm:$0xff]  ;;  %s862_s12 = scalar_lea.vmem %s1014_s6, %s809_s5 }
  0x12   : > { %v374_v4 = vmul.f32 %v814_v0, %v335_v1  ;;  %v445_v5 = vld [vmem:[%s826_s7] sm:$0xff]  ;;  %v375_v6 = vmul.f32 %v814_v0, %v336_v3  ;;  %v446_v8 = vld [vmem:[%s826_s7 + $0x8] sm:$0xff]  ;;  %v376_v9 = vmul.f32 %v814_v0, %v337_v7  ;;  %v338_v10 = vld [vmem:[%s820_s28 + $0x18] sm:$0xff] }
  0x13   : > { %v339_v11 = vld [vmem:[%s820_s28 + $0x20] sm:$0xff]  ;;  %v447_v14 = vld [vmem:[%s826_s7 + $0x10] sm:$0xff]  ;;  %v377_v15 = vmul.f32 %v814_v0, %v338_v10  ;;  %v448_v16 = vld [vmem:[%s826_s7 + $0x18] sm:$0xff] }
  0x14   : > { %v413_v12 = vadd.f32 %v832_v2, %v374_v4  ;;  %v414_v13 = vadd.f32 %v832_v2, %v375_v6  ;;  %v378_v17 = vmul.f32 %v814_v0, %v339_v11  ;;  %v340_v18 = vld [vmem:[%s820_s28 + $0x28] sm:$0xff]  ;;  %v415_v19 = vadd.f32 %v832_v2, %v376_v9  ;;  %v449_v20 = vld [vmem:[%s826_s7 + $0x20] sm:$0xff]  ;;  %v341_v22 = vld [vmem:[%s820_s28 + $0x30] sm:$0xff] }
  0x15   : > { %v379_v21 = vmul.f32 %v814_v0, %v340_v18  ;;  %v342_v23 = vld [vmem:[%s820_s28 + $0x38] sm:$0xff]  ;;  %v416_v26 = vadd.f32 %v832_v2, %v377_v15  ;;  %v450_v28 = vld [vmem:[%s826_s7 + $0x28] sm:$0xff]  ;;  %v380_v31 = vmul.f32 %v814_v0, %v341_v22  ;;  %v343_v33 = vld [vmem:[%s820_s28 + $0x40] sm:$0xff] }
  0x16   : > { %v477_v24 = vadd.f32 %v445_v5, %v413_v12  ;;  %v478_v25 = vadd.f32 %v446_v8, %v414_v13  ;;  %v417_v27 = vadd.f32 %v832_v2, %v378_v17  ;;  %v479_v29 = vadd.f32 %v447_v14, %v415_v19  ;;  %v344_v34 = vld [vmem:[%s820_s28 + $0x48] sm:$0xff]  ;;  %v451_v39 = vld [vmem:[%s826_s7 + $0x30] sm:$0xff]  ;;  %v452_v40 = vld [vmem:[%s826_s7 + $0x38] sm:$0xff] }
  0x17   : > { %v418_v30 = vadd.f32 %v832_v2, %v379_v21  ;;  %v381_v32 = vmul.f32 %v814_v0, %v342_v23  ;;  %v480_v37 = vadd.f32 %v448_v16, %v416_v26  ;;  %v345_v41 = vld [vmem:[%s820_s28 + $0x50] sm:$0xff]  ;;  %v419_v44 = vadd.f32 %v832_v2, %v380_v31  ;;  %v346_v46 = vld [vmem:[%s820_s28 + $0x58] sm:$0xff]  ;;  %v347_v47 = vld [vmem:[%s820_s28 + $0x60] sm:$0xff] }
  0x18   : > { %v509_v35 = vmax.f32 %v477_v24, 0.0  ;;  %v510_v36 = vmax.f32 %v478_v25, 0.0  ;;  %v481_v38 = vadd.f32 %v449_v20, %v417_v27  ;;  %v511_v42 = vmax.f32 %v479_v29, 0.0  ;;  %v348_v52 = vld [vmem:[%s820_s28 + $0x68] sm:$0xff]  ;;  %v453_v56 = vld [vmem:[%s826_s7 + $0x40] sm:$0xff]  ;;  %v455_v61 = vld [vmem:[%s826_s7 + $0x50] sm:$0xff] }
  0x19   : > { %v482_v43 = vadd.f32 %v450_v28, %v418_v30  ;;  %v420_v45 = vadd.f32 %v832_v2, %v381_v32  ;;  %v512_v48 = vmax.f32 %v480_v37, 0.0  ;;  %v382_v50 = vmul.f32 %v814_v0, %v343_v33  ;;  %v454_v57 = vld [vmem:[%s826_s7 + $0x48] sm:$0xff]  ;;  %v349_v1 = vld [vmem:[%s820_s28 + $0x70] sm:$0xff]  ;;  %v350_v3 = vld [vmem:[%s820_s28 + $0x78] sm:$0xff] }
  0x1a   : > { %541 = vst [vmem:[%s862_s12] sm:$0xff] %v509_v35  ;;  %542 = vst [vmem:[%s862_s12 + $0x8] sm:$0xff] %v510_v36  ;;  %v513_v49 = vmax.f32 %v481_v38, 0.0  ;;  %v383_v51 = vmul.f32 %v814_v0, %v344_v34  ;;  %v483_v54 = vadd.f32 %v451_v39, %v419_v44  ;;  %v384_v58 = vmul.f32 %v814_v0, %v345_v41  ;;  %v456_v7 = vld [vmem:[%s826_s7 + $0x58] sm:$0xff]  ;;  %v457_v8 = vld [vmem:[%s826_s7 + $0x60] sm:$0xff] }
  0x1b   : > { %543 = vst [vmem:[%s862_s12 + $0x10] sm:$0xff] %v511_v42  ;;  %v514_v53 = vmax.f32 %v482_v43, 0.0  ;;  %v484_v55 = vadd.f32 %v452_v40, %v420_v45  ;;  %544 = vst [vmem:[%s862_s12 + $0x18] sm:$0xff] %v512_v48  ;;  %v421_v59 = vadd.f32 %v832_v2, %v382_v50  ;;  %v385_v62 = vmul.f32 %v814_v0, %v346_v46  ;;  %v458_v14 = vld [vmem:[%s826_s7 + $0x68] sm:$0xff]  ;;  %v351_v19 = vld [vmem:[%s820_s28 + $0x80] sm:$0xff] }
  0x1c   : > { %545 = vst [vmem:[%s862_s12 + $0x20] sm:$0xff] %v513_v49  ;;  %v422_v60 = vadd.f32 %v832_v2, %v383_v51  ;;  %v386_v63 = vmul.f32 %v814_v0, %v347_v47  ;;  %v515_v4 = vmax.f32 %v483_v54, 0.0  ;;  %v423_v6 = vadd.f32 %v832_v2, %v384_v58  ;;  %v352_v20 = vld [vmem:[%s820_s28 + $0x88] sm:$0xff]  ;;  %v459_v25 = vld [vmem:[%s826_s7 + $0x70] sm:$0xff]  ;;  %v460_v26 = vld [vmem:[%s826_s7 + $0x78] sm:$0xff] }
  0x1d   : > { %546 = vst [vmem:[%s862_s12 + $0x28] sm:$0xff] %v514_v53  ;;  %v516_v5 = vmax.f32 %v484_v55, 0.0  ;;  %v387_v9 = vmul.f32 %v814_v0, %v348_v52  ;;  %v485_v10 = vadd.f32 %v453_v56, %v421_v59  ;;  %v424_v12 = vadd.f32 %v832_v2, %v385_v62  ;;  %v353_v27 = vld [vmem:[%s820_s28 + $0x90] sm:$0xff]  ;;  %v354_v32 = vld [vmem:[%s820_s28 + $0x98] sm:$0xff]  ;;  %v355_v33 = vld [vmem:[%s820_s28 + $0xa0] sm:$0xff] }
  0x1e   : > { %v486_v11 = vadd.f32 %v454_v57, %v422_v60  ;;  %v425_v13 = vadd.f32 %v832_v2, %v386_v63  ;;  %547 = vst [vmem:[%s862_s12 + $0x30] sm:$0xff] %v515_v4  ;;  %v487_v15 = vadd.f32 %v455_v61, %v423_v6  ;;  %v388_v17 = vmul.f32 %v814_v0, %v349_v1  ;;  %v356_v38 = vld [vmem:[%s820_s28 + $0xa8] sm:$0xff]  ;;  %v461_v42 = vld [vmem:[%s826_s7 + $0x80] sm:$0xff]  ;;  %v463_v47 = vld [vmem:[%s826_s7 + $0x90] sm:$0xff] }
  0x1f   : > { %548 = vst [vmem:[%s862_s12 + $0x38] sm:$0xff] %v516_v5  ;;  %v426_v16 = vadd.f32 %v832_v2, %v387_v9  ;;  %v389_v18 = vmul.f32 %v814_v0, %v350_v3  ;;  %v517_v21 = vmax.f32 %v485_v10, 0.0  ;;  %v488_v23 = vadd.f32 %v456_v7, %v424_v12  ;;  %v462_v43 = vld [vmem:[%s826_s7 + $0x88] sm:$0xff]  ;;  %v357_v50 = vld [vmem:[%s820_s28 + $0xb0] sm:$0xff]  ;;  %v358_v51 = vld [vmem:[%s820_s28 + $0xb8] sm:$0xff] }
  0x20   : > { %v518_v22 = vmax.f32 %v486_v11, 0.0  ;;  %v489_v24 = vadd.f32 %v457_v8, %v425_v13  ;;  %v519_v28 = vmax.f32 %v487_v15, 0.0  ;;  %v427_v30 = vadd.f32 %v832_v2, %v388_v17  ;;  %v464_v55 = vld [vmem:[%s826_s7 + $0x98] sm:$0xff]  ;;  %v465_v56 = vld [vmem:[%s826_s7 + $0xa0] sm:$0xff]  ;;  %v466_v62 = vld [vmem:[%s826_s7 + $0xa8] sm:$0xff] }
  0x21   : > { %v490_v29 = vadd.f32 %v458_v14, %v426_v16  ;;  %v428_v31 = vadd.f32 %v832_v2, %v389_v18  ;;  %549 = vst [vmem:[%s862_s12 + $0x40] sm:$0xff] %v517_v21  ;;  %v520_v34 = vmax.f32 %v488_v23, 0.0  ;;  %v390_v36 = vmul.f32 %v814_v0, %v351_v19  ;;  %v359_v5 = vld [vmem:[%s820_s28 + $0xc0] sm:$0xff]  ;;  %v360_v6 = vld [vmem:[%s820_s28 + $0xc8] sm:$0xff]  ;;  %v467_v11 = vld [vmem:[%s826_s7 + $0xb0] sm:$0xff] }
  0x22   : > { %550 = vst [vmem:[%s862_s12 + $0x48] sm:$0xff] %v518_v22  ;;  %v521_v35 = vmax.f32 %v489_v24, 0.0  ;;  %v391_v37 = vmul.f32 %v814_v0, %v352_v20  ;;  %551 = vst [vmem:[%s862_s12 + $0x50] sm:$0xff] %v519_v28  ;;  %v491_v40 = vadd.f32 %v459_v25, %v427_v30  ;;  %v392_v44 = vmul.f32 %v814_v0, %v353_v27  ;;  %v468_v12 = vld [vmem:[%s826_s7 + $0xb8] sm:$0xff]  ;;  %v361_v13 = vld [vmem:[%s820_s28 + $0xd0] sm:$0xff] }
  0x23   : > { %v522_v39 = vmax.f32 %v490_v29, 0.0  ;;  %v492_v41 = vadd.f32 %v460_v26, %v428_v31  ;;  %552 = vst [vmem:[%s862_s12 + $0x58] sm:$0xff] %v520_v34  ;;  %v429_v45 = vadd.f32 %v832_v2, %v390_v36  ;;  %v393_v48 = vmul.f32 %v814_v0, %v354_v32  ;;  %v362_v18 = vld [vmem:[%s820_s28 + $0xd8] sm:$0xff]  ;;  %v363_v19 = vld [vmem:[%s820_s28 + $0xe0] sm:$0xff]  ;;  %v364_v24 = vld [vmem:[%s820_s28 + $0xe8] sm:$0xff] }
  0x24   : > { %553 = vst [vmem:[%s862_s12 + $0x60] sm:$0xff] %v521_v35  ;;  %v430_v46 = vadd.f32 %v832_v2, %v391_v37  ;;  %v394_v49 = vmul.f32 %v814_v0, %v355_v33  ;;  %v523_v52 = vmax.f32 %v491_v40, 0.0  ;;  %v431_v54 = vadd.f32 %v832_v2, %v392_v44  ;;  %v469_v28 = vld [vmem:[%s826_s7 + $0xc0] sm:$0xff]  ;;  %v470_v29 = vld [vmem:[%s826_s7 + $0xc8] sm:$0xff]  ;;  %v471_v33 = vld [vmem:[%s826_s7 + $0xd0] sm:$0xff] }
  0x25   : > { %554 = vst [vmem:[%s862_s12 + $0x68] sm:$0xff] %v522_v39  ;;  %v524_v53 = vmax.f32 %v492_v41, 0.0  ;;  %v395_v57 = vmul.f32 %v814_v0, %v356_v38  ;;  %v493_v58 = vadd.f32 %v461_v42, %v429_v45  ;;  %v432_v60 = vadd.f32 %v832_v2, %v393_v48  ;;  %v365_v36 = vld [vmem:[%s820_s28 + $0xf0] sm:$0xff]  ;;  %v366_v37 = vld [vmem:[%s820_s28 + $0xf8] sm:$0xff]  ;;  %v473_v42 = vld [vmem:[%s826_s7 + $0xe0] sm:$0xff] }
  0x26   : > { %v494_v59 = vadd.f32 %v462_v43, %v430_v46  ;;  %v433_v61 = vadd.f32 %v832_v2, %v394_v49  ;;  %555 = vst [vmem:[%s862_s12 + $0x70] sm:$0xff] %v523_v52  ;;  %v495_v63 = vadd.f32 %v463_v47, %v431_v54  ;;  %v396_v3 = vmul.f32 %v814_v0, %v357_v50  ;;  %v472_v41 = vld [vmem:[%s826_s7 + $0xd8] sm:$0xff]  ;;  %v474_v48 = vld [vmem:[%s826_s7 + $0xe8] sm:$0xff] }
  0x27   : > { %556 = vst [vmem:[%s862_s12 + $0x78] sm:$0xff] %v524_v53  ;;  %v434_v1 = vadd.f32 %v832_v2, %v395_v57  ;;  %v397_v4 = vmul.f32 %v814_v0, %v358_v51  ;;  %v525_v7 = vmax.f32 %v493_v58, 0.0  ;;  %v496_v9 = vadd.f32 %v464_v55, %v432_v60  ;;  %v475_v57 = vld [vmem:[%s826_s7 + $0xf0] sm:$0xff]  ;;  %v476_v58 = vld [vmem:[%s826_s7 + $0xf8] sm:$0xff] }
  0x28   : > { %v526_v8 = vmax.f32 %v494_v59, 0.0  ;;  %v497_v10 = vadd.f32 %v465_v56, %v433_v61  ;;  %v527_v14 = vmax.f32 %v495_v63, 0.0  ;;  %v435_v16 = vadd.f32 %v832_v2, %v396_v3 }
  0x29   : > { %v498_v15 = vadd.f32 %v466_v62, %v434_v1  ;;  %v436_v17 = vadd.f32 %v832_v2, %v397_v4  ;;  %557 = vst [vmem:[%s862_s12 + $0x80] sm:$0xff] %v525_v7  ;;  %v528_v20 = vmax.f32 %v496_v9, 0.0  ;;  %v398_v22 = vmul.f32 %v814_v0, %v359_v5 }
  0x2a   : > { %558 = vst [vmem:[%s862_s12 + $0x88] sm:$0xff] %v526_v8  ;;  %v529_v21 = vmax.f32 %v497_v10, 0.0  ;;  %v399_v23 = vmul.f32 %v814_v0, %v360_v6  ;;  %559 = vst [vmem:[%s862_s12 + $0x90] sm:$0xff] %v527_v14  ;;  %v499_v26 = vadd.f32 %v467_v11, %v435_v16  ;;  %v400_v30 = vmul.f32 %v814_v0, %v361_v13 }
  0x2b   : > { %v530_v25 = vmax.f32 %v498_v15, 0.0  ;;  %v500_v27 = vadd.f32 %v468_v12, %v436_v17  ;;  %560 = vst [vmem:[%s862_s12 + $0x98] sm:$0xff] %v528_v20  ;;  %v437_v31 = vadd.f32 %v832_v2, %v398_v22  ;;  %v401_v34 = vmul.f32 %v814_v0, %v362_v18 }
  0x2c   : > { %561 = vst [vmem:[%s862_s12 + $0xa0] sm:$0xff] %v529_v21  ;;  %v438_v32 = vadd.f32 %v832_v2, %v399_v23  ;;  %v402_v35 = vmul.f32 %v814_v0, %v363_v19  ;;  %v531_v38 = vmax.f32 %v499_v26, 0.0  ;;  %v439_v40 = vadd.f32 %v832_v2, %v400_v30 }
  0x2d   : > { %562 = vst [vmem:[%s862_s12 + $0xa8] sm:$0xff] %v530_v25  ;;  %v532_v39 = vmax.f32 %v500_v27, 0.0  ;;  %v403_v43 = vmul.f32 %v814_v0, %v364_v24  ;;  %v501_v44 = vadd.f32 %v469_v28, %v437_v31  ;;  %v440_v46 = vadd.f32 %v832_v2, %v401_v34 }
  0x2e   : > { %v502_v45 = vadd.f32 %v470_v29, %v438_v32  ;;  %v441_v47 = vadd.f32 %v832_v2, %v402_v35  ;;  %563 = vst [vmem:[%s862_s12 + $0xb0] sm:$0xff] %v531_v38  ;;  %v503_v49 = vadd.f32 %v471_v33, %v439_v40  ;;  %v404_v51 = vmul.f32 %v814_v0, %v365_v36 }
  0x2f   : > { %564 = vst [vmem:[%s862_s12 + $0xb8] sm:$0xff] %v532_v39  ;;  %v442_v50 = vadd.f32 %v832_v2, %v403_v43  ;;  %v405_v52 = vmul.f32 %v814_v0, %v366_v37  ;;  %v533_v53 = vmax.f32 %v501_v44, 0.0  ;;  %v504_v55 = vadd.f32 %v472_v41, %v440_v46 }
  0x30   : > { %v534_v54 = vmax.f32 %v502_v45, 0.0  ;;  %v505_v56 = vadd.f32 %v473_v42, %v441_v47  ;;  %v535_v59 = vmax.f32 %v503_v49, 0.0  ;;  %v443_v61 = vadd.f32 %v832_v2, %v404_v51 }
  0x31   : > { %v506_v60 = vadd.f32 %v474_v48, %v442_v50  ;;  %v444_v62 = vadd.f32 %v832_v2, %v405_v52  ;;  %565 = vst [vmem:[%s862_s12 + $0xc0] sm:$0xff] %v533_v53  ;;  %v536_v0 = vmax.f32 %v504_v55, 0.0 }
  0x32   : > { %566 = vst [vmem:[%s862_s12 + $0xc8] sm:$0xff] %v534_v54  ;;  %v537_v63 = vmax.f32 %v505_v56, 0.0  ;;  %567 = vst [vmem:[%s862_s12 + $0xd0] sm:$0xff] %v535_v59  ;;  %v507_v3 = vadd.f32 %v475_v57, %v443_v61 }
  0x33   : > { %v538_v1 = vmax.f32 %v506_v60, 0.0  ;;  %v508_v4 = vadd.f32 %v476_v58, %v444_v62  ;;  %568 = vst [vmem:[%s862_s12 + $0xd8] sm:$0xff] %v536_v0 }
  0x34   : > { %569 = vst [vmem:[%s862_s12 + $0xe0] sm:$0xff] %v537_v63  ;;  %v539_v5 = vmax.f32 %v507_v3, 0.0 }
  0x35   : > { %570 = vst [vmem:[%s862_s12 + $0xe8] sm:$0xff] %v538_v1  ;;  %v540_v6 = vmax.f32 %v508_v4, 0.0 }
  0x36   : > { %571 = vst [vmem:[%s862_s12 + $0xf0] sm:$0xff] %v539_v5 }
  0x37   : > { %572 = vst [vmem:[%s862_s12 + $0xf8] sm:$0xff] %v540_v6 }
  0x38 PF: > { %s16_s23 = sadd.s32 1, %s754_s23   ;;  %s1015_s21 = smov %s750_s22 }
  0x39   : > { %p13_p5 = scmp.ge.s32.totalorder %s16_s23, 4   ;;  %s1016_s22 = smov %s1018_s4 }
  0x3b   :  { %15 = sbr.rel (!%p13_p5) target bundleno = 2 (0x2), region = 77 }

// kernel: resblock_forward.15
= control target key start
LH: loop header
LB: loop body
LE: loop exit
PB: predicated region body
PF: predicated region fallthrough
CT: control target
= control target key end

     0   :  { %s5147_s18 = smov 0   ;;  %s6405_s0 = inlined_call_operand.vmem [shape: f32[2,16,16,128], index: 0, kind: input, shape index: {}]   ;;  %s6406_s1 = inlined_call_operand.vmem [shape: f32[1,128], index: 1, kind: input, shape index: {}]   ;;  %s6407_s2 = inlined_call_operand.vmem [shape: f32[1,128], index: 2, kind: input, shape index: {}]   ;;  %s6408_s3 = inlined_call_operand.vmem [shape: f32[1152,128], index: 3, kind: input, shape index: {}]   ;;  %s6409_s4 = inlined_call_operand.vmem [shape: f32[2,16,16,128], index: 4, kind: output, shape index: {0}]   ;;  %s6410_s5 = inlined_call_operand.vmem [shape: f32[2,1,8,128], index: 5, kind: output, shape index: {1}]  }
   0x1 LB: > { %s3367_s19 = sadd.s32 4294967295, %s5114_s18   ;;  %p3371_p0 = scmp.ge.s32.totalorder %s5114_s18, 1  ;;  %s5114_s18 = sphi %s5147_s18, %s16_s18  }
   0x2   : > { %p190_p1 = scmp.lt.s32.totalorder %s5114_s18, 3 }
   0x4   : > { %p191_p2 = pnand %p3371_p0, %p190_p1 }
   0x6   : > { %194 = sbr.rel (%p191_p2) target bundleno = 570 (0x23a), region = 36 }
   0xd   : > { %v534_v0 = vld [vmem:[%s6408_s3 + $0x80] sm:$0xff]  ;;  %v535_v1 = vld [vmem:[%s6408_s3 + $0x88] sm:$0xff]  ;;  %p5166_p3 = scmp.lt.s32.totalorder %s3367_s19, 1  ;;  %v536_v5 = vld [vmem:[%s6408_s3 + $0x90] sm:$0xff]  ;;  %v5116_v7 = vmov 0.0  }
   0xe   : > { %v1642_v2 = vld [vmem:[%s6408_s3 + $0x200] sm:$0xff]  ;;  %v4535_v3 = vpack.c.bf16 %v535_v1, %v534_v0  ;;  %v1643_v4 = vld [vmem:[%s6408_s3 + $0x208] sm:$0xff]  ;;  %v537_v6 = vld [vmem:[%s6408_s3 + $0x98] sm:$0xff]  ;;  %411 = vst [vmem:[#allocation2] sm:$0xff] %v5116_v7 }
   0xf   : > { %412 = vst [vmem:[#allocation2 + $0x8] sm:$0xff] %v5116_v7  ;;  %413 = vst [vmem:[#allocation2 + $0x10] sm:$0x3] %v5116_v7  ;;  %v5217_v8 = vpack.c.bf16 %v1643_v4, %v1642_v2  ;;  %v4539_v9 = vpack.c.bf16 %v537_v6, %v536_v5  ;;  %v1644_v10 = vld [vmem:[%s6408_s3 + $0x210] sm:$0xff]  ;;  %v1645_v11 = vld [vmem:[%s6408_s3 + $0x218] sm:$0xff]  ;;  %s6470_s19 = smov (!%p5166_p3, %s3367_s19), 1 }
  0x10   : > { %415 = vst [vmem:[#allocation2 + $0x198] sm:$0xff] %v5116_v7  ;;  %416 = vst [vmem:[#allocation2 + $0x1a0] sm:$0xff] %v5116_v7  ;;  %v538_v12 = vld [vmem:[%s6408_s3 + $0xa0] sm:$0xff]  ;;  %4536 = vmatprep.subr.bf16.mxu1 %v4535_v3  ;;  %v5238_v13 = vpack.c.bf16 %v1645_v11, %v1644_v10  ;;  %v539_v14 = vld [vmem:[%s6408_s3 + $0xa8] sm:$0xff]  ;;  %s3381_s22 = sshll.u32 %s6470_s19, 8 }
  0x11   : > { %417 = vst [vmem:[#allocation2 + $0x1a8] sm:$0x3] %v5116_v7  ;;  %419 = vst [vmem:[#allocation2 + $0x18] sm:$0x1] %v5116_v7  ;;  %v1646_v15 = vld [vmem:[%s6408_s3 + $0x220] sm:$0xff]  ;;  %v1647_v16 = vld [vmem:[%s6408_s3 + $0x228] sm:$0xff]  ;;  %4664 = vmatprep.subr.bf16.mxu0 %v5217_v8  ;;  %4538 = vmatpush3.bf16.msra.mxu1 %v4535_v3  ;;  %v4543_v17 = vpack.c.bf16 %v539_v14, %v538_v12  ;;  %s5272_s8 = scalar_lea.vmem %s6405_s0, %s3381_s22  ;;  %s6359_s11 = scalar_lea.vmem %s6409_s4, %s3381_s22 }
  0x12   : > { %420 = vst [vmem:[#allocation2 + $0x30] sm:$0x1] %v5116_v7  ;;  %421 = vst [vmem:[#allocation2 + $0x48] sm:$0x1] %v5116_v7  ;;  %4666 = vmatpush3.bf16.msra.mxu0 %v5217_v8  ;;  %4540 = vmatprep.subr.bf16.mxu1 %v4539_v9  ;;  %v5253_v18 = vpack.c.bf16 %v1647_v16, %v1646_v15  ;;  %v540_v19 = vld [vmem:[%s6408_s3 + $0xb0] sm:$0xff]  ;;  %v541_v20 = vld [vmem:[%s6408_s3 + $0xb8] sm:$0xff] }
  0x13   : > { %422 = vst [vmem:[#allocation2 + $0x60] sm:$0x1] %v5116_v7  ;;  %423 = vst [vmem:[#allocation2 + $0x78] sm:$0x1] %v5116_v7  ;;  %4668 = vmatprep.subr.bf16.mxu0 %v5238_v13  ;;  %v1648_v21 = vld [vmem:[%s6408_s3 + $0x230] sm:$0xff]  ;;  %v1649_v22 = vld [vmem:[%s6408_s3 + $0x238] sm:$0xff]  ;;  %v4547_v23 = vpack.c.bf16 %v541_v20, %v540_v19 }
  0x14   : > { %424 = vst [vmem:[#allocation2 + $0x90] sm:$0x1] %v5116_v7  ;;  %425 = vst [vmem:[#allocation2 + $0xa8] sm:$0x1] %v5116_v7  ;;  %v542_v24 = vld [vmem:[%s6408_s3 + $0xc0] sm:$0xff]  ;;  %v543_v25 = vld [vmem:[%s6408_s3 + $0xc8] sm:$0xff]  ;;  %v5282_v26 = vpack.c.bf16 %v1649_v22, %v1648_v21 }
  0x15   : > { %426 = vst [vmem:[#allocation2 + $0xc0] sm:$0x1] %v5116_v7  ;;  %427 = vst [vmem:[#allocation2 + $0xd8] sm:$0x1] %v5116_v7  ;;  %4542 = vmatpush3.bf16.msra.mxu1 %v4539_v9  ;;  %v1650_v27 = vld [vmem:[%s6408_s3 + $0x240] sm:$0xff]  ;;  %v1651_v28 = vld [vmem:[%s6408_s3 + $0x248] sm:$0xff]  ;;  %v4551_v34 = vpack.c.bf16 %v543_v25, %v542_v24 }
  0x16   : > { %428 = vst [vmem:[#allocation2 + $0xf0] sm:$0x1] %v5116_v7  ;;  %429 = vst [vmem:[#allocation2 + $0x108] sm:$0x1] %v5116_v7  ;;  %4670 = vmatpush3.bf16.msra.mxu0 %v5238_v13  ;;  %4544 = vmatprep.subr.bf16.mxu1 %v4543_v17  ;;  %v502_v29 = vld [vmem:[#allocation2 + $0x1] sm:$0xff]  ;;  %v544_v35 = vld [vmem:[%s6408_s3 + $0xd0] sm:$0xff]  ;;  %v5308_v37 = vpack.c.bf16 %v1651_v28, %v1650_v27 }
  0x17   : > { %430 = vst [vmem:[#allocation2 + $0x120] sm:$0x1] %v5116_v7  ;;  %431 = vst [vmem:[#allocation2 + $0x138] sm:$0x1] %v5116_v7  ;;  %4672 = vmatprep.subr.bf16.mxu0 %v5253_v18  ;;  %3847 = vmatprep.mubr.f32.mxu1 %v502_v29  ;;  %v236_v30 = vld [vmem:[%s5272_s8] sm:$0xff]  ;;  %v237_v36 = vld [vmem:[%s5272_s8 + $0x8] sm:$0xff] }
  0x18   : > { %432 = vst [vmem:[#allocation2 + $0x150] sm:$0x1] %v5116_v7  ;;  %433 = vst [vmem:[#allocation2 + $0x168] sm:$0x1] %v5116_v7  ;;  %v5294_v31 = vld [vmem:[%s6406_s1] ss:$0 sm:$0xff] }
  0x19   : > { %434 = vst [vmem:[#allocation2 + $0x180] sm:$0x1] %v5116_v7  ;;  %437 = vst [vmem:[#allocation2 + $0x29] sm:$0x1] %v5116_v7  ;;  %v5299_v32 = vld [vmem:[%s6407_s2] ss:$0 sm:$0xff]  ;;  %4546 = vmatpush3.bf16.msra.mxu1 %v4543_v17  ;;  %v275_v33 = vmul.f32 %v5294_v31, %v236_v30  ;;  %v276_v40 = vmul.f32 %v5294_v31, %v237_v36 }
  0x1a   : > { %438 = vst [vmem:[#allocation2 + $0x41] sm:$0x1] %v5116_v7  ;;  %439 = vst [vmem:[#allocation2 + $0x59] sm:$0x1] %v5116_v7  ;;  %4674 = vmatpush3.bf16.msra.mxu0 %v5253_v18  ;;  %4548 = vmatprep.subr.bf16.mxu1 %v4547_v23  ;;  %v545_v38 = vld [vmem:[%s6408_s3 + $0xd8] sm:$0xff]  ;;  %v238_v41 = vld [vmem:[%s5272_s8 + $0x10] sm:$0xff] }
  0x1b   : > { %440 = vst [vmem:[#allocation2 + $0x71] sm:$0x1] %v5116_v7  ;;  %441 = vst [vmem:[#allocation2 + $0x89] sm:$0x1] %v5116_v7  ;;  %4676 = vmatprep.subr.bf16.mxu0 %v5282_v26  ;;  %v314_v39 = vadd.f32 %v5299_v32, %v275_v33  ;;  %v239_v42 = vld [vmem:[%s5272_s8 + $0x18] sm:$0xff]  ;;  %v1652_v43 = vld [vmem:[%s6408_s3 + $0x250] sm:$0xff]  ;;  %v277_v45 = vmul.f32 %v5294_v31, %v238_v41  ;;  %v315_v49 = vadd.f32 %v5299_v32, %v276_v40 }
  0x1c   : > { %442 = vst [vmem:[#allocation2 + $0xa1] sm:$0x1] %v5116_v7  ;;  %443 = vst [vmem:[#allocation2 + $0xb9] sm:$0x1] %v5116_v7  ;;  %v1653_v44 = vld [vmem:[%s6408_s3 + $0x258] sm:$0xff]  ;;  %v278_v46 = vmul.f32 %v5294_v31, %v239_v42  ;;  %v240_v47 = vld [vmem:[%s5272_s8 + $0x20] sm:$0xff]  ;;  %v4555_v52 = vpack.c.bf16 %v545_v38, %v544_v35 }
  0x1d   : > { %444 = vst [vmem:[#allocation2 + $0xd1] sm:$0x1] %v5116_v7  ;;  %445 = vst [vmem:[#allocation2 + $0xe9] sm:$0x1] %v5116_v7  ;;  %4550 = vmatpush3.bf16.msra.mxu1 %v4547_v23  ;;  %v5326_v48 = vmax.f32 %v314_v39, 0.0  ;;  %v279_v50 = vmul.f32 %v5294_v31, %v240_v47  ;;  %v241_v51 = vld [vmem:[%s5272_s8 + $0x28] sm:$0xff]  ;;  %v316_v53 = vadd.f32 %v5299_v32, %v277_v45 }
  0x1e   : > { %446 = vst [vmem:[#allocation2 + $0x101] sm:$0x1] %v5116_v7  ;;  %447 = vst [vmem:[#allocation2 + $0x119] sm:$0x1] %v5116_v7  ;;  %4678 = vmatpush3.bf16.msra.mxu0 %v5282_v26  ;;  %4552 = vmatprep.subr.bf16.mxu1 %v4551_v34  ;;  %v317_v54 = vadd.f32 %v5299_v32, %v278_v46  ;;  %v242_v55 = vld [vmem:[%s5272_s8 + $0x30] sm:$0xff]  ;;  %v243_v56 = vld [vmem:[%s5272_s8 + $0x38] sm:$0xff]  ;;  %v5337_v57 = vpack.c.bf16 %v1653_v44, %v1652_v43 }
  0x1f   : > { %448 = vst [vmem:[#allocation2 + $0x131] sm:$0x1] %v5116_v7  ;;  %449 = vst [vmem:[#allocation2 + $0x149] sm:$0x1] %v5116_v7  ;;  %4680 = vmatprep.subr.bf16.mxu0 %v5308_v37  ;;  %v546_v58 = vld [vmem:[%s6408_s3 + $0xe0] sm:$0xff]  ;;  %v547_v59 = vld [vmem:[%s6408_s3 + $0xe8] sm:$0xff]  ;;  %4167 = vmatprep.mubr.f32.mxu0 %v5326_v48  ;;  %v318_v61 = vadd.f32 %v5299_v32, %v279_v50  ;;  %v280_v62 = vmul.f32 %v5294_v31, %v241_v51 }
  0x20   : > { %450 = vst [vmem:[#allocation2 + $0x161] sm:$0x1] %v5116_v7  ;;  %451 = vst [vmem:[#allocation2 + $0x179] sm:$0x1] %v5116_v7  ;;  %v5347_v60 = vmax.f32 %v315_v49, 0.0  ;;  %v244_v63 = vld [vmem:[%s5272_s8 + $0x40] sm:$0xff]  ;;  %v281_v4 = vmul.f32 %v5294_v31, %v242_v55  ;;  %v282_v5 = vmul.f32 %v5294_v31, %v243_v56  ;;  %v4559_v14 = vpack.c.bf16 %v547_v59, %v546_v58 }
  0x21   : > { %452 = vst [vmem:[#allocation2 + $0x191] sm:$0x1] %v5116_v7  ;;  %418 = vst [vmem:[#allocation2] sm:$0x1] %v5116_v7  ;;  %v1654_v0 = vld [vmem:[%s6408_s3 + $0x260] sm:$0xff]  ;;  %v1655_v1 = vld [vmem:[%s6408_s3 + $0x268] sm:$0xff]  ;;  %4554 = vmatpush3.bf16.msra.mxu1 %v4551_v34  ;;  %v319_v10 = vadd.f32 %v5299_v32, %v280_v62  ;;  %v283_v11 = vmul.f32 %v5294_v31, %v244_v63 }
  0x22   : > { %435 = vst [vmem:[#allocation2 + $0x198] sm:$0x1] %v5116_v7  ;;  %436 = vst [vmem:[#allocation2 + $0x11] sm:$0x1] %v5116_v7  ;;  %v5358_v2 = vmax.f32 %v316_v53, 0.0  ;;  %v5360_v3 = vmax.f32 %v317_v54, 0.0  ;;  %4682 = vmatpush3.bf16.msra.mxu0 %v5308_v37  ;;  %4556 = vmatprep.subr.bf16.mxu1 %v4555_v52  ;;  %v320_v15 = vadd.f32 %v5299_v32, %v281_v4 }
  0x23   : > { %453 = vst [vmem:[#allocation2 + $0x1a9] sm:$0x1] %v5116_v7  ;;  %6435 = vst [vmem:[#allocation3_spill] sm:$0xff] %v5282_v26  ;;  %v245_v6 = vld [vmem:[%s5272_s8 + $0x48] sm:$0xff]  ;;  %v5366_v9 = vmax.f32 %v318_v61, 0.0  ;;  %v246_v12 = vld [vmem:[%s5272_s8 + $0x50] sm:$0xff]  ;;  %v321_v16 = vadd.f32 %v5299_v32, %v282_v5  ;;  %4684 = vmatprep.subr.bf16.mxu0 %v5337_v57  ;;  %v5378_v19 = vpack.c.bf16 %v1655_v1, %v1654_v0 }
  0x24   : > { %6436 = vst [vmem:[#allocation4_spill] sm:$0xff] %v5308_v37  ;;  %6437 = vst [vmem:[#allocation5_spill] sm:$0xff] %v5337_v57  ;;  %v247_v17 = vld [vmem:[%s5272_s8 + $0x58] sm:$0xff]  ;;  %v548_v20 = vld [vmem:[%s6408_s3 + $0xf0] sm:$0xff]  ;;  %v5387_v22 = vmax.f32 %v319_v10, 0.0  ;;  %v322_v23 = vadd.f32 %v5299_v32, %v283_v11  ;;  %v284_v24 = vmul.f32 %v5294_v31, %v245_v6  ;;  %v5398_v29 = vmax.f32 %v320_v15, 0.0 }
  0x25   : > { %379 = vst [vmem:[#allocation2 + $0x19] sm:$0xff] %v5326_v48  ;;  %380 = vst [vmem:[#allocation2 + $0x21] sm:$0xff] %v5347_v60  ;;  %v549_v21 = vld [vmem:[%s6408_s3 + $0xf8] sm:$0xff]  ;;  %v248_v25 = vld [vmem:[%s5272_s8 + $0x60] sm:$0xff]  ;;  %v5400_v30 = vmax.f32 %v321_v16, 0.0  ;;  %v285_v33 = vmul.f32 %v5294_v31, %v246_v12  ;;  %v286_v34 = vmul.f32 %v5294_v31, %v247_v17  ;;  %4558 = vmatpush3.bf16.msra.mxu1 %v4555_v52  ;;  %s3376_s22 = sshll.u32 %s6470_s19, 3 }
  0x26   : > { %381 = vst [vmem:[#allocation2 + $0x31] sm:$0xff] %v5358_v2  ;;  %382 = vst [vmem:[#allocation2 + $0x39] sm:$0xff] %v5360_v3  ;;  %v1656_v27 = vld [vmem:[%s6408_s3 + $0x270] sm:$0xff]  ;;  %v1657_v28 = vld [vmem:[%s6408_s3 + $0x278] sm:$0xff]  ;;  %v5406_v36 = vmax.f32 %v322_v23, 0.0  ;;  %v323_v38 = vadd.f32 %v5299_v32, %v284_v24  ;;  %v287_v39 = vmul.f32 %v5294_v31, %v248_v25  ;;  %4686 = vmatpush3.bf16.msra.mxu0 %v5337_v57  ;;  %4560 = vmatprep.subr.bf16.mxu1 %v4559_v14  ;;  %s235_s14 = scalar_lea.vmem %s6410_s5, %s3376_s22 }
  0x27   : > { %6438 = vst [vmem:[#allocation6_spill] sm:$0xff] %v5378_v19  ;;  %383 = vst [vmem:[#allocation2 + $0x49] sm:$0xff] %v5366_v9  ;;  %v249_v35 = vld [vmem:[%s5272_s8 + $0x68] sm:$0xff]  ;;  %v250_v40 = vld [vmem:[%s5272_s8 + $0x70] sm:$0xff]  ;;  %v4563_v42 = vpack.c.bf16 %v549_v21, %v548_v20  ;;  %v324_v45 = vadd.f32 %v5299_v32, %v285_v33  ;;  %v325_v46 = vadd.f32 %v5299_v32, %v286_v34  ;;  %4688 = vmatprep.subr.bf16.mxu0 %v5378_v19 }
  0x28   : > { %384 = vst [vmem:[#allocation2 + $0x51] sm:$0xff] %v5387_v22  ;;  %v251_v41 = vld [vmem:[%s5272_s8 + $0x78] sm:$0xff]  ;;  %v486_v43 = vld [vmem:[%s6408_s3] sm:$0xff]  ;;  %v487_v44 = vld [vmem:[%s6408_s3 + $0x8] sm:$0xff]  ;;  %v5424_v47 = vpack.c.bf16 %v1657_v28, %v1656_v27  ;;  %v5433_v51 = vmax.f32 %v323_v38, 0.0  ;;  %v326_v52 = vadd.f32 %v5299_v32, %v287_v39  ;;  %v288_v53 = vmul.f32 %v5294_v31, %v249_v35 }
  0x29   : > { %385 = vst [vmem:[#allocation2 + $0x61] sm:$0xff] %v5398_v29  ;;  %386 = vst [vmem:[#allocation2 + $0x69] sm:$0xff] %v5400_v30  ;;  %v1947_v49 = vld [vmem:[%s6408_s3 + $0x280] sm:$0xff]  ;;  %v1948_v50 = vld [vmem:[%s6408_s3 + $0x288] sm:$0xff]  ;;  %v5437_v54 = vmax.f32 %v324_v45, 0.0  ;;  %v5439_v55 = vmax.f32 %v325_v46, 0.0  ;;  %v289_v56 = vmul.f32 %v5294_v31, %v250_v40  ;;  %v290_v58 = vmul.f32 %v5294_v31, %v251_v41  ;;  %4562 = vmatpush3.bf16.msra.mxu1 %v4559_v14 }
  0x2a   : > { %6439 = vst [vmem:[#allocation7_spill] sm:$0xff] %v5424_v47  ;;  %387 = vst [vmem:[#allocation2 + $0x79] sm:$0xff] %v5406_v36  ;;  %v252_v59 = vld [vmem:[%s5272_s8 + $0x80] sm:$0xff]  ;;  %v253_v61 = vld [vmem:[%s5272_s8 + $0x88] sm:$0xff]  ;;  %v4567_v62 = vpack.c.bf16 %v487_v44, %v486_v43  ;;  %v5452_v1 = vmax.f32 %v326_v52, 0.0  ;;  %v327_v4 = vadd.f32 %v5299_v32, %v288_v53  ;;  %4690 = vmatpush3.bf16.msra.mxu0 %v5378_v19  ;;  %4564 = vmatprep.subr.bf16.mxu1 %v4563_v42 }
  0x2b   : > { %v1949_v63 = vld [vmem:[%s6408_s3 + $0x290] sm:$0xff]  ;;  %v1950_v0 = vld [vmem:[%s6408_s3 + $0x298] sm:$0xff]  ;;  %388 = vst [vmem:[#allocation2 + $0x81] sm:$0xff] %v5433_v51  ;;  %v4695_v6 = vpack.c.bf16 %v1948_v50, %v1947_v49  ;;  %389 = vst [vmem:[#allocation2 + $0x91] sm:$0xff] %v5437_v54  ;;  %v328_v12 = vadd.f32 %v5299_v32, %v289_v56  ;;  %v329_v14 = vadd.f32 %v5299_v32, %v290_v58  ;;  %4692 = vmatprep.subr.bf16.mxu0 %v5424_v47 }
  0x2c   : > { %v254_v5 = vld [vmem:[%s5272_s8 + $0x90] sm:$0xff]  ;;  %v489_v11 = vld [vmem:[%s6408_s3 + $0x18] sm:$0xff]  ;;  %390 = vst [vmem:[#allocation2 + $0x99] sm:$0xff] %v5439_v55  ;;  %391 = vst [vmem:[#allocation2 + $0xa9] sm:$0xff] %v5452_v1  ;;  %v5470_v16 = vmax.f32 %v327_v4, 0.0  ;;  %v291_v17 = vmul.f32 %v5294_v31, %v252_v59  ;;  %v292_v20 = vmul.f32 %v5294_v31, %v253_v61  ;;  %v5476_v24 = vpack.c.bf16 %v1950_v0, %v1949_v63 }
  0x2d   : > { %v488_v10 = vld [vmem:[%s6408_s3 + $0x10] sm:$0xff]  ;;  %v255_v15 = vld [vmem:[%s5272_s8 + $0x98] sm:$0xff]  ;;  %v293_v21 = vmul.f32 %v5294_v31, %v254_v5  ;;  %v256_v23 = vld [vmem:[%s5272_s8 + $0xa0] sm:$0xff]  ;;  %v5478_v25 = vmax.f32 %v328_v12, 0.0  ;;  %v5480_v27 = vmax.f32 %v329_v14, 0.0  ;;  %4566 = vmatpush3.bf16.msra.mxu1 %v4563_v42 }
  0x2e   : > { %v294_v28 = vmul.f32 %v5294_v31, %v255_v15  ;;  %v257_v33 = vld [vmem:[%s5272_s8 + $0xa8] sm:$0xff]  ;;  %v5484_v35 = vpack.c.bf16 %v489_v11, %v488_v10  ;;  %392 = vst [vmem:[#allocation2 + $0xb1] sm:$0xff] %v5470_v16  ;;  %v5488_v38 = vadd.f32 %v5299_v32, %v291_v17  ;;  %v5491_v39 = vadd.f32 %v5299_v32, %v292_v20  ;;  %v258_v41 = vld [vmem:[%s5272_s8 + $0xb0] sm:$0xff]  ;;  %v1951_v42 = vld [vmem:[%s6408_s3 + $0x2a0] sm:$0xff] }
  0x2f   : > { %v503_v34 = vld [vmem:[#allocation2 + $0x9] sm:$0xff]  ;;  %v5494_v40 = vadd.f32 %v5299_v32, %v293_v21  ;;  %4694 = vmatpush3.bf16.msra.mxu0 %v5424_v47  ;;  %4568 = vmatprep.subr.bf16.mxu1 %v4567_v62  ;;  %393 = vst [vmem:[#allocation2 + $0xc1] sm:$0xff] %v5478_v25  ;;  %394 = vst [vmem:[#allocation2 + $0xc9] sm:$0xff] %v5480_v27  ;;  %v295_v45 = vmul.f32 %v5294_v31, %v256_v23  ;;  %v259_v49 = vld [vmem:[%s5272_s8 + $0xb8] sm:$0xff] }
  0x30   : > { %v1952_v43 = vld [vmem:[%s6408_s3 + $0x2a8] sm:$0xff]  ;;  %v5507_v44 = vadd.f32 %v5299_v32, %v294_v28  ;;  %v296_v46 = vmul.f32 %v5294_v31, %v257_v33  ;;  %4696 = vmatprep.subr.bf16.mxu0 %v4695_v6  ;;  %v362_v50 = vmax.f32 %v5488_v38, 0.0  ;;  %v363_v52 = vmax.f32 %v5491_v39, 0.0  ;;  %v260_v58 = vld [vmem:[%s5272_s8 + $0xc0] sm:$0xff]  ;;  %3848 = vmatmul.mubr.f32.vlgmr.msra.gmra.mrb[0].mxu1 %v503_v34  ;;  %v262_v12 = vld [vmem:[%s5272_s8 + $0xd0] sm:$0xff] }
  0x31   : > { %v364_v53 = vmax.f32 %v5494_v40, 0.0  ;;  %v297_v56 = vmul.f32 %v5294_v31, %v258_v41  ;;  %v5519_v61 = vadd.f32 %v5299_v32, %v295_v45  ;;  %v298_v0 = vmul.f32 %v5294_v31, %v259_v49  ;;  %v261_v4 = vld [vmem:[%s5272_s8 + $0xc8] sm:$0xff]  ;;  %4570 = vmatpush3.bf16.msra.mxu1 %v4567_v62  ;;  %v490_v10 = vld [vmem:[%s6408_s3 + $0x20] sm:$0xff]  ;;  %3850 = vmatprep.mubr.f32.mxu1 %v5326_v48  ;;  %v263_v21 = vld [vmem:[%s5272_s8 + $0xd8] sm:$0xff] }
  0x32   : > { %v365_v59 = vmax.f32 %v5507_v44, 0.0  ;;  %v5522_v63 = vadd.f32 %v5299_v32, %v296_v46  ;;  %4168 = vmatmul.mubr.f32.vlgmr.msra.gmra.mrb[0].mxu0 %v5347_v60  ;;  %v5527_v5 = vpack.c.bf16 %v1952_v43, %v1951_v42  ;;  %v491_v11 = vld [vmem:[%s6408_s3 + $0x28] sm:$0xff]  ;;  %395 = vst [vmem:[#allocation2 + $0xd9] sm:$0xff] %v362_v50  ;;  %396 = vst [vmem:[#allocation2 + $0xe1] sm:$0xff] %v363_v52  ;;  %v264_v33 = vld [vmem:[%s5272_s8 + $0xe0] sm:$0xff]  ;;  %4572 = vmatprep.subr.bf16.mxu1 %v5484_v35 }
  0x33   : > { %397 = vst [vmem:[#allocation2 + $0xf1] sm:$0xff] %v364_v53  ;;  %v5542_v62 = vadd.f32 %v5299_v32, %v297_v56  ;;  %4698 = vmatpush3.bf16.msra.mxu0 %v4695_v6  ;;  %v366_v14 = vmax.f32 %v5519_v61, 0.0  ;;  %v5551_v17 = vadd.f32 %v5299_v32, %v298_v0  ;;  %v299_v20 = vmul.f32 %v5294_v31, %v260_v58  ;;  %v1953_v34 = vld [vmem:[%s6408_s3 + $0x2b0] sm:$0xff]  ;;  %v1954_v41 = vld [vmem:[%s6408_s3 + $0x2b8] sm:$0xff]  ;;  %v265_v45 = vld [vmem:[%s5272_s8 + $0xe8] sm:$0xff] }
  0x34   : > { %398 = vst [vmem:[#allocation2 + $0xf9] sm:$0xff] %v365_v59  ;;  %v367_v15 = vmax.f32 %v5522_v63, 0.0  ;;  %4170 = vmatprep.mubr.f32.mxu0 %v5358_v2  ;;  %4700 = vmatprep.subr.bf16.mxu0 %v5476_v24  ;;  %v300_v6 = vmul.f32 %v5294_v31, %v261_v4  ;;  %v301_v23 = vmul.f32 %v5294_v31, %v262_v12  ;;  %v492_v46 = vld [vmem:[%s6408_s3 + $0x30] sm:$0xff]  ;;  %v493_v49 = vld [vmem:[%s6408_s3 + $0x38] sm:$0xff]  ;;  %v5775_v39 = vld [vmem:[#allocation2 + $0x62] sm:$0xff] }
  0x35   : > { %v368_v48 = vmax.f32 %v5542_v62, 0.0  ;;  %v302_v28 = vmul.f32 %v5294_v31, %v263_v21  ;;  %3851 = vmatmul.mubr.f32.gmra.mrb[2].mxu1 %v5347_v60  ;;  %v4575_v42 = vpack.c.bf16 %v491_v11, %v490_v10  ;;  %399 = vst [vmem:[#allocation2 + $0x109] sm:$0xff] %v366_v14  ;;  %v369_v43 = vmax.f32 %v5551_v17, 0.0  ;;  %v1955_v21 = vld [vmem:[%s6408_s3 + $0x2c0] sm:$0xff]  ;;  %v2260_v38 = vld [vmem:[%s6408_s3 + $0x338] sm:$0xff]  ;;  %v2262_v40 = vld [vmem:[%s6408_s3 + $0x348] sm:$0xff] }
  0x36   : > { %400 = vst [vmem:[#allocation2 + $0x111] sm:$0xff] %v367_v15  ;;  %v5576_v60 = vadd.f32 %v5299_v32, %v299_v20  ;;  %4171 = vmatmul.mubr.f32.gmra.mrb[2].mxu0 %v5360_v3  ;;  %3853 = vmatprep.mubr.f32.mxu1 %v5358_v2  ;;  %v5590_v56 = vadd.f32 %v5299_v32, %v300_v6  ;;  %v1956_v6 = vld [vmem:[%s6408_s3 + $0x2c8] sm:$0xff]  ;;  %v5791_v44 = vld [vmem:[#allocation2 + $0x7a] sm:$0xff]  ;;  %v5807_v63 = vld [vmem:[#allocation2 + $0x92] sm:$0xff] }
  0x37   : > { %401 = vst [vmem:[#allocation2 + $0x121] sm:$0xff] %v368_v48  ;;  %v5593_v58 = vadd.f32 %v5299_v32, %v301_v23  ;;  %v5596_v0 = vadd.f32 %v5299_v32, %v302_v28  ;;  %4702 = vmatpush3.bf16.msra.mxu0 %v5476_v24  ;;  %4173 = vmatprep.mubr.f32.mxu0 %v5366_v9  ;;  %402 = vst [vmem:[#allocation2 + $0x129] sm:$0xff] %v369_v43  ;;  %v2264_v61 = vld [vmem:[%s6408_s3 + $0x358] sm:$0xff]  ;;  %v2266_v62 = vld [vmem:[%s6408_s3 + $0x368] sm:$0xff] }
  0x38   : > { %v370_v2 = vmax.f32 %v5576_v60, 0.0  ;;  %v303_v4 = vmul.f32 %v5294_v31, %v264_v33  ;;  %v304_v10 = vmul.f32 %v5294_v31, %v265_v45  ;;  %4704 = vmatprep.subr.bf16.mxu0 %v5527_v5  ;;  %4574 = vmatpush3.bf16.msra.mxu1 %v5484_v35  ;;  %v4707_v11 = vpack.c.bf16 %v1954_v41, %v1953_v34  ;;  %v495_v33 = vld [vmem:[%s6408_s3 + $0x48] sm:$0xff]  ;;  %v1957_v45 = vld [vmem:[%s6408_s3 + $0x2d0] sm:$0xff]  ;;  %v2268_v60 = vld [vmem:[%s6408_s3 + $0x378] sm:$0xff] }
  0x39   : > { %v371_v12 = vmax.f32 %v5590_v56, 0.0  ;;  %v372_v24 = vmax.f32 %v5593_v58, 0.0  ;;  %v373_v20 = vmax.f32 %v5596_v0, 0.0  ;;  %3854 = vmatmul.mubr.f32.gmra.mrb[4].mxu1 %v5360_v3  ;;  %4576 = vmatprep.subr.bf16.mxu1 %v4575_v42  ;;  %v4579_v23 = vpack.c.bf16 %v493_v49, %v492_v46  ;;  %v494_v3 = vld [vmem:[%s6408_s3 + $0x40] sm:$0xff]  ;;  %v1958_v46 = vld [vmem:[%s6408_s3 + $0x2d8] sm:$0xff]  ;;  %v5823_v17 = vld [vmem:[#allocation2 + $0xaa] sm:$0xff] }
  0x3a   : > { %403 = vst [vmem:[#allocation2 + $0x139] sm:$0xff] %v370_v2  ;;  %v5620_v35 = vadd.f32 %v5299_v32, %v303_v4  ;;  %v5623_v28 = vadd.f32 %v5299_v32, %v304_v10  ;;  %4174 = vmatmul.mubr.f32.gmra.mrb[4].mxu0 %v5387_v22  ;;  %3856 = vmatprep.mubr.f32.mxu1 %v5366_v9  ;;  %v1960_v4 = vld [vmem:[%s6408_s3 + $0x2e8] sm:$0xff]  ;;  %v5855_v0 = vld [vmem:[#allocation2 + $0xda] sm:$0xff] }
  0x3b   : > { %404 = vst [vmem:[#allocation2 + $0x141] sm:$0xff] %v371_v12  ;;  %405 = vst [vmem:[#allocation2 + $0x151] sm:$0xff] %v372_v24  ;;  %4706 = vmatpush3.bf16.msra.mxu0 %v5527_v5  ;;  %4176 = vmatprep.mubr.f32.mxu0 %v5398_v29  ;;  %v4711_v41 = vpack.c.bf16 %v1956_v6, %v1955_v21  ;;  %v4583_v5 = vpack.c.bf16 %v495_v33, %v494_v3  ;;  %v1961_v6 = vld [vmem:[%s6408_s3 + $0x2f0] sm:$0xff]  ;;  %v267_v33 = vld [vmem:[%s5272_s8 + $0xf8] sm:$0xff] }
  0x3c   : > { %406 = vst [vmem:[#allocation2 + $0x159] sm:$0xff] %v373_v20  ;;  %v374_v9 = vmax.f32 %v5620_v35, 0.0  ;;  %v375_v34 = vmax.f32 %v5623_v28, 0.0  ;;  %4708 = vmatprep.subr.bf16.mxu0 %v4707_v11  ;;  %4578 = vmatpush3.bf16.msra.mxu1 %v4575_v42  ;;  %v497_v42 = vld [vmem:[%s6408_s3 + $0x58] sm:$0xff]  ;;  %v4715_v49 = vpack.c.bf16 %v1958_v46, %v1957_v45  ;;  %v266_v3 = vld [vmem:[%s5272_s8 + $0xf0] sm:$0xff]  ;;  %v306_v46 = vmul.f32 %v5294_v31, %v267_v33  ;;  %v5839_v56 = vld [vmem:[#allocation2 + $0xc2] sm:$0xff] }
  0x3d   : > { %3857 = vmatmul.mubr.f32.gmra.mrb[6].mxu1 %v5387_v22  ;;  %4580 = vmatprep.subr.bf16.mxu1 %v4579_v23  ;;  %v496_v22 = vld [vmem:[%s6408_s3 + $0x50] sm:$0xff]  ;;  %v305_v45 = vmul.f32 %v5294_v31, %v266_v3  ;;  %v2254_v31 = vld [vmem:[%s6408_s3 + $0x308] sm:$0xff]  ;;  %v5757_v3 = vld [vmem:[#allocation2 + $0x3a] sm:$0xff] }
  0x3e   : > { %407 = vst [vmem:[#allocation2 + $0x169] sm:$0xff] %v374_v9  ;;  %408 = vst [vmem:[#allocation2 + $0x171] sm:$0xff] %v375_v34  ;;  %4177 = vmatmul.mubr.f32.gmra.mrb[6].mxu0 %v5400_v30  ;;  %3859 = vmatprep.mubr.f32.mxu1 %v5398_v29  ;;  %v1959_v29 = vld [vmem:[%s6408_s3 + $0x2e0] sm:$0xff]  ;;  %v4587_v10 = vpack.c.bf16 %v497_v42, %v496_v22  ;;  %v5703_v22 = vadd.f32 %v5299_v32, %v306_v46  ;;  %v2559_v58 = vld [vmem:[%s6408_s3 + $0x388] sm:$0xff] }
  0x3f   : > { %4710 = vmatpush3.bf16.msra.mxu0 %v4707_v11  ;;  %4179 = vmatprep.mubr.f32.mxu0 %v5406_v36  ;;  %v499_v11 = vld [vmem:[%s6408_s3 + $0x68] sm:$0xff]  ;;  %v4719_v21 = vpack.c.bf16 %v1960_v4, %v1959_v29  ;;  %v2253_v42 = vld [vmem:[%s6408_s3 + $0x300] sm:$0xff]  ;;  %v1035_v35 = vld [vmem:[%s6408_s3 + $0x118] sm:$0xff] }
  0x40   : > { %4712 = vmatprep.subr.bf16.mxu0 %v4711_v41  ;;  %4582 = vmatpush3.bf16.msra.mxu1 %v4579_v23  ;;  %6441 = vst [vmem:[#allocation9_spill] sm:$0xff] %v5703_v22  ;;  %v6411_v4 = vmax.f32 %v5703_v22, 0.0  ;;  %v2265_v46 = vld [vmem:[%s6408_s3 + $0x360] sm:$0xff]  ;;  %v5873_v28 = vld [vmem:[#allocation2 + $0xf2] sm:$0xff]  ;;  %v2567_v57 = vld [vmem:[%s6408_s3 + $0x3c8] sm:$0xff] }
  0x41   : > { %3860 = vmatmul.mubr.f32.gmra.mrb[8].mxu1 %v5400_v30  ;;  %4584 = vmatprep.subr.bf16.mxu1 %v4583_v5  ;;  %v498_v30 = vld [vmem:[%s6408_s3 + $0x60] sm:$0xff]  ;;  %v2561_v47 = vld [vmem:[%s6408_s3 + $0x398] sm:$0xff]  ;;  %v6050_v37 = vld [vmem:[#allocation2 + $0x110] sm:$0xff] }
  0x42   : > { %4180 = vmatmul.mubr.f32.gmra.mrb[8].mxu0 %v5433_v51  ;;  %3862 = vmatprep.mubr.f32.mxu1 %v5406_v36  ;;  %v1962_v36 = vld [vmem:[%s6408_s3 + $0x2f8] sm:$0xff]  ;;  %v4591_v23 = vpack.c.bf16 %v499_v11, %v498_v30  ;;  %v4727_v30 = vpack.c.bf16 %v2254_v31, %v2253_v42  ;;  %410 = vst [vmem:[#allocation2 + $0x189] sm:$0xff] %v6411_v4  ;;  %v2558_v42 = vld [vmem:[%s6408_s3 + $0x380] sm:$0xff]  ;;  %v5992_v4 = vld [vmem:[#allocation2 + $0xb0] sm:$0xff] }
  0x43   : > { %4714 = vmatpush3.bf16.msra.mxu0 %v4711_v41  ;;  %4182 = vmatprep.mubr.f32.mxu0 %v5437_v54  ;;  %v500_v41 = vld [vmem:[%s6408_s3 + $0x70] sm:$0xff]  ;;  %v2256_v11 = vld [vmem:[%s6408_s3 + $0x318] sm:$0xff]  ;;  %v454_v31 = vld [vmem:[#allocation2] sm:$0xff]  ;;  %6448 = vst [vmem:[#allocation16_spill] sm:$0xff] %v5992_v4 }
  0x44   : > { %4716 = vmatprep.subr.bf16.mxu0 %v4715_v49  ;;  %4586 = vmatpush3.bf16.msra.mxu1 %v4583_v5  ;;  %v4723_v5 = vpack.c.bf16 %v1962_v36, %v1961_v6  ;;  %v5741_v6 = vld [vmem:[#allocation2 + $0x22] sm:$0xff]  ;;  %v2565_v19 = vld [vmem:[%s6408_s3 + $0x3b8] sm:$0xff]  ;;  %v1001_v26 = vld [vmem:[#allocation2 + $0xa] sm:$0xff] }
  0x45   : > { %3863 = vmatmul.mubr.f32.gmra.mrb[10].mxu1 %v5433_v51  ;;  %4588 = vmatprep.subr.bf16.mxu1 %v4587_v10  ;;  %v501_v51 = vld [vmem:[%s6408_s3 + $0x78] sm:$0xff]  ;;  %v6021_v22 = vld [vmem:[#allocation2 + $0xe0] sm:$0xff] }
  0x46   : > { %4183 = vmatmul.mubr.f32.gmra.mrb[10].mxu0 %v5439_v55  ;;  %3865 = vmatprep.mubr.f32.mxu1 %v5437_v54  ;;  %v5700_v54 = vadd.f32 %v5299_v32, %v305_v45  ;;  %v1032_v32 = vld [vmem:[%s6408_s3 + $0x100] sm:$0xff]  ;;  %v2263_v45 = vld [vmem:[%s6408_s3 + $0x350] sm:$0xff] }
  0x47   : > { %4718 = vmatpush3.bf16.msra.mxu0 %v4715_v49  ;;  %4185 = vmatprep.mubr.f32.mxu0 %v5452_v1  ;;  %v4595_v49 = vpack.c.bf16 %v501_v51, %v500_v41  ;;  %v2259_v41 = vld [vmem:[%s6408_s3 + $0x330] sm:$0xff]  ;;  %v2261_v51 = vld [vmem:[%s6408_s3 + $0x340] sm:$0xff] }
  0x48   : > { %4720 = vmatprep.subr.bf16.mxu0 %v4719_v21  ;;  %4590 = vmatpush3.bf16.msra.mxu1 %v4587_v10  ;;  %6440 = vst [vmem:[#allocation8_spill] sm:$0xff] %v5700_v54  ;;  %v6412_v29 = vmax.f32 %v5700_v54, 0.0  ;;  %v5723_v10 = vld [vmem:[#allocation2 + $0x1a] sm:$0xff] }
  0x49   : > { %3866 = vmatmul.mubr.f32.gmra.mrb[12].mxu1 %v5439_v55  ;;  %4592 = vmatprep.subr.bf16.mxu1 %v4591_v23  ;;  %v1033_v55 = vld [vmem:[%s6408_s3 + $0x108] sm:$0xff]  ;;  %v2566_v54 = vld [vmem:[%s6408_s3 + $0x3c0] sm:$0xff] }
  0x4a   : > { %4186 = vmatmul.mubr.f32.gmra.mrb[12].mxu0 %v5470_v16  ;;  %3868 = vmatprep.mubr.f32.mxu1 %v5452_v1  ;;  %409 = vst [vmem:[#allocation2 + $0x181] sm:$0xff] %v6412_v29  ;;  %v2255_v1 = vld [vmem:[%s6408_s3 + $0x310] sm:$0xff]  ;;  %v5994_v29 = vld [vmem:[#allocation2 + $0xc0] sm:$0xff] }
  0x4b   : > { %4722 = vmatpush3.bf16.msra.mxu0 %v4719_v21  ;;  %4188 = vmatprep.mubr.f32.mxu0 %v5478_v25  ;;  %v5736_v21 = vpack.c.bf16 %v1033_v55, %v1032_v32  ;;  %v4731_v36 = vpack.c.bf16 %v2256_v11, %v2255_v1  ;;  %v5871_v32 = vld [vmem:[#allocation2 + $0x18] sm:$0xff]  ;;  %v1036_v55 = vld [vmem:[%s6408_s3 + $0x120] sm:$0xff]  ;;  %6449 = vst [vmem:[#allocation17_spill] sm:$0xff] %v5994_v29 }
  0x4c   : > { %4724 = vmatprep.subr.bf16.mxu0 %v4723_v5  ;;  %4594 = vmatpush3.bf16.msra.mxu1 %v4591_v23  ;;  %v2257_v23 = vld [vmem:[%s6408_s3 + $0x320] sm:$0xff] }
  0x4d   : > { %3869 = vmatmul.mubr.f32.gmra.mrb[14].mxu1 %v5470_v16  ;;  %4596 = vmatprep.subr.bf16.mxu1 %v4595_v49  ;;  %v5743_v16 = vld [vmem:[#allocation2 + $0x32] sm:$0xff]  ;;  %v5885_v1 = vld [vmem:[#allocation2 + $0x20] sm:$0xff] }
  0x4e   : > { %4189 = vmatmul.mubr.f32.gmra.mrb[14].mxu0 %v5480_v27  ;;  %3871 = vmatprep.mubr.f32.mxu1 %v5478_v25  ;;  %v2258_v25 = vld [vmem:[%s6408_s3 + $0x328] sm:$0xff]  ;;  %v5889_v11 = vld [vmem:[#allocation2 + $0xfa] sm:$0xff] }
  0x4f   : > { %4726 = vmatpush3.bf16.msra.mxu0 %v4723_v5  ;;  %4247 = vmatprep.mubr.f32.mxu0 %v5723_v10  ;;  %v4735_v33 = vpack.c.bf16 %v2258_v25, %v2257_v23  ;;  %v2267_v5 = vld [vmem:[%s6408_s3 + $0x370] sm:$0xff]  ;;  %v1039_v25 = vld [vmem:[%s6408_s3 + $0x138] sm:$0xff] }
  0x50   : > { %4728 = vmatprep.subr.bf16.mxu0 %v4727_v30  ;;  %4598 = vmatpush3.bf16.msra.mxu1 %v4595_v49  ;;  %v1034_v49 = vld [vmem:[%s6408_s3 + $0x110] sm:$0xff] }
  0x51   : > { %3872 = vmatmul.mubr.f32.gmra.mrb[16].mxu1 %v5480_v27  ;;  %4600 = vmatprep.subr.bf16.mxu1 %v5736_v21  ;;  %v5759_v27 = vld [vmem:[#allocation2 + $0x4a] sm:$0xff] }
  0x52   : > { %4248 = vmatmul.mubr.f32.vlgmr.msra.gmra.mrb[0].mxu0 %v5741_v6  ;;  %3874 = vmatprep.mubr.f32.mxu1 %v362_v50  ;;  %v5773_v50 = vld [vmem:[#allocation2 + $0x52] sm:$0xff] }
  0x53   : > { %4730 = vmatpush3.bf16.msra.mxu0 %v4727_v30  ;;  %4250 = vmatprep.mubr.f32.mxu0 %v5743_v16  ;;  %v1037_v30 = vld [vmem:[%s6408_s3 + $0x128] sm:$0xff] }
  0x54   : > { %4732 = vmatprep.subr.bf16.mxu0 %v4731_v36  ;;  %v4607_v23 = vpack.c.bf16 %v1037_v30, %v1036_v55  ;;  %v5961_v55 = vld [vmem:[#allocation2 + $0x15a] sm:$0xff]  ;;  %v5963_v30 = vld [vmem:[#allocation2 + $0x90] sm:$0xff] }
  0x55   : > { %3875 = vmatmul.mubr.f32.gmra.mrb[18].mxu1 %v363_v52  ;;  %v4739_v52 = vpack.c.bf16 %v2260_v38, %v2259_v41  ;;  %v5907_v41 = vld [vmem:[#allocation2 + $0x112] sm:$0xff]  ;;  %v5909_v38 = vld [vmem:[#allocation2 + $0x48] sm:$0xff]  ;;  %6445 = vst [vmem:[#allocation13_spill] sm:$0xff] %v5963_v30 }
  0x56   : > { %4251 = vmatmul.mubr.f32.gmra.mrb[2].mxu0 %v5757_v3  ;;  %3877 = vmatprep.mubr.f32.mxu1 %v364_v53  ;;  %v5789_v53 = vld [vmem:[#allocation2 + $0x6a] sm:$0xff] }
  0x57   : > { %4253 = vmatprep.mubr.f32.mxu0 %v5759_v27  ;;  %4734 = vmatpush3.bf16.msra.mxu0 %v4731_v36  ;;  %v5893_v36 = vld [vmem:[#allocation2 + $0x10a] sm:$0xff] }
  0x58   : > { %4736 = vmatprep.subr.bf16.mxu0 %v4735_v33 }
  0x59   : > { %3878 = vmatmul.mubr.f32.gmra.mrb[20].mxu1 %v365_v59  ;;  %v4743_v59 = vpack.c.bf16 %v2262_v40, %v2261_v51  ;;  %v1040_v40 = vld [vmem:[%s6408_s3 + $0x140] sm:$0xff] }
  0x5a   : > { %4254 = vmatmul.mubr.f32.gmra.mrb[4].mxu0 %v5773_v50  ;;  %3880 = vmatprep.mubr.f32.mxu1 %v366_v14  ;;  %v5805_v14 = vld [vmem:[#allocation2 + $0x82] sm:$0xff] }
  0x5b   : > { %4256 = vmatprep.mubr.f32.mxu0 %v5775_v39  ;;  %4738 = vmatpush3.bf16.msra.mxu0 %v4735_v33  ;;  %v5904_v33 = vld [vmem:[#allocation2 + $0x38] sm:$0xff] }
  0x5c   : > { %4740 = vmatprep.subr.bf16.mxu0 %v4739_v52 }
  0x5d   : > { %3881 = vmatmul.mubr.f32.gmra.mrb[22].mxu1 %v367_v15  ;;  %v4747_v15 = vpack.c.bf16 %v2264_v61, %v2263_v45  ;;  %v5922_v45 = vld [vmem:[#allocation2 + $0x50] sm:$0xff] }
  0x5e   : > { %4257 = vmatmul.mubr.f32.gmra.mrb[6].mxu0 %v5789_v53  ;;  %3883 = vmatprep.mubr.f32.mxu1 %v368_v48  ;;  %v5821_v48 = vld [vmem:[#allocation2 + $0x9a] sm:$0xff]  ;;  %v5925_v61 = vld [vmem:[#allocation2 + $0x12a] sm:$0xff] }
  0x5f   : > { %4259 = vmatprep.mubr.f32.mxu0 %v5791_v44  ;;  %4742 = vmatpush3.bf16.msra.mxu0 %v4739_v52  ;;  %v5911_v52 = vld [vmem:[#allocation2 + $0x122] sm:$0xff] }
  0x60   : > { %4744 = vmatprep.subr.bf16.mxu0 %v4743_v59 }
  0x61   : > { %3884 = vmatmul.mubr.f32.gmra.mrb[24].mxu1 %v369_v43  ;;  %v4751_v43 = vpack.c.bf16 %v2266_v62, %v2265_v46  ;;  %v5929_v46 = vld [vmem:[#allocation2 + $0x13a] sm:$0xff] }
  0x62   : > { %4260 = vmatmul.mubr.f32.gmra.mrb[8].mxu0 %v5805_v14  ;;  %3886 = vmatprep.mubr.f32.mxu1 %v370_v2  ;;  %v5837_v2 = vld [vmem:[#allocation2 + $0xb2] sm:$0xff] }
  0x63   : > { %4262 = vmatprep.mubr.f32.mxu0 %v5807_v63  ;;  %4746 = vmatpush3.bf16.msra.mxu0 %v4743_v59  ;;  %v1041_v59 = vld [vmem:[%s6408_s3 + $0x148] sm:$0xff] }
  0x64   : > { %4748 = vmatprep.subr.bf16.mxu0 %v4747_v15  ;;  %v4615_v62 = vpack.c.bf16 %v1041_v59, %v1040_v40  ;;  %v5976_v40 = vld [vmem:[#allocation2 + $0x98] sm:$0xff] }
  0x65   : > { %3887 = vmatmul.mubr.f32.gmra.mrb[26].mxu1 %v371_v12  ;;  %v4755_v12 = vpack.c.bf16 %v2268_v60, %v2267_v5  ;;  %v1043_v5 = vld [vmem:[%s6408_s3 + $0x158] sm:$0xff]  ;;  %v5940_v60 = vld [vmem:[#allocation2 + $0x68] sm:$0xff]  ;;  %6446 = vst [vmem:[#allocation14_spill] sm:$0xff] %v5976_v40 }
  0x66   : > { %4263 = vmatmul.mubr.f32.gmra.mrb[10].mxu0 %v5821_v48  ;;  %3889 = vmatprep.mubr.f32.mxu1 %v372_v24  ;;  %v5853_v24 = vld [vmem:[#allocation2 + $0xca] sm:$0xff]  ;;  %6442 = vst [vmem:[#allocation10_spill] sm:$0xff] %v5940_v60  ;;  %v5979_v59 = vld [vmem:[#allocation2 + $0x172] sm:$0xff] }
  0x67   : > { %4265 = vmatprep.mubr.f32.mxu0 %v5823_v17  ;;  %4750 = vmatpush3.bf16.msra.mxu0 %v4747_v15  ;;  %v5927_v15 = vld [vmem:[#allocation2 + $0x60] sm:$0xff] }
  0x68   : > { %4752 = vmatprep.subr.bf16.mxu0 %v4751_v43 }
  0x69   : > { %3890 = vmatmul.mubr.f32.gmra.mrb[28].mxu1 %v373_v20  ;;  %v5857_v20 = vpack.c.bf16 %v2559_v58, %v2558_v42  ;;  %v5945_v42 = vld [vmem:[#allocation2 + $0x78] sm:$0xff] }
  0x6a   : > { %4266 = vmatmul.mubr.f32.gmra.mrb[12].mxu0 %v5837_v2  ;;  %3892 = vmatprep.mubr.f32.mxu1 %v374_v9  ;;  %v5869_v9 = vld [vmem:[#allocation2 + $0xe2] sm:$0xff]  ;;  %6443 = vst [vmem:[#allocation11_spill] sm:$0xff] %v5945_v42  ;;  %v5947_v58 = vld [vmem:[#allocation2 + $0x152] sm:$0xff] }
  0x6b   : > { %4268 = vmatprep.mubr.f32.mxu0 %v5839_v56  ;;  %4754 = vmatpush3.bf16.msra.mxu0 %v4751_v43  ;;  %v1042_v43 = vld [vmem:[%s6408_s3 + $0x150] sm:$0xff] }
  0x6c   : > { %4756 = vmatprep.subr.bf16.mxu0 %v4755_v12 }
  0x6d   : > { %3893 = vmatmul.mubr.f32.gmra.mrb[30].mxu1 %v375_v34  ;;  %v4603_v34 = vpack.c.bf16 %v1035_v35, %v1034_v49  ;;  %v1044_v49 = vld [vmem:[%s6408_s3 + $0x160] sm:$0xff]  ;;  %v1045_v35 = vld [vmem:[%s6408_s3 + $0x168] sm:$0xff] }
  0x6e   : > { %4269 = vmatmul.mubr.f32.gmra.mrb[14].mxu0 %v5853_v24  ;;  %3927 = vmatprep.mubr.f32.mxu1 %v454_v31  ;;  %v4619_v31 = vpack.c.bf16 %v1043_v5, %v1042_v43  ;;  %v1945_v43 = vld [vmem:[#allocation2 + $0x182] sm:$0xff] }
  0x6f   : > { %4271 = vmatprep.mubr.f32.mxu0 %v5855_v0  ;;  %4758 = vmatpush3.bf16.msra.mxu0 %v4755_v12  ;;  %v5943_v12 = vld [vmem:[#allocation2 + $0x142] sm:$0xff] }
  0x70   : > { %4760 = vmatprep.subr.bf16.mxu0 %v5857_v20 }
  0x71   : > { %3928 = vmatmul.mubr.f32.vlgmr.msra.gmra.mrb[0].mxu1 %v5116_v7  ;;  %v5891_v7 = vld [vmem:[#allocation2 + $0x30] sm:$0xff] }
  0x72   : > { %4272 = vmatmul.mubr.f32.gmra.mrb[16].mxu0 %v5869_v9  ;;  %4602 = vmatpush3.bf16.msra.mxu1 %v5736_v21  ;;  %v1038_v21 = vld [vmem:[%s6408_s3 + $0x130] sm:$0xff] }
  0x73   : > { %3930 = vmatprep.mubr.f32.mxu1 %v5871_v32  ;;  %4274 = vmatprep.mubr.f32.mxu0 %v5873_v28  ;;  %v4611_v51 = vpack.c.bf16 %v1039_v25, %v1038_v21  ;;  %v4623_v21 = vpack.c.bf16 %v1045_v35, %v1044_v49  ;;  %v1046_v25 = vld [vmem:[%s6408_s3 + $0x170] sm:$0xff]  ;;  %v1337_v49 = vld [vmem:[%s6408_s3 + $0x180] sm:$0xff]  ;;  %v1338_v35 = vld [vmem:[%s6408_s3 + $0x188] sm:$0xff] }
  0x74   : > { %4604 = vmatprep.subr.bf16.mxu1 %v4603_v34 }
  0x75   : > { %3931 = vmatmul.mubr.f32.gmra.mrb[2].mxu1 %v5885_v1 }
  0x76   : > { %4275 = vmatmul.mubr.f32.gmra.mrb[18].mxu0 %v5889_v11  ;;  %3933 = vmatprep.mubr.f32.mxu1 %v5891_v7 }
  0x77   : > { %4277 = vmatprep.mubr.f32.mxu0 %v5893_v36  ;;  %4606 = vmatpush3.bf16.msra.mxu1 %v4603_v34  ;;  %v5958_v34 = vld [vmem:[#allocation2 + $0x80] sm:$0xff] }
  0x78   : > { %4608 = vmatprep.subr.bf16.mxu1 %v4607_v23  ;;  %6444 = vst [vmem:[#allocation12_spill] sm:$0xff] %v5958_v34 }
  0x79   : > { %3934 = vmatmul.mubr.f32.gmra.mrb[4].mxu1 %v5904_v33 }
  0x7a   : > { %4278 = vmatmul.mubr.f32.gmra.mrb[20].mxu0 %v5907_v41  ;;  %3936 = vmatprep.mubr.f32.mxu1 %v5909_v38 }
  0x7b   : > { %4280 = vmatprep.mubr.f32.mxu0 %v5911_v52  ;;  %4610 = vmatpush3.bf16.msra.mxu1 %v4607_v23  ;;  %v5965_v23 = vld [vmem:[#allocation2 + $0x16a] sm:$0xff] }
  0x7c   : > { %4612 = vmatprep.subr.bf16.mxu1 %v4611_v51 }
  0x7d   : > { %3937 = vmatmul.mubr.f32.gmra.mrb[6].mxu1 %v5922_v45 }
  0x7e   : > { %4281 = vmatmul.mubr.f32.gmra.mrb[22].mxu0 %v5925_v61  ;;  %3939 = vmatprep.mubr.f32.mxu1 %v5927_v15 }
  0x7f   : > { %4283 = vmatprep.mubr.f32.mxu0 %v5929_v46  ;;  %4614 = vmatpush3.bf16.msra.mxu1 %v4611_v51  ;;  %v1047_v51 = vld [vmem:[%s6408_s3 + $0x178] sm:$0xff] }
  0x80   : > { %4616 = vmatprep.subr.bf16.mxu1 %v4615_v62  ;;  %v4627_v5 = vpack.c.bf16 %v1047_v51, %v1046_v25  ;;  %v5996_v25 = vpack.c.bf16 %v1338_v35, %v1337_v49  ;;  %v2560_v51 = vld [vmem:[%s6408_s3 + $0x390] sm:$0xff]  ;;  %v2562_v35 = vld [vmem:[%s6408_s3 + $0x3a0] sm:$0xff] }
  0x81   : > { %3940 = vmatmul.mubr.f32.gmra.mrb[8].mxu1 %v5940_v60  ;;  %v4763_v49 = vpack.c.bf16 %v2561_v47, %v2560_v51  ;;  %v6025_v47 = vld [vmem:[#allocation2 + $0xf0] sm:$0xff] }
  0x82   : > { %4284 = vmatmul.mubr.f32.gmra.mrb[24].mxu0 %v5943_v12  ;;  %3942 = vmatprep.mubr.f32.mxu1 %v5945_v42  ;;  %v2564_v51 = vld [vmem:[%s6408_s3 + $0x3b0] sm:$0xff] }
  0x83   : > { %4286 = vmatprep.mubr.f32.mxu0 %v5947_v58  ;;  %4618 = vmatpush3.bf16.msra.mxu1 %v4615_v62  ;;  %v5981_v62 = vld [vmem:[#allocation2 + $0xa8] sm:$0xff] }
  0x84   : > { %4620 = vmatprep.subr.bf16.mxu1 %v4619_v31  ;;  %6447 = vst [vmem:[#allocation15_spill] sm:$0xff] %v5981_v62 }
  0x85   : > { %3943 = vmatmul.mubr.f32.gmra.mrb[10].mxu1 %v5958_v34 }
  0x86   : > { %4287 = vmatmul.mubr.f32.gmra.mrb[26].mxu0 %v5961_v55  ;;  %3945 = vmatprep.mubr.f32.mxu1 %v5963_v30 }
  0x87   : > { %4289 = vmatprep.mubr.f32.mxu0 %v5965_v23  ;;  %4622 = vmatpush3.bf16.msra.mxu1 %v4619_v31  ;;  %v1946_v31 = vld [vmem:[#allocation2 + $0x18a] sm:$0xff] }
  0x88   : > { %4624 = vmatprep.subr.bf16.mxu1 %v4623_v21 }
  0x89   : > { %3946 = vmatmul.mubr.f32.gmra.mrb[12].mxu1 %v5976_v40 }
  0x8a   : > { %4290 = vmatmul.mubr.f32.gmra.mrb[28].mxu0 %v5979_v59  ;;  %3948 = vmatprep.mubr.f32.mxu1 %v5981_v62 }
  0x8b   : > { %4292 = vmatprep.mubr.f32.mxu0 %v1945_v43  ;;  %4626 = vmatpush3.bf16.msra.mxu1 %v4623_v21  ;;  %v6006_v43 = vld [vmem:[#allocation2 + $0xc8] sm:$0xff]  ;;  %v6009_v21 = vld [vmem:[#allocation2 + $0xd8] sm:$0xff] }
  0x8c   : > { %4628 = vmatprep.subr.bf16.mxu1 %v4627_v5  ;;  %6450 = vst [vmem:[#allocation18_spill] sm:$0xff] %v6006_v43 }
  0x8d   : > { %3949 = vmatmul.mubr.f32.gmra.mrb[14].mxu1 %v5992_v4 }
  0x8e   : > { %4293 = vmatmul.mubr.f32.gmra.mrb[30].mxu0 %v1946_v31  ;;  %3951 = vmatprep.mubr.f32.mxu1 %v5994_v29  ;;  %v2563_v31 = vld [vmem:[%s6408_s3 + $0x3a8] sm:$0xff] }
  0x8f   : > { %4327 = vmatprep.mubr.f32.mxu0 %v5891_v7  ;;  %4630 = vmatpush3.bf16.msra.mxu1 %v4627_v5  ;;  %v4767_v5 = vpack.c.bf16 %v2563_v31, %v2562_v35  ;;  %v6039_v35 = vld [vmem:[#allocation2 + $0x108] sm:$0xff]  ;;  %v4771_v31 = vpack.c.bf16 %v2565_v19, %v2564_v51  ;;  %v4775_v19 = vpack.c.bf16 %v2567_v57, %v2566_v54  ;;  %v2568_v51 = vld [vmem:[%s6408_s3 + $0x3d0] sm:$0xff]  ;;  %v2570_v54 = vld [vmem:[%s6408_s3 + $0x3e0] sm:$0xff] }
  0x90   : > { %4632 = vmatprep.subr.bf16.mxu1 %v5996_v25 }
  0x91   : > { %3952 = vmatmul.mubr.f32.gmra.mrb[16].mxu1 %v6006_v43 }
  0x92   : > { %4328 = vmatmul.mubr.f32.vlgmr.msra.gmra.mrb[0].mxu0 %v5904_v33  ;;  %3954 = vmatprep.mubr.f32.mxu1 %v6009_v21 }
  0x93   : > { %4762 = vmatpush3.bf16.msra.mxu0 %v5857_v20  ;;  %4330 = vmatprep.mubr.f32.mxu0 %v5909_v38  ;;  %v6036_v20 = vld [vmem:[#allocation2 + $0xf8] sm:$0xff] }
  0x94   : > { %4764 = vmatprep.subr.bf16.mxu0 %v4763_v49 }
  0x95   : > { %3955 = vmatmul.mubr.f32.gmra.mrb[18].mxu1 %v6021_v22 }
  0x96   : > { %4331 = vmatmul.mubr.f32.gmra.mrb[2].mxu0 %v5922_v45  ;;  %3957 = vmatprep.mubr.f32.mxu1 %v6025_v47 }
  0x97   : > { %4333 = vmatprep.mubr.f32.mxu0 %v5927_v15  ;;  %4766 = vmatpush3.bf16.msra.mxu0 %v4763_v49  ;;  %v6053_v49 = vld [vmem:[#allocation2 + $0x120] sm:$0xff] }
  0x98   : > { %4768 = vmatprep.subr.bf16.mxu0 %v4767_v5 }
  0x99   : > { %3958 = vmatmul.mubr.f32.gmra.mrb[20].mxu1 %v6036_v20 }
  0x9a   : > { %4334 = vmatmul.mubr.f32.gmra.mrb[4].mxu0 %v5940_v60  ;;  %3960 = vmatprep.mubr.f32.mxu1 %v6039_v35  ;;  %v2569_v60 = vld [vmem:[%s6408_s3 + $0x3d8] sm:$0xff] }
  0x9b   : > { %4336 = vmatprep.mubr.f32.mxu0 %v5945_v42  ;;  %4770 = vmatpush3.bf16.msra.mxu0 %v4767_v5  ;;  %v6064_v42 = vld [vmem:[#allocation2 + $0x128] sm:$0xff]  ;;  %v6067_v5 = vld [vmem:[#allocation2 + $0x138] sm:$0xff]  ;;  %v4779_v57 = vpack.c.bf16 %v2569_v60, %v2568_v51  ;;  %v2572_v51 = vld [vmem:[%s6408_s3 + $0x3f0] sm:$0xff] }
  0x9c   : > { %4772 = vmatprep.subr.bf16.mxu0 %v4771_v31 }
  0x9d   : > { %3961 = vmatmul.mubr.f32.gmra.mrb[22].mxu1 %v6050_v37 }
  0x9e   : > { %4337 = vmatmul.mubr.f32.gmra.mrb[6].mxu0 %v5958_v34  ;;  %3963 = vmatprep.mubr.f32.mxu1 %v6053_v49  ;;  %v2571_v34 = vld [vmem:[%s6408_s3 + $0x3e8] sm:$0xff] }
  0x9f   : > { %4339 = vmatprep.mubr.f32.mxu0 %v5963_v30  ;;  %4774 = vmatpush3.bf16.msra.mxu0 %v4771_v31  ;;  %v6078_v30 = vld [vmem:[#allocation2 + $0x140] sm:$0xff]  ;;  %v6081_v31 = vld [vmem:[#allocation2 + $0x150] sm:$0xff]  ;;  %v4783_v60 = vpack.c.bf16 %v2571_v34, %v2570_v54 }
  0xa0   : > { %4776 = vmatprep.subr.bf16.mxu0 %v4775_v19  ;;  %v2863_v54 = vld [vmem:[%s6408_s3 + $0x400] sm:$0xff] }
  0xa1   : > { %3964 = vmatmul.mubr.f32.gmra.mrb[24].mxu1 %v6064_v42 }
  0xa2   : > { %4340 = vmatmul.mubr.f32.gmra.mrb[8].mxu0 %v5976_v40  ;;  %3966 = vmatprep.mubr.f32.mxu1 %v6067_v5  ;;  %v2573_v40 = vld [vmem:[%s6408_s3 + $0x3f8] sm:$0xff] }
  0xa3   : > { %4342 = vmatprep.mubr.f32.mxu0 %v5981_v62  ;;  %4778 = vmatpush3.bf16.msra.mxu0 %v4775_v19  ;;  %v6092_v62 = vld [vmem:[#allocation2 + $0x158] sm:$0xff]  ;;  %v6095_v19 = vld [vmem:[#allocation2 + $0x168] sm:$0xff]  ;;  %v4787_v34 = vpack.c.bf16 %v2573_v40, %v2572_v51  ;;  %v1339_v51 = vld [vmem:[%s6408_s3 + $0x190] sm:$0xff] }
  0xa4   : > { %4780 = vmatprep.subr.bf16.mxu0 %v4779_v57 }
  0xa5   : > { %3967 = vmatmul.mubr.f32.gmra.mrb[26].mxu1 %v6078_v30 }
  0xa6   : > { %4343 = vmatmul.mubr.f32.gmra.mrb[10].mxu0 %v5992_v4  ;;  %3969 = vmatprep.mubr.f32.mxu1 %v6081_v31  ;;  %v2864_v4 = vld [vmem:[%s6408_s3 + $0x408] sm:$0xff] }
  0xa7   : > { %4345 = vmatprep.mubr.f32.mxu0 %v5994_v29  ;;  %4782 = vmatpush3.bf16.msra.mxu0 %v4779_v57  ;;  %v6106_v29 = vld [vmem:[#allocation2 + $0x170] sm:$0xff]  ;;  %v1000_v57 = vld [vmem:[#allocation2 + $0x2] sm:$0xff]  ;;  %v6109_v40 = vpack.c.bf16 %v2864_v4, %v2863_v54 }
  0xa8   : > { %4784 = vmatprep.subr.bf16.mxu0 %v4783_v60  ;;  %v1341_v4 = vld [vmem:[%s6408_s3 + $0x1a0] sm:$0xff]  ;;  %v1342_v54 = vld [vmem:[%s6408_s3 + $0x1a8] sm:$0xff] }
  0xa9   : > { %3970 = vmatmul.mubr.f32.gmra.mrb[28].mxu1 %v6092_v62 }
  0xaa   : > { %4346 = vmatmul.mubr.f32.gmra.mrb[12].mxu0 %v6006_v43  ;;  %3972 = vmatprep.mubr.f32.mxu1 %v6095_v19  ;;  %v1340_v43 = vld [vmem:[%s6408_s3 + $0x198] sm:$0xff] }
  0xab   : > { %4348 = vmatprep.mubr.f32.mxu0 %v6009_v21  ;;  %4786 = vmatpush3.bf16.msra.mxu0 %v4783_v60  ;;  %v4635_v60 = vpack.c.bf16 %v1340_v43, %v1339_v51  ;;  %v4639_v43 = vpack.c.bf16 %v1342_v54, %v1341_v4  ;;  %v1350_v51 = vld [vmem:[%s6408_s3 + $0x1e8] sm:$0xff]  ;;  %v1352_v4 = vld [vmem:[%s6408_s3 + $0x1f8] sm:$0xff] }
  0xac   : > { %4788 = vmatprep.subr.bf16.mxu0 %v4787_v34  ;;  %v2251_v54 = vld [vmem:[#allocation2 + $0x198] sm:$0xff] }
  0xad   : > { %3973 = vmatmul.mubr.f32.gmra.mrb[30].mxu1 %v6106_v29 }
  0xae   : > { %4349 = vmatmul.mubr.f32.gmra.mrb[14].mxu0 %v6021_v22  ;;  %4007 = vmatprep.mubr.f32.mxu1 %v1000_v57  ;;  %v1348_v57 = vld [vmem:[%s6408_s3 + $0x1d8] sm:$0xff] }
  0xaf   : > { %4351 = vmatprep.mubr.f32.mxu0 %v6025_v47  ;;  %4790 = vmatpush3.bf16.msra.mxu0 %v4787_v34  ;;  %v1344_v34 = vld [vmem:[%s6408_s3 + $0x1b8] sm:$0xff] }
  0xb0   : > { %4792 = vmatprep.subr.bf16.mxu0 %v6109_v40 }
  0xb1   : > { %4008 = vmatmul.mubr.f32.vlgmr.msra.gmra.mrb[0].mxu1 %v1001_v26  ;;  %v1343_v26 = vld [vmem:[%s6408_s3 + $0x1b0] sm:$0xff] }
  0xb2   : > { %4352 = vmatmul.mubr.f32.gmra.mrb[16].mxu0 %v6036_v20  ;;  %4634 = vmatpush3.bf16.msra.mxu1 %v5996_v25  ;;  %v1346_v25 = vld [vmem:[%s6408_s3 + $0x1c8] sm:$0xff] }
  0xb3   : > { %4010 = vmatprep.mubr.f32.mxu1 %v5723_v10  ;;  %4354 = vmatprep.mubr.f32.mxu0 %v6039_v35  ;;  %v4643_v10 = vpack.c.bf16 %v1344_v34, %v1343_v26  ;;  %v2866_v26 = vld [vmem:[%s6408_s3 + $0x418] sm:$0xff]  ;;  %v5104_v34 = vld [vmem:[#allocation2 + $0x8] sm:$0xff] }
  0xb4   : > { %4636 = vmatprep.subr.bf16.mxu1 %v4635_v60 }
  0xb5   : > { %4011 = vmatmul.mubr.f32.gmra.mrb[2].mxu1 %v5741_v6  ;;  %v1345_v6 = vld [vmem:[%s6408_s3 + $0x1c0] sm:$0xff] }
  0xb6   : > { %4355 = vmatmul.mubr.f32.gmra.mrb[18].mxu0 %v6050_v37  ;;  %4013 = vmatprep.mubr.f32.mxu1 %v5743_v16  ;;  %v4647_v16 = vpack.c.bf16 %v1346_v25, %v1345_v6  ;;  %v2868_v6 = vld [vmem:[%s6408_s3 + $0x428] sm:$0xff] }
  0xb7   : > { %4357 = vmatprep.mubr.f32.mxu0 %v6053_v49  ;;  %4638 = vmatpush3.bf16.msra.mxu1 %v4635_v60  ;;  %v2530_v25 = vld [vmem:[#allocation2 + $0x61] sm:$0xff] }
  0xb8   : > { %4640 = vmatprep.subr.bf16.mxu1 %v4639_v43 }
  0xb9   : > { %4014 = vmatmul.mubr.f32.gmra.mrb[4].mxu1 %v5757_v3  ;;  %v1347_v3 = vld [vmem:[%s6408_s3 + $0x1d0] sm:$0xff] }
  0xba   : > { %4358 = vmatmul.mubr.f32.gmra.mrb[20].mxu0 %v6064_v42  ;;  %4016 = vmatprep.mubr.f32.mxu1 %v5759_v27  ;;  %v4651_v27 = vpack.c.bf16 %v1348_v57, %v1347_v3  ;;  %v2870_v3 = vld [vmem:[%s6408_s3 + $0x438] sm:$0xff] }
  0xbb   : > { %4360 = vmatprep.mubr.f32.mxu0 %v6067_v5  ;;  %4642 = vmatpush3.bf16.msra.mxu1 %v4639_v43  ;;  %v2526_v43 = vld [vmem:[#allocation2 + $0x31] sm:$0xff] }
  0xbc   : > { %4644 = vmatprep.subr.bf16.mxu1 %v4643_v10 }
  0xbd   : > { %4017 = vmatmul.mubr.f32.gmra.mrb[6].mxu1 %v5773_v50  ;;  %v1349_v50 = vld [vmem:[%s6408_s3 + $0x1e0] sm:$0xff] }
  0xbe   : > { %4361 = vmatmul.mubr.f32.gmra.mrb[22].mxu0 %v6078_v30  ;;  %4019 = vmatprep.mubr.f32.mxu1 %v5775_v39  ;;  %v6171_v39 = vld [vmem:[#allocation2 + $0x180] sm:$0xff]  ;;  %v4655_v60 = vpack.c.bf16 %v1350_v51, %v1349_v50  ;;  %v2534_v50 = vld [vmem:[#allocation2 + $0x91] sm:$0xff] }
  0xbf   : > { %4363 = vmatprep.mubr.f32.mxu0 %v6081_v31  ;;  %4646 = vmatpush3.bf16.msra.mxu1 %v4643_v10 }
  0xc0   : > { %4648 = vmatprep.subr.bf16.mxu1 %v4647_v16 }
  0xc1   : > { %4020 = vmatmul.mubr.f32.gmra.mrb[8].mxu1 %v5789_v53  ;;  %v1351_v53 = vld [vmem:[%s6408_s3 + $0x1f0] sm:$0xff] }
  0xc2   : > { %4364 = vmatmul.mubr.f32.gmra.mrb[24].mxu0 %v6092_v62  ;;  %4022 = vmatprep.mubr.f32.mxu1 %v5791_v44  ;;  %v6183_v44 = vld [vmem:[#allocation2 + $0x188] sm:$0xff] }
  0xc3   : > { %4366 = vmatprep.mubr.f32.mxu0 %v6095_v19  ;;  %4650 = vmatpush3.bf16.msra.mxu1 %v4647_v16 }
  0xc4   : > { %4652 = vmatprep.subr.bf16.mxu1 %v4651_v27 }
  0xc5   : > { %4023 = vmatmul.mubr.f32.gmra.mrb[10].mxu1 %v5805_v14  ;;  %v4659_v14 = vpack.c.bf16 %v1352_v4, %v1351_v53  ;;  %v2536_v53 = vld [vmem:[#allocation2 + $0xa9] sm:$0xff] }
  0xc6   : > { %4367 = vmatmul.mubr.f32.gmra.mrb[26].mxu0 %v6106_v29  ;;  %4025 = vmatprep.mubr.f32.mxu1 %v5807_v63  ;;  %v2865_v63 = vld [vmem:[%s6408_s3 + $0x410] sm:$0xff] }
  0xc7   : > { %4369 = vmatprep.mubr.f32.mxu0 %v6171_v39  ;;  %4654 = vmatpush3.bf16.msra.mxu1 %v4651_v27  ;;  %v4795_v10 = vpack.c.bf16 %v2866_v26, %v2865_v63  ;;  %v2872_v27 = vld [vmem:[%s6408_s3 + $0x448] sm:$0xff]  ;;  %v2878_v63 = vld [vmem:[%s6408_s3 + $0x478] sm:$0xff] }
  0xc8   : > { %4656 = vmatprep.subr.bf16.mxu1 %v4655_v60  ;;  %v6246_v26 = vld [vmem:[#allocation2 + $0xd9] sm:$0xff] }
  0xc9   : > { %4026 = vmatmul.mubr.f32.gmra.mrb[12].mxu1 %v5821_v48  ;;  %v2527_v48 = vld [vmem:[#allocation2 + $0x39] sm:$0xff] }
  0xca   : > { %4370 = vmatmul.mubr.f32.gmra.mrb[28].mxu0 %v6183_v44  ;;  %4028 = vmatprep.mubr.f32.mxu1 %v5823_v17  ;;  %v2528_v17 = vld [vmem:[#allocation2 + $0x49] sm:$0xff] }
  0xcb   : > { %4372 = vmatprep.mubr.f32.mxu0 %v2251_v54  ;;  %4658 = vmatpush3.bf16.msra.mxu1 %v4655_v60  ;;  %v2874_v60 = vld [vmem:[%s6408_s3 + $0x458] sm:$0xff]  ;;  %v2876_v54 = vld [vmem:[%s6408_s3 + $0x468] sm:$0xff] }
  0xcc   : > { %4660 = vmatprep.subr.bf16.mxu1 %v4659_v14 }
  0xcd   : > { %4029 = vmatmul.mubr.f32.gmra.mrb[14].mxu1 %v5837_v2  ;;  %v2867_v2 = vld [vmem:[%s6408_s3 + $0x420] sm:$0xff] }
  0xce   : > { %4373 = vmatmul.mubr.f32.gmra.mrb[30].mxu0 %v5104_v34  ;;  %4031 = vmatprep.mubr.f32.mxu1 %v5839_v56  ;;  %v2529_v56 = vld [vmem:[#allocation2 + $0x51] sm:$0xff]  ;;  %v4799_v16 = vpack.c.bf16 %v2868_v6, %v2867_v2  ;;  %v6457_v2 = vld [vmem:[#allocation5_spill] sm:$0xff]  ;;  %v6458_v6 = vld [vmem:[#allocation14_spill] sm:$0xff] }
  0xcf   : > { %4407 = vmatprep.mubr.f32.mxu0 %v2526_v43  ;;  %4662 = vmatpush3.bf16.msra.mxu1 %v4659_v14  ;;  %v2538_v14 = vld [vmem:[#allocation2 + $0xc1] sm:$0xff] }
  0xd0   : > { %4823 = vmatprep.subr.bf16.mxu1 %v5217_v8 }
  0xd1   : > { %4032 = vmatmul.mubr.f32.gmra.mrb[16].mxu1 %v5853_v24  ;;  %v2869_v24 = vld [vmem:[%s6408_s3 + $0x430] sm:$0xff] }
  0xd2   : > { %4408 = vmatmul.mubr.f32.vlgmr.msra.gmra.mrb[0].mxu0 %v2527_v48  ;;  %4034 = vmatprep.mubr.f32.mxu1 %v5855_v0  ;;  %v2531_v0 = vld [vmem:[#allocation2 + $0x69] sm:$0xff]  ;;  %v4803_v57 = vpack.c.bf16 %v2870_v3, %v2869_v24  ;;  %v6253_v48 = vld [vmem:[#allocation2 + $0xf1] sm:$0xff]  ;;  %v2556_v3 = vld [vmem:[#allocation2 + $0x199] sm:$0xff] }
  0xd3   : > { %4794 = vmatpush3.bf16.msra.mxu0 %v6109_v40  ;;  %4410 = vmatprep.mubr.f32.mxu0 %v2528_v17  ;;  %v2532_v40 = vld [vmem:[#allocation2 + $0x79] sm:$0xff] }
  0xd4   : > { %4796 = vmatprep.subr.bf16.mxu0 %v4795_v10  ;;  %v5105_v17 = vld [vmem:[#allocation2 + $0x159] sm:$0xff] }
  0xd5   : > { %4035 = vmatmul.mubr.f32.gmra.mrb[18].mxu1 %v5869_v9  ;;  %v2871_v9 = vld [vmem:[%s6408_s3 + $0x440] sm:$0xff] }
  0xd6   : > { %4411 = vmatmul.mubr.f32.gmra.mrb[2].mxu0 %v2529_v56  ;;  %4037 = vmatprep.mubr.f32.mxu1 %v5873_v28  ;;  %v2533_v28 = vld [vmem:[#allocation2 + $0x81] sm:$0xff]  ;;  %v4807_v51 = vpack.c.bf16 %v2872_v27, %v2871_v9  ;;  %v5107_v56 = vld [vmem:[#allocation2 + $0x171] sm:$0xff] }
  0xd7   : > { %4413 = vmatprep.mubr.f32.mxu0 %v2530_v25  ;;  %4798 = vmatpush3.bf16.msra.mxu0 %v4795_v10  ;;  %v5106_v10 = vld [vmem:[#allocation2 + $0x169] sm:$0xff]  ;;  %v6466_v27 = vld [vmem:[#allocation17_spill] sm:$0xff] }
  0xd8   : > { %4800 = vmatprep.subr.bf16.mxu0 %v4799_v16  ;;  %v6459_v25 = vld [vmem:[#allocation15_spill] sm:$0xff] }
  0xd9   : > { %4038 = vmatmul.mubr.f32.gmra.mrb[20].mxu1 %v5889_v11  ;;  %v2873_v11 = vld [vmem:[%s6408_s3 + $0x450] sm:$0xff] }
  0xda   : > { %4414 = vmatmul.mubr.f32.gmra.mrb[4].mxu0 %v2531_v0  ;;  %4040 = vmatprep.mubr.f32.mxu1 %v5893_v36  ;;  %v2535_v36 = vld [vmem:[#allocation2 + $0x99] sm:$0xff]  ;;  %v4811_v4 = vpack.c.bf16 %v2874_v60, %v2873_v11  ;;  %v6462_v0 = vld [vmem:[#allocation6_spill] sm:$0xff] }
  0xdb   : > { %4416 = vmatprep.mubr.f32.mxu0 %v2532_v40  ;;  %4802 = vmatpush3.bf16.msra.mxu0 %v4799_v16  ;;  %v6460_v16 = vld [vmem:[#allocation8_spill] sm:$0xff]  ;;  %v6468_v11 = vld [vmem:[#allocation18_spill] sm:$0xff] }
  0xdc   : > { %4804 = vmatprep.subr.bf16.mxu0 %v4803_v57  ;;  %v6461_v24 = vmax.f32 %v6460_v16, 0.0  ;;  %v6463_v40 = vld [vmem:[#allocation16_spill] sm:$0xff] }
  0xdd   : > { %4041 = vmatmul.mubr.f32.gmra.mrb[22].mxu1 %v5907_v41  ;;  %v2875_v41 = vld [vmem:[%s6408_s3 + $0x460] sm:$0xff] }
  0xde   : > { %4417 = vmatmul.mubr.f32.gmra.mrb[6].mxu0 %v2533_v28  ;;  %4043 = vmatprep.mubr.f32.mxu1 %v5911_v52  ;;  %v2537_v52 = vld [vmem:[#allocation2 + $0xb1] sm:$0xff]  ;;  %v4815_v43 = vpack.c.bf16 %v2876_v54, %v2875_v41  ;;  %v2557_v28 = vld [vmem:[#allocation2 + $0x1a1] sm:$0xff] }
  0xdf   : > { %4419 = vmatprep.mubr.f32.mxu0 %v2534_v50  ;;  %4806 = vmatpush3.bf16.msra.mxu0 %v4803_v57  ;;  %v6464_v57 = vld [vmem:[#allocation9_spill] sm:$0xff]  ;;  %v2831_v50 = vld [vmem:[#allocation2 + $0x32] sm:$0xff] }
  0xe0   : > { %4808 = vmatprep.subr.bf16.mxu0 %v4807_v51  ;;  %v6465_v9 = vmax.f32 %v6464_v57, 0.0  ;;  %v2832_v60 = vld [vmem:[#allocation2 + $0x3a] sm:$0xff]  ;;  %v2839_v54 = vld [vmem:[#allocation2 + $0x92] sm:$0xff] }
  0xe1   : > { %4044 = vmatmul.mubr.f32.gmra.mrb[24].mxu1 %v5925_v61  ;;  %v2877_v61 = vld [vmem:[%s6408_s3 + $0x470] sm:$0xff]  ;;  %v2837_v41 = vld [vmem:[#allocation2 + $0x7a] sm:$0xff] }
  0xe2   : > { %4420 = vmatmul.mubr.f32.gmra.mrb[8].mxu0 %v2535_v36  ;;  %4046 = vmatprep.mubr.f32.mxu1 %v5929_v46  ;;  %v2539_v46 = vld [vmem:[#allocation2 + $0xc9] sm:$0xff]  ;;  %v4819_v34 = vpack.c.bf16 %v2878_v63, %v2877_v61  ;;  %v1637_v63 = vld [vmem:[#allocation2 + $0x159] sm:$0xff] }
  0xe3   : > { %4422 = vmatprep.mubr.f32.mxu0 %v2536_v53  ;;  %4810 = vmatpush3.bf16.msra.mxu0 %v4807_v51  ;;  %v6467_v51 = vld [vmem:[#allocation7_spill] sm:$0xff] }
  0xe4   : > { %4812 = vmatprep.subr.bf16.mxu0 %v4811_v4  ;;  %v2833_v36 = vld [vmem:[#allocation2 + $0x4a] sm:$0xff]  ;;  %v2834_v53 = vld [vmem:[#allocation2 + $0x52] sm:$0xff] }
  0xe5   : > { %4047 = vmatmul.mubr.f32.gmra.mrb[26].mxu1 %v5943_v12  ;;  %v6251_v12 = vld [vmem:[#allocation2 + $0xe1] sm:$0xff]  ;;  %v2857_v61 = vld [vmem:[#allocation2 + $0x16a] sm:$0xff] }
  0xe6   : > { %4423 = vmatmul.mubr.f32.gmra.mrb[10].mxu0 %v2537_v52  ;;  %4049 = vmatprep.mubr.f32.mxu1 %v5947_v58  ;;  %v6259_v58 = vld [vmem:[#allocation2 + $0xf9] sm:$0xff]  ;;  %v2854_v52 = vld [vmem:[#allocation2 + $0x142] sm:$0xff] }
  0xe7   : > { %4425 = vmatprep.mubr.f32.mxu0 %v2538_v14  ;;  %4814 = vmatpush3.bf16.msra.mxu0 %v4811_v4  ;;  %v2835_v4 = vld [vmem:[#allocation2 + $0x62] sm:$0xff]  ;;  %v2855_v14 = vld [vmem:[#allocation2 + $0x152] sm:$0xff] }
  0xe8   : > { %4816 = vmatprep.subr.bf16.mxu0 %v4815_v43 }
  0xe9   : > { %4050 = vmatmul.mubr.f32.gmra.mrb[28].mxu1 %v5961_v55  ;;  %v6261_v55 = vld [vmem:[#allocation2 + $0x109] sm:$0xff] }
  0xea   : > { %4426 = vmatmul.mubr.f32.gmra.mrb[12].mxu0 %v2539_v46  ;;  %4052 = vmatprep.mubr.f32.mxu1 %v5965_v23  ;;  %v6268_v23 = vld [vmem:[#allocation2 + $0x111] sm:$0xff] }
  0xeb   : > { %4428 = vmatprep.mubr.f32.mxu0 %v6246_v26  ;;  %4818 = vmatpush3.bf16.msra.mxu0 %v4815_v43  ;;  %v2856_v43 = vld [vmem:[#allocation2 + $0x15a] sm:$0xff]  ;;  %v2858_v46 = vld [vmem:[#allocation2 + $0x172] sm:$0xff] }
  0xec   : > { %4820 = vmatprep.subr.bf16.mxu0 %v4819_v34 }
  0xed   : > { %4053 = vmatmul.mubr.f32.gmra.mrb[30].mxu1 %v5979_v59  ;;  %v6453_v59 = vld [vmem:[#allocation11_spill] sm:$0xff] }
  0xee   : > { %4429 = vmatmul.mubr.f32.gmra.mrb[14].mxu0 %v6251_v12  ;;  %4087 = vmatprep.mubr.f32.mxu1 %v5871_v32  ;;  %v6270_v32 = vld [vmem:[#allocation2 + $0x121] sm:$0xff] }
  0xef   : > { %4431 = vmatprep.mubr.f32.mxu0 %v6253_v48  ;;  %4822 = vmatpush3.bf16.msra.mxu0 %v4819_v34  ;;  %v2859_v34 = vld [vmem:[#allocation2 + $0x182] sm:$0xff] }
  0xf1   : > { %4088 = vmatmul.mubr.f32.vlgmr.msra.gmra.mrb[0].mxu1 %v5885_v1  ;;  %v6277_v1 = vld [vmem:[#allocation2 + $0x129] sm:$0xff] }
  0xf2   : > { %4432 = vmatmul.mubr.f32.gmra.mrb[16].mxu0 %v6259_v58  ;;  %4831 = vmatpush3.bf16.msra.mxu1 %v5217_v8  ;;  %v6280_v8 = vld [vmem:[#allocation2 + $0x139] sm:$0xff] }
  0xf3   : > { %4090 = vmatprep.mubr.f32.mxu1 %v5891_v7  ;;  %4434 = vmatprep.mubr.f32.mxu0 %v6261_v55  ;;  %v6287_v7 = vld [vmem:[#allocation2 + $0x141] sm:$0xff] }
  0xf4   : > { %4824 = vmatprep.subr.bf16.mxu1 %v5238_v13 }
  0xf5   : > { %4091 = vmatmul.mubr.f32.gmra.mrb[2].mxu1 %v5904_v33  ;;  %v6290_v33 = vld [vmem:[#allocation2 + $0x151] sm:$0xff] }
  0xf6   : > { %4435 = vmatmul.mubr.f32.gmra.mrb[18].mxu0 %v6268_v23  ;;  %4093 = vmatprep.mubr.f32.mxu1 %v5909_v38  ;;  %v6451_v38 = vld [vmem:[#allocation3_spill] sm:$0xff] }
  0xf7   : > { %4437 = vmatprep.mubr.f32.mxu0 %v6270_v32  ;;  %4832 = vmatpush3.bf16.msra.mxu1 %v5238_v13  ;;  %v6452_v13 = vld [vmem:[#allocation10_spill] sm:$0xff] }
  0xf8   : > { %4825 = vmatprep.subr.bf16.mxu1 %v5253_v18 }
  0xf9   : > { %4094 = vmatmul.mubr.f32.gmra.mrb[4].mxu1 %v5922_v45  ;;  %v6454_v45 = vld [vmem:[#allocation4_spill] sm:$0xff] }
  0xfa   : > { %4438 = vmatmul.mubr.f32.gmra.mrb[20].mxu0 %v6277_v1  ;;  %4096 = vmatprep.mubr.f32.mxu1 %v5927_v15  ;;  %v6455_v15 = vld [vmem:[#allocation12_spill] sm:$0xff] }
  0xfb   : > { %4440 = vmatprep.mubr.f32.mxu0 %v6280_v8  ;;  %4833 = vmatpush3.bf16.msra.mxu1 %v5253_v18  ;;  %v6456_v18 = vld [vmem:[#allocation13_spill] sm:$0xff] }
  0xfc   : > { %4826 = vmatprep.subr.bf16.mxu1 %v6451_v38 }
  0xfd   : > { %4097 = vmatmul.mubr.f32.gmra.mrb[6].mxu1 %v6452_v13 }
  0xfe   : > { %4441 = vmatmul.mubr.f32.gmra.mrb[22].mxu0 %v6287_v7  ;;  %4099 = vmatprep.mubr.f32.mxu1 %v6453_v59 }
  0xff   : > { %4443 = vmatprep.mubr.f32.mxu0 %v6290_v33  ;;  %4834 = vmatpush3.bf16.msra.mxu1 %v6451_v38 }
 0x100   : > { %4827 = vmatprep.subr.bf16.mxu1 %v6454_v45 }
 0x101   : > { %4100 = vmatmul.mubr.f32.gmra.mrb[8].mxu1 %v6455_v15 }
 0x102   : > { %4444 = vmatmul.mubr.f32.gmra.mrb[24].mxu0 %v5105_v17  ;;  %4102 = vmatprep.mubr.f32.mxu1 %v6456_v18 }
 0x103   : > { %4446 = vmatprep.mubr.f32.mxu0 %v5106_v10  ;;  %4835 = vmatpush3.bf16.msra.mxu1 %v6454_v45 }
 0x104   : > { %4828 = vmatprep.subr.bf16.mxu1 %v6457_v2 }
 0x105   : > { %4103 = vmatmul.mubr.f32.gmra.mrb[10].mxu1 %v6458_v6 }
 0x106   : > { %4447 = vmatmul.mubr.f32.gmra.mrb[26].mxu0 %v5107_v56  ;;  %4105 = vmatprep.mubr.f32.mxu1 %v6459_v25 }
 0x107   : > { %4449 = vmatprep.mubr.f32.mxu0 %v6461_v24  ;;  %4836 = vmatpush3.bf16.msra.mxu1 %v6457_v2 }
 0x108   : > { %4829 = vmatprep.subr.bf16.mxu1 %v6462_v0 }
 0x109   : > { %4106 = vmatmul.mubr.f32.gmra.mrb[12].mxu1 %v6463_v40 }
 0x10a   : > { %4450 = vmatmul.mubr.f32.gmra.mrb[28].mxu0 %v6465_v9  ;;  %4108 = vmatprep.mubr.f32.mxu1 %v6466_v27 }
 0x10b   : > { %4452 = vmatprep.mubr.f32.mxu0 %v2556_v3  ;;  %4837 = vmatpush3.bf16.msra.mxu1 %v6462_v0 }
 0x10c   : > { %4830 = vmatprep.subr.bf16.mxu1 %v6467_v51 }
 0x10d   : > { %4109 = vmatmul.mubr.f32.gmra.mrb[14].mxu1 %v6468_v11 }
 0x10e   : > { %4453 = vmatmul.mubr.f32.gmra.mrb[30].mxu0 %v2557_v28  ;;  %4111 = vmatprep.mubr.f32.mxu1 %v6009_v21  ;;  %v2836_v21 = vld [vmem:[#allocation2 + $0x6a] sm:$0xff] }
 0x10f   : > { %4487 = vmatprep.mubr.f32.mxu0 %v2831_v50  ;;  %4838 = vmatpush3.bf16.msra.mxu1 %v6467_v51 }
 0x111   : > { %4112 = vmatmul.mubr.f32.gmra.mrb[16].mxu1 %v6021_v22  ;;  %v2838_v22 = vld [vmem:[#allocation2 + $0x82] sm:$0xff] }
 0x112   : > { %4488 = vmatmul.mubr.f32.vlgmr.msra.gmra.mrb[0].mxu0 %v2832_v60  ;;  %4114 = vmatprep.mubr.f32.mxu1 %v6025_v47  ;;  %v2840_v47 = vld [vmem:[#allocation2 + $0x9a] sm:$0xff] }
 0x113   : > { %4490 = vmatprep.mubr.f32.mxu0 %v2833_v36 }
 0x115   : > { %4115 = vmatmul.mubr.f32.gmra.mrb[18].mxu1 %v6036_v20  ;;  %v2841_v20 = vld [vmem:[#allocation2 + $0xaa] sm:$0xff] }
 0x116   : > { %4491 = vmatmul.mubr.f32.gmra.mrb[2].mxu0 %v2834_v53  ;;  %4117 = vmatprep.mubr.f32.mxu1 %v6039_v35  ;;  %v2843_v35 = vld [vmem:[#allocation2 + $0xc2] sm:$0xff] }
 0x117   : > { %4493 = vmatprep.mubr.f32.mxu0 %v2835_v4 }
 0x119   : > { %4118 = vmatmul.mubr.f32.gmra.mrb[20].mxu1 %v6050_v37  ;;  %v2842_v37 = vld [vmem:[#allocation2 + $0xb2] sm:$0xff] }
 0x11a   : > { %4494 = vmatmul.mubr.f32.gmra.mrb[4].mxu0 %v2836_v21  ;;  %4120 = vmatprep.mubr.f32.mxu1 %v6053_v49  ;;  %v2845_v49 = vld [vmem:[#allocation2 + $0xda] sm:$0xff] }
 0x11b   : > { %4496 = vmatprep.mubr.f32.mxu0 %v2837_v41 }
 0x11d   : > { %4121 = vmatmul.mubr.f32.gmra.mrb[22].mxu1 %v6064_v42  ;;  %v2844_v42 = vld [vmem:[#allocation2 + $0xca] sm:$0xff] }
 0x11e   : > { %4497 = vmatmul.mubr.f32.gmra.mrb[6].mxu0 %v2838_v22  ;;  %4123 = vmatprep.mubr.f32.mxu1 %v6067_v5  ;;  %v2847_v5 = vld [vmem:[#allocation2 + $0xf2] sm:$0xff] }
 0x11f   : > { %4499 = vmatprep.mubr.f32.mxu0 %v2839_v54 }
 0x121   : > { %4124 = vmatmul.mubr.f32.gmra.mrb[24].mxu1 %v6078_v30  ;;  %v2846_v30 = vld [vmem:[#allocation2 + $0xe2] sm:$0xff] }
 0x122   : > { %4500 = vmatmul.mubr.f32.gmra.mrb[8].mxu0 %v2840_v47  ;;  %4126 = vmatprep.mubr.f32.mxu1 %v6081_v31  ;;  %v2849_v31 = vld [vmem:[#allocation2 + $0x10a] sm:$0xff] }
 0x123   : > { %4502 = vmatprep.mubr.f32.mxu0 %v2841_v20 }
 0x125   : > { %4127 = vmatmul.mubr.f32.gmra.mrb[26].mxu1 %v6092_v62  ;;  %v2848_v62 = vld [vmem:[#allocation2 + $0xfa] sm:$0xff] }
 0x126   : > { %4503 = vmatmul.mubr.f32.gmra.mrb[10].mxu0 %v2842_v37  ;;  %4129 = vmatprep.mubr.f32.mxu1 %v6095_v19  ;;  %v2851_v19 = vld [vmem:[#allocation2 + $0x122] sm:$0xff] }
 0x127   : > { %4505 = vmatprep.mubr.f32.mxu0 %v2843_v35 }
 0x129   : > { %4130 = vmatmul.mubr.f32.gmra.mrb[28].mxu1 %v6106_v29  ;;  %v2850_v29 = vld [vmem:[#allocation2 + $0x112] sm:$0xff] }
 0x12a   : > { %4506 = vmatmul.mubr.f32.gmra.mrb[12].mxu0 %v2844_v42  ;;  %4132 = vmatprep.mubr.f32.mxu1 %v6171_v39  ;;  %v2852_v39 = vld [vmem:[#allocation2 + $0x12a] sm:$0xff] }
 0x12b   : > { %4508 = vmatprep.mubr.f32.mxu0 %v2845_v49 }
 0x12d   : > { %4133 = vmatmul.mubr.f32.gmra.mrb[30].mxu1 %v6183_v44  ;;  %v2853_v44 = vld [vmem:[#allocation2 + $0x13a] sm:$0xff] }
 0x12e   : > { %4509 = vmatmul.mubr.f32.gmra.mrb[14].mxu0 %v2846_v30  ;;  %4191 = vmatprep.mubr.f32.mxu1 %v6246_v26  ;;  %v1638_v26 = vld [vmem:[#allocation2 + $0x169] sm:$0xff] }
 0x12f   : > { %4511 = vmatprep.mubr.f32.mxu0 %v2847_v5 }
 0x131   : > { %4192 = vmatmul.mubr.f32.vlgmr.msra.gmra.mrb[16].mxu1 %v6251_v12  ;;  %v1639_v12 = vld [vmem:[#allocation2 + $0x171] sm:$0xff] }
 0x132   : > { %4512 = vmatmul.mubr.f32.gmra.mrb[16].mxu0 %v2848_v62  ;;  %4194 = vmatprep.mubr.f32.mxu1 %v6253_v48  ;;  %v2860_v48 = vld [vmem:[#allocation2 + $0x18a] sm:$0xff] }
 0x133   : > { %4514 = vmatprep.mubr.f32.mxu0 %v2849_v31 }
 0x135   : > { %4195 = vmatmul.mubr.f32.gmra.mrb[18].mxu1 %v6259_v58  ;;  %v1640_v58 = vld [vmem:[#allocation2 + $0x181] sm:$0xff] }
 0x136   : > { %4515 = vmatmul.mubr.f32.gmra.mrb[18].mxu0 %v2850_v29  ;;  %4197 = vmatprep.mubr.f32.mxu1 %v6261_v55  ;;  %v2861_v55 = vld [vmem:[#allocation2 + $0x19a] sm:$0xff] }
 0x137   : > { %4517 = vmatprep.mubr.f32.mxu0 %v2851_v19 }
 0x139   : > { %4198 = vmatmul.mubr.f32.gmra.mrb[20].mxu1 %v6268_v23  ;;  %v1641_v23 = vld [vmem:[#allocation2 + $0x189] sm:$0xff] }
 0x13a   : > { %4518 = vmatmul.mubr.f32.gmra.mrb[20].mxu0 %v2852_v39  ;;  %4200 = vmatprep.mubr.f32.mxu1 %v6270_v32  ;;  %v2862_v32 = vld [vmem:[#allocation2 + $0x1a2] sm:$0xff] }
 0x13b   : > { %4520 = vmatprep.mubr.f32.mxu0 %v2853_v44 }
 0x13d   : > { %4201 = vmatmul.mubr.f32.gmra.mrb[22].mxu1 %v6277_v1 }
 0x13e   : > { %4521 = vmatmul.mubr.f32.gmra.mrb[22].mxu0 %v2854_v52  ;;  %4203 = vmatprep.mubr.f32.mxu1 %v6280_v8 }
 0x13f   : > { %4523 = vmatprep.mubr.f32.mxu0 %v2855_v14 }
 0x141   : > { %4204 = vmatmul.mubr.f32.gmra.mrb[24].mxu1 %v6287_v7 }
 0x142   : > { %4524 = vmatmul.mubr.f32.gmra.mrb[24].mxu0 %v2856_v43  ;;  %4206 = vmatprep.mubr.f32.mxu1 %v6290_v33 }
 0x143   : > { %4526 = vmatprep.mubr.f32.mxu0 %v2857_v61 }
 0x145   : > { %4207 = vmatmul.mubr.f32.gmra.mrb[26].mxu1 %v1637_v63 }
 0x146   : > { %4527 = vmatmul.mubr.f32.gmra.mrb[26].mxu0 %v2858_v46  ;;  %4209 = vmatprep.mubr.f32.mxu1 %v1638_v26 }
 0x147   : > { %4529 = vmatprep.mubr.f32.mxu0 %v2859_v34 }
 0x149   : > { %4210 = vmatmul.mubr.f32.gmra.mrb[28].mxu1 %v1639_v12 }
 0x14a   : > { %4530 = vmatmul.mubr.f32.gmra.mrb[28].mxu0 %v2860_v48  ;;  %4212 = vmatprep.mubr.f32.mxu1 %v1640_v58 }
 0x14b   : > { %4532 = vmatprep.mubr.f32.mxu0 %v2861_v55 }
 0x14d   : > { %4213 = vmatmul.mubr.f32.gmra.mrb[30].mxu1 %v1641_v23 }
 0x14e   : > { %4533 = vmatmul.mubr.f32.gmra.mrb[30].mxu0 %v2862_v32 }
 0x1c4   : > { %v4089_v1 = vpop.f32.mrb[0].mxu1 }
 0x1c5   : > { %v1419_v8 = vpop.f32.mrb[1].mxu1 }
 0x1c8   : > { %v4092_v7 = vpop.f32.mrb[2].mxu1 }
 0x1c9   : > { %v1429_v33 = vpop.f32.mrb[3].mxu1 }
 0x1cc   : > { %v4095_v38 = vpop.f32.mrb[4].mxu1 }
 0x1cd   : > { %v1439_v13 = vpop.f32.mrb[5].mxu1 }
 0x1d0   : > { %v4098_v59 = vpop.f32.mrb[6].mxu1 }
 0x1d1   : > { %v1449_v45 = vpop.f32.mrb[7].mxu1 }
 0x1d4   : > { %v4101_v15 = vpop.f32.mrb[8].mxu1 }
 0x1d5   : > { %v1459_v17 = vpop.f32.mrb[9].mxu1 }
 0x1d8   : > { %v4104_v18 = vpop.f32.mrb[10].mxu1 }
 0x1d9   : > { %v6344_v10 = vpop.f32.mrb[11].mxu1 }
 0x1dc   : > { %v6346_v2 = vpop.f32.mrb[12].mxu1 }
 0x1dd   : > { %v6348_v6 = vpop.f32.mrb[13].mxu1 }
 0x1e0   : > { %v6350_v56 = vpop.f32.mrb[14].mxu1 }
 0x1e1   : > { %v6352_v25 = vpop.f32.mrb[15].mxu1 }
 0x1e5   : > { %v4489_v16 = vpop.f32.mrb[0].mxu0 }
 0x1e6   : > { %v4839_v24 = vadd.f32 %v4489_v16, %v4089_v1  ;;  %v2945_v3 = vpop.f32.mrb[1].mxu0 }
 0x1e7   : > { %v4840_v0 = vadd.f32 %v2945_v3, %v1419_v8 }
 0x1e8   : > { %3137 = vst [vmem:[%s6359_s11 + $0x8] sm:$0xff] %v4839_v24  ;;  %v3206_v40 = vmul.f32 %v4839_v24, %v4839_v24 }
 0x1e9   : > { %3136 = vst [vmem:[%s6359_s11] sm:$0xff] %v4840_v0  ;;  %v3168_v57 = vadd.f32 %v4840_v0, %v4839_v24  ;;  %v3205_v9 = vmul.f32 %v4840_v0, %v4840_v0  ;;  %v4492_v27 = vpop.f32.mrb[2].mxu0 }
 0x1ea   : > { %v4841_v28 = vadd.f32 %v4492_v27, %v4092_v7  ;;  %v2955_v50 = vpop.f32.mrb[3].mxu0 }
 0x1eb   : > { %v3237_v51 = vadd.f32 %v3206_v40, %v3205_v9  ;;  %v4842_v11 = vadd.f32 %v2955_v50, %v1429_v33 }
 0x1ec   : > { %3139 = vst [vmem:[%s6359_s11 + $0x18] sm:$0xff] %v4841_v28  ;;  %v3208_v41 = vmul.f32 %v4841_v28, %v4841_v28 }
 0x1ed   : > { %3138 = vst [vmem:[%s6359_s11 + $0x10] sm:$0xff] %v4842_v11  ;;  %v3169_v60 = vadd.f32 %v4842_v11, %v3168_v57  ;;  %v3207_v36 = vmul.f32 %v4842_v11, %v4842_v11  ;;  %v4495_v53 = vpop.f32.mrb[4].mxu0 }
 0x1ee   : > { %v4843_v4 = vadd.f32 %v4495_v53, %v4095_v38  ;;  %v2965_v21 = vpop.f32.mrb[5].mxu0 }
 0x1ef   : > { %v3238_v22 = vadd.f32 %v3237_v51, %v3207_v36  ;;  %v4844_v54 = vadd.f32 %v2965_v21, %v1439_v13  ;;  %v3170_v47 = vadd.f32 %v4841_v28, %v3169_v60 }
 0x1f0   : > { %3141 = vst [vmem:[%s6359_s11 + $0x28] sm:$0xff] %v4843_v4  ;;  %v3210_v5 = vmul.f32 %v4843_v4, %v4843_v4 }
 0x1f1   : > { %3140 = vst [vmem:[%s6359_s11 + $0x20] sm:$0xff] %v4844_v54  ;;  %v3171_v20 = vadd.f32 %v4844_v54, %v3170_v47  ;;  %v3209_v37 = vmul.f32 %v4844_v54, %v4844_v54  ;;  %v3239_v35 = vadd.f32 %v3238_v22, %v3208_v41  ;;  %v4498_v42 = vpop.f32.mrb[6].mxu0 }
 0x1f2   : > { %v4845_v49 = vadd.f32 %v4498_v42, %v4098_v59  ;;  %v2975_v30 = vpop.f32.mrb[7].mxu0 }
 0x1f3   : > { %v3240_v62 = vadd.f32 %v3239_v35, %v3209_v37  ;;  %v4846_v31 = vadd.f32 %v2975_v30, %v1449_v45  ;;  %v3172_v29 = vadd.f32 %v4843_v4, %v3171_v20 }
 0x1f4   : > { %3143 = vst [vmem:[%s6359_s11 + $0x38] sm:$0xff] %v4845_v49  ;;  %v3212_v61 = vmul.f32 %v4845_v49, %v4845_v49 }
 0x1f5   : > { %3142 = vst [vmem:[%s6359_s11 + $0x30] sm:$0xff] %v4846_v31  ;;  %v3173_v19 = vadd.f32 %v4846_v31, %v3172_v29  ;;  %v3211_v39 = vmul.f32 %v4846_v31, %v4846_v31  ;;  %v3241_v44 = vadd.f32 %v3240_v62, %v3210_v5  ;;  %v4501_v52 = vpop.f32.mrb[8].mxu0 }
 0x1f6   : > { %v4847_v14 = vadd.f32 %v4501_v52, %v4101_v15  ;;  %v2985_v43 = vpop.f32.mrb[9].mxu0 }
 0x1f7   : > { %v3242_v63 = vadd.f32 %v3241_v44, %v3211_v39  ;;  %v4848_v46 = vadd.f32 %v2985_v43, %v1459_v17  ;;  %v3174_v26 = vadd.f32 %v4845_v49, %v3173_v19 }
 0x1f8   : > { %3145 = vst [vmem:[%s6359_s11 + $0x48] sm:$0xff] %v4847_v14  ;;  %v3214_v32 = vmul.f32 %v4847_v14, %v4847_v14 }
 0x1f9   : > { %3144 = vst [vmem:[%s6359_s11 + $0x40] sm:$0xff] %v4848_v46  ;;  %v3175_v34 = vadd.f32 %v4848_v46, %v3174_v26  ;;  %v3213_v12 = vmul.f32 %v4848_v46, %v4848_v46  ;;  %v3243_v48 = vadd.f32 %v3242_v63, %v3212_v61  ;;  %v4504_v58 = vpop.f32.mrb[10].mxu0 }
 0x1fa   : > { %v4849_v55 = vadd.f32 %v4504_v58, %v4104_v18  ;;  %v2995_v23 = vpop.f32.mrb[11].mxu0 }
 0x1fb   : > { %v3244_v1 = vadd.f32 %v3243_v48, %v3213_v12  ;;  %v4850_v8 = vadd.f32 %v2995_v23, %v6344_v10  ;;  %v3176_v7 = vadd.f32 %v4847_v14, %v3175_v34 }
 0x1fc   : > { %3147 = vst [vmem:[%s6359_s11 + $0x58] sm:$0xff] %v4849_v55  ;;  %v3216_v17 = vmul.f32 %v4849_v55, %v4849_v55 }
 0x1fd   : > { %3146 = vst [vmem:[%s6359_s11 + $0x50] sm:$0xff] %v4850_v8  ;;  %v3177_v33 = vadd.f32 %v4850_v8, %v3176_v7  ;;  %v3215_v38 = vmul.f32 %v4850_v8, %v4850_v8  ;;  %v3245_v13 = vadd.f32 %v3244_v1, %v3214_v32  ;;  %v4507_v59 = vpop.f32.mrb[12].mxu0 }
 0x1fe   : > { %v4851_v45 = vadd.f32 %v4507_v59, %v6346_v2  ;;  %v3005_v15 = vpop.f32.mrb[13].mxu0 }
 0x1ff   : > { %v3246_v18 = vadd.f32 %v3245_v13, %v3215_v38  ;;  %v4852_v16 = vadd.f32 %v3005_v15, %v6348_v6  ;;  %v3178_v24 = vadd.f32 %v4849_v55, %v3177_v33 }
 0x200   : > { %3149 = vst [vmem:[%s6359_s11 + $0x68] sm:$0xff] %v4851_v45  ;;  %v3218_v27 = vmul.f32 %v4851_v45, %v4851_v45 }
 0x201   : > { %3148 = vst [vmem:[%s6359_s11 + $0x60] sm:$0xff] %v4852_v16  ;;  %v3179_v10 = vadd.f32 %v4852_v16, %v3178_v24  ;;  %v3217_v3 = vmul.f32 %v4852_v16, %v4852_v16  ;;  %v3247_v0 = vadd.f32 %v3246_v18, %v3216_v17  ;;  %v4510_v40 = vpop.f32.mrb[14].mxu0 }
 0x202   : > { %v4853_v57 = vadd.f32 %v4510_v40, %v6350_v56  ;;  %v3015_v9 = vpop.f32.mrb[15].mxu0 }
 0x203   : > { %v3248_v28 = vadd.f32 %v3247_v0, %v3217_v3  ;;  %v4854_v2 = vadd.f32 %v3015_v9, %v6352_v25  ;;  %v3180_v50 = vadd.f32 %v4851_v45, %v3179_v10 }
 0x204   : > { %3151 = vst [vmem:[%s6359_s11 + $0x78] sm:$0xff] %v4853_v57  ;;  %v4193_v6 = vpop.f32.mrb[16].mxu1  ;;  %v3220_v41 = vmul.f32 %v4853_v57, %v4853_v57 }
 0x205   : > { %3150 = vst [vmem:[%s6359_s11 + $0x70] sm:$0xff] %v4854_v2  ;;  %v3181_v51 = vadd.f32 %v4854_v2, %v3180_v50  ;;  %v3219_v11 = vmul.f32 %v4854_v2, %v4854_v2  ;;  %v3249_v60 = vadd.f32 %v3248_v28, %v3218_v27  ;;  %v4513_v36 = vpop.f32.mrb[16].mxu0  ;;  %v1804_v53 = vpop.f32.mrb[17].mxu1 }
 0x206   : > { %v4855_v4 = vadd.f32 %v4513_v36, %v4193_v6  ;;  %v3025_v21 = vpop.f32.mrb[17].mxu0 }
 0x207   : > { %v3250_v56 = vadd.f32 %v3249_v60, %v3219_v11  ;;  %v4856_v22 = vadd.f32 %v3025_v21, %v1804_v53  ;;  %v3182_v54 = vadd.f32 %v4853_v57, %v3181_v51 }
 0x208   : > { %3153 = vst [vmem:[%s6359_s11 + $0x88] sm:$0xff] %v4855_v4  ;;  %v4196_v25 = vpop.f32.mrb[18].mxu1  ;;  %v3222_v5 = vmul.f32 %v4855_v4, %v4855_v4 }
 0x209   : > { %3152 = vst [vmem:[%s6359_s11 + $0x80] sm:$0xff] %v4856_v22  ;;  %v3183_v47 = vadd.f32 %v4856_v22, %v3182_v54  ;;  %v3221_v20 = vmul.f32 %v4856_v22, %v4856_v22  ;;  %v3251_v37 = vadd.f32 %v3250_v56, %v3220_v41  ;;  %v4516_v35 = vpop.f32.mrb[18].mxu0  ;;  %v1814_v42 = vpop.f32.mrb[19].mxu1 }
 0x20a   : > { %v4857_v49 = vadd.f32 %v4516_v35, %v4196_v25  ;;  %v3035_v30 = vpop.f32.mrb[19].mxu0 }
 0x20b   : > { %v3252_v62 = vadd.f32 %v3251_v37, %v3221_v20  ;;  %v4858_v31 = vadd.f32 %v3035_v30, %v1814_v42  ;;  %v3184_v29 = vadd.f32 %v4855_v4, %v3183_v47 }
 0x20c   : > { %3155 = vst [vmem:[%s6359_s11 + $0x98] sm:$0xff] %v4857_v49  ;;  %v4199_v19 = vpop.f32.mrb[20].mxu1  ;;  %v3224_v46 = vmul.f32 %v4857_v49, %v4857_v49 }
 0x20d   : > { %3154 = vst [vmem:[%s6359_s11 + $0x90] sm:$0xff] %v4858_v31  ;;  %v3185_v39 = vadd.f32 %v4858_v31, %v3184_v29  ;;  %v3223_v44 = vmul.f32 %v4858_v31, %v4858_v31  ;;  %v3253_v52 = vadd.f32 %v3252_v62, %v3222_v5  ;;  %v4519_v14 = vpop.f32.mrb[20].mxu0  ;;  %v1824_v43 = vpop.f32.mrb[21].mxu1 }
 0x20e   : > { %v4859_v61 = vadd.f32 %v4519_v14, %v4199_v19  ;;  %v3045_v63 = vpop.f32.mrb[21].mxu0 }
 0x20f   : > { %v3254_v26 = vadd.f32 %v3253_v52, %v3223_v44  ;;  %v4860_v34 = vadd.f32 %v3045_v63, %v1824_v43  ;;  %v3186_v12 = vadd.f32 %v4857_v49, %v3185_v39 }
 0x210   : > { %3157 = vst [vmem:[%s6359_s11 + $0xa8] sm:$0xff] %v4859_v61  ;;  %v4202_v48 = vpop.f32.mrb[22].mxu1  ;;  %v3226_v33 = vmul.f32 %v4859_v61, %v4859_v61 }
 0x211   : > { %3156 = vst [vmem:[%s6359_s11 + $0xa0] sm:$0xff] %v4860_v34  ;;  %v3187_v58 = vadd.f32 %v4860_v34, %v3186_v12  ;;  %v3225_v55 = vmul.f32 %v4860_v34, %v4860_v34  ;;  %v3255_v23 = vadd.f32 %v3254_v26, %v3224_v46  ;;  %v4522_v32 = vpop.f32.mrb[22].mxu0  ;;  %v1834_v1 = vpop.f32.mrb[23].mxu1 }
 0x212   : > { %v4861_v8 = vadd.f32 %v4522_v32, %v4202_v48  ;;  %v3055_v7 = vpop.f32.mrb[23].mxu0 }
 0x213   : > { %v3256_v38 = vadd.f32 %v3255_v23, %v3225_v55  ;;  %v4862_v13 = vadd.f32 %v3055_v7, %v1834_v1  ;;  %v3188_v59 = vadd.f32 %v4859_v61, %v3187_v58 }
 0x214   : > { %3159 = vst [vmem:[%s6359_s11 + $0xb8] sm:$0xff] %v4861_v8  ;;  %v4205_v45 = vpop.f32.mrb[24].mxu1  ;;  %v3228_v0 = vmul.f32 %v4861_v8, %v4861_v8 }
 0x215   : > { %3158 = vst [vmem:[%s6359_s11 + $0xb0] sm:$0xff] %v4862_v13  ;;  %v3189_v15 = vadd.f32 %v4862_v13, %v3188_v59  ;;  %v3227_v17 = vmul.f32 %v4862_v13, %v4862_v13  ;;  %v3257_v18 = vadd.f32 %v3256_v38, %v3226_v33  ;;  %v4525_v16 = vpop.f32.mrb[24].mxu0  ;;  %v1844_v24 = vpop.f32.mrb[25].mxu1 }
 0x216   : > { %v4863_v10 = vadd.f32 %v4525_v16, %v4205_v45  ;;  %v3065_v3 = vpop.f32.mrb[25].mxu0 }
 0x217   : > { %v3258_v40 = vadd.f32 %v3257_v18, %v3227_v17  ;;  %v4864_v57 = vadd.f32 %v3065_v3, %v1844_v24  ;;  %v3190_v9 = vadd.f32 %v4861_v8, %v3189_v15  ;;  %v3274_v8 = vlaneseq }
 0x218   : > { %3161 = vst [vmem:[%s6359_s11 + $0xc8] sm:$0xff] %v4863_v10  ;;  %v4208_v27 = vpop.f32.mrb[26].mxu1  ;;  %v3230_v36 = vmul.f32 %v4863_v10, %v4863_v10 }
 0x219   : > { %3160 = vst [vmem:[%s6359_s11 + $0xc0] sm:$0xff] %v4864_v57  ;;  %v3191_v28 = vadd.f32 %v4864_v57, %v3190_v9  ;;  %v3229_v2 = vmul.f32 %v4864_v57, %v4864_v57  ;;  %v3259_v50 = vadd.f32 %v3258_v40, %v3228_v0  ;;  %v4528_v6 = vpop.f32.mrb[26].mxu0  ;;  %v1854_v51 = vpop.f32.mrb[27].mxu1  ;;  %v3275_v59 = vshrl.u32 %v3274_v8, 7 }
 0x21a   : > { %v4865_v11 = vadd.f32 %v4528_v6, %v4208_v27  ;;  %v3075_v60 = vpop.f32.mrb[27].mxu0 }
 0x21b   : > { %v3260_v53 = vadd.f32 %v3259_v50, %v3229_v2  ;;  %v4866_v4 = vadd.f32 %v3075_v60, %v1854_v51  ;;  %v3192_v21 = vadd.f32 %v4863_v10, %v3191_v28  ;;  %vm3277_vm0 = vcmp.eq.s32.totalorder %v3275_v59, 1 }
 0x21c   : > { %3163 = vst [vmem:[%s6359_s11 + $0xd8] sm:$0xff] %v4865_v11  ;;  %v4211_v41 = vpop.f32.mrb[28].mxu1  ;;  %v3232_v35 = vmul.f32 %v4865_v11, %v4865_v11  ;;  %vm3276_vm1 = vcmp.eq.s32.totalorder %v3275_v59, 0 }
 0x21d   : > { %3162 = vst [vmem:[%s6359_s11 + $0xd0] sm:$0xff] %v4866_v4  ;;  %v3193_v56 = vadd.f32 %v4866_v4, %v3192_v21  ;;  %v3231_v22 = vmul.f32 %v4866_v4, %v4866_v4  ;;  %v3261_v54 = vadd.f32 %v3260_v53, %v3230_v36  ;;  %v4531_v25 = vpop.f32.mrb[28].mxu0  ;;  %v1864_v47 = vpop.f32.mrb[29].mxu1 }
 0x21e   : > { %v4867_v20 = vadd.f32 %v4531_v25, %v4211_v41  ;;  %v3085_v37 = vpop.f32.mrb[29].mxu0 }
 0x21f   : > { %v3262_v42 = vadd.f32 %v3261_v54, %v3231_v22  ;;  %v4868_v49 = vadd.f32 %v3085_v37, %v1864_v47  ;;  %v3194_v30 = vadd.f32 %v4865_v11, %v3193_v56 }
 0x220   : > { %3165 = vst [vmem:[%s6359_s11 + $0xe8] sm:$0xff] %v4867_v20  ;;  %v4214_v5 = vpop.f32.mrb[30].mxu1  ;;  %v3234_v14 = vmul.f32 %v4867_v20, %v4867_v20 }
 0x221   : > { %3164 = vst [vmem:[%s6359_s11 + $0xe0] sm:$0xff] %v4868_v49  ;;  %v3195_v62 = vadd.f32 %v4868_v49, %v3194_v30  ;;  %v3233_v31 = vmul.f32 %v4868_v49, %v4868_v49  ;;  %v3263_v29 = vadd.f32 %v3262_v42, %v3232_v35  ;;  %v4534_v19 = vpop.f32.mrb[30].mxu0  ;;  %v1874_v39 = vpop.f32.mrb[31].mxu1 }
 0x222   : > { %v4869_v44 = vadd.f32 %v4534_v19, %v4214_v5  ;;  %v3095_v52 = vpop.f32.mrb[31].mxu0 }
 0x223   : > { %v3264_v43 = vadd.f32 %v3263_v29, %v3233_v31  ;;  %v4870_v61 = vadd.f32 %v3095_v52, %v1874_v39  ;;  %v3196_v63 = vadd.f32 %v4867_v20, %v3195_v62 }
 0x224   : > { %3167 = vst [vmem:[%s6359_s11 + $0xf8] sm:$0xff] %v4869_v44  ;;  %v3236_v12 = vmul.f32 %v4869_v44, %v4869_v44 }
 0x225   : > { %3166 = vst [vmem:[%s6359_s11 + $0xf0] sm:$0xff] %v4870_v61  ;;  %v3197_v46 = vadd.f32 %v4870_v61, %v3196_v63  ;;  %v3235_v26 = vmul.f32 %v4870_v61, %v4870_v61  ;;  %v3265_v34 = vadd.f32 %v3264_v43, %v3234_v14 }
 0x227   : > { %v3198_v48 = vadd.f32 %v4869_v44, %v3197_v46  ;;  %v3266_v58 = vadd.f32 %v3265_v34, %v3235_v26 }
 0x229   : > { %v3199_v55 = vrot.slane %v3198_v48, 4  ;;  %v3267_v23 = vadd.f32 %v3266_v58, %v3236_v12 }
 0x22b   : > { %v3200_v32 = vadd.f32 %v3199_v55, %v3198_v48  ;;  %v3268_v1 = vrot.slane %v3267_v23, 4 }
 0x22d   : > { %v3201_v7 = vrot.slane %v3200_v32, 2  ;;  %v3269_v33 = vadd.f32 %v3268_v1, %v3267_v23 }
 0x22f   : > { %v3202_v38 = vadd.f32 %v3201_v7, %v3200_v32  ;;  %v3270_v13 = vrot.slane %v3269_v33, 2 }
 0x231   : > { %v3271_v45 = vadd.f32 %v3270_v13, %v3269_v33  ;;  %v3203_v15 = vrot.slane %v3202_v38, 1 }
 0x233   : > { %v3272_v17 = vrot.slane %v3271_v45, 1  ;;  %v3204_v16 = vadd.f32 %v3203_v15, %v3202_v38 }
 0x235   : > { %v3273_v18 = vadd.f32 %v3272_v17, %v3271_v45 }
 0x237   : > { %v3278_v24 = vsel %vm3277_vm0, %v3273_v18, 0.0 }
 0x238   : > { %v3279_v10 = vsel %vm3276_vm1, %v3204_v16, %v3278_v24 }
 0x239   : > { %3280 = vst [vmem:[%s235_s14] sm:$0xff] %v3279_v10 }
 0x23a PF: > { %s16_s18 = sadd.s32 1, %s5114_s18  }
 0x23b   : > { %p13_p4 = scmp.ge.s32.totalorder %s16_s18, 4  }
 0x23d   :  { %15 = sbr.rel (!%p13_p4) target bundleno = 1 (0x1), region = 81 }

// kernel: resblock_forward.26
= control target key start
LH: loop header
LB: loop body
LE: loop exit
PB: predicated region body
PF: predicated region fallthrough
CT: control target
= control target key end

     0   :  { %s797_s18 = smov 0   ;;  %s799_s19 = smov 0   ;;  %s899_s0 = inlined_call_operand.vmem [shape: f32[2,8,8,128], index: 0, kind: input, shape index: {}]   ;;  %s900_s1 = inlined_call_operand.vmem [shape: f32[1,128], index: 1, kind: input, shape index: {}, may-alias: {1,2}]   ;;  %s901_s2 = inlined_call_operand.vmem [shape: f32[1,128], index: 2, kind: input, shape index: {}, may-alias: {1,2}]   ;;  %s902_s3 = inlined_call_operand.vmem [shape: f32[128,128], index: 3, kind: input, shape index: {}]   ;;  %s903_s4 = inlined_call_operand.vmem [shape: f32[2,8,8,128], index: 4, kind: output, shape index: {0}]   ;;  %s904_s5 = inlined_call_operand.vmem [shape: f32[2,1,8,128], index: 5, kind: output, shape index: {1}]  }
   0x1   :  { %s801_s20 = smov 0  }
   0x2 LB: > { %s28_s1 = sadd.s32 1, %s761_s19  ;;  %p593_p0 = scmp.ge.s32.totalorder %s765_s20, 1  ;;  %s765_s20 = sphi %s801_s20, %s16_s20   ;;  %s761_s19 = sphi %s799_s19, %s906_s19   ;;  %s757_s18 = sphi %s797_s18, %s905_s18  }
   0x3   : > { %p30_p1 = scmp.ge.s32.totalorder %s28_s1, 2  ;;  %p213_p2 = scmp.lt.s32.totalorder %s765_s20, 3 }
   0x5   : > { %s908_s1 = smov (%p30_p1, %s28_s1), 0  ;;  %p214_p3 = pnand %p593_p0, %p213_p2 }
   0x6   : > { %v291_v0 = vld [vmem:[%s902_s3] sm:$0xff] (!%p214_p3)  ;;  %v292_v1 = vld [vmem:[%s902_s3 + $0x8] sm:$0xff] (!%p214_p3)  ;;  %v293_v2 = vld [vmem:[%s902_s3 + $0x10] sm:$0xff] (!%p214_p3)  ;;  %p257_p4 = scmp.lt.s32.totalorder (!%p214_p3), %s757_s18, 1 }
   0x7   : > { %217 = sbr.rel (%p214_p3) target bundleno = 287 (0x11f), region = 36  ;;  %v671_v3 = vpack.c.bf16 (!%p214_p3), %v292_v1, %v291_v0  ;;  %v294_v4 = vld [vmem:[%s902_s3 + $0x18] sm:$0xff] (!%p214_p3)  ;;  %v295_v6 = vld [vmem:[%s902_s3 + $0x20] sm:$0xff] (!%p214_p3)  ;;  %v296_v7 = vld [vmem:[%s902_s3 + $0x28] sm:$0xff] (!%p214_p3)  ;;  %v454_v1 = vlaneseq (!%p214_p3) }
   0x8   : > { %v675_v5 = vpack.c.bf16 (!%p214_p3), %v294_v4, %v293_v2  ;;  %v679_v8 = vpack.c.bf16 (!%p214_p3), %v296_v7, %v295_v6  ;;  %v297_v9 = vld [vmem:[%s902_s3 + $0x30] sm:$0xff] (!%p214_p3)  ;;  %v298_v10 = vld [vmem:[%s902_s3 + $0x38] sm:$0xff] (!%p214_p3)  ;;  %v299_v14 = vld [vmem:[%s902_s3 + $0x40] sm:$0xff] (!%p214_p3) }
   0x9   : > { %672 = vmatprep.subr.bf16.mxu0 (!%p214_p3), %v671_v3  ;;  %703 = vmatprep.subr.bf16.mxu1 (!%p214_p3), %v671_v3  ;;  %v683_v13 = vpack.c.bf16 (!%p214_p3), %v298_v10, %v297_v9  ;;  %v300_v15 = vld [vmem:[%s902_s3 + $0x48] sm:$0xff] (!%p214_p3)  ;;  %v301_v17 = vld [vmem:[%s902_s3 + $0x50] sm:$0xff] (!%p214_p3)  ;;  %v302_v18 = vld [vmem:[%s902_s3 + $0x58] sm:$0xff] (!%p214_p3)  ;;  %v455_v6 = vshrl.u32 (!%p214_p3), %v454_v1, 7 }
   0xa   : > { %674 = vmatpush3.bf16.msra.mxu0 (!%p214_p3), %v671_v3  ;;  %711 = vmatpush3.bf16.msra.mxu1 (!%p214_p3), %v671_v3  ;;  %v687_v16 = vpack.c.bf16 (!%p214_p3), %v300_v15, %v299_v14  ;;  %v691_v19 = vpack.c.bf16 (!%p214_p3), %v302_v18, %v301_v17  ;;  %v303_v20 = vld [vmem:[%s902_s3 + $0x60] sm:$0xff] (!%p214_p3)  ;;  %v304_v21 = vld [vmem:[%s902_s3 + $0x68] sm:$0xff] (!%p214_p3)  ;;  %v305_v23 = vld [vmem:[%s902_s3 + $0x70] sm:$0xff] (!%p214_p3) }
   0xb   : > { %676 = vmatprep.subr.bf16.mxu0 (!%p214_p3), %v675_v5  ;;  %704 = vmatprep.subr.bf16.mxu1 (!%p214_p3), %v675_v5  ;;  %v695_v22 = vpack.c.bf16 (!%p214_p3), %v304_v21, %v303_v20  ;;  %v306_v24 = vld [vmem:[%s902_s3 + $0x78] sm:$0xff] (!%p214_p3)  ;;  %vm457_vm0 = vcmp.eq.s32.totalorder (!%p214_p3), %v455_v6, 1  ;;  %vm456_vm1 = vcmp.eq.s32.totalorder (!%p214_p3), %v455_v6, 0 }
   0xc   : > { %v699_v25 = vpack.c.bf16 (!%p214_p3), %v306_v24, %v305_v23 }
   0xe   : > { %s910_s18 = smov (!%p257_p4, %s757_s18), 1  ;;  %678 = vmatpush3.bf16.msra.mxu0 %v675_v5  ;;  %712 = vmatpush3.bf16.msra.mxu1 %v675_v5 }
   0xf   : > { %s601_s7 = sshll.u32 %s910_s18, 6  ;;  %680 = vmatprep.subr.bf16.mxu0 %v679_v8  ;;  %705 = vmatprep.subr.bf16.mxu1 %v679_v8 }
  0x10   : > { %s841_s10 = scalar_lea.vmem %s899_s0, %s601_s7  ;;  %s274_s12 = scalar_lea.vmem %s903_s4, %s601_s7 }
  0x11   : > { %v283_v11 = vld [vmem:[%s841_s10] sm:$0xff]  ;;  %v284_v26 = vld [vmem:[%s841_s10 + $0x8] sm:$0xff]  ;;  %v285_v28 = vld [vmem:[%s841_s10 + $0x10] sm:$0xff]  ;;  %s598_s7 = sshll.u32 %s910_s18, 3 }
  0x12   : > { %659 = vmatprep.mubr.f32.mxu0 %v283_v11  ;;  %v287_v12 = vld [vmem:[%s841_s10 + $0x20] sm:$0xff]  ;;  %682 = vmatpush3.bf16.msra.mxu0 %v679_v8  ;;  %v288_v27 = vld [vmem:[%s841_s10 + $0x28] sm:$0xff]  ;;  %v289_v29 = vld [vmem:[%s841_s10 + $0x30] sm:$0xff]  ;;  %s282_s14 = scalar_lea.vmem %s904_s5, %s598_s7 }
  0x13   : > { %665 = vmatprep.mubr.f32.mxu1 %v287_v12  ;;  %713 = vmatpush3.bf16.msra.mxu1 %v679_v8  ;;  %v286_v30 = vld [vmem:[%s841_s10 + $0x18] sm:$0xff] }
  0x14   : > { %684 = vmatprep.subr.bf16.mxu0 %v683_v13  ;;  %706 = vmatprep.subr.bf16.mxu1 %v683_v13  ;;  %v290_v31 = vld [vmem:[%s841_s10 + $0x38] sm:$0xff] }
  0x16   : > { %686 = vmatpush3.bf16.msra.mxu0 %v683_v13 }
  0x17   : > { %714 = vmatpush3.bf16.msra.mxu1 %v683_v13  ;;  %688 = vmatprep.subr.bf16.mxu0 %v687_v16 }
  0x18   : > { %707 = vmatprep.subr.bf16.mxu1 %v687_v16 }
  0x1a   : > { %690 = vmatpush3.bf16.msra.mxu0 %v687_v16 }
  0x1b   : > { %715 = vmatpush3.bf16.msra.mxu1 %v687_v16  ;;  %692 = vmatprep.subr.bf16.mxu0 %v691_v19 }
  0x1c   : > { %708 = vmatprep.subr.bf16.mxu1 %v691_v19 }
  0x1e   : > { %694 = vmatpush3.bf16.msra.mxu0 %v691_v19 }
  0x1f   : > { %716 = vmatpush3.bf16.msra.mxu1 %v691_v19  ;;  %696 = vmatprep.subr.bf16.mxu0 %v695_v22 }
  0x20   : > { %709 = vmatprep.subr.bf16.mxu1 %v695_v22 }
  0x22   : > { %698 = vmatpush3.bf16.msra.mxu0 %v695_v22 }
  0x23   : > { %717 = vmatpush3.bf16.msra.mxu1 %v695_v22  ;;  %700 = vmatprep.subr.bf16.mxu0 %v699_v25 }
  0x24   : > { %710 = vmatprep.subr.bf16.mxu1 %v699_v25 }
  0x26   : > { %702 = vmatpush3.bf16.msra.mxu0 %v699_v25 }
  0x27   : > { %718 = vmatpush3.bf16.msra.mxu1 %v699_v25 }
  0x29   : > { %660 = vmatmul.mubr.f32.vlgmr.msra.gmra.mrb[0].mxu0 %v284_v26 }
  0x2a   : > { %666 = vmatmul.mubr.f32.vlgmr.msra.gmra.mrb[0].mxu1 %v288_v27  ;;  %662 = vmatprep.mubr.f32.mxu0 %v285_v28 }
  0x2b   : > { %668 = vmatprep.mubr.f32.mxu1 %v289_v29 }
  0x2d   : > { %663 = vmatmul.mubr.f32.gmra.mrb[2].mxu0 %v286_v30 }
  0x2e   : > { %669 = vmatmul.mubr.f32.gmra.mrb[2].mxu1 %v290_v31 }
  0xfc   : > { %v661_v32 = vpop.f32.mrb[0].mxu0 }
  0xfd   : > { %v667_v33 = vpop.f32.mrb[0].mxu1  ;;  %413 = vst [vmem:[%s274_s12 + $0x8] sm:$0xff] %v661_v32  ;;  %v434_v34 = vmul.f32 %v661_v32, %v661_v32  ;;  %v373_v35 = vpop.f32.mrb[1].mxu0 }
  0xfe   : > { %417 = vst [vmem:[%s274_s12 + $0x28] sm:$0xff] %v667_v33  ;;  %v393_v36 = vpop.f32.mrb[1].mxu1  ;;  %412 = vst [vmem:[%s274_s12] sm:$0xff] %v373_v35  ;;  %v420_v37 = vadd.f32 %v661_v32, %v373_v35  ;;  %v433_v38 = vmul.f32 %v373_v35, %v373_v35  ;;  %v438_v52 = vmul.f32 %v667_v33, %v667_v33 }
  0xff   : > { %416 = vst [vmem:[%s274_s12 + $0x20] sm:$0xff] %v393_v36  ;;  %v437_v49 = vmul.f32 %v393_v36, %v393_v36 }
 0x100   : > { %v441_v39 = vadd.f32 %v434_v34, %v433_v38  ;;  %v664_v40 = vpop.f32.mrb[2].mxu0 }
 0x101   : > { %v670_v41 = vpop.f32.mrb[2].mxu1  ;;  %415 = vst [vmem:[%s274_s12 + $0x18] sm:$0xff] %v664_v40  ;;  %v383_v42 = vpop.f32.mrb[3].mxu0  ;;  %v436_v46 = vmul.f32 %v664_v40, %v664_v40 }
 0x102   : > { %419 = vst [vmem:[%s274_s12 + $0x38] sm:$0xff] %v670_v41  ;;  %v403_v43 = vpop.f32.mrb[3].mxu1  ;;  %414 = vst [vmem:[%s274_s12 + $0x10] sm:$0xff] %v383_v42  ;;  %v421_v44 = vadd.f32 %v420_v37, %v383_v42  ;;  %v435_v45 = vmul.f32 %v383_v42, %v383_v42  ;;  %v440_v58 = vmul.f32 %v670_v41, %v670_v41 }
 0x103   : > { %418 = vst [vmem:[%s274_s12 + $0x30] sm:$0xff] %v403_v43  ;;  %v439_v55 = vmul.f32 %v403_v43, %v403_v43 }
 0x104   : > { %v422_v47 = vadd.f32 %v664_v40, %v421_v44  ;;  %v442_v48 = vadd.f32 %v441_v39, %v435_v45 }
 0x106   : > { %v443_v50 = vadd.f32 %v442_v48, %v436_v46  ;;  %v423_v51 = vadd.f32 %v422_v47, %v393_v36 }
 0x108   : > { %v444_v53 = vadd.f32 %v443_v50, %v437_v49  ;;  %v424_v54 = vadd.f32 %v667_v33, %v423_v51 }
 0x10a   : > { %v425_v56 = vadd.f32 %v424_v54, %v403_v43  ;;  %v445_v57 = vadd.f32 %v444_v53, %v438_v52 }
 0x10c   : > { %v426_v59 = vadd.f32 %v670_v41, %v425_v56  ;;  %v446_v60 = vadd.f32 %v445_v57, %v439_v55 }
 0x10e   : > { %v427_v61 = vrot.slane %v426_v59, 4  ;;  %v447_v62 = vadd.f32 %v446_v60, %v440_v58 }
 0x110   : > { %v428_v63 = vadd.f32 %v427_v61, %v426_v59  ;;  %v448_v0 = vrot.slane %v447_v62, 4 }
 0x112   : > { %v429_v2 = vrot.slane %v428_v63, 2  ;;  %v449_v3 = vadd.f32 %v448_v0, %v447_v62 }
 0x114   : > { %v430_v4 = vadd.f32 %v429_v2, %v428_v63  ;;  %v450_v5 = vrot.slane %v449_v3, 2 }
 0x116   : > { %v451_v7 = vadd.f32 %v450_v5, %v449_v3  ;;  %v431_v8 = vrot.slane %v430_v4, 1 }
 0x118   : > { %v452_v9 = vrot.slane %v451_v7, 1  ;;  %v432_v11 = vadd.f32 %v431_v8, %v430_v4 }
 0x11a   : > { %v453_v10 = vadd.f32 %v452_v9, %v451_v7 }
 0x11c   : > { %v458_v12 = vsel %vm457_vm0, %v453_v10, 0.0 }
 0x11d   : > { %v459_v13 = vsel %vm456_vm1, %v432_v11, %v458_v12 }
 0x11e   : > { %460 = vst [vmem:[%s282_s14] sm:$0xff] %v459_v13 }
 0x11f PF: > { %s16_s20 = sadd.s32 1, %s765_s20   ;;  %s905_s18 = smov %s761_s19 }
 0x120   : > { %p13_p5 = scmp.ge.s32.totalorder %s16_s20, 4   ;;  %s906_s19 = smov %s908_s1 }
 0x122   :  { %15 = sbr.rel (!%p13_p5) target bundleno = 2 (0x2), region = 78 }

// kernel: resblock_forward.25
= control target key start
LH: loop header
LB: loop body
LE: loop exit
PB: predicated region body
PF: predicated region fallthrough
CT: control target
= control target key end

     0   :  { %s837_s18 = smov 0   ;;  %s839_s19 = smov 0   ;;  %s955_s0 = inlined_call_operand.vmem [shape: f32[2,8,8,128], index: 0, kind: input, shape index: {}]   ;;  %s956_s1 = inlined_call_operand.vmem [shape: f32[1,128], index: 1, kind: input, shape index: {}]   ;;  %s957_s2 = inlined_call_operand.vmem [shape: f32[1,128], index: 2, kind: input, shape index: {}]   ;;  %s958_s3 = inlined_call_operand.vmem [shape: f32[128,128], index: 3, kind: input, shape index: {}]   ;;  %s959_s4 = inlined_call_operand.vmem [shape: f32[2,8,8,128], index: 4, kind: output, shape index: {0}]   ;;  %s960_s5 = inlined_call_operand.vmem [shape: f32[2,1,8,128], index: 5, kind: output, shape index: {1}]  }
   0x1   :  { %s841_s20 = smov 0  }
   0x2 LB: > { %s28_s21 = sadd.s32 1, %s801_s19  ;;  %p631_p0 = scmp.ge.s32.totalorder %s805_s20, 1  ;;  %s805_s20 = sphi %s841_s20, %s16_s20   ;;  %s801_s19 = sphi %s839_s19, %s962_s19   ;;  %s797_s18 = sphi %s837_s18, %s961_s18  }
   0x3   : > { %p30_p1 = scmp.ge.s32.totalorder %s28_s21, 2  ;;  %p213_p2 = scmp.lt.s32.totalorder %s805_s20, 3 }
   0x5   : > { %s964_s21 = smov (%p30_p1, %s28_s21), 0  ;;  %p214_p3 = pnand %p631_p0, %p213_p2 }
   0x6   : > { %v329_v0 = vld [vmem:[%s958_s3] sm:$0xff] (!%p214_p3)  ;;  %v330_v1 = vld [vmem:[%s958_s3 + $0x8] sm:$0xff] (!%p214_p3)  ;;  %v331_v2 = vld [vmem:[%s958_s3 + $0x10] sm:$0xff] (!%p214_p3)  ;;  %p257_p4 = scmp.lt.s32.totalorder (!%p214_p3), %s797_s18, 1 }
   0x7   : > { %217 = sbr.rel (%p214_p3) target bundleno = 287 (0x11f), region = 36  ;;  %v711_v3 = vpack.c.bf16 (!%p214_p3), %v330_v1, %v329_v0  ;;  %v332_v4 = vld [vmem:[%s958_s3 + $0x18] sm:$0xff] (!%p214_p3)  ;;  %v333_v6 = vld [vmem:[%s958_s3 + $0x20] sm:$0xff] (!%p214_p3)  ;;  %v334_v7 = vld [vmem:[%s958_s3 + $0x28] sm:$0xff] (!%p214_p3) }
   0x8   : > { %v715_v5 = vpack.c.bf16 (!%p214_p3), %v332_v4, %v331_v2  ;;  %v719_v8 = vpack.c.bf16 (!%p214_p3), %v334_v7, %v333_v6  ;;  %v335_v9 = vld [vmem:[%s958_s3 + $0x30] sm:$0xff] (!%p214_p3)  ;;  %v637_v10 = vld [vmem:[%s956_s1] ss:$0 sm:$0xff] (!%p214_p3)  ;;  %v336_v11 = vld [vmem:[%s958_s3 + $0x38] sm:$0xff] (!%p214_p3) }
   0x9   : > { %712 = vmatprep.subr.bf16.mxu0 (!%p214_p3), %v711_v3  ;;  %743 = vmatprep.subr.bf16.mxu1 (!%p214_p3), %v711_v3  ;;  %v896_v13 = vld [vmem:[%s957_s2] ss:$0 sm:$0xff] (!%p214_p3)  ;;  %v723_v17 = vpack.c.bf16 (!%p214_p3), %v336_v11, %v335_v9  ;;  %v338_v20 = vld [vmem:[%s958_s3 + $0x48] sm:$0xff] (!%p214_p3)  ;;  %v339_v25 = vld [vmem:[%s958_s3 + $0x50] sm:$0xff] (!%p214_p3) }
   0xa   : > { %714 = vmatpush3.bf16.msra.mxu0 (!%p214_p3), %v711_v3  ;;  %751 = vmatpush3.bf16.msra.mxu1 (!%p214_p3), %v711_v3  ;;  %v337_v19 = vld [vmem:[%s958_s3 + $0x40] sm:$0xff] (!%p214_p3)  ;;  %v340_v26 = vld [vmem:[%s958_s3 + $0x58] sm:$0xff] (!%p214_p3)  ;;  %v342_v29 = vld [vmem:[%s958_s3 + $0x68] sm:$0xff] (!%p214_p3) }
   0xb   : > { %716 = vmatprep.subr.bf16.mxu0 (!%p214_p3), %v715_v5  ;;  %744 = vmatprep.subr.bf16.mxu1 (!%p214_p3), %v715_v5  ;;  %v727_v24 = vpack.c.bf16 (!%p214_p3), %v338_v20, %v337_v19  ;;  %v731_v27 = vpack.c.bf16 (!%p214_p3), %v340_v26, %v339_v25  ;;  %v341_v28 = vld [vmem:[%s958_s3 + $0x60] sm:$0xff] (!%p214_p3)  ;;  %v343_v35 = vld [vmem:[%s958_s3 + $0x70] sm:$0xff] (!%p214_p3)  ;;  %v344_v36 = vld [vmem:[%s958_s3 + $0x78] sm:$0xff] (!%p214_p3) }
   0xc   : > { %v735_v32 = vpack.c.bf16 (!%p214_p3), %v342_v29, %v341_v28  ;;  %v739_v43 = vpack.c.bf16 (!%p214_p3), %v344_v36, %v343_v35 }
   0xe   : > { %s966_s18 = smov (!%p257_p4, %s797_s18), 1  ;;  %718 = vmatpush3.bf16.msra.mxu0 %v715_v5  ;;  %752 = vmatpush3.bf16.msra.mxu1 %v715_v5 }
   0xf   : > { %s641_s9 = sshll.u32 %s966_s18, 6  ;;  %720 = vmatprep.subr.bf16.mxu0 %v719_v8  ;;  %745 = vmatprep.subr.bf16.mxu1 %v719_v8 }
  0x10   : > { %s884_s14 = scalar_lea.vmem %s955_s0, %s641_s9  ;;  %s274_s23 = scalar_lea.vmem %s959_s4, %s641_s9 }
  0x11   : > { %v283_v12 = vld [vmem:[%s884_s14] sm:$0xff]  ;;  %v284_v30 = vld [vmem:[%s884_s14 + $0x8] sm:$0xff]  ;;  %v285_v33 = vld [vmem:[%s884_s14 + $0x10] sm:$0xff]  ;;  %s636_s9 = sshll.u32 %s966_s18, 3 }
  0x12   : > { %v298_v14 = vmul.f32 %v637_v10, %v283_v12  ;;  %v287_v15 = vld [vmem:[%s884_s14 + $0x20] sm:$0xff]  ;;  %722 = vmatpush3.bf16.msra.mxu0 %v719_v8  ;;  %753 = vmatpush3.bf16.msra.mxu1 %v719_v8  ;;  %v288_v31 = vld [vmem:[%s884_s14 + $0x28] sm:$0xff]  ;;  %v289_v34 = vld [vmem:[%s884_s14 + $0x30] sm:$0xff]  ;;  %v299_v37 = vmul.f32 %v637_v10, %v284_v30  ;;  %v300_v39 = vmul.f32 %v637_v10, %v285_v33  ;;  %s282_s26 = scalar_lea.vmem %s960_s5, %s636_s9 }
  0x13   : > { %v302_v16 = vmul.f32 %v637_v10, %v287_v15  ;;  %724 = vmatprep.subr.bf16.mxu0 %v723_v17  ;;  %746 = vmatprep.subr.bf16.mxu1 %v723_v17  ;;  %v303_v38 = vmul.f32 %v637_v10, %v288_v31  ;;  %v286_v40 = vld [vmem:[%s884_s14 + $0x18] sm:$0xff]  ;;  %v304_v41 = vmul.f32 %v637_v10, %v289_v34 }
  0x14   : > { %v313_v18 = vadd.f32 %v896_v13, %v298_v14  ;;  %v290_v42 = vld [vmem:[%s884_s14 + $0x38] sm:$0xff]  ;;  %v314_v44 = vadd.f32 %v896_v13, %v299_v37  ;;  %v301_v45 = vmul.f32 %v637_v10, %v286_v40  ;;  %v315_v48 = vadd.f32 %v896_v13, %v300_v39 }
  0x15   : > { %v317_v21 = vadd.f32 %v896_v13, %v302_v16  ;;  %v318_v46 = vadd.f32 %v896_v13, %v303_v38  ;;  %v305_v47 = vmul.f32 %v637_v10, %v290_v42  ;;  %v319_v49 = vadd.f32 %v896_v13, %v304_v41 }
  0x16   : > { %v321_v22 = vmax.f32 %v313_v18, 0.0  ;;  %726 = vmatpush3.bf16.msra.mxu0 %v723_v17  ;;  %754 = vmatpush3.bf16.msra.mxu1 %v723_v17  ;;  %v322_v50 = vmax.f32 %v314_v44, 0.0  ;;  %v316_v51 = vadd.f32 %v896_v13, %v301_v45  ;;  %v323_v54 = vmax.f32 %v315_v48, 0.0 }
  0x17   : > { %v325_v23 = vmax.f32 %v317_v21, 0.0  ;;  %728 = vmatprep.subr.bf16.mxu0 %v727_v24  ;;  %747 = vmatprep.subr.bf16.mxu1 %v727_v24  ;;  %v326_v52 = vmax.f32 %v318_v46, 0.0  ;;  %v320_v53 = vadd.f32 %v896_v13, %v305_v47  ;;  %v327_v55 = vmax.f32 %v319_v49, 0.0 }
  0x18   : > { %699 = vmatprep.mubr.f32.mxu0 %v321_v22  ;;  %v324_v56 = vmax.f32 %v316_v51, 0.0 }
  0x19   : > { %705 = vmatprep.mubr.f32.mxu1 %v325_v23  ;;  %v328_v57 = vmax.f32 %v320_v53, 0.0 }
  0x1a   : > { %730 = vmatpush3.bf16.msra.mxu0 %v727_v24  ;;  %755 = vmatpush3.bf16.msra.mxu1 %v727_v24 }
  0x1b   : > { %732 = vmatprep.subr.bf16.mxu0 %v731_v27  ;;  %748 = vmatprep.subr.bf16.mxu1 %v731_v27 }
  0x1e   : > { %734 = vmatpush3.bf16.msra.mxu0 %v731_v27  ;;  %756 = vmatpush3.bf16.msra.mxu1 %v731_v27  ;;  %v492_v27 = vlaneseq }
  0x1f   : > { %736 = vmatprep.subr.bf16.mxu0 %v735_v32  ;;  %749 = vmatprep.subr.bf16.mxu1 %v735_v32 }
  0x22   : > { %738 = vmatpush3.bf16.msra.mxu0 %v735_v32  ;;  %757 = vmatpush3.bf16.msra.mxu1 %v735_v32  ;;  %v493_v32 = vshrl.u32 %v492_v27, 7 }
  0x23   : > { %740 = vmatprep.subr.bf16.mxu0 %v739_v43  ;;  %750 = vmatprep.subr.bf16.mxu1 %v739_v43 }
  0x24   : > { %vm495_vm0 = vcmp.eq.s32.totalorder %v493_v32, 1  ;;  %vm494_vm1 = vcmp.eq.s32.totalorder %v493_v32, 0 }
  0x26   : > { %742 = vmatpush3.bf16.msra.mxu0 %v739_v43  ;;  %758 = vmatpush3.bf16.msra.mxu1 %v739_v43 }
  0x29   : > { %700 = vmatmul.mubr.f32.vlgmr.msra.gmra.mrb[0].mxu0 %v322_v50  ;;  %706 = vmatmul.mubr.f32.vlgmr.msra.gmra.mrb[0].mxu1 %v326_v52 }
  0x2a   : > { %702 = vmatprep.mubr.f32.mxu0 %v323_v54  ;;  %708 = vmatprep.mubr.f32.mxu1 %v327_v55 }
  0x2d   : > { %703 = vmatmul.mubr.f32.gmra.mrb[2].mxu0 %v324_v56  ;;  %709 = vmatmul.mubr.f32.gmra.mrb[2].mxu1 %v328_v57 }
  0xfc   : > { %v701_v58 = vpop.f32.mrb[0].mxu0  ;;  %v707_v59 = vpop.f32.mrb[0].mxu1 }
  0xfd   : > { %451 = vst [vmem:[%s274_s23 + $0x8] sm:$0xff] %v701_v58  ;;  %v472_v60 = vmul.f32 %v701_v58, %v701_v58  ;;  %v411_v61 = vpop.f32.mrb[1].mxu0  ;;  %455 = vst [vmem:[%s274_s23 + $0x28] sm:$0xff] %v707_v59  ;;  %v431_v62 = vpop.f32.mrb[1].mxu1  ;;  %v476_v14 = vmul.f32 %v707_v59, %v707_v59 }
  0xfe   : > { %450 = vst [vmem:[%s274_s23] sm:$0xff] %v411_v61  ;;  %v458_v63 = vadd.f32 %v701_v58, %v411_v61  ;;  %v471_v0 = vmul.f32 %v411_v61, %v411_v61  ;;  %454 = vst [vmem:[%s274_s23 + $0x20] sm:$0xff] %v431_v62  ;;  %v475_v11 = vmul.f32 %v431_v62, %v431_v62 }
 0x100   : > { %v479_v1 = vadd.f32 %v472_v60, %v471_v0  ;;  %v704_v2 = vpop.f32.mrb[2].mxu0  ;;  %v710_v3 = vpop.f32.mrb[2].mxu1 }
 0x101   : > { %453 = vst [vmem:[%s274_s23 + $0x18] sm:$0xff] %v704_v2  ;;  %v421_v4 = vpop.f32.mrb[3].mxu0  ;;  %457 = vst [vmem:[%s274_s23 + $0x38] sm:$0xff] %v710_v3  ;;  %v441_v5 = vpop.f32.mrb[3].mxu1  ;;  %v474_v8 = vmul.f32 %v704_v2, %v704_v2  ;;  %v478_v20 = vmul.f32 %v710_v3, %v710_v3 }
 0x102   : > { %452 = vst [vmem:[%s274_s23 + $0x10] sm:$0xff] %v421_v4  ;;  %v459_v6 = vadd.f32 %v458_v63, %v421_v4  ;;  %v473_v7 = vmul.f32 %v421_v4, %v421_v4  ;;  %456 = vst [vmem:[%s274_s23 + $0x30] sm:$0xff] %v441_v5  ;;  %v477_v17 = vmul.f32 %v441_v5, %v441_v5 }
 0x104   : > { %v460_v9 = vadd.f32 %v704_v2, %v459_v6  ;;  %v480_v10 = vadd.f32 %v479_v1, %v473_v7 }
 0x106   : > { %v481_v12 = vadd.f32 %v480_v10, %v474_v8  ;;  %v461_v13 = vadd.f32 %v460_v9, %v431_v62 }
 0x108   : > { %v482_v15 = vadd.f32 %v481_v12, %v475_v11  ;;  %v462_v16 = vadd.f32 %v707_v59, %v461_v13 }
 0x10a   : > { %v463_v18 = vadd.f32 %v462_v16, %v441_v5  ;;  %v483_v19 = vadd.f32 %v482_v15, %v476_v14 }
 0x10c   : > { %v464_v21 = vadd.f32 %v710_v3, %v463_v18  ;;  %v484_v22 = vadd.f32 %v483_v19, %v477_v17 }
 0x10e   : > { %v465_v23 = vrot.slane %v464_v21, 4  ;;  %v485_v24 = vadd.f32 %v484_v22, %v478_v20 }
 0x110   : > { %v466_v25 = vadd.f32 %v465_v23, %v464_v21  ;;  %v486_v26 = vrot.slane %v485_v24, 4 }
 0x112   : > { %v467_v28 = vrot.slane %v466_v25, 2  ;;  %v487_v29 = vadd.f32 %v486_v26, %v485_v24 }
 0x114   : > { %v468_v30 = vadd.f32 %v467_v28, %v466_v25  ;;  %v488_v31 = vrot.slane %v487_v29, 2 }
 0x116   : > { %v489_v33 = vadd.f32 %v488_v31, %v487_v29  ;;  %v469_v34 = vrot.slane %v468_v30, 1 }
 0x118   : > { %v490_v35 = vrot.slane %v489_v33, 1  ;;  %v470_v37 = vadd.f32 %v469_v34, %v468_v30 }
 0x11a   : > { %v491_v36 = vadd.f32 %v490_v35, %v489_v33 }
 0x11c   : > { %v496_v38 = vsel %vm495_vm0, %v491_v36, 0.0 }
 0x11d   : > { %v497_v39 = vsel %vm494_vm1, %v470_v37, %v496_v38 }
 0x11e   : > { %498 = vst [vmem:[%s282_s26] sm:$0xff] %v497_v39 }
 0x11f PF: > { %s16_s20 = sadd.s32 1, %s805_s20   ;;  %s961_s18 = smov %s801_s19 }
 0x120   : > { %p13_p5 = scmp.ge.s32.totalorder %s16_s20, 4   ;;  %s962_s19 = smov %s964_s21 }
 0x122   :  { %15 = sbr.rel (!%p13_p5) target bundleno = 2 (0x2), region = 78 }

// kernel: resblock_forward.27
= control target key start
LH: loop header
LB: loop body
LE: loop exit
PB: predicated region body
PF: predicated region fallthrough
CT: control target
= control target key end

     0   :  { %s635_s21 = smov 0   ;;  %s637_s22 = smov 0   ;;  %s738_s0 = inlined_call_operand.vmem [shape: f32[2,8,8,128], index: 0, kind: input, shape index: {}]   ;;  %s739_s1 = inlined_call_operand.vmem [shape: f32[2,8,8,128], index: 1, kind: input, shape index: {}]   ;;  %s740_s2 = inlined_call_operand.vmem [shape: f32[1,128], index: 2, kind: input, shape index: {}]   ;;  %s741_s3 = inlined_call_operand.vmem [shape: f32[1,128], index: 3, kind: input, shape index: {}]   ;;  %s742_s4 = inlined_call_operand.vmem [shape: f32[1,128], index: 4, kind: input, shape index: {}]   ;;  %s743_s5 = inlined_call_operand.vmem [shape: f32[1,128], index: 5, kind: input, shape index: {}]   ;;  %s744_s6 = inlined_call_operand.vmem [shape: f32[2,8,8,128], index: 6, kind: output, shape index: {}]  }
   0x1   :  { %s639_s23 = smov 0  }
   0x2 LB: > { %s28_s24 = sadd.s32 1, %s594_s22  ;;  %p536_p0 = scmp.ge.s32.totalorder %s598_s23, 1  ;;  %s598_s23 = sphi %s639_s23, %s16_s23   ;;  %s594_s22 = sphi %s637_s22, %s746_s22   ;;  %s590_s21 = sphi %s635_s21, %s745_s21  }
   0x3   : > { %p30_p1 = scmp.ge.s32.totalorder %s28_s24, 2  ;;  %p250_p2 = scmp.lt.s32.totalorder %s598_s23, 3 }
   0x5   : > { %s748_s24 = smov (%p30_p1, %s28_s24), 0  ;;  %p251_p3 = pnand %p536_p0, %p250_p2 }
   0x6   : > { %p298_p4 = scmp.lt.s32.totalorder (!%p251_p3), %s590_s21, 1  ;;  %v543_v0 = vld [vmem:[%s740_s2] ss:$0 sm:$0xff] (!%p251_p3) }
   0x7   : > { %254 = sbr.rel (%p251_p3) target bundleno = 36 (0x24), region = 44  ;;  %v545_v1 = vld [vmem:[%s742_s4] ss:$0 sm:$0xff] (!%p251_p3) }
   0x8   : > { %v676_v2 = vld [vmem:[%s741_s3] ss:$0 sm:$0xff] (!%p251_p3) }
   0x9   : > { %v681_v3 = vld [vmem:[%s743_s5] ss:$0 sm:$0xff] (!%p251_p3) }
   0xe   : > { %s750_s21 = smov (!%p298_p4, %s590_s21), 1 }
   0xf   : > { %s653_s25 = sshll.u32 %s750_s21, 6 }
  0x10   : > { %s665_s8 = scalar_lea.vmem %s738_s0, %s653_s25  ;;  %s671_s11 = scalar_lea.vmem %s739_s1, %s653_s25 }
  0x11   : > { %v327_v4 = vld [vmem:[%s665_s8] sm:$0xff]  ;;  %v328_v6 = vld [vmem:[%s665_s8 + $0x8] sm:$0xff]  ;;  %v329_v11 = vld [vmem:[%s665_s8 + $0x10] sm:$0xff]  ;;  %s706_s18 = scalar_lea.vmem %s744_s6, %s653_s25 }
  0x12   : > { %v365_v5 = vld [vmem:[%s671_s11] sm:$0xff]  ;;  %v342_v7 = vmul.f32 %v543_v0, %v327_v4  ;;  %v343_v9 = vmul.f32 %v543_v0, %v328_v6  ;;  %v366_v10 = vld [vmem:[%s671_s11 + $0x8] sm:$0xff]  ;;  %v367_v12 = vld [vmem:[%s671_s11 + $0x10] sm:$0xff]  ;;  %v344_v14 = vmul.f32 %v543_v0, %v329_v11 }
  0x13   : > { %v380_v8 = vmul.f32 %v545_v1, %v365_v5  ;;  %v381_v13 = vmul.f32 %v545_v1, %v366_v10  ;;  %v382_v15 = vmul.f32 %v545_v1, %v367_v12  ;;  %v330_v16 = vld [vmem:[%s665_s8 + $0x18] sm:$0xff]  ;;  %v331_v18 = vld [vmem:[%s665_s8 + $0x20] sm:$0xff]  ;;  %v332_v24 = vld [vmem:[%s665_s8 + $0x28] sm:$0xff] }
  0x14   : > { %v368_v17 = vld [vmem:[%s671_s11 + $0x18] sm:$0xff]  ;;  %v357_v19 = vadd.f32 %v676_v2, %v342_v7  ;;  %v358_v21 = vadd.f32 %v676_v2, %v343_v9  ;;  %v345_v22 = vmul.f32 %v543_v0, %v330_v16  ;;  %v369_v23 = vld [vmem:[%s671_s11 + $0x20] sm:$0xff]  ;;  %v359_v26 = vadd.f32 %v676_v2, %v344_v14  ;;  %v370_v29 = vld [vmem:[%s671_s11 + $0x28] sm:$0xff] }
  0x15   : > { %v395_v20 = vadd.f32 %v681_v3, %v380_v8  ;;  %v396_v25 = vadd.f32 %v681_v3, %v381_v13  ;;  %v397_v27 = vadd.f32 %v681_v3, %v382_v15  ;;  %v383_v28 = vmul.f32 %v545_v1, %v368_v17  ;;  %v333_v38 = vld [vmem:[%s665_s8 + $0x30] sm:$0xff]  ;;  %v334_v44 = vld [vmem:[%s665_s8 + $0x38] sm:$0xff] }
  0x16   : > { %v360_v31 = vadd.f32 %v676_v2, %v345_v22  ;;  %v346_v32 = vmul.f32 %v543_v0, %v331_v18  ;;  %v384_v33 = vmul.f32 %v545_v1, %v369_v23  ;;  %v347_v37 = vmul.f32 %v543_v0, %v332_v24  ;;  %v371_v39 = vld [vmem:[%s671_s11 + $0x30] sm:$0xff]  ;;  %v372_v45 = vld [vmem:[%s671_s11 + $0x38] sm:$0xff] }
  0x17   : > { %v403_v30 = vadd.f32 %v395_v20, %v357_v19  ;;  %v404_v34 = vadd.f32 %v396_v25, %v358_v21  ;;  %v405_v35 = vadd.f32 %v397_v27, %v359_v26  ;;  %v398_v36 = vadd.f32 %v681_v3, %v383_v28 }
  0x18   : > { %v361_v41 = vadd.f32 %v676_v2, %v346_v32  ;;  %v399_v42 = vadd.f32 %v681_v3, %v384_v33  ;;  %v385_v43 = vmul.f32 %v545_v1, %v370_v29  ;;  %v362_v49 = vadd.f32 %v676_v2, %v347_v37 }
  0x19   : > { %v411_v40 = vmax.f32 %v403_v30, 0.0  ;;  %v412_v46 = vmax.f32 %v404_v34, 0.0  ;;  %v413_v47 = vmax.f32 %v405_v35, 0.0  ;;  %v406_v48 = vadd.f32 %v398_v36, %v360_v31 }
  0x1a   : > { %v407_v50 = vadd.f32 %v399_v42, %v361_v41  ;;  %v400_v51 = vadd.f32 %v681_v3, %v385_v43  ;;  %v348_v52 = vmul.f32 %v543_v0, %v333_v38  ;;  %v386_v53 = vmul.f32 %v545_v1, %v371_v39 }
  0x1b   : > { %419 = vst [vmem:[%s706_s18] sm:$0xff] %v411_v40  ;;  %420 = vst [vmem:[%s706_s18 + $0x8] sm:$0xff] %v412_v46  ;;  %v414_v54 = vmax.f32 %v406_v48, 0.0  ;;  %v349_v55 = vmul.f32 %v543_v0, %v334_v44  ;;  %v387_v56 = vmul.f32 %v545_v1, %v372_v45 }
  0x1c   : > { %421 = vst [vmem:[%s706_s18 + $0x10] sm:$0xff] %v413_v47  ;;  %v415_v57 = vmax.f32 %v407_v50, 0.0  ;;  %v408_v58 = vadd.f32 %v400_v51, %v362_v49  ;;  %v363_v59 = vadd.f32 %v676_v2, %v348_v52  ;;  %v401_v60 = vadd.f32 %v681_v3, %v386_v53 }
  0x1d   : > { %422 = vst [vmem:[%s706_s18 + $0x18] sm:$0xff] %v414_v54  ;;  %v364_v61 = vadd.f32 %v676_v2, %v349_v55  ;;  %v402_v62 = vadd.f32 %v681_v3, %v387_v56 }
  0x1e   : > { %423 = vst [vmem:[%s706_s18 + $0x20] sm:$0xff] %v415_v57  ;;  %v416_v63 = vmax.f32 %v408_v58, 0.0  ;;  %v409_v4 = vadd.f32 %v401_v60, %v363_v59 }
  0x1f   : > { %v410_v5 = vadd.f32 %v402_v62, %v364_v61 }
  0x20   : > { %424 = vst [vmem:[%s706_s18 + $0x28] sm:$0xff] %v416_v63  ;;  %v417_v0 = vmax.f32 %v409_v4, 0.0 }
  0x21   : > { %v418_v6 = vmax.f32 %v410_v5, 0.0 }
  0x22   : > { %425 = vst [vmem:[%s706_s18 + $0x30] sm:$0xff] %v417_v0 }
  0x23   : > { %426 = vst [vmem:[%s706_s18 + $0x38] sm:$0xff] %v418_v6 }
  0x24 PF: > { %s16_s23 = sadd.s32 1, %s598_s23   ;;  %s745_s21 = smov %s594_s22 }
  0x25   : > { %p13_p5 = scmp.ge.s32.totalorder %s16_s23, 4   ;;  %s746_s22 = smov %s748_s24 }
  0x27   :  { %15 = sbr.rel (!%p13_p5) target bundleno = 2 (0x2), region = 77 }

// kernel: resblock_forward.24
= control target key start
LH: loop header
LB: loop body
LE: loop exit
PB: predicated region body
PF: predicated region fallthrough
CT: control target
= control target key end

     0   :  { %11 = vsyncpa [#allocation4], 0  ;;  %s6588_s0 = inlined_call_operand.vmem [shape: f32[2,16,16,128], index: 0, kind: input, shape index: {}]   ;;  %s6589_s1 = inlined_call_operand.vmem [shape: f32[1,128], index: 1, kind: input, shape index: {}]   ;;  %s6590_s2 = inlined_call_operand.vmem [shape: f32[1,128], index: 2, kind: input, shape index: {}]   ;;  %s6591_s3 = inlined_call_operand.vmem [shape: f32[1152,128], index: 3, kind: input, shape index: {}]   ;;  %s6592_s4 = inlined_call_operand.vmem [shape: f32[2,16,16,128], index: 4, kind: output, shape index: {0}]   ;;  %s6593_s5 = inlined_call_operand.hbm [shape: f32[2,1,8,128], index: 5, kind: output, shape index: {1}]  }
   0x1   :  { %13 = vsyncpa [#allocation4 + $0x1], 0  ;;  %s5256_s18 = smov 0   ;;  %s5258_s19 = smov 0  }
   0x2   :  { %s5260_s20 = smov 0   ;;  %s5262_s21 = smov 0  }
   0x3 LB: > { %s5277_s22 = sadd.s32 4294967295, %s5222_s21   ;;  %s3387_s23 = sadd.s32 4294967294, %s5222_s21   ;;  %s5222_s21 = sphi %s5262_s21, %s6656_s21   ;;  %s5218_s20 = sphi %s5260_s20, %s6655_s20   ;;  %s5214_s19 = sphi %s5258_s19, %s6654_s19   ;;  %s5210_s18 = sphi %s5256_s18, %s6653_s18  }
   0x4   : > { %s5281_s24 = sadd.s32 1, %s5222_s21   ;;  %s141_s25 = sadd.s32 1, %s5218_s20 }
   0x5   : > { %s138_s26 = ssub.s32 %s5222_s21, %s5281_s24  ;;  %p151_p0 = scmp.ne.s32.totalorder %s5218_s20, %s5214_s19 }
   0x6   : > { %p139_p1 = scmp.eq.s32.totalorder %s138_s26, 0  ;;  %p152_p2 = scmp.eq.s32.totalorder %s5277_s22, 1 }
   0x7   : > { %p157_p3 = scmp.ne.s32.totalorder %s5214_s19, %s5210_s18  ;;  %p158_p4 = scmp.eq.s32.totalorder %s3387_s23, 1 }
   0x8   : > { %s5292_s27 = scalar_select %p139_p1, %s5218_s20, %s141_s25  }
   0x9   : > { %p5294_p5 = por %p152_p2, %p151_p0  ;;  %p5298_p6 = por %p158_p4, %p157_p3 }
   0xa   : > { %p3390_p7 = scmp.ge.s32.totalorder %s5222_s21, 1  ;;  %p193_p8 = scmp.lt.s32.totalorder %s5222_s21, 3 }
   0xc   : > { %p194_p9 = pnand %p3390_p7, %p193_p8 }
   0xe   : > { %197 = sbr.rel (%p194_p9) target bundleno = 591 (0x24f), region = 36 }
  0x15   : > { %v534_v0 = vld [vmem:[%s6591_s3 + $0x80] sm:$0xff]  ;;  %v535_v1 = vld [vmem:[%s6591_s3 + $0x88] sm:$0xff]  ;;  %p226_p10 = scmp.lt.s32.totalorder %s5277_s22, 1  ;;  %v536_v5 = vld [vmem:[%s6591_s3 + $0x90] sm:$0xff]  ;;  %v5224_v7 = vmov 0.0   ;;  %s3399_s16 = sshll.u32 %s5277_s22, 7 }
  0x16   : > { %v1642_v2 = vld [vmem:[%s6591_s3 + $0x200] sm:$0xff]  ;;  %v4556_v3 = vpack.c.bf16 %v535_v1, %v534_v0  ;;  %v1643_v4 = vld [vmem:[%s6591_s3 + $0x208] sm:$0xff]  ;;  %v537_v6 = vld [vmem:[%s6591_s3 + $0x98] sm:$0xff]  ;;  %411 = vst [vmem:[#allocation2] sm:$0xff] %v5224_v7  ;;  %s5225_s6 = smov [#allocation3]  }
  0x17   : > { %412 = vst [vmem:[#allocation2 + $0x8] sm:$0xff] %v5224_v7  ;;  %413 = vst [vmem:[#allocation2 + $0x10] sm:$0x3] %v5224_v7  ;;  %v5361_v8 = vpack.c.bf16 %v1643_v4, %v1642_v2  ;;  %v4560_v9 = vpack.c.bf16 %v537_v6, %v536_v5  ;;  %v1644_v10 = vld [vmem:[%s6591_s3 + $0x210] sm:$0xff]  ;;  %v1645_v11 = vld [vmem:[%s6591_s3 + $0x218] sm:$0xff]  ;;  %s5376_s7 = scalar_select %p226_p10, %s5277_s22, 1 }
  0x18   : > { %415 = vst [vmem:[#allocation2 + $0x198] sm:$0xff] %v5224_v7  ;;  %416 = vst [vmem:[#allocation2 + $0x1a0] sm:$0xff] %v5224_v7  ;;  %v538_v12 = vld [vmem:[%s6591_s3 + $0xa0] sm:$0xff]  ;;  %4557 = vmatprep.subr.bf16.mxu1 %v4556_v3  ;;  %v5381_v13 = vpack.c.bf16 %v1645_v11, %v1644_v10  ;;  %v539_v14 = vld [vmem:[%s6591_s3 + $0xa8] sm:$0xff]  ;;  %s5164_s8 = sshll.u32 %s5225_s6, 4  ;;  %s5165_s8 = int_to_ptr.vmem [resolvable:$false] %s5164_s8 }
  0x19   : > { %417 = vst [vmem:[#allocation2 + $0x1a8] sm:$0x3] %v5224_v7  ;;  %419 = vst [vmem:[#allocation2 + $0x18] sm:$0x1] %v5224_v7  ;;  %v1646_v15 = vld [vmem:[%s6591_s3 + $0x220] sm:$0xff]  ;;  %v1647_v16 = vld [vmem:[%s6591_s3 + $0x228] sm:$0xff]  ;;  %4685 = vmatprep.subr.bf16.mxu0 %v5361_v8  ;;  %4559 = vmatpush3.bf16.msra.mxu1 %v4556_v3  ;;  %v4564_v17 = vpack.c.bf16 %v539_v14, %v538_v12 }
  0x1a   : > { %420 = vst [vmem:[#allocation2 + $0x30] sm:$0x1] %v5224_v7  ;;  %421 = vst [vmem:[#allocation2 + $0x48] sm:$0x1] %v5224_v7  ;;  %4687 = vmatpush3.bf16.msra.mxu0 %v5361_v8  ;;  %4561 = vmatprep.subr.bf16.mxu1 %v4560_v9  ;;  %s3402_s14 = sshll.u32 %s5376_s7, 8  ;;  %v5396_v18 = vpack.c.bf16 %v1647_v16, %v1646_v15  ;;  %v540_v19 = vld [vmem:[%s6591_s3 + $0xb0] sm:$0xff] }
  0x1b   : > { %422 = vst [vmem:[#allocation2 + $0x60] sm:$0x1] %v5224_v7  ;;  %423 = vst [vmem:[#allocation2 + $0x78] sm:$0x1] %v5224_v7  ;;  %4689 = vmatprep.subr.bf16.mxu0 %v5381_v13  ;;  %v541_v20 = vld [vmem:[%s6591_s3 + $0xb8] sm:$0xff]  ;;  %v1648_v21 = vld [vmem:[%s6591_s3 + $0x230] sm:$0xff]  ;;  %s5415_s10 = scalar_lea.vmem %s6588_s0, %s3402_s14  ;;  %s6502_s15 = scalar_lea.vmem %s6592_s4, %s3402_s14 }
  0x1c   : > { %424 = vst [vmem:[#allocation2 + $0x90] sm:$0x1] %v5224_v7  ;;  %425 = vst [vmem:[#allocation2 + $0xa8] sm:$0x1] %v5224_v7  ;;  %v1649_v22 = vld [vmem:[%s6591_s3 + $0x238] sm:$0xff]  ;;  %v4568_v23 = vpack.c.bf16 %v541_v20, %v540_v19  ;;  %v542_v24 = vld [vmem:[%s6591_s3 + $0xc0] sm:$0xff] }
  0x1d   : > { %426 = vst [vmem:[#allocation2 + $0xc0] sm:$0x1] %v5224_v7  ;;  %427 = vst [vmem:[#allocation2 + $0xd8] sm:$0x1] %v5224_v7  ;;  %4563 = vmatpush3.bf16.msra.mxu1 %v4560_v9  ;;  %v543_v25 = vld [vmem:[%s6591_s3 + $0xc8] sm:$0xff]  ;;  %v5425_v26 = vpack.c.bf16 %v1649_v22, %v1648_v21  ;;  %v1650_v27 = vld [vmem:[%s6591_s3 + $0x240] sm:$0xff] }
  0x1e   : > { %428 = vst [vmem:[#allocation2 + $0xf0] sm:$0x1] %v5224_v7  ;;  %429 = vst [vmem:[#allocation2 + $0x108] sm:$0x1] %v5224_v7  ;;  %4691 = vmatpush3.bf16.msra.mxu0 %v5381_v13  ;;  %4565 = vmatprep.subr.bf16.mxu1 %v4564_v17  ;;  %v1651_v28 = vld [vmem:[%s6591_s3 + $0x248] sm:$0xff]  ;;  %v236_v30 = vld [vmem:[%s5415_s10] sm:$0xff]  ;;  %v4572_v34 = vpack.c.bf16 %v543_v25, %v542_v24 }
  0x1f   : > { %430 = vst [vmem:[#allocation2 + $0x120] sm:$0x1] %v5224_v7  ;;  %431 = vst [vmem:[#allocation2 + $0x138] sm:$0x1] %v5224_v7  ;;  %4693 = vmatprep.subr.bf16.mxu0 %v5396_v18  ;;  %v502_v29 = vld [vmem:[#allocation2 + $0x1] sm:$0xff]  ;;  %v544_v35 = vld [vmem:[%s6591_s3 + $0xd0] sm:$0xff]  ;;  %v5451_v37 = vpack.c.bf16 %v1651_v28, %v1650_v27 }
  0x20   : > { %432 = vst [vmem:[#allocation2 + $0x150] sm:$0x1] %v5224_v7  ;;  %433 = vst [vmem:[#allocation2 + $0x168] sm:$0x1] %v5224_v7  ;;  %3868 = vmatprep.mubr.f32.mxu1 %v502_v29  ;;  %v5437_v31 = vld [vmem:[%s6589_s1] ss:$0 sm:$0xff] }
  0x21   : > { %434 = vst [vmem:[#allocation2 + $0x180] sm:$0x1] %v5224_v7  ;;  %437 = vst [vmem:[#allocation2 + $0x29] sm:$0x1] %v5224_v7  ;;  %v5442_v32 = vld [vmem:[%s6590_s2] ss:$0 sm:$0xff]  ;;  %4567 = vmatpush3.bf16.msra.mxu1 %v4564_v17  ;;  %v275_v33 = vmul.f32 %v5437_v31, %v236_v30 }
  0x22   : > { %438 = vst [vmem:[#allocation2 + $0x41] sm:$0x1] %v5224_v7  ;;  %439 = vst [vmem:[#allocation2 + $0x59] sm:$0x1] %v5224_v7  ;;  %4695 = vmatpush3.bf16.msra.mxu0 %v5396_v18  ;;  %4569 = vmatprep.subr.bf16.mxu1 %v4568_v23  ;;  %v237_v36 = vld [vmem:[%s5415_s10 + $0x8] sm:$0xff]  ;;  %v545_v38 = vld [vmem:[%s6591_s3 + $0xd8] sm:$0xff] }
  0x23   : > { %440 = vst [vmem:[#allocation2 + $0x71] sm:$0x1] %v5224_v7  ;;  %441 = vst [vmem:[#allocation2 + $0x89] sm:$0x1] %v5224_v7  ;;  %4697 = vmatprep.subr.bf16.mxu0 %v5425_v26  ;;  %v314_v39 = vadd.f32 %v5442_v32, %v275_v33  ;;  %v276_v40 = vmul.f32 %v5437_v31, %v237_v36  ;;  %v238_v41 = vld [vmem:[%s5415_s10 + $0x10] sm:$0xff]  ;;  %v239_v42 = vld [vmem:[%s5415_s10 + $0x18] sm:$0xff]  ;;  %v4576_v52 = vpack.c.bf16 %v545_v38, %v544_v35 }
  0x24   : > { %442 = vst [vmem:[#allocation2 + $0xa1] sm:$0x1] %v5224_v7  ;;  %443 = vst [vmem:[#allocation2 + $0xb9] sm:$0x1] %v5224_v7  ;;  %v1652_v43 = vld [vmem:[%s6591_s3 + $0x250] sm:$0xff]  ;;  %v1653_v44 = vld [vmem:[%s6591_s3 + $0x258] sm:$0xff]  ;;  %v277_v45 = vmul.f32 %v5437_v31, %v238_v41  ;;  %v278_v46 = vmul.f32 %v5437_v31, %v239_v42 }
  0x25   : > { %444 = vst [vmem:[#allocation2 + $0xd1] sm:$0x1] %v5224_v7  ;;  %445 = vst [vmem:[#allocation2 + $0xe9] sm:$0x1] %v5224_v7  ;;  %v240_v47 = vld [vmem:[%s5415_s10 + $0x20] sm:$0xff]  ;;  %4571 = vmatpush3.bf16.msra.mxu1 %v4568_v23  ;;  %v5469_v48 = vmax.f32 %v314_v39, 0.0  ;;  %v315_v49 = vadd.f32 %v5442_v32, %v276_v40  ;;  %v5480_v57 = vpack.c.bf16 %v1653_v44, %v1652_v43 }
  0x26   : > { %446 = vst [vmem:[#allocation2 + $0x101] sm:$0x1] %v5224_v7  ;;  %447 = vst [vmem:[#allocation2 + $0x119] sm:$0x1] %v5224_v7  ;;  %v279_v50 = vmul.f32 %v5437_v31, %v240_v47  ;;  %v241_v51 = vld [vmem:[%s5415_s10 + $0x28] sm:$0xff]  ;;  %4699 = vmatpush3.bf16.msra.mxu0 %v5425_v26  ;;  %4573 = vmatprep.subr.bf16.mxu1 %v4572_v34  ;;  %v316_v53 = vadd.f32 %v5442_v32, %v277_v45  ;;  %v242_v55 = vld [vmem:[%s5415_s10 + $0x30] sm:$0xff] }
  0x27   : > { %448 = vst [vmem:[#allocation2 + $0x131] sm:$0x1] %v5224_v7  ;;  %449 = vst [vmem:[#allocation2 + $0x149] sm:$0x1] %v5224_v7  ;;  %v317_v54 = vadd.f32 %v5442_v32, %v278_v46  ;;  %v243_v56 = vld [vmem:[%s5415_s10 + $0x38] sm:$0xff]  ;;  %4701 = vmatprep.subr.bf16.mxu0 %v5451_v37  ;;  %v546_v58 = vld [vmem:[%s6591_s3 + $0xe0] sm:$0xff]  ;;  %4188 = vmatprep.mubr.f32.mxu0 %v5469_v48  ;;  %v280_v62 = vmul.f32 %v5437_v31, %v241_v51 }
  0x28   : > { %450 = vst [vmem:[#allocation2 + $0x161] sm:$0x1] %v5224_v7  ;;  %451 = vst [vmem:[#allocation2 + $0x179] sm:$0x1] %v5224_v7  ;;  %v547_v59 = vld [vmem:[%s6591_s3 + $0xe8] sm:$0xff]  ;;  %v5490_v60 = vmax.f32 %v315_v49, 0.0  ;;  %v318_v61 = vadd.f32 %v5442_v32, %v279_v50  ;;  %v281_v4 = vmul.f32 %v5437_v31, %v242_v55  ;;  %v282_v5 = vmul.f32 %v5437_v31, %v243_v56 }
  0x29   : > { %452 = vst [vmem:[#allocation2 + $0x191] sm:$0x1] %v5224_v7  ;;  %418 = vst [vmem:[#allocation2] sm:$0x1] %v5224_v7  ;;  %v244_v63 = vld [vmem:[%s5415_s10 + $0x40] sm:$0xff]  ;;  %v1655_v1 = vld [vmem:[%s6591_s3 + $0x268] sm:$0xff]  ;;  %4575 = vmatpush3.bf16.msra.mxu1 %v4572_v34  ;;  %v319_v10 = vadd.f32 %v5442_v32, %v280_v62  ;;  %v4580_v14 = vpack.c.bf16 %v547_v59, %v546_v58 }
  0x2a   : > { %435 = vst [vmem:[#allocation2 + $0x198] sm:$0x1] %v5224_v7  ;;  %436 = vst [vmem:[#allocation2 + $0x11] sm:$0x1] %v5224_v7  ;;  %v1654_v0 = vld [vmem:[%s6591_s3 + $0x260] sm:$0xff]  ;;  %v5501_v2 = vmax.f32 %v316_v53, 0.0  ;;  %v283_v11 = vmul.f32 %v5437_v31, %v244_v63  ;;  %4703 = vmatpush3.bf16.msra.mxu0 %v5451_v37  ;;  %4577 = vmatprep.subr.bf16.mxu1 %v4576_v52  ;;  %v320_v15 = vadd.f32 %v5442_v32, %v281_v4 }
  0x2b   : > { %453 = vst [vmem:[#allocation2 + $0x1a9] sm:$0x1] %v5224_v7  ;;  %6619 = vst [vmem:[#allocation6_spill] sm:$0xff] %v5425_v26  ;;  %v5503_v3 = vmax.f32 %v317_v54, 0.0  ;;  %v245_v6 = vld [vmem:[%s5415_s10 + $0x48] sm:$0xff]  ;;  %v5509_v9 = vmax.f32 %v318_v61, 0.0  ;;  %v321_v16 = vadd.f32 %v5442_v32, %v282_v5  ;;  %4705 = vmatprep.subr.bf16.mxu0 %v5480_v57  ;;  %v5521_v19 = vpack.c.bf16 %v1655_v1, %v1654_v0 }
  0x2c   : > { %6620 = vst [vmem:[#allocation7_spill] sm:$0xff] %v5451_v37  ;;  %6621 = vst [vmem:[#allocation8_spill] sm:$0xff] %v5480_v57  ;;  %v246_v12 = vld [vmem:[%s5415_s10 + $0x50] sm:$0xff]  ;;  %v247_v17 = vld [vmem:[%s5415_s10 + $0x58] sm:$0xff]  ;;  %v5530_v22 = vmax.f32 %v319_v10, 0.0  ;;  %v322_v23 = vadd.f32 %v5442_v32, %v283_v11  ;;  %v284_v24 = vmul.f32 %v5437_v31, %v245_v6  ;;  %v5541_v29 = vmax.f32 %v320_v15, 0.0 }
  0x2d   : > { %379 = vst [vmem:[#allocation2 + $0x19] sm:$0xff] %v5469_v48  ;;  %380 = vst [vmem:[#allocation2 + $0x21] sm:$0xff] %v5490_v60  ;;  %v548_v20 = vld [vmem:[%s6591_s3 + $0xf0] sm:$0xff]  ;;  %v549_v21 = vld [vmem:[%s6591_s3 + $0xf8] sm:$0xff]  ;;  %v5543_v30 = vmax.f32 %v321_v16, 0.0  ;;  %v285_v33 = vmul.f32 %v5437_v31, %v246_v12  ;;  %v286_v34 = vmul.f32 %v5437_v31, %v247_v17  ;;  %4579 = vmatpush3.bf16.msra.mxu1 %v4576_v52  ;;  %s223_s7 = sand.u32 1, %s5214_s19  }
  0x2e   : > { %381 = vst [vmem:[#allocation2 + $0x31] sm:$0xff] %v5501_v2  ;;  %382 = vst [vmem:[#allocation2 + $0x39] sm:$0xff] %v5503_v3  ;;  %v248_v25 = vld [vmem:[%s5415_s10 + $0x60] sm:$0xff]  ;;  %v1656_v27 = vld [vmem:[%s6591_s3 + $0x270] sm:$0xff]  ;;  %v5549_v36 = vmax.f32 %v322_v23, 0.0  ;;  %v323_v38 = vadd.f32 %v5442_v32, %v284_v24  ;;  %4707 = vmatpush3.bf16.msra.mxu0 %v5480_v57  ;;  %4581 = vmatprep.subr.bf16.mxu1 %v4580_v14  ;;  %v4584_v42 = vpack.c.bf16 %v549_v21, %v548_v20  ;;  %s3391_s14 = sshll.u32 %s223_s7, 3 }
  0x2f   : > { %6622 = vst [vmem:[#allocation9_spill] sm:$0xff] %v5521_v19  ;;  %383 = vst [vmem:[#allocation2 + $0x49] sm:$0xff] %v5509_v9  ;;  %v1657_v28 = vld [vmem:[%s6591_s3 + $0x278] sm:$0xff]  ;;  %v249_v35 = vld [vmem:[%s5415_s10 + $0x68] sm:$0xff]  ;;  %v287_v39 = vmul.f32 %v5437_v31, %v248_v25  ;;  %v324_v45 = vadd.f32 %v5442_v32, %v285_v33  ;;  %v325_v46 = vadd.f32 %v5442_v32, %v286_v34  ;;  %4709 = vmatprep.subr.bf16.mxu0 %v5521_v19  ;;  %s225_s17 = scalar_lea.vmem [#allocation3], %s3391_s14  ;;  %s3287_s30 = scalar_lea.sflag [#allocation4], %s223_s7 }
  0x30   : > { %384 = vst [vmem:[#allocation2 + $0x51] sm:$0xff] %v5530_v22  ;;  %v250_v40 = vld [vmem:[%s5415_s10 + $0x70] sm:$0xff]  ;;  %v251_v41 = vld [vmem:[%s5415_s10 + $0x78] sm:$0xff]  ;;  %v486_v43 = vld [vmem:[%s6591_s3] sm:$0xff]  ;;  %v5567_v47 = vpack.c.bf16 %v1657_v28, %v1656_v27  ;;  %v5576_v51 = vmax.f32 %v323_v38, 0.0  ;;  %v288_v53 = vmul.f32 %v5437_v31, %v249_v35  ;;  %s3303_s23 = sshll.u32 %s225_s17, 4  ;;  %s6548_s23 = int_to_ptr.vmem [resolvable:$true] %s3303_s23 }
  0x31   : > { %v487_v44 = vld [vmem:[%s6591_s3 + $0x8] sm:$0xff]  ;;  %385 = vst [vmem:[#allocation2 + $0x61] sm:$0xff] %v5541_v29  ;;  %386 = vst [vmem:[#allocation2 + $0x69] sm:$0xff] %v5543_v30  ;;  %v1947_v49 = vld [vmem:[%s6591_s3 + $0x280] sm:$0xff]  ;;  %v326_v52 = vadd.f32 %v5442_v32, %v287_v39  ;;  %v5580_v54 = vmax.f32 %v324_v45, 0.0  ;;  %v5582_v55 = vmax.f32 %v325_v46, 0.0  ;;  %v289_v56 = vmul.f32 %v5437_v31, %v250_v40  ;;  %4583 = vmatpush3.bf16.msra.mxu1 %v4580_v14  ;;  %p5167_p0 = scmp.lt.s32.totalorder %s6548_s23, %s5165_s8 }
  0x32   : > { %6623 = vst [vmem:[#allocation10_spill] sm:$0xff] %v5567_v47  ;;  %v1948_v50 = vld [vmem:[%s6591_s3 + $0x288] sm:$0xff]  ;;  %387 = vst [vmem:[#allocation2 + $0x79] sm:$0xff] %v5549_v36  ;;  %v290_v58 = vmul.f32 %v5437_v31, %v251_v41  ;;  %v252_v59 = vld [vmem:[%s5415_s10 + $0x80] sm:$0xff]  ;;  %v4588_v62 = vpack.c.bf16 %v487_v44, %v486_v43  ;;  %v327_v4 = vadd.f32 %v5442_v32, %v288_v53  ;;  %4711 = vmatpush3.bf16.msra.mxu0 %v5521_v19  ;;  %s5160_s22 = scalar_lea.vmem %s6548_s23, 128  ;;  %s5166_s9 = scalar_lea.vmem %s5165_s8, 256 }
  0x33   : > { %v253_v61 = vld [vmem:[%s5415_s10 + $0x88] sm:$0xff]  ;;  %v1949_v63 = vld [vmem:[%s6591_s3 + $0x290] sm:$0xff]  ;;  %v1950_v0 = vld [vmem:[%s6591_s3 + $0x298] sm:$0xff]  ;;  %388 = vst [vmem:[#allocation2 + $0x81] sm:$0xff] %v5576_v51  ;;  %v5595_v1 = vmax.f32 %v326_v52, 0.0  ;;  %4585 = vmatprep.subr.bf16.mxu1 %v4584_v42  ;;  %v4716_v6 = vpack.c.bf16 %v1948_v50, %v1947_v49  ;;  %v328_v12 = vadd.f32 %v5442_v32, %v289_v56  ;;  %4713 = vmatprep.subr.bf16.mxu0 %v5567_v47  ;;  %p5161_p11 = scmp.ne.s32.totalorder %s6548_s23, %s5160_s22  ;;  %p5168_p1 = scmp.lt.s32.totalorder %s5166_s9, %s5160_s22 }
  0x34   : > { %v254_v5 = vld [vmem:[%s5415_s10 + $0x90] sm:$0xff]  ;;  %v489_v11 = vld [vmem:[%s6591_s3 + $0x18] sm:$0xff]  ;;  %389 = vst [vmem:[#allocation2 + $0x91] sm:$0xff] %v5580_v54  ;;  %390 = vst [vmem:[#allocation2 + $0x99] sm:$0xff] %v5582_v55  ;;  %v329_v14 = vadd.f32 %v5442_v32, %v290_v58  ;;  %v5613_v16 = vmax.f32 %v327_v4, 0.0  ;;  %v291_v17 = vmul.f32 %v5437_v31, %v252_v59  ;;  %v292_v20 = vmul.f32 %v5437_v31, %v253_v61 }
  0x35   : > { %v488_v10 = vld [vmem:[%s6591_s3 + $0x10] sm:$0xff]  ;;  %v255_v15 = vld [vmem:[%s5415_s10 + $0x98] sm:$0xff]  ;;  %391 = vst [vmem:[#allocation2 + $0xa9] sm:$0xff] %v5595_v1  ;;  %v293_v21 = vmul.f32 %v5437_v31, %v254_v5  ;;  %v256_v23 = vld [vmem:[%s5415_s10 + $0xa0] sm:$0xff]  ;;  %v5619_v24 = vpack.c.bf16 %v1950_v0, %v1949_v63  ;;  %v5621_v25 = vmax.f32 %v328_v12, 0.0  ;;  %4587 = vmatpush3.bf16.msra.mxu1 %v4584_v42  ;;  %p5162_p12 = pnand %p5161_p11, %p5294_p5  ;;  %p5169_p2 = por %p5168_p1, %p5167_p0 }
  0x36   : > { %v5623_v27 = vmax.f32 %v329_v14, 0.0  ;;  %v294_v28 = vmul.f32 %v5437_v31, %v255_v15  ;;  %v257_v33 = vld [vmem:[%s5415_s10 + $0xa8] sm:$0xff]  ;;  %v5627_v35 = vpack.c.bf16 %v489_v11, %v488_v10  ;;  %392 = vst [vmem:[#allocation2 + $0xb1] sm:$0xff] %v5613_v16  ;;  %v5631_v38 = vadd.f32 %v5442_v32, %v291_v17  ;;  %v258_v41 = vld [vmem:[%s5415_s10 + $0xb0] sm:$0xff]  ;;  %4715 = vmatpush3.bf16.msra.mxu0 %v5567_v47  ;;  %v1951_v42 = vld [vmem:[%s6591_s3 + $0x2a0] sm:$0xff] }
  0x37   : > { %v503_v34 = vld [vmem:[#allocation2 + $0x9] sm:$0xff]  ;;  %v5634_v39 = vadd.f32 %v5442_v32, %v292_v20  ;;  %v5637_v40 = vadd.f32 %v5442_v32, %v293_v21  ;;  %4589 = vmatprep.subr.bf16.mxu1 %v4588_v62  ;;  %393 = vst [vmem:[#allocation2 + $0xc1] sm:$0xff] %v5621_v25  ;;  %v295_v45 = vmul.f32 %v5437_v31, %v256_v23  ;;  %v259_v49 = vld [vmem:[%s5415_s10 + $0xb8] sm:$0xff]  ;;  %v260_v58 = vld [vmem:[%s5415_s10 + $0xc0] sm:$0xff]  ;;  %p5163_p13 = pneg %p5162_p12 }
  0x38   : > { %v1952_v43 = vld [vmem:[%s6591_s3 + $0x2a8] sm:$0xff]  ;;  %394 = vst [vmem:[#allocation2 + $0xc9] sm:$0xff] %v5623_v27  ;;  %v5650_v44 = vadd.f32 %v5442_v32, %v294_v28  ;;  %v296_v46 = vmul.f32 %v5437_v31, %v257_v33  ;;  %4717 = vmatprep.subr.bf16.mxu0 %v4716_v6  ;;  %v362_v50 = vmax.f32 %v5631_v38, 0.0  ;;  %v297_v56 = vmul.f32 %v5437_v31, %v258_v41  ;;  %v490_v10 = vld [vmem:[%s6591_s3 + $0x20] sm:$0xff]  ;;  %v262_v12 = vld [vmem:[%s5415_s10 + $0xd0] sm:$0xff] }
  0x39   : > { %v363_v52 = vmax.f32 %v5634_v39, 0.0  ;;  %v364_v53 = vmax.f32 %v5637_v40, 0.0  ;;  %3869 = vmatmul.mubr.f32.vlgmr.msra.gmra.mrb[0].mxu1 %v503_v34  ;;  %v5662_v61 = vadd.f32 %v5442_v32, %v295_v45  ;;  %v298_v0 = vmul.f32 %v5437_v31, %v259_v49  ;;  %v261_v4 = vld [vmem:[%s5415_s10 + $0xc8] sm:$0xff]  ;;  %4189 = vmatmul.mubr.f32.vlgmr.msra.gmra.mrb[0].mxu0 %v5490_v60  ;;  %v263_v21 = vld [vmem:[%s5415_s10 + $0xd8] sm:$0xff]  ;;  %v264_v33 = vld [vmem:[%s5415_s10 + $0xe0] sm:$0xff]  ;;  %p5170_p3 = pnand %p5169_p2, %p5163_p13 }
  0x3a   : > { %v365_v59 = vmax.f32 %v5650_v44, 0.0  ;;  %v5665_v63 = vadd.f32 %v5442_v32, %v296_v46  ;;  %4591 = vmatpush3.bf16.msra.mxu1 %v4588_v62  ;;  %v5670_v5 = vpack.c.bf16 %v1952_v43, %v1951_v42  ;;  %v491_v11 = vld [vmem:[%s6591_s3 + $0x28] sm:$0xff]  ;;  %395 = vst [vmem:[#allocation2 + $0xd9] sm:$0xff] %v362_v50  ;;  %v5685_v62 = vadd.f32 %v5442_v32, %v297_v56  ;;  %v1953_v34 = vld [vmem:[%s6591_s3 + $0x2b0] sm:$0xff]  ;;  %v1954_v41 = vld [vmem:[%s6591_s3 + $0x2b8] sm:$0xff] }
  0x3b   : > { %396 = vst [vmem:[#allocation2 + $0xe1] sm:$0xff] %v363_v52  ;;  %397 = vst [vmem:[#allocation2 + $0xf1] sm:$0xff] %v364_v53  ;;  %4719 = vmatpush3.bf16.msra.mxu0 %v4716_v6  ;;  %3871 = vmatprep.mubr.f32.mxu1 %v5469_v48  ;;  %v366_v14 = vmax.f32 %v5662_v61, 0.0  ;;  %v5694_v17 = vadd.f32 %v5442_v32, %v298_v0  ;;  %v299_v20 = vmul.f32 %v5437_v31, %v260_v58  ;;  %v265_v45 = vld [vmem:[%s5415_s10 + $0xe8] sm:$0xff]  ;;  %v492_v46 = vld [vmem:[%s6591_s3 + $0x30] sm:$0xff] }
  0x3c   : > { %398 = vst [vmem:[#allocation2 + $0xf9] sm:$0xff] %v365_v59  ;;  %v367_v15 = vmax.f32 %v5665_v63, 0.0  ;;  %4191 = vmatprep.mubr.f32.mxu0 %v5501_v2  ;;  %4721 = vmatprep.subr.bf16.mxu0 %v5619_v24  ;;  %v368_v48 = vmax.f32 %v5685_v62, 0.0  ;;  %v300_v6 = vmul.f32 %v5437_v31, %v261_v4  ;;  %v301_v23 = vmul.f32 %v5437_v31, %v262_v12  ;;  %v493_v49 = vld [vmem:[%s6591_s3 + $0x38] sm:$0xff]  ;;  %v5918_v39 = vld [vmem:[#allocation2 + $0x62] sm:$0xff]  ;;  %v1001_v26 = vld [vmem:[#allocation2 + $0xa] sm:$0xff] }
  0x3d   : > { %v302_v28 = vmul.f32 %v5437_v31, %v263_v21  ;;  %3872 = vmatmul.mubr.f32.gmra.mrb[2].mxu1 %v5490_v60  ;;  %4593 = vmatprep.subr.bf16.mxu1 %v5627_v35  ;;  %v4596_v42 = vpack.c.bf16 %v491_v11, %v490_v10  ;;  %399 = vst [vmem:[#allocation2 + $0x109] sm:$0xff] %v366_v14  ;;  %v369_v43 = vmax.f32 %v5694_v17, 0.0  ;;  %v1955_v21 = vld [vmem:[%s6591_s3 + $0x2c0] sm:$0xff]  ;;  %v2260_v38 = vld [vmem:[%s6591_s3 + $0x338] sm:$0xff]  ;;  %v2262_v40 = vld [vmem:[%s6591_s3 + $0x348] sm:$0xff] }
  0x3e   : > { %400 = vst [vmem:[#allocation2 + $0x111] sm:$0xff] %v367_v15  ;;  %v5719_v60 = vadd.f32 %v5442_v32, %v299_v20  ;;  %4192 = vmatmul.mubr.f32.gmra.mrb[2].mxu0 %v5503_v3  ;;  %3874 = vmatprep.mubr.f32.mxu1 %v5501_v2  ;;  %401 = vst [vmem:[#allocation2 + $0x121] sm:$0xff] %v368_v48  ;;  %v5733_v56 = vadd.f32 %v5442_v32, %v300_v6  ;;  %v1956_v6 = vld [vmem:[%s6591_s3 + $0x2c8] sm:$0xff]  ;;  %v5934_v44 = vld [vmem:[#allocation2 + $0x7a] sm:$0xff] }
  0x3f   : > { %v5736_v58 = vadd.f32 %v5442_v32, %v301_v23  ;;  %v5739_v0 = vadd.f32 %v5442_v32, %v302_v28  ;;  %4723 = vmatpush3.bf16.msra.mxu0 %v5619_v24  ;;  %4194 = vmatprep.mubr.f32.mxu0 %v5509_v9  ;;  %402 = vst [vmem:[#allocation2 + $0x129] sm:$0xff] %v369_v43  ;;  %v2264_v61 = vld [vmem:[%s6591_s3 + $0x358] sm:$0xff]  ;;  %v2266_v62 = vld [vmem:[%s6591_s3 + $0x368] sm:$0xff] }
  0x40   : > { %v370_v2 = vmax.f32 %v5719_v60, 0.0  ;;  %v303_v4 = vmul.f32 %v5437_v31, %v264_v33  ;;  %v304_v10 = vmul.f32 %v5437_v31, %v265_v45  ;;  %4725 = vmatprep.subr.bf16.mxu0 %v5670_v5  ;;  %4595 = vmatpush3.bf16.msra.mxu1 %v5627_v35  ;;  %v4728_v11 = vpack.c.bf16 %v1954_v41, %v1953_v34  ;;  %v495_v33 = vld [vmem:[%s6591_s3 + $0x48] sm:$0xff]  ;;  %v1957_v45 = vld [vmem:[%s6591_s3 + $0x2d0] sm:$0xff]  ;;  %v2268_v60 = vld [vmem:[%s6591_s3 + $0x378] sm:$0xff] }
  0x41   : > { %v371_v12 = vmax.f32 %v5733_v56, 0.0  ;;  %v372_v24 = vmax.f32 %v5736_v58, 0.0  ;;  %v373_v20 = vmax.f32 %v5739_v0, 0.0  ;;  %3875 = vmatmul.mubr.f32.gmra.mrb[4].mxu1 %v5503_v3  ;;  %4597 = vmatprep.subr.bf16.mxu1 %v4596_v42  ;;  %v4600_v23 = vpack.c.bf16 %v493_v49, %v492_v46  ;;  %v494_v3 = vld [vmem:[%s6591_s3 + $0x40] sm:$0xff]  ;;  %v1958_v46 = vld [vmem:[%s6591_s3 + $0x2d8] sm:$0xff]  ;;  %v5966_v17 = vld [vmem:[#allocation2 + $0xaa] sm:$0xff] }
  0x42   : > { %403 = vst [vmem:[#allocation2 + $0x139] sm:$0xff] %v370_v2  ;;  %v5763_v35 = vadd.f32 %v5442_v32, %v303_v4  ;;  %v5766_v28 = vadd.f32 %v5442_v32, %v304_v10  ;;  %4195 = vmatmul.mubr.f32.gmra.mrb[4].mxu0 %v5530_v22  ;;  %3877 = vmatprep.mubr.f32.mxu1 %v5509_v9  ;;  %v1960_v4 = vld [vmem:[%s6591_s3 + $0x2e8] sm:$0xff]  ;;  %v5950_v63 = vld [vmem:[#allocation2 + $0x92] sm:$0xff]  ;;  %v5998_v0 = vld [vmem:[#allocation2 + $0xda] sm:$0xff] }
  0x43   : > { %404 = vst [vmem:[#allocation2 + $0x141] sm:$0xff] %v371_v12  ;;  %405 = vst [vmem:[#allocation2 + $0x151] sm:$0xff] %v372_v24  ;;  %4727 = vmatpush3.bf16.msra.mxu0 %v5670_v5  ;;  %4197 = vmatprep.mubr.f32.mxu0 %v5541_v29  ;;  %v4732_v41 = vpack.c.bf16 %v1956_v6, %v1955_v21  ;;  %v4604_v5 = vpack.c.bf16 %v495_v33, %v494_v3  ;;  %v1961_v6 = vld [vmem:[%s6591_s3 + $0x2f0] sm:$0xff]  ;;  %v267_v33 = vld [vmem:[%s5415_s10 + $0xf8] sm:$0xff] }
  0x44   : > { %406 = vst [vmem:[#allocation2 + $0x159] sm:$0xff] %v373_v20  ;;  %v374_v9 = vmax.f32 %v5763_v35, 0.0  ;;  %v375_v34 = vmax.f32 %v5766_v28, 0.0  ;;  %4729 = vmatprep.subr.bf16.mxu0 %v4728_v11  ;;  %4599 = vmatpush3.bf16.msra.mxu1 %v4596_v42  ;;  %v497_v42 = vld [vmem:[%s6591_s3 + $0x58] sm:$0xff]  ;;  %v4736_v49 = vpack.c.bf16 %v1958_v46, %v1957_v45  ;;  %v266_v3 = vld [vmem:[%s5415_s10 + $0xf0] sm:$0xff]  ;;  %v306_v46 = vmul.f32 %v5437_v31, %v267_v33  ;;  %v5982_v56 = vld [vmem:[#allocation2 + $0xc2] sm:$0xff]  ;;  %s6546_s10 = scalar_lea.hbm %s6593_s5, %s3399_s16 }
  0x45   : > { %3878 = vmatmul.mubr.f32.gmra.mrb[6].mxu1 %v5530_v22  ;;  %4601 = vmatprep.subr.bf16.mxu1 %v4600_v23  ;;  %v496_v22 = vld [vmem:[%s6591_s3 + $0x50] sm:$0xff]  ;;  %v305_v45 = vmul.f32 %v5437_v31, %v266_v3  ;;  %v2254_v31 = vld [vmem:[%s6591_s3 + $0x308] sm:$0xff]  ;;  %v5900_v3 = vld [vmem:[#allocation2 + $0x3a] sm:$0xff] }
  0x46   : > { %407 = vst [vmem:[#allocation2 + $0x169] sm:$0xff] %v374_v9  ;;  %408 = vst [vmem:[#allocation2 + $0x171] sm:$0xff] %v375_v34  ;;  %4198 = vmatmul.mubr.f32.gmra.mrb[6].mxu0 %v5543_v30  ;;  %3880 = vmatprep.mubr.f32.mxu1 %v5541_v29  ;;  %v1959_v29 = vld [vmem:[%s6591_s3 + $0x2e0] sm:$0xff]  ;;  %v4608_v10 = vpack.c.bf16 %v497_v42, %v496_v22  ;;  %v5846_v22 = vadd.f32 %v5442_v32, %v306_v46  ;;  %v2559_v58 = vld [vmem:[%s6591_s3 + $0x388] sm:$0xff] }
  0x47   : > { %4731 = vmatpush3.bf16.msra.mxu0 %v4728_v11  ;;  %4200 = vmatprep.mubr.f32.mxu0 %v5549_v36  ;;  %v499_v11 = vld [vmem:[%s6591_s3 + $0x68] sm:$0xff]  ;;  %v4740_v21 = vpack.c.bf16 %v1960_v4, %v1959_v29  ;;  %v2253_v42 = vld [vmem:[%s6591_s3 + $0x300] sm:$0xff]  ;;  %v1035_v35 = vld [vmem:[%s6591_s3 + $0x118] sm:$0xff] }
  0x48   : > { %4733 = vmatprep.subr.bf16.mxu0 %v4732_v41  ;;  %4603 = vmatpush3.bf16.msra.mxu1 %v4600_v23  ;;  %6625 = vst [vmem:[#allocation12_spill] sm:$0xff] %v5846_v22  ;;  %v6594_v4 = vmax.f32 %v5846_v22, 0.0  ;;  %v2265_v46 = vld [vmem:[%s6591_s3 + $0x360] sm:$0xff]  ;;  %v6016_v28 = vld [vmem:[#allocation2 + $0xf2] sm:$0xff]  ;;  %v2567_v57 = vld [vmem:[%s6591_s3 + $0x3c8] sm:$0xff] }
  0x49   : > { %3881 = vmatmul.mubr.f32.gmra.mrb[8].mxu1 %v5543_v30  ;;  %4605 = vmatprep.subr.bf16.mxu1 %v4604_v5  ;;  %v498_v30 = vld [vmem:[%s6591_s3 + $0x60] sm:$0xff]  ;;  %v2561_v47 = vld [vmem:[%s6591_s3 + $0x398] sm:$0xff]  ;;  %v6193_v37 = vld [vmem:[#allocation2 + $0x110] sm:$0xff] }
  0x4a   : > { %4201 = vmatmul.mubr.f32.gmra.mrb[8].mxu0 %v5576_v51  ;;  %3883 = vmatprep.mubr.f32.mxu1 %v5549_v36  ;;  %v1962_v36 = vld [vmem:[%s6591_s3 + $0x2f8] sm:$0xff]  ;;  %v4612_v23 = vpack.c.bf16 %v499_v11, %v498_v30  ;;  %v4748_v30 = vpack.c.bf16 %v2254_v31, %v2253_v42  ;;  %410 = vst [vmem:[#allocation2 + $0x189] sm:$0xff] %v6594_v4  ;;  %v2558_v42 = vld [vmem:[%s6591_s3 + $0x380] sm:$0xff]  ;;  %v6135_v4 = vld [vmem:[#allocation2 + $0xb0] sm:$0xff] }
  0x4b   : > { %4735 = vmatpush3.bf16.msra.mxu0 %v4732_v41  ;;  %4203 = vmatprep.mubr.f32.mxu0 %v5580_v54  ;;  %v500_v41 = vld [vmem:[%s6591_s3 + $0x70] sm:$0xff]  ;;  %v2256_v11 = vld [vmem:[%s6591_s3 + $0x318] sm:$0xff]  ;;  %v454_v31 = vld [vmem:[#allocation2] sm:$0xff]  ;;  %6632 = vst [vmem:[#allocation19_spill] sm:$0xff] %v6135_v4 }
  0x4c   : > { %4737 = vmatprep.subr.bf16.mxu0 %v4736_v49  ;;  %4607 = vmatpush3.bf16.msra.mxu1 %v4604_v5  ;;  %v4744_v5 = vpack.c.bf16 %v1962_v36, %v1961_v6  ;;  %v5884_v6 = vld [vmem:[#allocation2 + $0x22] sm:$0xff]  ;;  %v2565_v19 = vld [vmem:[%s6591_s3 + $0x3b8] sm:$0xff] }
  0x4d   : > { %3884 = vmatmul.mubr.f32.gmra.mrb[10].mxu1 %v5576_v51  ;;  %4609 = vmatprep.subr.bf16.mxu1 %v4608_v10  ;;  %v501_v51 = vld [vmem:[%s6591_s3 + $0x78] sm:$0xff]  ;;  %v6164_v22 = vld [vmem:[#allocation2 + $0xe0] sm:$0xff] }
  0x4e   : > { %4204 = vmatmul.mubr.f32.gmra.mrb[10].mxu0 %v5582_v55  ;;  %3886 = vmatprep.mubr.f32.mxu1 %v5580_v54  ;;  %v5843_v54 = vadd.f32 %v5442_v32, %v305_v45  ;;  %v1032_v32 = vld [vmem:[%s6591_s3 + $0x100] sm:$0xff]  ;;  %v2263_v45 = vld [vmem:[%s6591_s3 + $0x350] sm:$0xff] }
  0x4f   : > { %4739 = vmatpush3.bf16.msra.mxu0 %v4736_v49  ;;  %4206 = vmatprep.mubr.f32.mxu0 %v5595_v1  ;;  %v4616_v49 = vpack.c.bf16 %v501_v51, %v500_v41  ;;  %v2259_v41 = vld [vmem:[%s6591_s3 + $0x330] sm:$0xff]  ;;  %v2261_v51 = vld [vmem:[%s6591_s3 + $0x340] sm:$0xff] }
  0x50   : > { %4741 = vmatprep.subr.bf16.mxu0 %v4740_v21  ;;  %4611 = vmatpush3.bf16.msra.mxu1 %v4608_v10  ;;  %6624 = vst [vmem:[#allocation11_spill] sm:$0xff] %v5843_v54  ;;  %v6595_v29 = vmax.f32 %v5843_v54, 0.0  ;;  %v5866_v10 = vld [vmem:[#allocation2 + $0x1a] sm:$0xff] }
  0x51   : > { %3887 = vmatmul.mubr.f32.gmra.mrb[12].mxu1 %v5582_v55  ;;  %4613 = vmatprep.subr.bf16.mxu1 %v4612_v23  ;;  %v1033_v55 = vld [vmem:[%s6591_s3 + $0x108] sm:$0xff]  ;;  %v2566_v54 = vld [vmem:[%s6591_s3 + $0x3c0] sm:$0xff] }
  0x52   : > { %4207 = vmatmul.mubr.f32.gmra.mrb[12].mxu0 %v5613_v16  ;;  %3889 = vmatprep.mubr.f32.mxu1 %v5595_v1  ;;  %409 = vst [vmem:[#allocation2 + $0x181] sm:$0xff] %v6595_v29  ;;  %v2255_v1 = vld [vmem:[%s6591_s3 + $0x310] sm:$0xff]  ;;  %v6137_v29 = vld [vmem:[#allocation2 + $0xc0] sm:$0xff] }
  0x53   : > { %4743 = vmatpush3.bf16.msra.mxu0 %v4740_v21  ;;  %4209 = vmatprep.mubr.f32.mxu0 %v5621_v25  ;;  %v5879_v21 = vpack.c.bf16 %v1033_v55, %v1032_v32  ;;  %v4752_v36 = vpack.c.bf16 %v2256_v11, %v2255_v1  ;;  %v6014_v32 = vld [vmem:[#allocation2 + $0x18] sm:$0xff]  ;;  %v1036_v55 = vld [vmem:[%s6591_s3 + $0x120] sm:$0xff]  ;;  %6633 = vst [vmem:[#allocation20_spill] sm:$0xff] %v6137_v29 }
  0x54   : > { %4745 = vmatprep.subr.bf16.mxu0 %v4744_v5  ;;  %4615 = vmatpush3.bf16.msra.mxu1 %v4612_v23  ;;  %v2257_v23 = vld [vmem:[%s6591_s3 + $0x320] sm:$0xff] }
  0x55   : > { %3890 = vmatmul.mubr.f32.gmra.mrb[14].mxu1 %v5613_v16  ;;  %4617 = vmatprep.subr.bf16.mxu1 %v4616_v49  ;;  %v5886_v16 = vld [vmem:[#allocation2 + $0x32] sm:$0xff]  ;;  %v6028_v1 = vld [vmem:[#allocation2 + $0x20] sm:$0xff] }
  0x56   : > { %4210 = vmatmul.mubr.f32.gmra.mrb[14].mxu0 %v5623_v27  ;;  %3892 = vmatprep.mubr.f32.mxu1 %v5621_v25  ;;  %v2258_v25 = vld [vmem:[%s6591_s3 + $0x328] sm:$0xff]  ;;  %v6032_v11 = vld [vmem:[#allocation2 + $0xfa] sm:$0xff] }
  0x57   : > { %4747 = vmatpush3.bf16.msra.mxu0 %v4744_v5  ;;  %4268 = vmatprep.mubr.f32.mxu0 %v5866_v10  ;;  %v4756_v33 = vpack.c.bf16 %v2258_v25, %v2257_v23  ;;  %v2267_v5 = vld [vmem:[%s6591_s3 + $0x370] sm:$0xff]  ;;  %v1039_v25 = vld [vmem:[%s6591_s3 + $0x138] sm:$0xff] }
  0x58   : > { %4749 = vmatprep.subr.bf16.mxu0 %v4748_v30  ;;  %4619 = vmatpush3.bf16.msra.mxu1 %v4616_v49  ;;  %v1034_v49 = vld [vmem:[%s6591_s3 + $0x110] sm:$0xff] }
  0x59   : > { %3893 = vmatmul.mubr.f32.gmra.mrb[16].mxu1 %v5623_v27  ;;  %4621 = vmatprep.subr.bf16.mxu1 %v5879_v21  ;;  %v5902_v27 = vld [vmem:[#allocation2 + $0x4a] sm:$0xff] }
  0x5a   : > { %4269 = vmatmul.mubr.f32.vlgmr.msra.gmra.mrb[0].mxu0 %v5884_v6  ;;  %3895 = vmatprep.mubr.f32.mxu1 %v362_v50  ;;  %v5916_v50 = vld [vmem:[#allocation2 + $0x52] sm:$0xff] }
  0x5b   : > { %4751 = vmatpush3.bf16.msra.mxu0 %v4748_v30  ;;  %4271 = vmatprep.mubr.f32.mxu0 %v5886_v16  ;;  %v1037_v30 = vld [vmem:[%s6591_s3 + $0x128] sm:$0xff] }
  0x5c   : > { %4753 = vmatprep.subr.bf16.mxu0 %v4752_v36  ;;  %v4628_v23 = vpack.c.bf16 %v1037_v30, %v1036_v55  ;;  %v6104_v55 = vld [vmem:[#allocation2 + $0x15a] sm:$0xff]  ;;  %v6106_v30 = vld [vmem:[#allocation2 + $0x90] sm:$0xff] }
  0x5d   : > { %3896 = vmatmul.mubr.f32.gmra.mrb[18].mxu1 %v363_v52  ;;  %v4760_v52 = vpack.c.bf16 %v2260_v38, %v2259_v41  ;;  %v6050_v41 = vld [vmem:[#allocation2 + $0x112] sm:$0xff]  ;;  %v6052_v38 = vld [vmem:[#allocation2 + $0x48] sm:$0xff]  ;;  %6629 = vst [vmem:[#allocation16_spill] sm:$0xff] %v6106_v30 }
  0x5e   : > { %4272 = vmatmul.mubr.f32.gmra.mrb[2].mxu0 %v5900_v3  ;;  %3898 = vmatprep.mubr.f32.mxu1 %v364_v53  ;;  %v5932_v53 = vld [vmem:[#allocation2 + $0x6a] sm:$0xff] }
  0x5f   : > { %4274 = vmatprep.mubr.f32.mxu0 %v5902_v27  ;;  %4755 = vmatpush3.bf16.msra.mxu0 %v4752_v36  ;;  %v6036_v36 = vld [vmem:[#allocation2 + $0x10a] sm:$0xff] }
  0x60   : > { %4757 = vmatprep.subr.bf16.mxu0 %v4756_v33 }
  0x61   : > { %3899 = vmatmul.mubr.f32.gmra.mrb[20].mxu1 %v365_v59  ;;  %v4764_v59 = vpack.c.bf16 %v2262_v40, %v2261_v51  ;;  %v1040_v40 = vld [vmem:[%s6591_s3 + $0x140] sm:$0xff] }
  0x62   : > { %4275 = vmatmul.mubr.f32.gmra.mrb[4].mxu0 %v5916_v50  ;;  %3901 = vmatprep.mubr.f32.mxu1 %v366_v14  ;;  %v5948_v14 = vld [vmem:[#allocation2 + $0x82] sm:$0xff] }
  0x63   : > { %4277 = vmatprep.mubr.f32.mxu0 %v5918_v39  ;;  %4759 = vmatpush3.bf16.msra.mxu0 %v4756_v33  ;;  %v6047_v33 = vld [vmem:[#allocation2 + $0x38] sm:$0xff] }
  0x64   : > { %4761 = vmatprep.subr.bf16.mxu0 %v4760_v52 }
  0x65   : > { %3902 = vmatmul.mubr.f32.gmra.mrb[22].mxu1 %v367_v15  ;;  %v4768_v15 = vpack.c.bf16 %v2264_v61, %v2263_v45  ;;  %v6065_v45 = vld [vmem:[#allocation2 + $0x50] sm:$0xff] }
  0x66   : > { %4278 = vmatmul.mubr.f32.gmra.mrb[6].mxu0 %v5932_v53  ;;  %3904 = vmatprep.mubr.f32.mxu1 %v368_v48  ;;  %v5964_v48 = vld [vmem:[#allocation2 + $0x9a] sm:$0xff]  ;;  %v6068_v61 = vld [vmem:[#allocation2 + $0x12a] sm:$0xff] }
  0x67   : > { %4280 = vmatprep.mubr.f32.mxu0 %v5934_v44  ;;  %4763 = vmatpush3.bf16.msra.mxu0 %v4760_v52  ;;  %v6054_v52 = vld [vmem:[#allocation2 + $0x122] sm:$0xff] }
  0x68   : > { %4765 = vmatprep.subr.bf16.mxu0 %v4764_v59 }
  0x69   : > { %3905 = vmatmul.mubr.f32.gmra.mrb[24].mxu1 %v369_v43  ;;  %v4772_v43 = vpack.c.bf16 %v2266_v62, %v2265_v46  ;;  %v6072_v46 = vld [vmem:[#allocation2 + $0x13a] sm:$0xff] }
  0x6a   : > { %4281 = vmatmul.mubr.f32.gmra.mrb[8].mxu0 %v5948_v14  ;;  %3907 = vmatprep.mubr.f32.mxu1 %v370_v2  ;;  %v5980_v2 = vld [vmem:[#allocation2 + $0xb2] sm:$0xff] }
  0x6b   : > { %4283 = vmatprep.mubr.f32.mxu0 %v5950_v63  ;;  %4767 = vmatpush3.bf16.msra.mxu0 %v4764_v59  ;;  %v1041_v59 = vld [vmem:[%s6591_s3 + $0x148] sm:$0xff] }
  0x6c   : > { %4769 = vmatprep.subr.bf16.mxu0 %v4768_v15  ;;  %v4636_v62 = vpack.c.bf16 %v1041_v59, %v1040_v40  ;;  %v6119_v40 = vld [vmem:[#allocation2 + $0x98] sm:$0xff] }
  0x6d   : > { %3908 = vmatmul.mubr.f32.gmra.mrb[26].mxu1 %v371_v12  ;;  %v4776_v12 = vpack.c.bf16 %v2268_v60, %v2267_v5  ;;  %v1043_v5 = vld [vmem:[%s6591_s3 + $0x158] sm:$0xff]  ;;  %v6083_v60 = vld [vmem:[#allocation2 + $0x68] sm:$0xff]  ;;  %6630 = vst [vmem:[#allocation17_spill] sm:$0xff] %v6119_v40 }
  0x6e   : > { %4284 = vmatmul.mubr.f32.gmra.mrb[10].mxu0 %v5964_v48  ;;  %3910 = vmatprep.mubr.f32.mxu1 %v372_v24  ;;  %v5996_v24 = vld [vmem:[#allocation2 + $0xca] sm:$0xff]  ;;  %6626 = vst [vmem:[#allocation13_spill] sm:$0xff] %v6083_v60  ;;  %v6122_v59 = vld [vmem:[#allocation2 + $0x172] sm:$0xff] }
  0x6f   : > { %4286 = vmatprep.mubr.f32.mxu0 %v5966_v17  ;;  %4771 = vmatpush3.bf16.msra.mxu0 %v4768_v15  ;;  %v6070_v15 = vld [vmem:[#allocation2 + $0x60] sm:$0xff] }
  0x70   : > { %4773 = vmatprep.subr.bf16.mxu0 %v4772_v43 }
  0x71   : > { %3911 = vmatmul.mubr.f32.gmra.mrb[28].mxu1 %v373_v20  ;;  %v6000_v20 = vpack.c.bf16 %v2559_v58, %v2558_v42  ;;  %v6088_v42 = vld [vmem:[#allocation2 + $0x78] sm:$0xff] }
  0x72   : > { %4287 = vmatmul.mubr.f32.gmra.mrb[12].mxu0 %v5980_v2  ;;  %3913 = vmatprep.mubr.f32.mxu1 %v374_v9  ;;  %v6012_v9 = vld [vmem:[#allocation2 + $0xe2] sm:$0xff]  ;;  %6627 = vst [vmem:[#allocation14_spill] sm:$0xff] %v6088_v42  ;;  %v6090_v58 = vld [vmem:[#allocation2 + $0x152] sm:$0xff] }
  0x73   : > { %4289 = vmatprep.mubr.f32.mxu0 %v5982_v56  ;;  %4775 = vmatpush3.bf16.msra.mxu0 %v4772_v43  ;;  %v1042_v43 = vld [vmem:[%s6591_s3 + $0x150] sm:$0xff] }
  0x74   : > { %4777 = vmatprep.subr.bf16.mxu0 %v4776_v12 }
  0x75   : > { %3914 = vmatmul.mubr.f32.gmra.mrb[30].mxu1 %v375_v34  ;;  %v4624_v34 = vpack.c.bf16 %v1035_v35, %v1034_v49  ;;  %v1044_v49 = vld [vmem:[%s6591_s3 + $0x160] sm:$0xff]  ;;  %v1045_v35 = vld [vmem:[%s6591_s3 + $0x168] sm:$0xff] }
  0x76   : > { %4290 = vmatmul.mubr.f32.gmra.mrb[14].mxu0 %v5996_v24  ;;  %3948 = vmatprep.mubr.f32.mxu1 %v454_v31  ;;  %v4640_v31 = vpack.c.bf16 %v1043_v5, %v1042_v43  ;;  %v1945_v43 = vld [vmem:[#allocation2 + $0x182] sm:$0xff] }
  0x77   : > { %4292 = vmatprep.mubr.f32.mxu0 %v5998_v0  ;;  %4779 = vmatpush3.bf16.msra.mxu0 %v4776_v12  ;;  %v6086_v12 = vld [vmem:[#allocation2 + $0x142] sm:$0xff] }
  0x78   : > { %4781 = vmatprep.subr.bf16.mxu0 %v6000_v20 }
  0x79   : > { %3949 = vmatmul.mubr.f32.vlgmr.msra.gmra.mrb[0].mxu1 %v5224_v7  ;;  %v6034_v7 = vld [vmem:[#allocation2 + $0x30] sm:$0xff] }
  0x7a   : > { %4293 = vmatmul.mubr.f32.gmra.mrb[16].mxu0 %v6012_v9  ;;  %4623 = vmatpush3.bf16.msra.mxu1 %v5879_v21  ;;  %v1038_v21 = vld [vmem:[%s6591_s3 + $0x130] sm:$0xff] }
  0x7b   : > { %3951 = vmatprep.mubr.f32.mxu1 %v6014_v32  ;;  %4295 = vmatprep.mubr.f32.mxu0 %v6016_v28  ;;  %v4632_v51 = vpack.c.bf16 %v1039_v25, %v1038_v21  ;;  %v4644_v21 = vpack.c.bf16 %v1045_v35, %v1044_v49  ;;  %v1046_v25 = vld [vmem:[%s6591_s3 + $0x170] sm:$0xff]  ;;  %v1337_v49 = vld [vmem:[%s6591_s3 + $0x180] sm:$0xff]  ;;  %v1338_v35 = vld [vmem:[%s6591_s3 + $0x188] sm:$0xff] }
  0x7c   : > { %4625 = vmatprep.subr.bf16.mxu1 %v4624_v34 }
  0x7d   : > { %3952 = vmatmul.mubr.f32.gmra.mrb[2].mxu1 %v6028_v1 }
  0x7e   : > { %4296 = vmatmul.mubr.f32.gmra.mrb[18].mxu0 %v6032_v11  ;;  %3954 = vmatprep.mubr.f32.mxu1 %v6034_v7 }
  0x7f   : > { %4298 = vmatprep.mubr.f32.mxu0 %v6036_v36  ;;  %4627 = vmatpush3.bf16.msra.mxu1 %v4624_v34  ;;  %v6101_v34 = vld [vmem:[#allocation2 + $0x80] sm:$0xff] }
  0x80   : > { %4629 = vmatprep.subr.bf16.mxu1 %v4628_v23  ;;  %6628 = vst [vmem:[#allocation15_spill] sm:$0xff] %v6101_v34 }
  0x81   : > { %3955 = vmatmul.mubr.f32.gmra.mrb[4].mxu1 %v6047_v33 }
  0x82   : > { %4299 = vmatmul.mubr.f32.gmra.mrb[20].mxu0 %v6050_v41  ;;  %3957 = vmatprep.mubr.f32.mxu1 %v6052_v38 }
  0x83   : > { %4301 = vmatprep.mubr.f32.mxu0 %v6054_v52  ;;  %4631 = vmatpush3.bf16.msra.mxu1 %v4628_v23  ;;  %v6108_v23 = vld [vmem:[#allocation2 + $0x16a] sm:$0xff] }
  0x84   : > { %4633 = vmatprep.subr.bf16.mxu1 %v4632_v51 }
  0x85   : > { %3958 = vmatmul.mubr.f32.gmra.mrb[6].mxu1 %v6065_v45 }
  0x86   : > { %4302 = vmatmul.mubr.f32.gmra.mrb[22].mxu0 %v6068_v61  ;;  %3960 = vmatprep.mubr.f32.mxu1 %v6070_v15 }
  0x87   : > { %4304 = vmatprep.mubr.f32.mxu0 %v6072_v46  ;;  %4635 = vmatpush3.bf16.msra.mxu1 %v4632_v51  ;;  %v1047_v51 = vld [vmem:[%s6591_s3 + $0x178] sm:$0xff] }
  0x88   : > { %4637 = vmatprep.subr.bf16.mxu1 %v4636_v62  ;;  %v4648_v5 = vpack.c.bf16 %v1047_v51, %v1046_v25  ;;  %v6139_v25 = vpack.c.bf16 %v1338_v35, %v1337_v49  ;;  %v2560_v51 = vld [vmem:[%s6591_s3 + $0x390] sm:$0xff]  ;;  %v2562_v35 = vld [vmem:[%s6591_s3 + $0x3a0] sm:$0xff] }
  0x89   : > { %3961 = vmatmul.mubr.f32.gmra.mrb[8].mxu1 %v6083_v60  ;;  %v4784_v49 = vpack.c.bf16 %v2561_v47, %v2560_v51  ;;  %v6168_v47 = vld [vmem:[#allocation2 + $0xf0] sm:$0xff] }
  0x8a   : > { %4305 = vmatmul.mubr.f32.gmra.mrb[24].mxu0 %v6086_v12  ;;  %3963 = vmatprep.mubr.f32.mxu1 %v6088_v42  ;;  %v2564_v51 = vld [vmem:[%s6591_s3 + $0x3b0] sm:$0xff] }
  0x8b   : > { %4307 = vmatprep.mubr.f32.mxu0 %v6090_v58  ;;  %4639 = vmatpush3.bf16.msra.mxu1 %v4636_v62  ;;  %v6124_v62 = vld [vmem:[#allocation2 + $0xa8] sm:$0xff] }
  0x8c   : > { %4641 = vmatprep.subr.bf16.mxu1 %v4640_v31  ;;  %6631 = vst [vmem:[#allocation18_spill] sm:$0xff] %v6124_v62 }
  0x8d   : > { %3964 = vmatmul.mubr.f32.gmra.mrb[10].mxu1 %v6101_v34 }
  0x8e   : > { %4308 = vmatmul.mubr.f32.gmra.mrb[26].mxu0 %v6104_v55  ;;  %3966 = vmatprep.mubr.f32.mxu1 %v6106_v30 }
  0x8f   : > { %4310 = vmatprep.mubr.f32.mxu0 %v6108_v23  ;;  %4643 = vmatpush3.bf16.msra.mxu1 %v4640_v31  ;;  %v1946_v31 = vld [vmem:[#allocation2 + $0x18a] sm:$0xff] }
  0x90   : > { %4645 = vmatprep.subr.bf16.mxu1 %v4644_v21 }
  0x91   : > { %3967 = vmatmul.mubr.f32.gmra.mrb[12].mxu1 %v6119_v40 }
  0x92   : > { %4311 = vmatmul.mubr.f32.gmra.mrb[28].mxu0 %v6122_v59  ;;  %3969 = vmatprep.mubr.f32.mxu1 %v6124_v62 }
  0x93   : > { %4313 = vmatprep.mubr.f32.mxu0 %v1945_v43  ;;  %4647 = vmatpush3.bf16.msra.mxu1 %v4644_v21  ;;  %v6149_v43 = vld [vmem:[#allocation2 + $0xc8] sm:$0xff]  ;;  %v6152_v21 = vld [vmem:[#allocation2 + $0xd8] sm:$0xff] }
  0x94   : > { %4649 = vmatprep.subr.bf16.mxu1 %v4648_v5  ;;  %6634 = vst [vmem:[#allocation21_spill] sm:$0xff] %v6149_v43 }
  0x95   : > { %3970 = vmatmul.mubr.f32.gmra.mrb[14].mxu1 %v6135_v4 }
  0x96   : > { %4314 = vmatmul.mubr.f32.gmra.mrb[30].mxu0 %v1946_v31  ;;  %3972 = vmatprep.mubr.f32.mxu1 %v6137_v29  ;;  %v2563_v31 = vld [vmem:[%s6591_s3 + $0x3a8] sm:$0xff] }
  0x97   : > { %4348 = vmatprep.mubr.f32.mxu0 %v6034_v7  ;;  %4651 = vmatpush3.bf16.msra.mxu1 %v4648_v5  ;;  %v4788_v5 = vpack.c.bf16 %v2563_v31, %v2562_v35  ;;  %v6182_v35 = vld [vmem:[#allocation2 + $0x108] sm:$0xff]  ;;  %v4792_v31 = vpack.c.bf16 %v2565_v19, %v2564_v51  ;;  %v4796_v19 = vpack.c.bf16 %v2567_v57, %v2566_v54  ;;  %v2568_v51 = vld [vmem:[%s6591_s3 + $0x3d0] sm:$0xff]  ;;  %v2570_v54 = vld [vmem:[%s6591_s3 + $0x3e0] sm:$0xff] }
  0x98   : > { %4653 = vmatprep.subr.bf16.mxu1 %v6139_v25 }
  0x99   : > { %3973 = vmatmul.mubr.f32.gmra.mrb[16].mxu1 %v6149_v43 }
  0x9a   : > { %4349 = vmatmul.mubr.f32.vlgmr.msra.gmra.mrb[0].mxu0 %v6047_v33  ;;  %3975 = vmatprep.mubr.f32.mxu1 %v6152_v21 }
  0x9b   : > { %4783 = vmatpush3.bf16.msra.mxu0 %v6000_v20  ;;  %4351 = vmatprep.mubr.f32.mxu0 %v6052_v38  ;;  %v6179_v20 = vld [vmem:[#allocation2 + $0xf8] sm:$0xff] }
  0x9c   : > { %4785 = vmatprep.subr.bf16.mxu0 %v4784_v49 }
  0x9d   : > { %3976 = vmatmul.mubr.f32.gmra.mrb[18].mxu1 %v6164_v22 }
  0x9e   : > { %4352 = vmatmul.mubr.f32.gmra.mrb[2].mxu0 %v6065_v45  ;;  %3978 = vmatprep.mubr.f32.mxu1 %v6168_v47 }
  0x9f   : > { %4354 = vmatprep.mubr.f32.mxu0 %v6070_v15  ;;  %4787 = vmatpush3.bf16.msra.mxu0 %v4784_v49  ;;  %v6196_v49 = vld [vmem:[#allocation2 + $0x120] sm:$0xff] }
  0xa0   : > { %4789 = vmatprep.subr.bf16.mxu0 %v4788_v5 }
  0xa1   : > { %3979 = vmatmul.mubr.f32.gmra.mrb[20].mxu1 %v6179_v20 }
  0xa2   : > { %4355 = vmatmul.mubr.f32.gmra.mrb[4].mxu0 %v6083_v60  ;;  %3981 = vmatprep.mubr.f32.mxu1 %v6182_v35  ;;  %v2569_v60 = vld [vmem:[%s6591_s3 + $0x3d8] sm:$0xff] }
  0xa3   : > { %4357 = vmatprep.mubr.f32.mxu0 %v6088_v42  ;;  %4791 = vmatpush3.bf16.msra.mxu0 %v4788_v5  ;;  %v6207_v42 = vld [vmem:[#allocation2 + $0x128] sm:$0xff]  ;;  %v6210_v5 = vld [vmem:[#allocation2 + $0x138] sm:$0xff]  ;;  %v4800_v57 = vpack.c.bf16 %v2569_v60, %v2568_v51  ;;  %v2572_v51 = vld [vmem:[%s6591_s3 + $0x3f0] sm:$0xff] }
  0xa4   : > { %4793 = vmatprep.subr.bf16.mxu0 %v4792_v31 }
  0xa5   : > { %3982 = vmatmul.mubr.f32.gmra.mrb[22].mxu1 %v6193_v37 }
  0xa6   : > { %4358 = vmatmul.mubr.f32.gmra.mrb[6].mxu0 %v6101_v34  ;;  %3984 = vmatprep.mubr.f32.mxu1 %v6196_v49  ;;  %v2571_v34 = vld [vmem:[%s6591_s3 + $0x3e8] sm:$0xff] }
  0xa7   : > { %4360 = vmatprep.mubr.f32.mxu0 %v6106_v30  ;;  %4795 = vmatpush3.bf16.msra.mxu0 %v4792_v31  ;;  %v6221_v30 = vld [vmem:[#allocation2 + $0x140] sm:$0xff]  ;;  %v6224_v31 = vld [vmem:[#allocation2 + $0x150] sm:$0xff]  ;;  %v4804_v60 = vpack.c.bf16 %v2571_v34, %v2570_v54 }
  0xa8   : > { %4797 = vmatprep.subr.bf16.mxu0 %v4796_v19  ;;  %v2863_v54 = vld [vmem:[%s6591_s3 + $0x400] sm:$0xff] }
  0xa9   : > { %3985 = vmatmul.mubr.f32.gmra.mrb[24].mxu1 %v6207_v42 }
  0xaa   : > { %4361 = vmatmul.mubr.f32.gmra.mrb[8].mxu0 %v6119_v40  ;;  %3987 = vmatprep.mubr.f32.mxu1 %v6210_v5  ;;  %v2573_v40 = vld [vmem:[%s6591_s3 + $0x3f8] sm:$0xff] }
  0xab   : > { %4363 = vmatprep.mubr.f32.mxu0 %v6124_v62  ;;  %4799 = vmatpush3.bf16.msra.mxu0 %v4796_v19  ;;  %v6235_v62 = vld [vmem:[#allocation2 + $0x158] sm:$0xff]  ;;  %v6238_v19 = vld [vmem:[#allocation2 + $0x168] sm:$0xff]  ;;  %v4808_v34 = vpack.c.bf16 %v2573_v40, %v2572_v51  ;;  %v1339_v51 = vld [vmem:[%s6591_s3 + $0x190] sm:$0xff] }
  0xac   : > { %4801 = vmatprep.subr.bf16.mxu0 %v4800_v57 }
  0xad   : > { %3988 = vmatmul.mubr.f32.gmra.mrb[26].mxu1 %v6221_v30 }
  0xae   : > { %4364 = vmatmul.mubr.f32.gmra.mrb[10].mxu0 %v6135_v4  ;;  %3990 = vmatprep.mubr.f32.mxu1 %v6224_v31  ;;  %v2864_v4 = vld [vmem:[%s6591_s3 + $0x408] sm:$0xff] }
  0xaf   : > { %4366 = vmatprep.mubr.f32.mxu0 %v6137_v29  ;;  %4803 = vmatpush3.bf16.msra.mxu0 %v4800_v57  ;;  %v6249_v29 = vld [vmem:[#allocation2 + $0x170] sm:$0xff]  ;;  %v1000_v57 = vld [vmem:[#allocation2 + $0x2] sm:$0xff]  ;;  %v6252_v40 = vpack.c.bf16 %v2864_v4, %v2863_v54 }
  0xb0   : > { %4805 = vmatprep.subr.bf16.mxu0 %v4804_v60  ;;  %v1341_v4 = vld [vmem:[%s6591_s3 + $0x1a0] sm:$0xff]  ;;  %v1342_v54 = vld [vmem:[%s6591_s3 + $0x1a8] sm:$0xff] }
  0xb1   : > { %3991 = vmatmul.mubr.f32.gmra.mrb[28].mxu1 %v6235_v62 }
  0xb2   : > { %4367 = vmatmul.mubr.f32.gmra.mrb[12].mxu0 %v6149_v43  ;;  %3993 = vmatprep.mubr.f32.mxu1 %v6238_v19  ;;  %v1340_v43 = vld [vmem:[%s6591_s3 + $0x198] sm:$0xff] }
  0xb3   : > { %4369 = vmatprep.mubr.f32.mxu0 %v6152_v21  ;;  %4807 = vmatpush3.bf16.msra.mxu0 %v4804_v60  ;;  %v4656_v60 = vpack.c.bf16 %v1340_v43, %v1339_v51  ;;  %v4660_v43 = vpack.c.bf16 %v1342_v54, %v1341_v4  ;;  %v1350_v51 = vld [vmem:[%s6591_s3 + $0x1e8] sm:$0xff]  ;;  %v1352_v4 = vld [vmem:[%s6591_s3 + $0x1f8] sm:$0xff] }
  0xb4   : > { %4809 = vmatprep.subr.bf16.mxu0 %v4808_v34  ;;  %v2251_v54 = vld [vmem:[#allocation2 + $0x198] sm:$0xff] }
  0xb5   : > { %3994 = vmatmul.mubr.f32.gmra.mrb[30].mxu1 %v6249_v29 }
  0xb6   : > { %4370 = vmatmul.mubr.f32.gmra.mrb[14].mxu0 %v6164_v22  ;;  %4028 = vmatprep.mubr.f32.mxu1 %v1000_v57  ;;  %v1348_v57 = vld [vmem:[%s6591_s3 + $0x1d8] sm:$0xff] }
  0xb7   : > { %4372 = vmatprep.mubr.f32.mxu0 %v6168_v47  ;;  %4811 = vmatpush3.bf16.msra.mxu0 %v4808_v34  ;;  %v1344_v34 = vld [vmem:[%s6591_s3 + $0x1b8] sm:$0xff] }
  0xb8   : > { %4813 = vmatprep.subr.bf16.mxu0 %v6252_v40 }
  0xb9   : > { %4029 = vmatmul.mubr.f32.vlgmr.msra.gmra.mrb[0].mxu1 %v1001_v26  ;;  %v1343_v26 = vld [vmem:[%s6591_s3 + $0x1b0] sm:$0xff] }
  0xba   : > { %4373 = vmatmul.mubr.f32.gmra.mrb[16].mxu0 %v6179_v20  ;;  %4655 = vmatpush3.bf16.msra.mxu1 %v6139_v25  ;;  %v1346_v25 = vld [vmem:[%s6591_s3 + $0x1c8] sm:$0xff] }
  0xbb   : > { %4031 = vmatprep.mubr.f32.mxu1 %v5866_v10  ;;  %4375 = vmatprep.mubr.f32.mxu0 %v6182_v35  ;;  %v4664_v10 = vpack.c.bf16 %v1344_v34, %v1343_v26  ;;  %v2866_v26 = vld [vmem:[%s6591_s3 + $0x418] sm:$0xff]  ;;  %v5156_v34 = vld [vmem:[#allocation2 + $0x8] sm:$0xff] }
  0xbc   : > { %4657 = vmatprep.subr.bf16.mxu1 %v4656_v60 }
  0xbd   : > { %4032 = vmatmul.mubr.f32.gmra.mrb[2].mxu1 %v5884_v6  ;;  %v1345_v6 = vld [vmem:[%s6591_s3 + $0x1c0] sm:$0xff] }
  0xbe   : > { %4376 = vmatmul.mubr.f32.gmra.mrb[18].mxu0 %v6193_v37  ;;  %4034 = vmatprep.mubr.f32.mxu1 %v5886_v16  ;;  %v4668_v16 = vpack.c.bf16 %v1346_v25, %v1345_v6  ;;  %v2868_v6 = vld [vmem:[%s6591_s3 + $0x428] sm:$0xff] }
  0xbf   : > { %4378 = vmatprep.mubr.f32.mxu0 %v6196_v49  ;;  %4659 = vmatpush3.bf16.msra.mxu1 %v4656_v60  ;;  %v2530_v25 = vld [vmem:[#allocation2 + $0x61] sm:$0xff] }
  0xc0   : > { %4661 = vmatprep.subr.bf16.mxu1 %v4660_v43 }
  0xc1   : > { %4035 = vmatmul.mubr.f32.gmra.mrb[4].mxu1 %v5900_v3  ;;  %v1347_v3 = vld [vmem:[%s6591_s3 + $0x1d0] sm:$0xff] }
  0xc2   : > { %4379 = vmatmul.mubr.f32.gmra.mrb[20].mxu0 %v6207_v42  ;;  %4037 = vmatprep.mubr.f32.mxu1 %v5902_v27  ;;  %v4672_v27 = vpack.c.bf16 %v1348_v57, %v1347_v3  ;;  %v2870_v3 = vld [vmem:[%s6591_s3 + $0x438] sm:$0xff] }
  0xc3   : > { %4381 = vmatprep.mubr.f32.mxu0 %v6210_v5  ;;  %4663 = vmatpush3.bf16.msra.mxu1 %v4660_v43  ;;  %v2526_v43 = vld [vmem:[#allocation2 + $0x31] sm:$0xff] }
  0xc4   : > { %4665 = vmatprep.subr.bf16.mxu1 %v4664_v10 }
  0xc5   : > { %4038 = vmatmul.mubr.f32.gmra.mrb[6].mxu1 %v5916_v50  ;;  %v1349_v50 = vld [vmem:[%s6591_s3 + $0x1e0] sm:$0xff] }
  0xc6   : > { %4382 = vmatmul.mubr.f32.gmra.mrb[22].mxu0 %v6221_v30  ;;  %4040 = vmatprep.mubr.f32.mxu1 %v5918_v39  ;;  %v6314_v39 = vld [vmem:[#allocation2 + $0x180] sm:$0xff]  ;;  %v4676_v60 = vpack.c.bf16 %v1350_v51, %v1349_v50  ;;  %v2534_v50 = vld [vmem:[#allocation2 + $0x91] sm:$0xff] }
  0xc7   : > { %4384 = vmatprep.mubr.f32.mxu0 %v6224_v31  ;;  %4667 = vmatpush3.bf16.msra.mxu1 %v4664_v10 }
  0xc8   : > { %4669 = vmatprep.subr.bf16.mxu1 %v4668_v16 }
  0xc9   : > { %4041 = vmatmul.mubr.f32.gmra.mrb[8].mxu1 %v5932_v53  ;;  %v1351_v53 = vld [vmem:[%s6591_s3 + $0x1f0] sm:$0xff] }
  0xca   : > { %4385 = vmatmul.mubr.f32.gmra.mrb[24].mxu0 %v6235_v62  ;;  %4043 = vmatprep.mubr.f32.mxu1 %v5934_v44  ;;  %v6326_v44 = vld [vmem:[#allocation2 + $0x188] sm:$0xff] }
  0xcb   : > { %4387 = vmatprep.mubr.f32.mxu0 %v6238_v19  ;;  %4671 = vmatpush3.bf16.msra.mxu1 %v4668_v16 }
  0xcc   : > { %4673 = vmatprep.subr.bf16.mxu1 %v4672_v27 }
  0xcd   : > { %4044 = vmatmul.mubr.f32.gmra.mrb[10].mxu1 %v5948_v14  ;;  %v4680_v14 = vpack.c.bf16 %v1352_v4, %v1351_v53  ;;  %v2536_v53 = vld [vmem:[#allocation2 + $0xa9] sm:$0xff] }
  0xce   : > { %4388 = vmatmul.mubr.f32.gmra.mrb[26].mxu0 %v6249_v29  ;;  %4046 = vmatprep.mubr.f32.mxu1 %v5950_v63  ;;  %v2865_v63 = vld [vmem:[%s6591_s3 + $0x410] sm:$0xff] }
  0xcf   : > { %4390 = vmatprep.mubr.f32.mxu0 %v6314_v39  ;;  %4675 = vmatpush3.bf16.msra.mxu1 %v4672_v27  ;;  %v4816_v10 = vpack.c.bf16 %v2866_v26, %v2865_v63  ;;  %v2872_v27 = vld [vmem:[%s6591_s3 + $0x448] sm:$0xff]  ;;  %v2878_v63 = vld [vmem:[%s6591_s3 + $0x478] sm:$0xff] }
  0xd0   : > { %4677 = vmatprep.subr.bf16.mxu1 %v4676_v60  ;;  %v6389_v26 = vld [vmem:[#allocation2 + $0xd9] sm:$0xff] }
  0xd1   : > { %4047 = vmatmul.mubr.f32.gmra.mrb[12].mxu1 %v5964_v48  ;;  %v2527_v48 = vld [vmem:[#allocation2 + $0x39] sm:$0xff] }
  0xd2   : > { %4391 = vmatmul.mubr.f32.gmra.mrb[28].mxu0 %v6326_v44  ;;  %4049 = vmatprep.mubr.f32.mxu1 %v5966_v17  ;;  %v2528_v17 = vld [vmem:[#allocation2 + $0x49] sm:$0xff] }
  0xd3   : > { %4393 = vmatprep.mubr.f32.mxu0 %v2251_v54  ;;  %4679 = vmatpush3.bf16.msra.mxu1 %v4676_v60  ;;  %v2874_v60 = vld [vmem:[%s6591_s3 + $0x458] sm:$0xff]  ;;  %v2876_v54 = vld [vmem:[%s6591_s3 + $0x468] sm:$0xff] }
  0xd4   : > { %4681 = vmatprep.subr.bf16.mxu1 %v4680_v14 }
  0xd5   : > { %4050 = vmatmul.mubr.f32.gmra.mrb[14].mxu1 %v5980_v2  ;;  %v2867_v2 = vld [vmem:[%s6591_s3 + $0x420] sm:$0xff] }
  0xd6   : > { %4394 = vmatmul.mubr.f32.gmra.mrb[30].mxu0 %v5156_v34  ;;  %4052 = vmatprep.mubr.f32.mxu1 %v5982_v56  ;;  %v2529_v56 = vld [vmem:[#allocation2 + $0x51] sm:$0xff]  ;;  %v4820_v16 = vpack.c.bf16 %v2868_v6, %v2867_v2 }
  0xd7   : > { %4428 = vmatprep.mubr.f32.mxu0 %v2526_v43  ;;  %4683 = vmatpush3.bf16.msra.mxu1 %v4680_v14  ;;  %v2538_v14 = vld [vmem:[#allocation2 + $0xc1] sm:$0xff]  ;;  %v6641_v2 = vld [vmem:[#allocation8_spill] sm:$0xff]  ;;  %v6642_v6 = vld [vmem:[#allocation17_spill] sm:$0xff] }
  0xd8   : > { %4844 = vmatprep.subr.bf16.mxu1 %v5361_v8 }
  0xd9   : > { %4053 = vmatmul.mubr.f32.gmra.mrb[16].mxu1 %v5996_v24  ;;  %v2869_v24 = vld [vmem:[%s6591_s3 + $0x430] sm:$0xff] }
  0xda   : > { %4429 = vmatmul.mubr.f32.vlgmr.msra.gmra.mrb[0].mxu0 %v2527_v48  ;;  %4055 = vmatprep.mubr.f32.mxu1 %v5998_v0  ;;  %v2531_v0 = vld [vmem:[#allocation2 + $0x69] sm:$0xff]  ;;  %v4824_v57 = vpack.c.bf16 %v2870_v3, %v2869_v24  ;;  %v6396_v48 = vld [vmem:[#allocation2 + $0xf1] sm:$0xff]  ;;  %v2556_v3 = vld [vmem:[#allocation2 + $0x199] sm:$0xff] }
  0xdb   : > { %4815 = vmatpush3.bf16.msra.mxu0 %v6252_v40  ;;  %4431 = vmatprep.mubr.f32.mxu0 %v2528_v17  ;;  %v2532_v40 = vld [vmem:[#allocation2 + $0x79] sm:$0xff] }
  0xdc   : > { %4817 = vmatprep.subr.bf16.mxu0 %v4816_v10  ;;  %v5157_v17 = vld [vmem:[#allocation2 + $0x159] sm:$0xff] }
  0xdd   : > { %4056 = vmatmul.mubr.f32.gmra.mrb[18].mxu1 %v6012_v9  ;;  %v2871_v9 = vld [vmem:[%s6591_s3 + $0x440] sm:$0xff] }
  0xde   : > { %4432 = vmatmul.mubr.f32.gmra.mrb[2].mxu0 %v2529_v56  ;;  %4058 = vmatprep.mubr.f32.mxu1 %v6016_v28  ;;  %v2533_v28 = vld [vmem:[#allocation2 + $0x81] sm:$0xff]  ;;  %v4828_v51 = vpack.c.bf16 %v2872_v27, %v2871_v9  ;;  %v5159_v56 = vld [vmem:[#allocation2 + $0x171] sm:$0xff] }
  0xdf   : > { %4434 = vmatprep.mubr.f32.mxu0 %v2530_v25  ;;  %4819 = vmatpush3.bf16.msra.mxu0 %v4816_v10  ;;  %v5158_v10 = vld [vmem:[#allocation2 + $0x169] sm:$0xff]  ;;  %v6643_v25 = vld [vmem:[#allocation18_spill] sm:$0xff] }
  0xe0   : > { %4821 = vmatprep.subr.bf16.mxu0 %v4820_v16  ;;  %v6650_v27 = vld [vmem:[#allocation20_spill] sm:$0xff] }
  0xe1   : > { %4059 = vmatmul.mubr.f32.gmra.mrb[20].mxu1 %v6032_v11  ;;  %v2873_v11 = vld [vmem:[%s6591_s3 + $0x450] sm:$0xff] }
  0xe2   : > { %4435 = vmatmul.mubr.f32.gmra.mrb[4].mxu0 %v2531_v0  ;;  %4061 = vmatprep.mubr.f32.mxu1 %v6036_v36  ;;  %v2535_v36 = vld [vmem:[#allocation2 + $0x99] sm:$0xff]  ;;  %v4832_v4 = vpack.c.bf16 %v2874_v60, %v2873_v11 }
  0xe3   : > { %4437 = vmatprep.mubr.f32.mxu0 %v2532_v40  ;;  %4823 = vmatpush3.bf16.msra.mxu0 %v4820_v16  ;;  %v6644_v16 = vld [vmem:[#allocation11_spill] sm:$0xff]  ;;  %v6646_v0 = vld [vmem:[#allocation9_spill] sm:$0xff] }
  0xe4   : > { %4825 = vmatprep.subr.bf16.mxu0 %v4824_v57  ;;  %v6645_v24 = vmax.f32 %v6644_v16, 0.0  ;;  %v6647_v40 = vld [vmem:[#allocation19_spill] sm:$0xff]  ;;  %v6652_v11 = vld [vmem:[#allocation21_spill] sm:$0xff] }
  0xe5   : > { %4062 = vmatmul.mubr.f32.gmra.mrb[22].mxu1 %v6050_v41  ;;  %v2875_v41 = vld [vmem:[%s6591_s3 + $0x460] sm:$0xff] }
  0xe6   : > { %4438 = vmatmul.mubr.f32.gmra.mrb[6].mxu0 %v2533_v28  ;;  %4064 = vmatprep.mubr.f32.mxu1 %v6054_v52  ;;  %v2537_v52 = vld [vmem:[#allocation2 + $0xb1] sm:$0xff]  ;;  %v4836_v43 = vpack.c.bf16 %v2876_v54, %v2875_v41  ;;  %v2557_v28 = vld [vmem:[#allocation2 + $0x1a1] sm:$0xff] }
  0xe7   : > { %4440 = vmatprep.mubr.f32.mxu0 %v2534_v50  ;;  %4827 = vmatpush3.bf16.msra.mxu0 %v4824_v57  ;;  %v6648_v57 = vld [vmem:[#allocation12_spill] sm:$0xff]  ;;  %v2832_v60 = vld [vmem:[#allocation2 + $0x3a] sm:$0xff] }
  0xe8   : > { %4829 = vmatprep.subr.bf16.mxu0 %v4828_v51  ;;  %v6649_v9 = vmax.f32 %v6648_v57, 0.0  ;;  %v2831_v50 = vld [vmem:[#allocation2 + $0x32] sm:$0xff]  ;;  %v2837_v41 = vld [vmem:[#allocation2 + $0x7a] sm:$0xff] }
  0xe9   : > { %4065 = vmatmul.mubr.f32.gmra.mrb[24].mxu1 %v6068_v61  ;;  %v2877_v61 = vld [vmem:[%s6591_s3 + $0x470] sm:$0xff] }
  0xea   : > { %4441 = vmatmul.mubr.f32.gmra.mrb[8].mxu0 %v2535_v36  ;;  %4067 = vmatprep.mubr.f32.mxu1 %v6072_v46  ;;  %v2539_v46 = vld [vmem:[#allocation2 + $0xc9] sm:$0xff]  ;;  %v4840_v34 = vpack.c.bf16 %v2878_v63, %v2877_v61  ;;  %v2839_v54 = vld [vmem:[#allocation2 + $0x92] sm:$0xff] }
  0xeb   : > { %4443 = vmatprep.mubr.f32.mxu0 %v2536_v53  ;;  %4831 = vmatpush3.bf16.msra.mxu0 %v4828_v51  ;;  %v6651_v51 = vld [vmem:[#allocation10_spill] sm:$0xff]  ;;  %v2833_v36 = vld [vmem:[#allocation2 + $0x4a] sm:$0xff]  ;;  %v2834_v53 = vld [vmem:[#allocation2 + $0x52] sm:$0xff] }
  0xec   : > { %4833 = vmatprep.subr.bf16.mxu0 %v4832_v4  ;;  %v2857_v61 = vld [vmem:[#allocation2 + $0x16a] sm:$0xff]  ;;  %v1637_v63 = vld [vmem:[#allocation2 + $0x159] sm:$0xff] }
  0xed   : > { %4068 = vmatmul.mubr.f32.gmra.mrb[26].mxu1 %v6086_v12  ;;  %v6394_v12 = vld [vmem:[#allocation2 + $0xe1] sm:$0xff] }
  0xee   : > { %4444 = vmatmul.mubr.f32.gmra.mrb[10].mxu0 %v2537_v52  ;;  %4070 = vmatprep.mubr.f32.mxu1 %v6090_v58  ;;  %v6402_v58 = vld [vmem:[#allocation2 + $0xf9] sm:$0xff]  ;;  %v2854_v52 = vld [vmem:[#allocation2 + $0x142] sm:$0xff] }
  0xef   : > { %4446 = vmatprep.mubr.f32.mxu0 %v2538_v14  ;;  %4835 = vmatpush3.bf16.msra.mxu0 %v4832_v4  ;;  %v2835_v4 = vld [vmem:[#allocation2 + $0x62] sm:$0xff]  ;;  %v2855_v14 = vld [vmem:[#allocation2 + $0x152] sm:$0xff] }
  0xf0   : > { %4837 = vmatprep.subr.bf16.mxu0 %v4836_v43 }
  0xf1   : > { %4071 = vmatmul.mubr.f32.gmra.mrb[28].mxu1 %v6104_v55  ;;  %v6404_v55 = vld [vmem:[#allocation2 + $0x109] sm:$0xff] }
  0xf2   : > { %4447 = vmatmul.mubr.f32.gmra.mrb[12].mxu0 %v2539_v46  ;;  %4073 = vmatprep.mubr.f32.mxu1 %v6108_v23  ;;  %v6411_v23 = vld [vmem:[#allocation2 + $0x111] sm:$0xff] }
  0xf3   : > { %4449 = vmatprep.mubr.f32.mxu0 %v6389_v26  ;;  %4839 = vmatpush3.bf16.msra.mxu0 %v4836_v43  ;;  %v2856_v43 = vld [vmem:[#allocation2 + $0x15a] sm:$0xff]  ;;  %v2858_v46 = vld [vmem:[#allocation2 + $0x172] sm:$0xff] }
  0xf4   : > { %4841 = vmatprep.subr.bf16.mxu0 %v4840_v34 }
  0xf5   : > { %4074 = vmatmul.mubr.f32.gmra.mrb[30].mxu1 %v6122_v59  ;;  %v6637_v59 = vld [vmem:[#allocation14_spill] sm:$0xff] }
  0xf6   : > { %4450 = vmatmul.mubr.f32.gmra.mrb[14].mxu0 %v6394_v12  ;;  %4108 = vmatprep.mubr.f32.mxu1 %v6014_v32  ;;  %v6413_v32 = vld [vmem:[#allocation2 + $0x121] sm:$0xff] }
  0xf7   : > { %4452 = vmatprep.mubr.f32.mxu0 %v6396_v48  ;;  %4843 = vmatpush3.bf16.msra.mxu0 %v4840_v34  ;;  %v2859_v34 = vld [vmem:[#allocation2 + $0x182] sm:$0xff] }
  0xf9   : > { %4109 = vmatmul.mubr.f32.vlgmr.msra.gmra.mrb[0].mxu1 %v6028_v1  ;;  %v6420_v1 = vld [vmem:[#allocation2 + $0x129] sm:$0xff] }
  0xfa   : > { %4453 = vmatmul.mubr.f32.gmra.mrb[16].mxu0 %v6402_v58  ;;  %4852 = vmatpush3.bf16.msra.mxu1 %v5361_v8  ;;  %v6423_v8 = vld [vmem:[#allocation2 + $0x139] sm:$0xff] }
  0xfb   : > { %4111 = vmatprep.mubr.f32.mxu1 %v6034_v7  ;;  %4455 = vmatprep.mubr.f32.mxu0 %v6404_v55  ;;  %v6430_v7 = vld [vmem:[#allocation2 + $0x141] sm:$0xff] }
  0xfc   : > { %4845 = vmatprep.subr.bf16.mxu1 %v5381_v13 }
  0xfd   : > { %4112 = vmatmul.mubr.f32.gmra.mrb[2].mxu1 %v6047_v33  ;;  %v6433_v33 = vld [vmem:[#allocation2 + $0x151] sm:$0xff] }
  0xfe   : > { %4456 = vmatmul.mubr.f32.gmra.mrb[18].mxu0 %v6411_v23  ;;  %4114 = vmatprep.mubr.f32.mxu1 %v6052_v38  ;;  %v6635_v38 = vld [vmem:[#allocation6_spill] sm:$0xff] }
  0xff   : > { %4458 = vmatprep.mubr.f32.mxu0 %v6413_v32  ;;  %4853 = vmatpush3.bf16.msra.mxu1 %v5381_v13  ;;  %v6636_v13 = vld [vmem:[#allocation13_spill] sm:$0xff] }
 0x100   : > { %4846 = vmatprep.subr.bf16.mxu1 %v5396_v18 }
 0x101   : > { %4115 = vmatmul.mubr.f32.gmra.mrb[4].mxu1 %v6065_v45  ;;  %v6638_v45 = vld [vmem:[#allocation7_spill] sm:$0xff] }
 0x102   : > { %4459 = vmatmul.mubr.f32.gmra.mrb[20].mxu0 %v6420_v1  ;;  %4117 = vmatprep.mubr.f32.mxu1 %v6070_v15  ;;  %v6639_v15 = vld [vmem:[#allocation15_spill] sm:$0xff] }
 0x103   : > { %4461 = vmatprep.mubr.f32.mxu0 %v6423_v8  ;;  %4854 = vmatpush3.bf16.msra.mxu1 %v5396_v18  ;;  %v6640_v18 = vld [vmem:[#allocation16_spill] sm:$0xff] }
 0x104   : > { %4847 = vmatprep.subr.bf16.mxu1 %v6635_v38 }
 0x105   : > { %4118 = vmatmul.mubr.f32.gmra.mrb[6].mxu1 %v6636_v13 }
 0x106   : > { %4462 = vmatmul.mubr.f32.gmra.mrb[22].mxu0 %v6430_v7  ;;  %4120 = vmatprep.mubr.f32.mxu1 %v6637_v59 }
 0x107   : > { %4464 = vmatprep.mubr.f32.mxu0 %v6433_v33  ;;  %4855 = vmatpush3.bf16.msra.mxu1 %v6635_v38 }
 0x108   : > { %4848 = vmatprep.subr.bf16.mxu1 %v6638_v45 }
 0x109   : > { %4121 = vmatmul.mubr.f32.gmra.mrb[8].mxu1 %v6639_v15 }
 0x10a   : > { %4465 = vmatmul.mubr.f32.gmra.mrb[24].mxu0 %v5157_v17  ;;  %4123 = vmatprep.mubr.f32.mxu1 %v6640_v18 }
 0x10b   : > { %4467 = vmatprep.mubr.f32.mxu0 %v5158_v10  ;;  %4856 = vmatpush3.bf16.msra.mxu1 %v6638_v45 }
 0x10c   : > { %4849 = vmatprep.subr.bf16.mxu1 %v6641_v2 }
 0x10d   : > { %4124 = vmatmul.mubr.f32.gmra.mrb[10].mxu1 %v6642_v6 }
 0x10e   : > { %4468 = vmatmul.mubr.f32.gmra.mrb[26].mxu0 %v5159_v56  ;;  %4126 = vmatprep.mubr.f32.mxu1 %v6643_v25 }
 0x10f   : > { %4470 = vmatprep.mubr.f32.mxu0 %v6645_v24  ;;  %4857 = vmatpush3.bf16.msra.mxu1 %v6641_v2 }
 0x110   : > { %4850 = vmatprep.subr.bf16.mxu1 %v6646_v0 }
 0x111   : > { %4127 = vmatmul.mubr.f32.gmra.mrb[12].mxu1 %v6647_v40 }
 0x112   : > { %4471 = vmatmul.mubr.f32.gmra.mrb[28].mxu0 %v6649_v9  ;;  %4129 = vmatprep.mubr.f32.mxu1 %v6650_v27 }
 0x113   : > { %4473 = vmatprep.mubr.f32.mxu0 %v2556_v3  ;;  %4858 = vmatpush3.bf16.msra.mxu1 %v6646_v0 }
 0x114   : > { %4851 = vmatprep.subr.bf16.mxu1 %v6651_v51 }
 0x115   : > { %4130 = vmatmul.mubr.f32.gmra.mrb[14].mxu1 %v6652_v11 }
 0x116   : > { %4474 = vmatmul.mubr.f32.gmra.mrb[30].mxu0 %v2557_v28  ;;  %4132 = vmatprep.mubr.f32.mxu1 %v6152_v21  ;;  %v2836_v21 = vld [vmem:[#allocation2 + $0x6a] sm:$0xff] }
 0x117   : > { %4508 = vmatprep.mubr.f32.mxu0 %v2831_v50  ;;  %4859 = vmatpush3.bf16.msra.mxu1 %v6651_v51 }
 0x119   : > { %4133 = vmatmul.mubr.f32.gmra.mrb[16].mxu1 %v6164_v22  ;;  %v2838_v22 = vld [vmem:[#allocation2 + $0x82] sm:$0xff] }
 0x11a   : > { %4509 = vmatmul.mubr.f32.vlgmr.msra.gmra.mrb[0].mxu0 %v2832_v60  ;;  %4135 = vmatprep.mubr.f32.mxu1 %v6168_v47  ;;  %v2840_v47 = vld [vmem:[#allocation2 + $0x9a] sm:$0xff] }
 0x11b   : > { %4511 = vmatprep.mubr.f32.mxu0 %v2833_v36 }
 0x11d   : > { %4136 = vmatmul.mubr.f32.gmra.mrb[18].mxu1 %v6179_v20  ;;  %v2841_v20 = vld [vmem:[#allocation2 + $0xaa] sm:$0xff] }
 0x11e   : > { %4512 = vmatmul.mubr.f32.gmra.mrb[2].mxu0 %v2834_v53  ;;  %4138 = vmatprep.mubr.f32.mxu1 %v6182_v35  ;;  %v2843_v35 = vld [vmem:[#allocation2 + $0xc2] sm:$0xff] }
 0x11f   : > { %4514 = vmatprep.mubr.f32.mxu0 %v2835_v4 }
 0x121   : > { %4139 = vmatmul.mubr.f32.gmra.mrb[20].mxu1 %v6193_v37  ;;  %v2842_v37 = vld [vmem:[#allocation2 + $0xb2] sm:$0xff] }
 0x122   : > { %4515 = vmatmul.mubr.f32.gmra.mrb[4].mxu0 %v2836_v21  ;;  %4141 = vmatprep.mubr.f32.mxu1 %v6196_v49  ;;  %v2845_v49 = vld [vmem:[#allocation2 + $0xda] sm:$0xff] }
 0x123   : > { %4517 = vmatprep.mubr.f32.mxu0 %v2837_v41 }
 0x125   : > { %4142 = vmatmul.mubr.f32.gmra.mrb[22].mxu1 %v6207_v42  ;;  %v2844_v42 = vld [vmem:[#allocation2 + $0xca] sm:$0xff] }
 0x126   : > { %4518 = vmatmul.mubr.f32.gmra.mrb[6].mxu0 %v2838_v22  ;;  %4144 = vmatprep.mubr.f32.mxu1 %v6210_v5  ;;  %v2847_v5 = vld [vmem:[#allocation2 + $0xf2] sm:$0xff] }
 0x127   : > { %4520 = vmatprep.mubr.f32.mxu0 %v2839_v54 }
 0x129   : > { %4145 = vmatmul.mubr.f32.gmra.mrb[24].mxu1 %v6221_v30  ;;  %v2846_v30 = vld [vmem:[#allocation2 + $0xe2] sm:$0xff] }
 0x12a   : > { %4521 = vmatmul.mubr.f32.gmra.mrb[8].mxu0 %v2840_v47  ;;  %4147 = vmatprep.mubr.f32.mxu1 %v6224_v31  ;;  %v2849_v31 = vld [vmem:[#allocation2 + $0x10a] sm:$0xff] }
 0x12b   : > { %4523 = vmatprep.mubr.f32.mxu0 %v2841_v20 }
 0x12d   : > { %4148 = vmatmul.mubr.f32.gmra.mrb[26].mxu1 %v6235_v62  ;;  %v2848_v62 = vld [vmem:[#allocation2 + $0xfa] sm:$0xff] }
 0x12e   : > { %4524 = vmatmul.mubr.f32.gmra.mrb[10].mxu0 %v2842_v37  ;;  %4150 = vmatprep.mubr.f32.mxu1 %v6238_v19  ;;  %v2851_v19 = vld [vmem:[#allocation2 + $0x122] sm:$0xff] }
 0x12f   : > { %4526 = vmatprep.mubr.f32.mxu0 %v2843_v35 }
 0x131   : > { %4151 = vmatmul.mubr.f32.gmra.mrb[28].mxu1 %v6249_v29  ;;  %v2850_v29 = vld [vmem:[#allocation2 + $0x112] sm:$0xff] }
 0x132   : > { %4527 = vmatmul.mubr.f32.gmra.mrb[12].mxu0 %v2844_v42  ;;  %4153 = vmatprep.mubr.f32.mxu1 %v6314_v39  ;;  %v2852_v39 = vld [vmem:[#allocation2 + $0x12a] sm:$0xff] }
 0x133   : > { %4529 = vmatprep.mubr.f32.mxu0 %v2845_v49 }
 0x135   : > { %4154 = vmatmul.mubr.f32.gmra.mrb[30].mxu1 %v6326_v44  ;;  %v2853_v44 = vld [vmem:[#allocation2 + $0x13a] sm:$0xff] }
 0x136   : > { %4530 = vmatmul.mubr.f32.gmra.mrb[14].mxu0 %v2846_v30  ;;  %4212 = vmatprep.mubr.f32.mxu1 %v6389_v26  ;;  %v1638_v26 = vld [vmem:[#allocation2 + $0x169] sm:$0xff] }
 0x137   : > { %4532 = vmatprep.mubr.f32.mxu0 %v2847_v5 }
 0x139   : > { %4213 = vmatmul.mubr.f32.vlgmr.msra.gmra.mrb[16].mxu1 %v6394_v12  ;;  %v1639_v12 = vld [vmem:[#allocation2 + $0x171] sm:$0xff] }
 0x13a   : > { %4533 = vmatmul.mubr.f32.gmra.mrb[16].mxu0 %v2848_v62  ;;  %4215 = vmatprep.mubr.f32.mxu1 %v6396_v48  ;;  %v2860_v48 = vld [vmem:[#allocation2 + $0x18a] sm:$0xff] }
 0x13b   : > { %4535 = vmatprep.mubr.f32.mxu0 %v2849_v31 }
 0x13d   : > { %4216 = vmatmul.mubr.f32.gmra.mrb[18].mxu1 %v6402_v58  ;;  %v1640_v58 = vld [vmem:[#allocation2 + $0x181] sm:$0xff] }
 0x13e   : > { %4536 = vmatmul.mubr.f32.gmra.mrb[18].mxu0 %v2850_v29  ;;  %4218 = vmatprep.mubr.f32.mxu1 %v6404_v55  ;;  %v2861_v55 = vld [vmem:[#allocation2 + $0x19a] sm:$0xff] }
 0x13f   : > { %4538 = vmatprep.mubr.f32.mxu0 %v2851_v19 }
 0x141   : > { %4219 = vmatmul.mubr.f32.gmra.mrb[20].mxu1 %v6411_v23  ;;  %v1641_v23 = vld [vmem:[#allocation2 + $0x189] sm:$0xff] }
 0x142   : > { %4539 = vmatmul.mubr.f32.gmra.mrb[20].mxu0 %v2852_v39  ;;  %4221 = vmatprep.mubr.f32.mxu1 %v6413_v32  ;;  %v2862_v32 = vld [vmem:[#allocation2 + $0x1a2] sm:$0xff] }
 0x143   : > { %4541 = vmatprep.mubr.f32.mxu0 %v2853_v44 }
 0x145   : > { %4222 = vmatmul.mubr.f32.gmra.mrb[22].mxu1 %v6420_v1 }
 0x146   : > { %4542 = vmatmul.mubr.f32.gmra.mrb[22].mxu0 %v2854_v52  ;;  %4224 = vmatprep.mubr.f32.mxu1 %v6423_v8 }
 0x147   : > { %4544 = vmatprep.mubr.f32.mxu0 %v2855_v14 }
 0x149   : > { %4225 = vmatmul.mubr.f32.gmra.mrb[24].mxu1 %v6430_v7 }
 0x14a   : > { %4545 = vmatmul.mubr.f32.gmra.mrb[24].mxu0 %v2856_v43  ;;  %4227 = vmatprep.mubr.f32.mxu1 %v6433_v33 }
 0x14b   : > { %4547 = vmatprep.mubr.f32.mxu0 %v2857_v61 }
 0x14d   : > { %4228 = vmatmul.mubr.f32.gmra.mrb[26].mxu1 %v1637_v63 }
 0x14e   : > { %4548 = vmatmul.mubr.f32.gmra.mrb[26].mxu0 %v2858_v46  ;;  %4230 = vmatprep.mubr.f32.mxu1 %v1638_v26 }
 0x14f   : > { %4550 = vmatprep.mubr.f32.mxu0 %v2859_v34 }
 0x151   : > { %4231 = vmatmul.mubr.f32.gmra.mrb[28].mxu1 %v1639_v12 }
 0x152   : > { %4551 = vmatmul.mubr.f32.gmra.mrb[28].mxu0 %v2860_v48  ;;  %4233 = vmatprep.mubr.f32.mxu1 %v1640_v58 }
 0x153   : > { %4553 = vmatprep.mubr.f32.mxu0 %v2861_v55 }
 0x155   : > { %4234 = vmatmul.mubr.f32.gmra.mrb[30].mxu1 %v1641_v23 }
 0x156   : > { %4554 = vmatmul.mubr.f32.gmra.mrb[30].mxu0 %v2862_v32 }
 0x1cc   : > { %v4110_v1 = vpop.f32.mrb[0].mxu1 }
 0x1cd   : > { %v1419_v8 = vpop.f32.mrb[1].mxu1 }
 0x1d0   : > { %v4113_v7 = vpop.f32.mrb[2].mxu1 }
 0x1d1   : > { %v1429_v33 = vpop.f32.mrb[3].mxu1 }
 0x1d4   : > { %v4116_v38 = vpop.f32.mrb[4].mxu1 }
 0x1d5   : > { %v1439_v13 = vpop.f32.mrb[5].mxu1 }
 0x1d8   : > { %v4119_v59 = vpop.f32.mrb[6].mxu1 }
 0x1d9   : > { %v1449_v45 = vpop.f32.mrb[7].mxu1 }
 0x1dc   : > { %v4122_v15 = vpop.f32.mrb[8].mxu1 }
 0x1dd   : > { %v1459_v17 = vpop.f32.mrb[9].mxu1 }
 0x1e0   : > { %v4125_v18 = vpop.f32.mrb[10].mxu1 }
 0x1e1   : > { %v6487_v10 = vpop.f32.mrb[11].mxu1 }
 0x1e4   : > { %v6489_v2 = vpop.f32.mrb[12].mxu1 }
 0x1e5   : > { %v6491_v6 = vpop.f32.mrb[13].mxu1 }
 0x1e8   : > { %v6493_v56 = vpop.f32.mrb[14].mxu1 }
 0x1e9   : > { %v6495_v25 = vpop.f32.mrb[15].mxu1 }
 0x1ed   : > { %v4510_v16 = vpop.f32.mrb[0].mxu0 }
 0x1ee   : > { %v4860_v24 = vadd.f32 %v4510_v16, %v4110_v1  ;;  %v2945_v3 = vpop.f32.mrb[1].mxu0 }
 0x1ef   : > { %v4861_v0 = vadd.f32 %v2945_v3, %v1419_v8 }
 0x1f0   : > { %3137 = vst [vmem:[%s6502_s15 + $0x8] sm:$0xff] %v4860_v24  ;;  %v3206_v40 = vmul.f32 %v4860_v24, %v4860_v24 }
 0x1f1   : > { %3136 = vst [vmem:[%s6502_s15] sm:$0xff] %v4861_v0  ;;  %v3168_v57 = vadd.f32 %v4861_v0, %v4860_v24  ;;  %v3205_v9 = vmul.f32 %v4861_v0, %v4861_v0  ;;  %v4513_v27 = vpop.f32.mrb[2].mxu0 }
 0x1f2   : > { %v4862_v28 = vadd.f32 %v4513_v27, %v4113_v7  ;;  %v2955_v50 = vpop.f32.mrb[3].mxu0 }
 0x1f3   : > { %v3237_v51 = vadd.f32 %v3206_v40, %v3205_v9  ;;  %v4863_v11 = vadd.f32 %v2955_v50, %v1429_v33 }
 0x1f4   : > { %3139 = vst [vmem:[%s6502_s15 + $0x18] sm:$0xff] %v4862_v28  ;;  %v3208_v41 = vmul.f32 %v4862_v28, %v4862_v28 }
 0x1f5   : > { %3138 = vst [vmem:[%s6502_s15 + $0x10] sm:$0xff] %v4863_v11  ;;  %v3169_v60 = vadd.f32 %v4863_v11, %v3168_v57  ;;  %v3207_v36 = vmul.f32 %v4863_v11, %v4863_v11  ;;  %v4516_v53 = vpop.f32.mrb[4].mxu0 }
 0x1f6   : > { %v4864_v4 = vadd.f32 %v4516_v53, %v4116_v38  ;;  %v2965_v21 = vpop.f32.mrb[5].mxu0 }
 0x1f7   : > { %v3238_v22 = vadd.f32 %v3237_v51, %v3207_v36  ;;  %v4865_v54 = vadd.f32 %v2965_v21, %v1439_v13  ;;  %v3170_v47 = vadd.f32 %v4862_v28, %v3169_v60 }
 0x1f8   : > { %3141 = vst [vmem:[%s6502_s15 + $0x28] sm:$0xff] %v4864_v4  ;;  %v3210_v5 = vmul.f32 %v4864_v4, %v4864_v4 }
 0x1f9   : > { %3140 = vst [vmem:[%s6502_s15 + $0x20] sm:$0xff] %v4865_v54  ;;  %v3171_v20 = vadd.f32 %v4865_v54, %v3170_v47  ;;  %v3209_v37 = vmul.f32 %v4865_v54, %v4865_v54  ;;  %v3239_v35 = vadd.f32 %v3238_v22, %v3208_v41  ;;  %v4519_v42 = vpop.f32.mrb[6].mxu0 }
 0x1fa   : > { %v4866_v49 = vadd.f32 %v4519_v42, %v4119_v59  ;;  %v2975_v30 = vpop.f32.mrb[7].mxu0 }
 0x1fb   : > { %v3240_v62 = vadd.f32 %v3239_v35, %v3209_v37  ;;  %v4867_v31 = vadd.f32 %v2975_v30, %v1449_v45  ;;  %v3172_v29 = vadd.f32 %v4864_v4, %v3171_v20 }
 0x1fc   : > { %3143 = vst [vmem:[%s6502_s15 + $0x38] sm:$0xff] %v4866_v49  ;;  %v3212_v61 = vmul.f32 %v4866_v49, %v4866_v49 }
 0x1fd   : > { %3142 = vst [vmem:[%s6502_s15 + $0x30] sm:$0xff] %v4867_v31  ;;  %v3173_v19 = vadd.f32 %v4867_v31, %v3172_v29  ;;  %v3211_v39 = vmul.f32 %v4867_v31, %v4867_v31  ;;  %v3241_v44 = vadd.f32 %v3240_v62, %v3210_v5  ;;  %v4522_v52 = vpop.f32.mrb[8].mxu0 }
 0x1fe   : > { %v4868_v14 = vadd.f32 %v4522_v52, %v4122_v15  ;;  %v2985_v43 = vpop.f32.mrb[9].mxu0 }
 0x1ff   : > { %v3242_v63 = vadd.f32 %v3241_v44, %v3211_v39  ;;  %v4869_v46 = vadd.f32 %v2985_v43, %v1459_v17  ;;  %v3174_v26 = vadd.f32 %v4866_v49, %v3173_v19 }
 0x200   : > { %3145 = vst [vmem:[%s6502_s15 + $0x48] sm:$0xff] %v4868_v14  ;;  %v3214_v32 = vmul.f32 %v4868_v14, %v4868_v14 }
 0x201   : > { %3144 = vst [vmem:[%s6502_s15 + $0x40] sm:$0xff] %v4869_v46  ;;  %v3175_v34 = vadd.f32 %v4869_v46, %v3174_v26  ;;  %v3213_v12 = vmul.f32 %v4869_v46, %v4869_v46  ;;  %v3243_v48 = vadd.f32 %v3242_v63, %v3212_v61  ;;  %v4525_v58 = vpop.f32.mrb[10].mxu0 }
 0x202   : > { %v4870_v55 = vadd.f32 %v4525_v58, %v4125_v18  ;;  %v2995_v23 = vpop.f32.mrb[11].mxu0 }
 0x203   : > { %v3244_v1 = vadd.f32 %v3243_v48, %v3213_v12  ;;  %v4871_v8 = vadd.f32 %v2995_v23, %v6487_v10  ;;  %v3176_v7 = vadd.f32 %v4868_v14, %v3175_v34 }
 0x204   : > { %3147 = vst [vmem:[%s6502_s15 + $0x58] sm:$0xff] %v4870_v55  ;;  %v3216_v17 = vmul.f32 %v4870_v55, %v4870_v55 }
 0x205   : > { %3146 = vst [vmem:[%s6502_s15 + $0x50] sm:$0xff] %v4871_v8  ;;  %v3177_v33 = vadd.f32 %v4871_v8, %v3176_v7  ;;  %v3215_v38 = vmul.f32 %v4871_v8, %v4871_v8  ;;  %v3245_v13 = vadd.f32 %v3244_v1, %v3214_v32  ;;  %v4528_v59 = vpop.f32.mrb[12].mxu0 }
 0x206   : > { %v4872_v45 = vadd.f32 %v4528_v59, %v6489_v2  ;;  %v3005_v15 = vpop.f32.mrb[13].mxu0 }
 0x207   : > { %v3246_v18 = vadd.f32 %v3245_v13, %v3215_v38  ;;  %v4873_v16 = vadd.f32 %v3005_v15, %v6491_v6  ;;  %v3178_v24 = vadd.f32 %v4870_v55, %v3177_v33 }
 0x208   : > { %3149 = vst [vmem:[%s6502_s15 + $0x68] sm:$0xff] %v4872_v45  ;;  %v3218_v27 = vmul.f32 %v4872_v45, %v4872_v45 }
 0x209   : > { %3148 = vst [vmem:[%s6502_s15 + $0x60] sm:$0xff] %v4873_v16  ;;  %v3179_v10 = vadd.f32 %v4873_v16, %v3178_v24  ;;  %v3217_v3 = vmul.f32 %v4873_v16, %v4873_v16  ;;  %v3247_v0 = vadd.f32 %v3246_v18, %v3216_v17  ;;  %v4531_v40 = vpop.f32.mrb[14].mxu0 }
 0x20a   : > { %v4874_v57 = vadd.f32 %v4531_v40, %v6493_v56  ;;  %v3015_v9 = vpop.f32.mrb[15].mxu0 }
 0x20b   : > { %v3248_v28 = vadd.f32 %v3247_v0, %v3217_v3  ;;  %v4875_v2 = vadd.f32 %v3015_v9, %v6495_v25  ;;  %v3180_v50 = vadd.f32 %v4872_v45, %v3179_v10 }
 0x20c   : > { %3151 = vst [vmem:[%s6502_s15 + $0x78] sm:$0xff] %v4874_v57  ;;  %v4214_v6 = vpop.f32.mrb[16].mxu1  ;;  %v3220_v41 = vmul.f32 %v4874_v57, %v4874_v57 }
 0x20d   : > { %3150 = vst [vmem:[%s6502_s15 + $0x70] sm:$0xff] %v4875_v2  ;;  %v3181_v51 = vadd.f32 %v4875_v2, %v3180_v50  ;;  %v3219_v11 = vmul.f32 %v4875_v2, %v4875_v2  ;;  %v3249_v60 = vadd.f32 %v3248_v28, %v3218_v27  ;;  %v4534_v36 = vpop.f32.mrb[16].mxu0  ;;  %v1804_v53 = vpop.f32.mrb[17].mxu1 }
 0x20e   : > { %v4876_v4 = vadd.f32 %v4534_v36, %v4214_v6  ;;  %v3025_v21 = vpop.f32.mrb[17].mxu0 }
 0x20f   : > { %v3250_v56 = vadd.f32 %v3249_v60, %v3219_v11  ;;  %v4877_v22 = vadd.f32 %v3025_v21, %v1804_v53  ;;  %v3182_v54 = vadd.f32 %v4874_v57, %v3181_v51 }
 0x210   : > { %3153 = vst [vmem:[%s6502_s15 + $0x88] sm:$0xff] %v4876_v4  ;;  %v4217_v25 = vpop.f32.mrb[18].mxu1  ;;  %v3222_v5 = vmul.f32 %v4876_v4, %v4876_v4 }
 0x211   : > { %3152 = vst [vmem:[%s6502_s15 + $0x80] sm:$0xff] %v4877_v22  ;;  %v3183_v47 = vadd.f32 %v4877_v22, %v3182_v54  ;;  %v3221_v20 = vmul.f32 %v4877_v22, %v4877_v22  ;;  %v3251_v37 = vadd.f32 %v3250_v56, %v3220_v41  ;;  %v4537_v35 = vpop.f32.mrb[18].mxu0  ;;  %v1814_v42 = vpop.f32.mrb[19].mxu1 }
 0x212   : > { %v4878_v49 = vadd.f32 %v4537_v35, %v4217_v25  ;;  %v3035_v30 = vpop.f32.mrb[19].mxu0 }
 0x213   : > { %v3252_v62 = vadd.f32 %v3251_v37, %v3221_v20  ;;  %v4879_v31 = vadd.f32 %v3035_v30, %v1814_v42  ;;  %v3184_v29 = vadd.f32 %v4876_v4, %v3183_v47 }
 0x214   : > { %3155 = vst [vmem:[%s6502_s15 + $0x98] sm:$0xff] %v4878_v49  ;;  %v4220_v19 = vpop.f32.mrb[20].mxu1  ;;  %v3224_v46 = vmul.f32 %v4878_v49, %v4878_v49 }
 0x215   : > { %3154 = vst [vmem:[%s6502_s15 + $0x90] sm:$0xff] %v4879_v31  ;;  %v3185_v39 = vadd.f32 %v4879_v31, %v3184_v29  ;;  %v3223_v44 = vmul.f32 %v4879_v31, %v4879_v31  ;;  %v3253_v52 = vadd.f32 %v3252_v62, %v3222_v5  ;;  %v4540_v14 = vpop.f32.mrb[20].mxu0  ;;  %v1824_v43 = vpop.f32.mrb[21].mxu1 }
 0x216   : > { %v4880_v61 = vadd.f32 %v4540_v14, %v4220_v19  ;;  %v3045_v63 = vpop.f32.mrb[21].mxu0 }
 0x217   : > { %v3254_v26 = vadd.f32 %v3253_v52, %v3223_v44  ;;  %v4881_v34 = vadd.f32 %v3045_v63, %v1824_v43  ;;  %v3186_v12 = vadd.f32 %v4878_v49, %v3185_v39 }
 0x218   : > { %3157 = vst [vmem:[%s6502_s15 + $0xa8] sm:$0xff] %v4880_v61  ;;  %v4223_v48 = vpop.f32.mrb[22].mxu1  ;;  %v3226_v33 = vmul.f32 %v4880_v61, %v4880_v61 }
 0x219   : > { %3156 = vst [vmem:[%s6502_s15 + $0xa0] sm:$0xff] %v4881_v34  ;;  %v3187_v58 = vadd.f32 %v4881_v34, %v3186_v12  ;;  %v3225_v55 = vmul.f32 %v4881_v34, %v4881_v34  ;;  %v3255_v23 = vadd.f32 %v3254_v26, %v3224_v46  ;;  %v4543_v32 = vpop.f32.mrb[22].mxu0  ;;  %v1834_v1 = vpop.f32.mrb[23].mxu1 }
 0x21a   : > { %v4882_v8 = vadd.f32 %v4543_v32, %v4223_v48  ;;  %v3055_v7 = vpop.f32.mrb[23].mxu0 }
 0x21b   : > { %v3256_v38 = vadd.f32 %v3255_v23, %v3225_v55  ;;  %v4883_v13 = vadd.f32 %v3055_v7, %v1834_v1  ;;  %v3188_v59 = vadd.f32 %v4880_v61, %v3187_v58 }
 0x21c   : > { %3159 = vst [vmem:[%s6502_s15 + $0xb8] sm:$0xff] %v4882_v8  ;;  %v4226_v45 = vpop.f32.mrb[24].mxu1  ;;  %v3228_v0 = vmul.f32 %v4882_v8, %v4882_v8 }
 0x21d   : > { %3158 = vst [vmem:[%s6502_s15 + $0xb0] sm:$0xff] %v4883_v13  ;;  %v3189_v15 = vadd.f32 %v4883_v13, %v3188_v59  ;;  %v3227_v17 = vmul.f32 %v4883_v13, %v4883_v13  ;;  %v3257_v18 = vadd.f32 %v3256_v38, %v3226_v33  ;;  %v4546_v16 = vpop.f32.mrb[24].mxu0  ;;  %v1844_v24 = vpop.f32.mrb[25].mxu1 }
 0x21e   : > { %v4884_v10 = vadd.f32 %v4546_v16, %v4226_v45  ;;  %v3065_v3 = vpop.f32.mrb[25].mxu0 }
 0x21f   : > { %v3258_v40 = vadd.f32 %v3257_v18, %v3227_v17  ;;  %v4885_v57 = vadd.f32 %v3065_v3, %v1844_v24  ;;  %v3190_v9 = vadd.f32 %v4882_v8, %v3189_v15  ;;  %v3274_v8 = vlaneseq }
 0x220   : > { %3161 = vst [vmem:[%s6502_s15 + $0xc8] sm:$0xff] %v4884_v10  ;;  %v4229_v27 = vpop.f32.mrb[26].mxu1  ;;  %v3230_v36 = vmul.f32 %v4884_v10, %v4884_v10 }
 0x221   : > { %3160 = vst [vmem:[%s6502_s15 + $0xc0] sm:$0xff] %v4885_v57  ;;  %v3191_v28 = vadd.f32 %v4885_v57, %v3190_v9  ;;  %v3229_v2 = vmul.f32 %v4885_v57, %v4885_v57  ;;  %v3259_v50 = vadd.f32 %v3258_v40, %v3228_v0  ;;  %v4549_v6 = vpop.f32.mrb[26].mxu0  ;;  %v1854_v51 = vpop.f32.mrb[27].mxu1  ;;  %v3275_v59 = vshrl.u32 %v3274_v8, 7 }
 0x222   : > { %v4886_v11 = vadd.f32 %v4549_v6, %v4229_v27  ;;  %v3075_v60 = vpop.f32.mrb[27].mxu0 }
 0x223   : > { %v3260_v53 = vadd.f32 %v3259_v50, %v3229_v2  ;;  %v4887_v4 = vadd.f32 %v3075_v60, %v1854_v51  ;;  %v3192_v21 = vadd.f32 %v4884_v10, %v3191_v28  ;;  %vm3277_vm0 = vcmp.eq.s32.totalorder %v3275_v59, 1 }
 0x224   : > { %3163 = vst [vmem:[%s6502_s15 + $0xd8] sm:$0xff] %v4886_v11  ;;  %v4232_v41 = vpop.f32.mrb[28].mxu1  ;;  %v3232_v35 = vmul.f32 %v4886_v11, %v4886_v11  ;;  %vm3276_vm1 = vcmp.eq.s32.totalorder %v3275_v59, 0 }
 0x225   : > { %3162 = vst [vmem:[%s6502_s15 + $0xd0] sm:$0xff] %v4887_v4  ;;  %v3193_v56 = vadd.f32 %v4887_v4, %v3192_v21  ;;  %v3231_v22 = vmul.f32 %v4887_v4, %v4887_v4  ;;  %v3261_v54 = vadd.f32 %v3260_v53, %v3230_v36  ;;  %v4552_v25 = vpop.f32.mrb[28].mxu0  ;;  %v1864_v47 = vpop.f32.mrb[29].mxu1 }
 0x226   : > { %v4888_v20 = vadd.f32 %v4552_v25, %v4232_v41  ;;  %v3085_v37 = vpop.f32.mrb[29].mxu0 }
 0x227   : > { %v3262_v42 = vadd.f32 %v3261_v54, %v3231_v22  ;;  %v4889_v49 = vadd.f32 %v3085_v37, %v1864_v47  ;;  %v3194_v30 = vadd.f32 %v4886_v11, %v3193_v56 }
 0x228   : > { %3165 = vst [vmem:[%s6502_s15 + $0xe8] sm:$0xff] %v4888_v20  ;;  %v4235_v5 = vpop.f32.mrb[30].mxu1  ;;  %v3234_v14 = vmul.f32 %v4888_v20, %v4888_v20 }
 0x229   : > { %3164 = vst [vmem:[%s6502_s15 + $0xe0] sm:$0xff] %v4889_v49  ;;  %v3195_v62 = vadd.f32 %v4889_v49, %v3194_v30  ;;  %v3233_v31 = vmul.f32 %v4889_v49, %v4889_v49  ;;  %v3263_v29 = vadd.f32 %v3262_v42, %v3232_v35  ;;  %v4555_v19 = vpop.f32.mrb[30].mxu0  ;;  %v1874_v39 = vpop.f32.mrb[31].mxu1 }
 0x22a   : > { %v4890_v44 = vadd.f32 %v4555_v19, %v4235_v5  ;;  %v3095_v52 = vpop.f32.mrb[31].mxu0 }
 0x22b   : > { %v3264_v43 = vadd.f32 %v3263_v29, %v3233_v31  ;;  %v4891_v61 = vadd.f32 %v3095_v52, %v1874_v39  ;;  %v3196_v63 = vadd.f32 %v4888_v20, %v3195_v62 }
 0x22c   : > { %3167 = vst [vmem:[%s6502_s15 + $0xf8] sm:$0xff] %v4890_v44  ;;  %v3236_v12 = vmul.f32 %v4890_v44, %v4890_v44 }
 0x22d   : > { %3166 = vst [vmem:[%s6502_s15 + $0xf0] sm:$0xff] %v4891_v61  ;;  %v3197_v46 = vadd.f32 %v4891_v61, %v3196_v63  ;;  %v3235_v26 = vmul.f32 %v4891_v61, %v4891_v61  ;;  %v3265_v34 = vadd.f32 %v3264_v43, %v3234_v14 }
 0x22f   : > { %v3198_v48 = vadd.f32 %v4890_v44, %v3197_v46  ;;  %v3266_v58 = vadd.f32 %v3265_v34, %v3235_v26 }
 0x231   : > { %v3199_v55 = vrot.slane %v3198_v48, 4  ;;  %v3267_v23 = vadd.f32 %v3266_v58, %v3236_v12 }
 0x233   : > { %v3200_v32 = vadd.f32 %v3199_v55, %v3198_v48  ;;  %v3268_v1 = vrot.slane %v3267_v23, 4 }
 0x235   : > { %v3201_v7 = vrot.slane %v3200_v32, 2  ;;  %v3269_v33 = vadd.f32 %v3268_v1, %v3267_v23 }
 0x237   : > { %v3202_v38 = vadd.f32 %v3201_v7, %v3200_v32  ;;  %v3270_v13 = vrot.slane %v3269_v33, 2 }
 0x239   : > { %v3271_v45 = vadd.f32 %v3270_v13, %v3269_v33  ;;  %v3203_v15 = vrot.slane %v3202_v38, 1 }
 0x23b   : > { %v3272_v17 = vrot.slane %v3271_v45, 1  ;;  %v3204_v16 = vadd.f32 %v3203_v15, %v3202_v38 }
 0x23d   : > { %v3273_v18 = vadd.f32 %v3272_v17, %v3271_v45 }
 0x23f   : > { %v3278_v24 = vsel %vm3277_vm0, %v3273_v18, 0.0 }
 0x240   : > { %v3279_v10 = vsel %vm3276_vm1, %v3204_v16, %v3278_v24 }
 0x241   : > { %3280 = vst [vmem:[%s225_s17] sm:$0xff] %v3279_v10 }
 0x242   : > { %5173 = shalt.err (!%p5170_p3)
}
 0x243   : > { %s5174_s11 = scalar_lea.hbm %s6546_s10, 128  ;;  %s5178_s15 = scalar_lea.hbm %s6593_s5, 256 }
 0x244   : > { %p5175_p4 = scmp.ne.s32.totalorder %s6546_s10, %s5174_s11  ;;  %p5179_p9 = scmp.lt.u32.totalorder %s6546_s10, %s6593_s5 }
 0x245   : > { %p5180_p10 = scmp.lt.u32.totalorder %s5178_s15, %s5174_s11  ;;  %p5182_p12 = scmp.lt.u32.totalorder %s5174_s11, %s6546_s10 }
 0x246   : > { %p5176_p7 = pnand %p5175_p4, %p5294_p5 }
 0x247   : > { %p5181_p11 = por %p5180_p10, %p5179_p9 }
 0x248   : > { %p5177_p8 = pneg %p5176_p7 }
 0x249   : > { %p5183_p13 = por %p5182_p12, %p5181_p11 }
 0x24b   : > { %p5184_p0 = pnand %p5183_p13, %p5177_p8 }
 0x24d   : > { %5187 = shalt.err (!%p5184_p0)
}
 0x24e   : > { %5116 = dma.vmem_to_hbm [thread:$0]  (%p5294_p5), %s6548_s23, 128, %s6546_s10, %s3287_s30  }
 0x24f PF: > { %p5122_p1 = scmp.ge.s32.totalorder %s5222_s21, 2  ;;  %s3323_s16 = sand.u32 1, %s5210_s18  }
 0x250   : > { %s3324_s17 = scalar_lea.sflag [#allocation4], %s3323_s16 }
 0x251   : > { %p5119_p2 = pnand %p5122_p1, %p5298_p6 }
 0x253   : > { %5205 = dma.done.wait (!%p5119_p2), %s3324_s17, 128  }
 0x254   : > { %5207 = vsyncadd (!%p5119_p2), %s3324_s17, 4294967168  ;;  %p16_p3 = scmp.ge.s32.totalorder %s5281_s24, 4   ;;  %s6653_s18 = smov %s5214_s19 }
 0x255   : > { %s6654_s19 = smov %s5218_s20  ;;  %s6655_s20 = smov %s5292_s27 }
 0x256   : > { %s6656_s21 = smov %s5281_s24  ;;  %18 = sbr.rel (!%p16_p3) target bundleno = 3 (0x3), region = 86 }
 0x25d   :  { %3329 = vsyncpa [#allocation4], 1 }
 0x25e   :  { %3331 = vsyncpa [#allocation4 + $0x1], 1 }

</bundles_post_ra>
